<compile_context>
chip_gen: v7x
topology: tpu7x:2x2x1
jax: 0.10.0
libtpu: 0.0.40
codegen_flags: <defaults>
</compile_context>

<pallas_src>
import functools
import math

import jax
import jax.numpy as jnp
from jax.experimental import pallas as pl
from jax.experimental.pallas import tpu as pltpu


def _round_up(v, m):
    return (v + m - 1) // m * m


# --------------------------------------------------------------------------------------
# Fused conv-as-matmul kernel:  y = act((x @ w) [* scale] + shift)  + optional epilogues.
#   mode "plain":       out = y
#   mode "sum_halves":  out = y[:, :half] + y[:, half:2*half]          (A_conv2 + B_conv2)
#   mode "add_max":     out = y + max(extras...)                       (conv + maxpool add)
#   mode "dual_max":    out = (y, max(extras...), y + max(extras...))  (A_pool2 stage)
# --------------------------------------------------------------------------------------
def _fused_mm_kernel(*refs, relu, mode, n_extras, has_scale, half):
    idx = 0
    x_ref = refs[idx]; idx += 1
    w_ref = refs[idx]; idx += 1
    if has_scale:
        s_ref = refs[idx]; idx += 1
    b_ref = refs[idx]; idx += 1
    extra_refs = refs[idx:idx + n_extras]; idx += n_extras
    out_refs = refs[idx:]

    y = jnp.dot(x_ref[...], w_ref[...], preferred_element_type=jnp.float32)
    if has_scale:
        y = y * s_ref[...]
    y = y + b_ref[...]
    if relu:
        y = jnp.maximum(y, 0.0)

    if n_extras:
        m = extra_refs[0][...]
        for e in extra_refs[1:]:
            m = jnp.maximum(m, e[...])

    if mode == "plain":
        out_refs[0][...] = y
    elif mode == "sum_halves":
        out_refs[0][...] = y[:, :half] + y[:, half:2 * half]
    elif mode == "add_max":
        out_refs[0][...] = y + m
    elif mode == "dual_max":
        out_refs[0][...] = y
        out_refs[1][...] = m
        out_refs[2][...] = y + m


def fused_conv_mm(x, w, scale, shift, *, relu, extras=(), mode="plain", tile_m=256):
    """Row-tiled (x @ w) with folded BN scale/shift and fused epilogues.

    x: (M, K) im2col patches, w: (K, N).  Operands cast to bf16 (f32 accumulation);
    scale/shift/extras stay f32.  K padded to 16, N to 128 (lane-dense output).
    """
    M, K = x.shape
    K2, N = w.shape
    assert K == K2
    Kp = _round_up(K, 16)
    Np = _round_up(N, 128)
    Mp8 = _round_up(M, 8)
    if Mp8 > tile_m:
        tm = tile_m
        Mp = _round_up(M, tm)
    else:
        tm = Mp8
        Mp = Mp8
    grid = Mp // tm

    xp = jnp.pad(x.astype(jnp.bfloat16), ((0, Mp - M), (0, Kp - K)))
    wp = jnp.pad(w.astype(jnp.bfloat16), ((0, Kp - K), (0, Np - N)))

    inputs = [xp, wp]
    in_specs = [pl.BlockSpec((tm, Kp), lambda i: (i, 0)),
                pl.BlockSpec((Kp, Np), lambda i: (0, 0))]
    has_scale = scale is not None
    if has_scale:
        sp = jnp.pad(scale.astype(jnp.float32).reshape(1, N), ((0, 0), (0, Np - N)))
        inputs.append(sp)
        in_specs.append(pl.BlockSpec((1, Np), lambda i: (0, 0)))
    bp = jnp.pad(shift.astype(jnp.float32).reshape(1, N), ((0, 0), (0, Np - N)))
    inputs.append(bp)
    in_specs.append(pl.BlockSpec((1, Np), lambda i: (0, 0)))
    for e in extras:
        ep = jnp.pad(e.astype(jnp.float32), ((0, Mp - M), (0, Np - N)))
        inputs.append(ep)
        in_specs.append(pl.BlockSpec((tm, Np), lambda i: (i, 0)))

    half = N // 2
    if mode == "dual_max":
        n_out, out_w = 3, Np
    elif mode == "sum_halves":
        assert N == Np, "sum_halves expects a 128-multiple output width"
        n_out, out_w = 1, half
    else:
        n_out, out_w = 1, Np

    out_shape = tuple(jax.ShapeDtypeStruct((Mp, out_w), jnp.float32) for _ in range(n_out))
    out_specs = tuple(pl.BlockSpec((tm, out_w), lambda i: (i, 0)) for _ in range(n_out))
    if n_out == 1:
        out_shape = out_shape[0]
        out_specs = out_specs[0]

    res = pl.pallas_call(
        functools.partial(_fused_mm_kernel, relu=relu, mode=mode,
                          n_extras=len(extras), has_scale=has_scale, half=half),
        grid=(grid,),
        in_specs=in_specs,
        out_specs=out_specs,
        out_shape=out_shape,
        compiler_params=pltpu.CompilerParams(dimension_semantics=("parallel",)),
    )(*inputs)

    if mode == "dual_max":
        return tuple(r[:M, :N] for r in res)
    if mode == "sum_halves":
        return res[:M, :half]
    return res[:M, :N]


# --------------------------------- pooling helpers ------------------------------------

def _pool_views_2x2(x_nhwc, padding=0):
    """4 shifted views (B, Ho*Wo, C) of a 2x2/stride-2 max-pool window decomposition."""
    B, H, W, C = x_nhwc.shape
    if padding:
        x_nhwc = jnp.pad(
            x_nhwc, ((0, 0), (padding, padding), (padding, padding), (0, 0)),
            constant_values=-jnp.inf)
        H += 2 * padding
        W += 2 * padding
    Ho = (H - 2) // 2 + 1
    Wo = (W - 2) // 2 + 1
    views = []
    for dy in range(2):
        for dx in range(2):
            v = x_nhwc[:, dy:dy + 2 * (Ho - 1) + 1:2, dx:dx + 2 * (Wo - 1) + 1:2, :]
            views.append(v.reshape(B, Ho * Wo, C).astype(jnp.float32))
    return views, (B, Ho, Wo, C)


def _max4_kernel(a_ref, b_ref, c_ref, d_ref, o_ref):
    o_ref[...] = jnp.maximum(jnp.maximum(a_ref[...], b_ref[...]),
                             jnp.maximum(c_ref[...], d_ref[...]))


def maxpool_2x2(x_nhwc, padding=0):
    views, (B, Ho, Wo, C) = _pool_views_2x2(x_nhwc, padding)
    out = pl.pallas_call(
        _max4_kernel,
        out_shape=jax.ShapeDtypeStruct((B, Ho * Wo, C), jnp.float32),
    )(*views)
    return out.reshape(B, Ho, Wo, C)


# --------------------------------- conv via im2col -------------------------------------

def _im2col(x_nhwc, k, stride, padding):
    B, H, W, Cin = x_nhwc.shape
    if padding:
        x_nhwc = jnp.pad(x_nhwc, ((0, 0), (padding, padding), (padding, padding), (0, 0)))
        H += 2 * padding
        W += 2 * padding
    Ho = (H - k) // stride + 1
    Wo = (W - k) // stride + 1
    if k == 1 and stride == 1:
        patches = x_nhwc
    else:
        views = []
        for dy in range(k):
            for dx in range(k):
                views.append(x_nhwc[:, dy:dy + stride * (Ho - 1) + 1:stride,
                                       dx:dx + stride * (Wo - 1) + 1:stride, :])
        patches = jnp.concatenate(views, axis=-1)
    return patches.reshape(B * Ho * Wo, k * k * Cin), Ho, Wo


def conv2d(x_nhwc, p, *, k, stride, padding, relu, extras=(), mode="plain"):
    """Conv2d (+folded BN) (+ReLU) (+fused epilogue) as an im2col matmul kernel."""
    B = x_nhwc.shape[0]
    patches, Ho, Wo = _im2col(x_nhwc, k, stride, padding)
    res = fused_conv_mm(patches, p["w"], p["scale"], p["shift"],
                        relu=relu, extras=extras, mode=mode)
    if mode == "dual_max":
        return tuple(r.reshape(B, Ho, Wo, -1) for r in res)
    return res.reshape(B, Ho, Wo, -1)


# ---------------------------- fused 2x (2-layer) LSTM kernel ---------------------------

def _lstm_fused_kernel(x_ref, wih0_ref, whh0_ref, b0_ref,
                       wih1_ref, whh1_ref, b1_ref, out_ref, g_ref, *, batch):
    """Two independent 2-layer LSTMs fused block-diagonally (fused hidden H=32, gates 4H=128).

    x_ref/out_ref: (T*B, H) flattened time-major.  g_ref: (T*B, 4H) scratch holding the
    hoisted input projection for every timestep.  PyTorch gate order (i, f, g, o), gate
    columns interleaved per gate so plain H-wide slices separate the gates.
    """
    TB, H = x_ref.shape
    if batch >= 8:
        chunk_rows, steps = batch, 1
    else:
        chunk_rows, steps = 8, 8 // batch
    n_chunks = TB // chunk_rows

    def run_layer(in_ref, wih, whh, bias):
        # Hoisted input projection for all timesteps: one big MXU matmul instead of
        # T tiny ones on the serial critical path.
        g_ref[...] = jnp.dot(in_ref[...], wih,
                             preferred_element_type=jnp.float32) + bias

        def body(j, carry):
            h, c = carry
            base = pl.multiple_of(j * chunk_rows, 8)
            gchunk = g_ref[pl.ds(base, chunk_rows), :]          # aligned (chunk_rows, 4H)
            hs = []
            for s in range(steps):                              # unrolled sub-steps
                g = (gchunk[s * batch:(s + 1) * batch, :]
                     + jnp.dot(h, whh, preferred_element_type=jnp.float32))
                i = jax.nn.sigmoid(g[:, 0:H])
                f = jax.nn.sigmoid(g[:, H:2 * H])
                gg = jnp.tanh(g[:, 2 * H:3 * H])
                o = jax.nn.sigmoid(g[:, 3 * H:4 * H])
                c = f * c + i * gg
                h = o * jnp.tanh(c)
                hs.append(h)
            out_ref[pl.ds(base, chunk_rows), :] = (
                hs[0] if steps == 1 else jnp.concatenate(hs, axis=0))
            return (h, c)

        zero = jnp.zeros((batch, H), jnp.float32)
        jax.lax.fori_loop(0, n_chunks, body, (zero, zero))

    run_layer(x_ref, wih0_ref[...], whh0_ref[...], b0_ref[...])
    # Layer-1 projection reads the finished layer-0 outputs from out_ref before the
    # second recurrence overwrites them in place.
    run_layer(out_ref, wih1_ref[...], whh1_ref[...], b1_ref[...])


def lstm_fused(x1_btf, x2_btf, p):
    """Runs both nn.LSTM(16,16,2,batch_first=True) stacks in one fused kernel."""
    B, T, F = x1_btf.shape
    Hf = 2 * F
    assert (B % 8 == 0) or (8 % B == 0), "batch must divide 8 or be a multiple of 8"
    assert (T * B) % max(8, B) == 0
    x = jnp.concatenate([x1_btf, x2_btf], axis=-1)                     # (B, T, 32)
    xt = jnp.transpose(x, (1, 0, 2)).reshape(T * B, Hf).astype(jnp.float32)
    out = pl.pallas_call(
        functools.partial(_lstm_fused_kernel, batch=B),
        out_shape=jax.ShapeDtypeStruct((T * B, Hf), jnp.float32),
        scratch_shapes=[pltpu.VMEM((T * B, 4 * Hf), jnp.float32)],
    )(xt, p["wih0"], p["whh0"], p["b0"], p["wih1"], p["whh1"], p["b1"])
    out = out.reshape(T, B, Hf).transpose(1, 0, 2)                     # (B, T, 32)
    return out[..., :F], out[..., F:]


# --------------------------------------- head ------------------------------------------

def _head_kernel(xg_ref, l0_ref, l1_ref, l2_ref, l3_ref, wt_ref, wb_ref, b_ref, o_ref):
    x1 = jnp.mean(xg_ref[...], axis=1)                                 # AvgPool2d(3) -> (B,256)
    m = jnp.maximum(jnp.maximum(l0_ref[...], l1_ref[...]),
                    jnp.maximum(l2_ref[...], l3_ref[...]))             # label MaxPool2d(2)
    x2 = jnp.mean(m, axis=1)                                           # AvgPool2d(2) -> (B,128)
    o_ref[...] = (jnp.dot(x1, wt_ref[...], preferred_element_type=jnp.float32)
                  + jnp.dot(x2, wb_ref[...], preferred_element_type=jnp.float32)
                  + b_ref[...])


def head_fc(xg_nhwc, label_views, fc):
    B = xg_nhwc.shape[0]
    C = xg_nhwc.shape[-1]
    N = fc["b"].shape[0]
    Np = _round_up(N, 128)
    wt = jnp.pad(fc["w_top"].astype(jnp.float32), ((0, 0), (0, Np - N)))
    wb = jnp.pad(fc["w_bot"].astype(jnp.float32), ((0, 0), (0, Np - N)))
    bb = jnp.pad(fc["b"].astype(jnp.float32).reshape(1, N), ((0, 0), (0, Np - N)))
    xg3 = xg_nhwc.reshape(B, -1, C).astype(jnp.float32)                # (B, 9, 256)
    out = pl.pallas_call(
        _head_kernel,
        out_shape=jax.ShapeDtypeStruct((B, Np), jnp.float32),
    )(xg3, *label_views, wt, wb, bb)
    return out[:, :N]


# ------------------------------------- parameters --------------------------------------

def _conv_param(key, cout, cin, k, bn):
    kw, kb = jax.random.split(key)
    w = 0.1 * jax.random.normal(kw, (cout, cin, k, k), jnp.float32)    # torch OIHW
    b = 0.05 * jax.random.normal(kb, (cout,), jnp.float32)
    wm = jnp.transpose(w, (2, 3, 1, 0)).reshape(k * k * cin, cout)     # im2col (kh*kw*Cin, Cout)
    if bn:  # eval-mode BN (mean=0, var=1, gamma=1, beta=0) folded into scale/shift
        s = 1.0 / math.sqrt(1.0 + 1e-5)
        return {"w": wm, "scale": jnp.full((cout,), s, jnp.float32), "shift": b * s}
    return {"w": wm, "scale": None, "shift": b}


def _merge_convs(p1, p2):
    scale = None
    if p1["scale"] is not None:
        scale = jnp.concatenate([p1["scale"], p2["scale"]])
    return {"w": jnp.concatenate([p1["w"], p2["w"]], axis=1),
            "scale": scale,
            "shift": jnp.concatenate([p1["shift"], p2["shift"]])}


def _lstm_params(key, input_size=16, hidden=16):
    ks = jax.random.split(key, 8)
    mk = lambda k, s: 0.1 * jax.random.normal(k, s, jnp.float32)
    return {"wih0": mk(ks[0], (input_size, 4 * hidden)),
            "whh0": mk(ks[1], (hidden, 4 * hidden)),
            "b0": mk(ks[2], (4 * hidden,)) + mk(ks[3], (4 * hidden,)),   # b_ih + b_hh
            "wih1": mk(ks[4], (hidden, 4 * hidden)),
            "whh1": mk(ks[5], (hidden, 4 * hidden)),
            "b1": mk(ks[6], (4 * hidden,)) + mk(ks[7], (4 * hidden,))}


def _fuse_lstm_pair(pa, pb, hidden=16):
    """Block-diagonal fusion of two independent LSTMs into one of width 2*hidden.

    Gate columns are interleaved per gate as [iA iB | fA fB | gA gB | oA oB] so the fused
    kernel separates gates with plain 32-wide slices of the 128-wide gate vector.
    """
    H = hidden

    def fuse_w(w1, w2):
        R = w1.shape[0]
        out = jnp.zeros((2 * R, 8 * H), jnp.float32)
        for g in range(4):
            out = out.at[:R, (2 * g) * H:(2 * g + 1) * H].set(w1[:, g * H:(g + 1) * H])
            out = out.at[R:, (2 * g + 1) * H:(2 * g + 2) * H].set(w2[:, g * H:(g + 1) * H])
        return out

    def fuse_b(b1, b2):
        parts = []
        for g in range(4):
            parts.append(b1[g * H:(g + 1) * H])
            parts.append(b2[g * H:(g + 1) * H])
        return jnp.concatenate(parts).reshape(1, 8 * H)

    return {"wih0": fuse_w(pa["wih0"], pb["wih0"]),
            "whh0": fuse_w(pa["whh0"], pb["whh0"]),
            "b0": fuse_b(pa["b0"], pb["b0"]),
            "wih1": fuse_w(pa["wih1"], pb["wih1"]),
            "whh1": fuse_w(pa["whh1"], pb["whh1"]),
            "b1": fuse_b(pa["b1"], pb["b1"])}


def init_params(key, num_class=10):
    ks = jax.random.split(key, 13)
    A_conv1 = _conv_param(ks[0], 16, 1, 3, bn=True)
    B_conv1 = _conv_param(ks[1], 32, 1, 3, bn=True)
    A_conv2 = _conv_param(ks[2], 64, 32, 3, bn=True)
    B_conv2 = _conv_param(ks[3], 64, 32, 3, bn=True)
    p = {
        "convAB1": _merge_convs(A_conv1, B_conv1),                     # 1 -> 16 | 32
        "convAB2": _merge_convs(A_conv2, B_conv2),                     # 32 -> 64 | 64
        "A_pool1": _conv_param(ks[4], 32, 16, 3, bn=True),
        "A_pool2": _conv_param(ks[5], 128, 64, 3, bn=True),
        "point_conv1": _conv_param(ks[6], 128, 64, 1, bn=False),
        "global_conv": _conv_param(ks[7], 256, 1152, 2, bn=True),
        "convlabel1": _conv_param(ks[8], 32, 1, 3, bn=False),
        "convlabel2": _conv_param(ks[9], 128, 32, 3, bn=False),
        "lstm_fused": _fuse_lstm_pair(_lstm_params(ks[10]), _lstm_params(ks[11])),
    }
    kw, kb = jax.random.split(ks[12])
    w_fc = 0.1 * jax.random.normal(kw, (num_class, 384), jnp.float32)  # torch Linear (out, in)
    b_fc = 0.05 * jax.random.normal(kb, (num_class,), jnp.float32)
    w = (w_fc * (1.0 / math.sqrt(1.0 + 1e-5))).T                       # fold eval BatchNorm1d
    p["fc"] = {"w_top": w[:256], "w_bot": w[256:], "b": b_fc}
    return p


# --------------------------------------- forward ---------------------------------------

def multimoding2017_forward(params, input_data):
    """input_data: (B, 1, 548) float32 -- 484 'pcap' values followed by 64 'label' values."""
    B = input_data.shape[0]

    # ---- featureslabel ----
    xl = input_data[:, 0, 484:].reshape(B, 8, 8, 1)                    # NHWC
    xl = conv2d(xl, params["convlabel1"], k=3, stride=1, padding=1, relu=True)  # (B,8,8,32)
    xl = maxpool_2x2(xl)                                               # (B,4,4,32)
    xl = conv2d(xl, params["convlabel2"], k=3, stride=1, padding=1, relu=True)  # (B,4,4,128)
    label_views, _ = _pool_views_2x2(xl)                               # 4 x (B,4,128)

    # ---- featurespcap ----
    xp = input_data[:, 0, :484].reshape(B, 22, 22, 1)                  # NHWC
    ab1 = conv2d(xp, params["convAB1"], k=3, stride=1, padding=1, relu=True)    # (B,22,22,48)
    a1, b1 = ab1[..., :16], ab1[..., 16:]
    bp1_views, _ = _pool_views_2x2(b1)                                 # MaxPool2d(2) of B_conv1
    add1 = conv2d(a1, params["A_pool1"], k=3, stride=2, padding=1, relu=True,
                  extras=[v.reshape(-1, v.shape[-1]) for v in bp1_views],
                  mode="add_max")                                      # (B,11,11,32)
    add2 = conv2d(add1, params["convAB2"], k=3, stride=1, padding=1, relu=True,
                  mode="sum_halves")                                   # (B,11,11,64)
    bpt = conv2d(add2, params["point_conv1"], k=1, stride=1, padding=0, relu=False)  # (B,11,11,128)
    bp2_views, _ = _pool_views_2x2(bpt, padding=1)                     # MaxPool2d(2, padding=1)
    ap2, bp2, x_add = conv2d(add2, params["A_pool2"], k=3, stride=2, padding=1, relu=True,
                             extras=[v.reshape(-1, v.shape[-1]) for v in bp2_views],
                             mode="dual_max")                          # each (B,6,6,128)

    # cat on channel, then flatten in NCHW memory order to match torch .view(B,-1,16)
    out1 = jnp.transpose(jnp.concatenate([ap2, x_add], axis=-1), (0, 3, 1, 2)).reshape(B, -1, 16)
    out2 = jnp.transpose(jnp.concatenate([bp2, x_add], axis=-1), (0, 3, 1, 2)).reshape(B, -1, 16)

    a_out, b_out = lstm_fused(out1, out2, params["lstm_fused"])        # (B,576,16) x 2
    out = jnp.concatenate([a_out, b_out], axis=1)                      # (B,1152,16)
    out = jnp.transpose(out.reshape(B, 1152, 4, 4), (0, 2, 3, 1))      # NHWC (B,4,4,1152)
    xg = conv2d(out, params["global_conv"], k=2, stride=2, padding=1, relu=True)  # (B,3,3,256)

    # ---- head: AvgPool(3) | label MaxPool(2)+AvgPool(2) | BN1d+Dropout(eval)+Linear ----
    return head_fc(xg, label_views, params["fc"])                      # (B, num_class)


# ----------------------------------------- main ----------------------------------------

if __name__ == "__main__":
    key = jax.random.PRNGKey(0)
    k_params, k_x = jax.random.split(key)
    params = init_params(k_params, num_class=10)
    x = jax.random.normal(k_x, (2, 1, 548), jnp.float32)   # batch=2, (484 pcap + 64 label)

    fwd = jax.jit(multimoding2017_forward)
    y = fwd(params, x)
    jax.block_until_ready(y)
    assert y.shape == (2, 10) and y.dtype == jnp.float32
    assert bool(jnp.all(jnp.isfinite(y)))
    print("KERNEL_OK")
</pallas_src>

<mosaic_0001>
module attributes {stable_mosaic.version = 11 : i64} {
  func.func @_fused_mm_kernel(%arg0: i32, %arg1: memref<256x16xbf16, #tpu.memory_space<vmem>>, %arg2: memref<16x128xbf16, #tpu.memory_space<vmem>>, %arg3: memref<1x128xf32, #tpu.memory_space<vmem>>, %arg4: memref<1x128xf32, #tpu.memory_space<vmem>>, %arg5: memref<256x128xf32, #tpu.memory_space<vmem>>) attributes {dimension_semantics = [#tpu.dimension_semantics<parallel>], iteration_bounds = array<i64: 4>, scalar_prefetch = 0 : i64, scratch_operands = 0 : i64, tpu.core_type = #tpu.core_type<tc>, window_params = [{transform_indices = @transform_0, window_bounds = array<i64: 256, 16>}, {pipeline_mode = #tpu.pipeline_mode<synchronous>, transform_indices = @transform_1, window_bounds = array<i64: 16, 128>}, {pipeline_mode = #tpu.pipeline_mode<synchronous>, transform_indices = @transform_2, window_bounds = array<i64: 1, 128>}, {pipeline_mode = #tpu.pipeline_mode<synchronous>, transform_indices = @transform_3, window_bounds = array<i64: 1, 128>}, {transform_indices = @transform_4, window_bounds = array<i64: 256, 128>}]} {
    %c0 = arith.constant 0 : index
    %c0_0 = arith.constant 0 : index
    %0 = vector.load %arg1[%c0, %c0_0] : memref<256x16xbf16, #tpu.memory_space<vmem>>, vector<256x16xbf16>
    %c0_1 = arith.constant 0 : index
    %c0_2 = arith.constant 0 : index
    %1 = vector.load %arg2[%c0_1, %c0_2] : memref<16x128xbf16, #tpu.memory_space<vmem>>, vector<16x128xbf16>
    %cst = arith.constant dense<0.000000e+00> : vector<256x128xf32>
    %2 = tpu.matmul %0, %1, %cst {dimension_numbers = #tpu.dot_dimension_numbers<[1], [0], [0], [1], [0, 0, 1, 1], [], []>} : vector<256x16xbf16>, vector<16x128xbf16>, vector<256x128xf32> -> vector<256x128xf32>
    %c0_3 = arith.constant 0 : index
    %c0_4 = arith.constant 0 : index
    %3 = vector.load %arg3[%c0_3, %c0_4] : memref<1x128xf32, #tpu.memory_space<vmem>>, vector<1x128xf32>
    %4 = vector.broadcast %3 : vector<1x128xf32> to vector<256x128xf32>
    %5 = arith.mulf %2, %4 : vector<256x128xf32>
    %c0_5 = arith.constant 0 : index
    %c0_6 = arith.constant 0 : index
    %6 = vector.load %arg4[%c0_5, %c0_6] : memref<1x128xf32, #tpu.memory_space<vmem>>, vector<1x128xf32>
    %7 = vector.broadcast %6 : vector<1x128xf32> to vector<256x128xf32>
    %8 = arith.addf %5, %7 : vector<256x128xf32>
    %cst_7 = arith.constant 0.000000e+00 : f32
    %9 = vector.broadcast %cst_7 : f32 to vector<256x128xf32>
    %10 = arith.maximumf %8, %9 : vector<256x128xf32>
    %c0_8 = arith.constant 0 : index
    %c0_9 = arith.constant 0 : index
    %11 = vector.load %arg5[%c0_8, %c0_9] : memref<256x128xf32, #tpu.memory_space<vmem>>, vector<256x128xf32>
    tpu.vector_store %arg5[%c0_8, %c0_9], %10 {strides = array<i32>} : memref<256x128xf32, #tpu.memory_space<vmem>>, vector<256x128xf32>,
    return
  }
  func.func @transform_0(%arg0: i32) -> (i32, i32) {
    %c0_i32 = arith.constant 0 : i32
    %c0_i32_0 = arith.constant 0 : i32
    return %arg0, %c0_i32 : i32, i32
  }
  func.func @transform_1(%arg0: i32) -> (i32, i32) {
    %c0_i32 = arith.constant 0 : i32
    %c0_i32_0 = arith.constant 0 : i32
    %c0_i32_1 = arith.constant 0 : i32
    return %c0_i32, %c0_i32_0 : i32, i32
  }
  func.func @transform_2(%arg0: i32) -> (i32, i32) {
    %c0_i32 = arith.constant 0 : i32
    %c0_i32_0 = arith.constant 0 : i32
    %c0_i32_1 = arith.constant 0 : i32
    return %c0_i32, %c0_i32_0 : i32, i32
  }
  func.func @transform_3(%arg0: i32) -> (i32, i32) {
    %c0_i32 = arith.constant 0 : i32
    %c0_i32_0 = arith.constant 0 : i32
    %c0_i32_1 = arith.constant 0 : i32
    return %c0_i32, %c0_i32_0 : i32, i32
  }
  func.func @transform_4(%arg0: i32) -> (i32, i32) {
    %c0_i32 = arith.constant 0 : i32
    %c0_i32_0 = arith.constant 0 : i32
    return %arg0, %c0_i32 : i32, i32
  }
}

module attributes {stable_mosaic.version = 11 : i64} {
  func.func @_fused_mm_kernel(%arg0: i32, %arg1: memref<248x144xbf16, #tpu.memory_space<vmem>>, %arg2: memref<144x128xbf16, #tpu.memory_space<vmem>>, %arg3: memref<1x128xf32, #tpu.memory_space<vmem>>, %arg4: memref<1x128xf32, #tpu.memory_space<vmem>>, %arg5: memref<248x128xf32, #tpu.memory_space<vmem>>, %arg6: memref<248x128xf32, #tpu.memory_space<vmem>>, %arg7: memref<248x128xf32, #tpu.memory_space<vmem>>, %arg8: memref<248x128xf32, #tpu.memory_space<vmem>>, %arg9: memref<248x128xf32, #tpu.memory_space<vmem>>) attributes {dimension_semantics = [#tpu.dimension_semantics<parallel>], iteration_bounds = array<i64: 1>, scalar_prefetch = 0 : i64, scratch_operands = 0 : i64, tpu.core_type = #tpu.core_type<tc>, window_params = [{transform_indices = @transform_0, window_bounds = array<i64: 248, 144>}, {pipeline_mode = #tpu.pipeline_mode<synchronous>, transform_indices = @transform_1, window_bounds = array<i64: 144, 128>}, {pipeline_mode = #tpu.pipeline_mode<synchronous>, transform_indices = @transform_2, window_bounds = array<i64: 1, 128>}, {pipeline_mode = #tpu.pipeline_mode<synchronous>, transform_indices = @transform_3, window_bounds = array<i64: 1, 128>}, {transform_indices = @transform_4, window_bounds = array<i64: 248, 128>}, {transform_indices = @transform_5, window_bounds = array<i64: 248, 128>}, {transform_indices = @transform_6, window_bounds = array<i64: 248, 128>}, {transform_indices = @transform_7, window_bounds = array<i64: 248, 128>}, {transform_indices = @transform_8, window_bounds = array<i64: 248, 128>}]} {
    %c0 = arith.constant 0 : index
    %c0_0 = arith.constant 0 : index
    %0 = vector.load %arg1[%c0, %c0_0] : memref<248x144xbf16, #tpu.memory_space<vmem>>, vector<248x144xbf16>
    %c0_1 = arith.constant 0 : index
    %c0_2 = arith.constant 0 : index
    %1 = vector.load %arg2[%c0_1, %c0_2] : memref<144x128xbf16, #tpu.memory_space<vmem>>, vector<144x128xbf16>
    %cst = arith.constant dense<0.000000e+00> : vector<248x128xf32>
    %2 = tpu.matmul %0, %1, %cst {dimension_numbers = #tpu.dot_dimension_numbers<[1], [0], [0], [1], [0, 0, 1, 1], [], []>} : vector<248x144xbf16>, vector<144x128xbf16>, vector<248x128xf32> -> vector<248x128xf32>
    %c0_3 = arith.constant 0 : index
    %c0_4 = arith.constant 0 : index
    %3 = vector.load %arg3[%c0_3, %c0_4] : memref<1x128xf32, #tpu.memory_space<vmem>>, vector<1x128xf32>
    %4 = vector.broadcast %3 : vector<1x128xf32> to vector<248x128xf32>
    %5 = arith.mulf %2, %4 : vector<248x128xf32>
    %c0_5 = arith.constant 0 : index
    %c0_6 = arith.constant 0 : index
    %6 = vector.load %arg4[%c0_5, %c0_6] : memref<1x128xf32, #tpu.memory_space<vmem>>, vector<1x128xf32>
    %7 = vector.broadcast %6 : vector<1x128xf32> to vector<248x128xf32>
    %8 = arith.addf %5, %7 : vector<248x128xf32>
    %cst_7 = arith.constant 0.000000e+00 : f32
    %9 = vector.broadcast %cst_7 : f32 to vector<248x128xf32>
    %10 = arith.maximumf %8, %9 : vector<248x128xf32>
    %c0_8 = arith.constant 0 : index
    %c0_9 = arith.constant 0 : index
    %11 = vector.load %arg5[%c0_8, %c0_9] : memref<248x128xf32, #tpu.memory_space<vmem>>, vector<248x128xf32>
    %c0_10 = arith.constant 0 : index
    %c0_11 = arith.constant 0 : index
    %12 = vector.load %arg6[%c0_10, %c0_11] : memref<248x128xf32, #tpu.memory_space<vmem>>, vector<248x128xf32>
    %13 = arith.maximumf %11, %12 : vector<248x128xf32>
    %c0_12 = arith.constant 0 : index
    %c0_13 = arith.constant 0 : index
    %14 = vector.load %arg7[%c0_12, %c0_13] : memref<248x128xf32, #tpu.memory_space<vmem>>, vector<248x128xf32>
    %15 = arith.maximumf %13, %14 : vector<248x128xf32>
    %c0_14 = arith.constant 0 : index
    %c0_15 = arith.constant 0 : index
    %16 = vector.load %arg8[%c0_14, %c0_15] : memref<248x128xf32, #tpu.memory_space<vmem>>, vector<248x128xf32>
    %17 = arith.maximumf %15, %16 : vector<248x128xf32>
    %18 = arith.addf %10, %17 : vector<248x128xf32>
    %c0_16 = arith.constant 0 : index
    %c0_17 = arith.constant 0 : index
    %19 = vector.load %arg9[%c0_16, %c0_17] : memref<248x128xf32, #tpu.memory_space<vmem>>, vector<248x128xf32>
    tpu.vector_store %arg9[%c0_16, %c0_17], %18 {strides = array<i32>} : memref<248x128xf32, #tpu.memory_space<vmem>>, vector<248x128xf32>,
    return
  }
  func.func @transform_0(%arg0: i32) -> (i32, i32) {
    %c0_i32 = arith.constant 0 : i32
    %c0_i32_0 = arith.constant 0 : i32
    return %arg0, %c0_i32 : i32, i32
  }
  func.func @transform_1(%arg0: i32) -> (i32, i32) {
    %c0_i32 = arith.constant 0 : i32
    %c0_i32_0 = arith.constant 0 : i32
    %c0_i32_1 = arith.constant 0 : i32
    return %c0_i32, %c0_i32_0 : i32, i32
  }
  func.func @transform_2(%arg0: i32) -> (i32, i32) {
    %c0_i32 = arith.constant 0 : i32
    %c0_i32_0 = arith.constant 0 : i32
    %c0_i32_1 = arith.constant 0 : i32
    return %c0_i32, %c0_i32_0 : i32, i32
  }
  func.func @transform_3(%arg0: i32) -> (i32, i32) {
    %c0_i32 = arith.constant 0 : i32
    %c0_i32_0 = arith.constant 0 : i32
    %c0_i32_1 = arith.constant 0 : i32
    return %c0_i32, %c0_i32_0 : i32, i32
  }
  func.func @transform_4(%arg0: i32) -> (i32, i32) {
    %c0_i32 = arith.constant 0 : i32
    %c0_i32_0 = arith.constant 0 : i32
    return %arg0, %c0_i32 : i32, i32
  }
  func.func @transform_5(%arg0: i32) -> (i32, i32) {
    %c0_i32 = arith.constant 0 : i32
    %c0_i32_0 = arith.constant 0 : i32
    return %arg0, %c0_i32 : i32, i32
  }
  func.func @transform_6(%arg0: i32) -> (i32, i32) {
    %c0_i32 = arith.constant 0 : i32
    %c0_i32_0 = arith.constant 0 : i32
    return %arg0, %c0_i32 : i32, i32
  }
  func.func @transform_7(%arg0: i32) -> (i32, i32) {
    %c0_i32 = arith.constant 0 : i32
    %c0_i32_0 = arith.constant 0 : i32
    return %arg0, %c0_i32 : i32, i32
  }
  func.func @transform_8(%arg0: i32) -> (i32, i32) {
    %c0_i32 = arith.constant 0 : i32
    %c0_i32_0 = arith.constant 0 : i32
    return %arg0, %c0_i32 : i32, i32
  }
}

module attributes {stable_mosaic.version = 11 : i64} {
  func.func @_fused_mm_kernel(%arg0: i32, %arg1: memref<248x288xbf16, #tpu.memory_space<vmem>>, %arg2: memref<288x128xbf16, #tpu.memory_space<vmem>>, %arg3: memref<1x128xf32, #tpu.memory_space<vmem>>, %arg4: memref<1x128xf32, #tpu.memory_space<vmem>>, %arg5: memref<248x64xf32, #tpu.memory_space<vmem>>) attributes {dimension_semantics = [#tpu.dimension_semantics<parallel>], iteration_bounds = array<i64: 1>, scalar_prefetch = 0 : i64, scratch_operands = 0 : i64, tpu.core_type = #tpu.core_type<tc>, window_params = [{transform_indices = @transform_0, window_bounds = array<i64: 248, 288>}, {pipeline_mode = #tpu.pipeline_mode<synchronous>, transform_indices = @transform_1, window_bounds = array<i64: 288, 128>}, {pipeline_mode = #tpu.pipeline_mode<synchronous>, transform_indices = @transform_2, window_bounds = array<i64: 1, 128>}, {pipeline_mode = #tpu.pipeline_mode<synchronous>, transform_indices = @transform_3, window_bounds = array<i64: 1, 128>}, {transform_indices = @transform_4, window_bounds = array<i64: 248, 64>}]} {
    %c0 = arith.constant 0 : index
    %c0_0 = arith.constant 0 : index
    %0 = vector.load %arg1[%c0, %c0_0] : memref<248x288xbf16, #tpu.memory_space<vmem>>, vector<248x288xbf16>
    %c0_1 = arith.constant 0 : index
    %c0_2 = arith.constant 0 : index
    %1 = vector.load %arg2[%c0_1, %c0_2] : memref<288x128xbf16, #tpu.memory_space<vmem>>, vector<288x128xbf16>
    %cst = arith.constant dense<0.000000e+00> : vector<248x128xf32>
    %2 = tpu.matmul %0, %1, %cst {dimension_numbers = #tpu.dot_dimension_numbers<[1], [0], [0], [1], [0, 0, 1, 1], [], []>} : vector<248x288xbf16>, vector<288x128xbf16>, vector<248x128xf32> -> vector<248x128xf32>
    %c0_3 = arith.constant 0 : index
    %c0_4 = arith.constant 0 : index
    %3 = vector.load %arg3[%c0_3, %c0_4] : memref<1x128xf32, #tpu.memory_space<vmem>>, vector<1x128xf32>
    %4 = vector.broadcast %3 : vector<1x128xf32> to vector<248x128xf32>
    %5 = arith.mulf %2, %4 : vector<248x128xf32>
    %c0_5 = arith.constant 0 : index
    %c0_6 = arith.constant 0 : index
    %6 = vector.load %arg4[%c0_5, %c0_6] : memref<1x128xf32, #tpu.memory_space<vmem>>, vector<1x128xf32>
    %7 = vector.broadcast %6 : vector<1x128xf32> to vector<248x128xf32>
    %8 = arith.addf %5, %7 : vector<248x128xf32>
    %cst_7 = arith.constant 0.000000e+00 : f32
    %9 = vector.broadcast %cst_7 : f32 to vector<248x128xf32>
    %10 = arith.maximumf %8, %9 : vector<248x128xf32>
    %11 = vector.extract_strided_slice %10 {offsets = [0, 0], sizes = [248, 64], strides = [1, 1]} : vector<248x128xf32> to vector<248x64xf32>
    %12 = vector.extract_strided_slice %10 {offsets = [0, 64], sizes = [248, 64], strides = [1, 1]} : vector<248x128xf32> to vector<248x64xf32>
    %13 = arith.addf %11, %12 : vector<248x64xf32>
    %c0_8 = arith.constant 0 : index
    %c0_9 = arith.constant 0 : index
    %14 = vector.load %arg5[%c0_8, %c0_9] : memref<248x64xf32, #tpu.memory_space<vmem>>, vector<248x64xf32>
    tpu.vector_store %arg5[%c0_8, %c0_9], %13 {strides = array<i32>} : memref<248x64xf32, #tpu.memory_space<vmem>>, vector<248x64xf32>,
    return
  }
  func.func @transform_0(%arg0: i32) -> (i32, i32) {
    %c0_i32 = arith.constant 0 : i32
    %c0_i32_0 = arith.constant 0 : i32
    return %arg0, %c0_i32 : i32, i32
  }
  func.func @transform_1(%arg0: i32) -> (i32, i32) {
    %c0_i32 = arith.constant 0 : i32
    %c0_i32_0 = arith.constant 0 : i32
    %c0_i32_1 = arith.constant 0 : i32
    return %c0_i32, %c0_i32_0 : i32, i32
  }
  func.func @transform_2(%arg0: i32) -> (i32, i32) {
    %c0_i32 = arith.constant 0 : i32
    %c0_i32_0 = arith.constant 0 : i32
    %c0_i32_1 = arith.constant 0 : i32
    return %c0_i32, %c0_i32_0 : i32, i32
  }
  func.func @transform_3(%arg0: i32) -> (i32, i32) {
    %c0_i32 = arith.constant 0 : i32
    %c0_i32_0 = arith.constant 0 : i32
    %c0_i32_1 = arith.constant 0 : i32
    return %c0_i32, %c0_i32_0 : i32, i32
  }
  func.func @transform_4(%arg0: i32) -> (i32, i32) {
    %c0_i32 = arith.constant 0 : i32
    %c0_i32_0 = arith.constant 0 : i32
    return %arg0, %c0_i32 : i32, i32
  }
}

module attributes {stable_mosaic.version = 11 : i64} {
  func.func @_fused_mm_kernel(%arg0: i32, %arg1: memref<248x64xbf16, #tpu.memory_space<vmem>>, %arg2: memref<64x128xbf16, #tpu.memory_space<vmem>>, %arg3: memref<1x128xf32, #tpu.memory_space<vmem>>, %arg4: memref<248x128xf32, #tpu.memory_space<vmem>>) attributes {dimension_semantics = [#tpu.dimension_semantics<parallel>], iteration_bounds = array<i64: 1>, scalar_prefetch = 0 : i64, scratch_operands = 0 : i64, tpu.core_type = #tpu.core_type<tc>, window_params = [{transform_indices = @transform_0, window_bounds = array<i64: 248, 64>}, {pipeline_mode = #tpu.pipeline_mode<synchronous>, transform_indices = @transform_1, window_bounds = array<i64: 64, 128>}, {pipeline_mode = #tpu.pipeline_mode<synchronous>, transform_indices = @transform_2, window_bounds = array<i64: 1, 128>}, {transform_indices = @transform_3, window_bounds = array<i64: 248, 128>}]} {
    %c0 = arith.constant 0 : index
    %c0_0 = arith.constant 0 : index
    %0 = vector.load %arg1[%c0, %c0_0] : memref<248x64xbf16, #tpu.memory_space<vmem>>, vector<248x64xbf16>
    %c0_1 = arith.constant 0 : index
    %c0_2 = arith.constant 0 : index
    %1 = vector.load %arg2[%c0_1, %c0_2] : memref<64x128xbf16, #tpu.memory_space<vmem>>, vector<64x128xbf16>
    %cst = arith.constant dense<0.000000e+00> : vector<248x128xf32>
    %2 = tpu.matmul %0, %1, %cst {dimension_numbers = #tpu.dot_dimension_numbers<[1], [0], [0], [1], [0, 0, 1, 1], [], []>} : vector<248x64xbf16>, vector<64x128xbf16>, vector<248x128xf32> -> vector<248x128xf32>
    %c0_3 = arith.constant 0 : index
    %c0_4 = arith.constant 0 : index
    %3 = vector.load %arg3[%c0_3, %c0_4] : memref<1x128xf32, #tpu.memory_space<vmem>>, vector<1x128xf32>
    %4 = vector.broadcast %3 : vector<1x128xf32> to vector<248x128xf32>
    %5 = arith.addf %2, %4 : vector<248x128xf32>
    %c0_5 = arith.constant 0 : index
    %c0_6 = arith.constant 0 : index
    %6 = vector.load %arg4[%c0_5, %c0_6] : memref<248x128xf32, #tpu.memory_space<vmem>>, vector<248x128xf32>
    tpu.vector_store %arg4[%c0_5, %c0_6], %5 {strides = array<i32>} : memref<248x128xf32, #tpu.memory_space<vmem>>, vector<248x128xf32>,
    return
  }
  func.func @transform_0(%arg0: i32) -> (i32, i32) {
    %c0_i32 = arith.constant 0 : i32
    %c0_i32_0 = arith.constant 0 : i32
    return %arg0, %c0_i32 : i32, i32
  }
  func.func @transform_1(%arg0: i32) -> (i32, i32) {
    %c0_i32 = arith.constant 0 : i32
    %c0_i32_0 = arith.constant 0 : i32
    %c0_i32_1 = arith.constant 0 : i32
    return %c0_i32, %c0_i32_0 : i32, i32
  }
  func.func @transform_2(%arg0: i32) -> (i32, i32) {
    %c0_i32 = arith.constant 0 : i32
    %c0_i32_0 = arith.constant 0 : i32
    %c0_i32_1 = arith.constant 0 : i32
    return %c0_i32, %c0_i32_0 : i32, i32
  }
  func.func @transform_3(%arg0: i32) -> (i32, i32) {
    %c0_i32 = arith.constant 0 : i32
    %c0_i32_0 = arith.constant 0 : i32
    return %arg0, %c0_i32 : i32, i32
  }
}

module attributes {stable_mosaic.version = 11 : i64} {
  func.func @_fused_mm_kernel(%arg0: i32, %arg1: memref<72x576xbf16, #tpu.memory_space<vmem>>, %arg2: memref<576x128xbf16, #tpu.memory_space<vmem>>, %arg3: memref<1x128xf32, #tpu.memory_space<vmem>>, %arg4: memref<1x128xf32, #tpu.memory_space<vmem>>, %arg5: memref<72x128xf32, #tpu.memory_space<vmem>>, %arg6: memref<72x128xf32, #tpu.memory_space<vmem>>, %arg7: memref<72x128xf32, #tpu.memory_space<vmem>>, %arg8: memref<72x128xf32, #tpu.memory_space<vmem>>, %arg9: memref<72x128xf32, #tpu.memory_space<vmem>>, %arg10: memref<72x128xf32, #tpu.memory_space<vmem>>, %arg11: memref<72x128xf32, #tpu.memory_space<vmem>>) attributes {dimension_semantics = [#tpu.dimension_semantics<parallel>], iteration_bounds = array<i64: 1>, scalar_prefetch = 0 : i64, scratch_operands = 0 : i64, tpu.core_type = #tpu.core_type<tc>, window_params = [{transform_indices = @transform_0, window_bounds = array<i64: 72, 576>}, {pipeline_mode = #tpu.pipeline_mode<synchronous>, transform_indices = @transform_1, window_bounds = array<i64: 576, 128>}, {pipeline_mode = #tpu.pipeline_mode<synchronous>, transform_indices = @transform_2, window_bounds = array<i64: 1, 128>}, {pipeline_mode = #tpu.pipeline_mode<synchronous>, transform_indices = @transform_3, window_bounds = array<i64: 1, 128>}, {transform_indices = @transform_4, window_bounds = array<i64: 72, 128>}, {transform_indices = @transform_5, window_bounds = array<i64: 72, 128>}, {transform_indices = @transform_6, window_bounds = array<i64: 72, 128>}, {transform_indices = @transform_7, window_bounds = array<i64: 72, 128>}, {transform_indices = @transform_8, window_bounds = array<i64: 72, 128>}, {transform_indices = @transform_9, window_bounds = array<i64: 72, 128>}, {transform_indices = @transform_10, window_bounds = array<i64: 72, 128>}]} {
    %c0 = arith.constant 0 : index
    %c0_0 = arith.constant 0 : index
    %0 = vector.load %arg1[%c0, %c0_0] : memref<72x576xbf16, #tpu.memory_space<vmem>>, vector<72x576xbf16>
    %c0_1 = arith.constant 0 : index
    %c0_2 = arith.constant 0 : index
    %1 = vector.load %arg2[%c0_1, %c0_2] : memref<576x128xbf16, #tpu.memory_space<vmem>>, vector<576x128xbf16>
    %cst = arith.constant dense<0.000000e+00> : vector<72x128xf32>
    %2 = tpu.matmul %0, %1, %cst {dimension_numbers = #tpu.dot_dimension_numbers<[1], [0], [0], [1], [0, 0, 1, 1], [], []>} : vector<72x576xbf16>, vector<576x128xbf16>, vector<72x128xf32> -> vector<72x128xf32>
    %c0_3 = arith.constant 0 : index
    %c0_4 = arith.constant 0 : index
    %3 = vector.load %arg3[%c0_3, %c0_4] : memref<1x128xf32, #tpu.memory_space<vmem>>, vector<1x128xf32>
    %4 = vector.broadcast %3 : vector<1x128xf32> to vector<72x128xf32>
    %5 = arith.mulf %2, %4 : vector<72x128xf32>
    %c0_5 = arith.constant 0 : index
    %c0_6 = arith.constant 0 : index
    %6 = vector.load %arg4[%c0_5, %c0_6] : memref<1x128xf32, #tpu.memory_space<vmem>>, vector<1x128xf32>
    %7 = vector.broadcast %6 : vector<1x128xf32> to vector<72x128xf32>
    %8 = arith.addf %5, %7 : vector<72x128xf32>
    %cst_7 = arith.constant 0.000000e+00 : f32
    %9 = vector.broadcast %cst_7 : f32 to vector<72x128xf32>
    %10 = arith.maximumf %8, %9 : vector<72x128xf32>
    %c0_8 = arith.constant 0 : index
    %c0_9 = arith.constant 0 : index
    %11 = vector.load %arg5[%c0_8, %c0_9] : memref<72x128xf32, #tpu.memory_space<vmem>>, vector<72x128xf32>
    %c0_10 = arith.constant 0 : index
    %c0_11 = arith.constant 0 : index
    %12 = vector.load %arg6[%c0_10, %c0_11] : memref<72x128xf32, #tpu.memory_space<vmem>>, vector<72x128xf32>
    %13 = arith.maximumf %11, %12 : vector<72x128xf32>
    %c0_12 = arith.constant 0 : index
    %c0_13 = arith.constant 0 : index
    %14 = vector.load %arg7[%c0_12, %c0_13] : memref<72x128xf32, #tpu.memory_space<vmem>>, vector<72x128xf32>
    %15 = arith.maximumf %13, %14 : vector<72x128xf32>
    %c0_14 = arith.constant 0 : index
    %c0_15 = arith.constant 0 : index
    %16 = vector.load %arg8[%c0_14, %c0_15] : memref<72x128xf32, #tpu.memory_space<vmem>>, vector<72x128xf32>
    %17 = arith.maximumf %15, %16 : vector<72x128xf32>
    %c0_16 = arith.constant 0 : index
    %c0_17 = arith.constant 0 : index
    %18 = vector.load %arg9[%c0_16, %c0_17] : memref<72x128xf32, #tpu.memory_space<vmem>>, vector<72x128xf32>
    tpu.vector_store %arg9[%c0_16, %c0_17], %10 {strides = array<i32>} : memref<72x128xf32, #tpu.memory_space<vmem>>, vector<72x128xf32>,
    %c0_18 = arith.constant 0 : index
    %c0_19 = arith.constant 0 : index
    %19 = vector.load %arg10[%c0_18, %c0_19] : memref<72x128xf32, #tpu.memory_space<vmem>>, vector<72x128xf32>
    tpu.vector_store %arg10[%c0_18, %c0_19], %17 {strides = array<i32>} : memref<72x128xf32, #tpu.memory_space<vmem>>, vector<72x128xf32>,
    %20 = arith.addf %10, %17 : vector<72x128xf32>
    %c0_20 = arith.constant 0 : index
    %c0_21 = arith.constant 0 : index
    %21 = vector.load %arg11[%c0_20, %c0_21] : memref<72x128xf32, #tpu.memory_space<vmem>>, vector<72x128xf32>
    tpu.vector_store %arg11[%c0_20, %c0_21], %20 {strides = array<i32>} : memref<72x128xf32, #tpu.memory_space<vmem>>, vector<72x128xf32>,
    return
  }
  func.func @transform_0(%arg0: i32) -> (i32, i32) {
    %c0_i32 = arith.constant 0 : i32
    %c0_i32_0 = arith.constant 0 : i32
    return %arg0, %c0_i32 : i32, i32
  }
  func.func @transform_1(%arg0: i32) -> (i32, i32) {
    %c0_i32 = arith.constant 0 : i32
    %c0_i32_0 = arith.constant 0 : i32
    %c0_i32_1 = arith.constant 0 : i32
    return %c0_i32, %c0_i32_0 : i32, i32
  }
  func.func @transform_2(%arg0: i32) -> (i32, i32) {
    %c0_i32 = arith.constant 0 : i32
    %c0_i32_0 = arith.constant 0 : i32
    %c0_i32_1 = arith.constant 0 : i32
    return %c0_i32, %c0_i32_0 : i32, i32
  }
  func.func @transform_3(%arg0: i32) -> (i32, i32) {
    %c0_i32 = arith.constant 0 : i32
    %c0_i32_0 = arith.constant 0 : i32
    %c0_i32_1 = arith.constant 0 : i32
    return %c0_i32, %c0_i32_0 : i32, i32
  }
  func.func @transform_4(%arg0: i32) -> (i32, i32) {
    %c0_i32 = arith.constant 0 : i32
    %c0_i32_0 = arith.constant 0 : i32
    return %arg0, %c0_i32 : i32, i32
  }
  func.func @transform_5(%arg0: i32) -> (i32, i32) {
    %c0_i32 = arith.constant 0 : i32
    %c0_i32_0 = arith.constant 0 : i32
    return %arg0, %c0_i32 : i32, i32
  }
  func.func @transform_6(%arg0: i32) -> (i32, i32) {
    %c0_i32 = arith.constant 0 : i32
    %c0_i32_0 = arith.constant 0 : i32
    return %arg0, %c0_i32 : i32, i32
  }
  func.func @transform_7(%arg0: i32) -> (i32, i32) {
    %c0_i32 = arith.constant 0 : i32
    %c0_i32_0 = arith.constant 0 : i32
    return %arg0, %c0_i32 : i32, i32
  }
  func.func @transform_8(%arg0: i32) -> (i32, i32) {
    %c0_i32 = arith.constant 0 : i32
    %c0_i32_0 = arith.constant 0 : i32
    return %arg0, %c0_i32 : i32, i32
  }
  func.func @transform_9(%arg0: i32) -> (i32, i32) {
    %c0_i32 = arith.constant 0 : i32
    %c0_i32_0 = arith.constant 0 : i32
    return %arg0, %c0_i32 : i32, i32
  }
  func.func @transform_10(%arg0: i32) -> (i32, i32) {
    %c0_i32 = arith.constant 0 : i32
    %c0_i32_0 = arith.constant 0 : i32
    return %arg0, %c0_i32 : i32, i32
  }
}

module attributes {stable_mosaic.version = 11 : i64} {
  func.func @_lstm_fused_kernel(%arg0: memref<1152x32xf32, #tpu.memory_space<vmem>>, %arg1: memref<32x128xf32, #tpu.memory_space<vmem>>, %arg2: memref<32x128xf32, #tpu.memory_space<vmem>>, %arg3: memref<1x128xf32, #tpu.memory_space<vmem>>, %arg4: memref<32x128xf32, #tpu.memory_space<vmem>>, %arg5: memref<32x128xf32, #tpu.memory_space<vmem>>, %arg6: memref<1x128xf32, #tpu.memory_space<vmem>>, %arg7: memref<1152x32xf32, #tpu.memory_space<vmem>>, %arg8: memref<1152x128xf32, #tpu.memory_space<vmem>>) attributes {dimension_semantics = [], scalar_prefetch = 0 : i64, scratch_operands = 1 : i64, tpu.core_type = #tpu.core_type<tc>} {
    %c0 = arith.constant 0 : index
    %c0_0 = arith.constant 0 : index
    %0 = vector.load %arg1[%c0, %c0_0] : memref<32x128xf32, #tpu.memory_space<vmem>>, vector<32x128xf32>
    %c0_1 = arith.constant 0 : index
    %c0_2 = arith.constant 0 : index
    %1 = vector.load %arg2[%c0_1, %c0_2] : memref<32x128xf32, #tpu.memory_space<vmem>>, vector<32x128xf32>
    %c0_3 = arith.constant 0 : index
    %c0_4 = arith.constant 0 : index
    %2 = vector.load %arg3[%c0_3, %c0_4] : memref<1x128xf32, #tpu.memory_space<vmem>>, vector<1x128xf32>
    %c0_5 = arith.constant 0 : index
    %c0_6 = arith.constant 0 : index
    %3 = vector.load %arg0[%c0_5, %c0_6] : memref<1152x32xf32, #tpu.memory_space<vmem>>, vector<1152x32xf32>
    %cst = arith.constant dense<0.000000e+00> : vector<1152x128xf32>
    %4 = tpu.matmul %3, %0, %cst {dimension_numbers = #tpu.dot_dimension_numbers<[1], [0], [0], [1], [0, 0, 1, 1], [], []>} : vector<1152x32xf32>, vector<32x128xf32>, vector<1152x128xf32> -> vector<1152x128xf32>
    %5 = vector.broadcast %2 : vector<1x128xf32> to vector<1152x128xf32>
    %6 = arith.addf %4, %5 : vector<1152x128xf32>
    %c0_7 = arith.constant 0 : index
    %c0_8 = arith.constant 0 : index
    %7 = vector.load %arg8[%c0_7, %c0_8] : memref<1152x128xf32, #tpu.memory_space<vmem>>, vector<1152x128xf32>
    tpu.vector_store %arg8[%c0_7, %c0_8], %6 {strides = array<i32>} : memref<1152x128xf32, #tpu.memory_space<vmem>>, vector<1152x128xf32>,
    %cst_9 = arith.constant 0.000000e+00 : f32
    %8 = vector.broadcast %cst_9 : f32 to vector<2x32xf32>
    %c0_i32 = arith.constant 0 : i32
    %c144_i32 = arith.constant 144 : i32
    %9 = arith.addi %c0_i32, %c144_i32 : i32
    %c1_i32 = arith.constant 1 : i32
    %10:2 = scf.for %arg9 = %c0_i32 to %9 step %c1_i32 iter_args(%arg10 = %8, %arg11 = %8) -> (vector<2x32xf32>, vector<2x32xf32>)  : i32 {
      %c8_i32 = arith.constant 8 : i32
      %22 = arith.muli %arg9, %c8_i32 : i32
      %23 = tpu.assume_multiple %22, 8 : i32
      %24 = arith.index_cast %23 : i32 to index
      %c0_27 = arith.constant 0 : index
      %25 = vector.load %arg8[%24, %c0_27] : memref<1152x128xf32, #tpu.memory_space<vmem>>, vector<8x128xf32>
      %26 = vector.extract_strided_slice %25 {offsets = [0, 0], sizes = [2, 128], strides = [1, 1]} : vector<8x128xf32> to vector<2x128xf32>
      %cst_28 = arith.constant dense<0.000000e+00> : vector<2x128xf32>
      %27 = tpu.matmul %arg10, %1, %cst_28 {dimension_numbers = #tpu.dot_dimension_numbers<[1], [0], [0], [1], [0, 0, 1, 1], [], []>} : vector<2x32xf32>, vector<32x128xf32>, vector<2x128xf32> -> vector<2x128xf32>
      %28 = arith.addf %26, %27 : vector<2x128xf32>
      %29 = vector.extract_strided_slice %28 {offsets = [0, 0], sizes = [2, 32], strides = [1, 1]} : vector<2x128xf32> to vector<2x32xf32>
      %30 = arith.negf %29 : vector<2x32xf32>
      %31 = math.exp %30 : vector<2x32xf32>
      %cst_29 = arith.constant 1.000000e+00 : f32
      %32 = vector.broadcast %cst_29 : f32 to vector<2x32xf32>
      %33 = arith.addf %32, %31 : vector<2x32xf32>
      %34 = arith.divf %32, %33 : vector<2x32xf32>
      %35 = vector.extract_strided_slice %28 {offsets = [0, 32], sizes = [2, 32], strides = [1, 1]} : vector<2x128xf32> to vector<2x32xf32>
      %36 = arith.negf %35 : vector<2x32xf32>
      %37 = math.exp %36 : vector<2x32xf32>
      %cst_30 = arith.constant 1.000000e+00 : f32
      %38 = vector.broadcast %cst_30 : f32 to vector<2x32xf32>
      %39 = arith.addf %38, %37 : vector<2x32xf32>
      %40 = arith.divf %38, %39 : vector<2x32xf32>
      %41 = vector.extract_strided_slice %28 {offsets = [0, 64], sizes = [2, 32], strides = [1, 1]} : vector<2x128xf32> to vector<2x32xf32>
      %42 = math.tanh %41 : vector<2x32xf32>
      %43 = vector.extract_strided_slice %28 {offsets = [0, 96], sizes = [2, 32], strides = [1, 1]} : vector<2x128xf32> to vector<2x32xf32>
      %44 = arith.negf %43 : vector<2x32xf32>
      %45 = math.exp %44 : vector<2x32xf32>
      %cst_31 = arith.constant 1.000000e+00 : f32
      %46 = vector.broadcast %cst_31 : f32 to vector<2x32xf32>
      %47 = arith.addf %46, %45 : vector<2x32xf32>
      %48 = arith.divf %46, %47 : vector<2x32xf32>
      %49 = arith.mulf %40, %arg11 : vector<2x32xf32>
      %50 = arith.mulf %34, %42 : vector<2x32xf32>
      %51 = arith.addf %49, %50 : vector<2x32xf32>
      %52 = math.tanh %51 : vector<2x32xf32>
      %53 = arith.mulf %48, %52 : vector<2x32xf32>
      %54 = vector.extract_strided_slice %25 {offsets = [2, 0], sizes = [2, 128], strides = [1, 1]} : vector<8x128xf32> to vector<2x128xf32>
      %cst_32 = arith.constant dense<0.000000e+00> : vector<2x128xf32>
      %55 = tpu.matmul %53, %1, %cst_32 {dimension_numbers = #tpu.dot_dimension_numbers<[1], [0], [0], [1], [0, 0, 1, 1], [], []>} : vector<2x32xf32>, vector<32x128xf32>, vector<2x128xf32> -> vector<2x128xf32>
      %56 = arith.addf %54, %55 : vector<2x128xf32>
      %57 = vector.extract_strided_slice %56 {offsets = [0, 0], sizes = [2, 32], strides = [1, 1]} : vector<2x128xf32> to vector<2x32xf32>
      %58 = arith.negf %57 : vector<2x32xf32>
      %59 = math.exp %58 : vector<2x32xf32>
      %cst_33 = arith.constant 1.000000e+00 : f32
      %60 = vector.broadcast %cst_33 : f32 to vector<2x32xf32>
      %61 = arith.addf %60, %59 : vector<2x32xf32>
      %62 = arith.divf %60, %61 : vector<2x32xf32>
      %63 = vector.extract_strided_slice %56 {offsets = [0, 32], sizes = [2, 32], strides = [1, 1]} : vector<2x128xf32> to vector<2x32xf32>
      %64 = arith.negf %63 : vector<2x32xf32>
      %65 = math.exp %64 : vector<2x32xf32>
      %cst_34 = arith.constant 1.000000e+00 : f32
      %66 = vector.broadcast %cst_34 : f32 to vector<2x32xf32>
      %67 = arith.addf %66, %65 : vector<2x32xf32>
      %68 = arith.divf %66, %67 : vector<2x32xf32>
      %69 = vector.extract_strided_slice %56 {offsets = [0, 64], sizes = [2, 32], strides = [1, 1]} : vector<2x128xf32> to vector<2x32xf32>
      %70 = math.tanh %69 : vector<2x32xf32>
      %71 = vector.extract_strided_slice %56 {offsets = [0, 96], sizes = [2, 32], strides = [1, 1]} : vector<2x128xf32> to vector<2x32xf32>
      %72 = arith.negf %71 : vector<2x32xf32>
      %73 = math.exp %72 : vector<2x32xf32>
      %cst_35 = arith.constant 1.000000e+00 : f32
      %74 = vector.broadcast %cst_35 : f32 to vector<2x32xf32>
      %75 = arith.addf %74, %73 : vector<2x32xf32>
      %76 = arith.divf %74, %75 : vector<2x32xf32>
      %77 = arith.mulf %68, %51 : vector<2x32xf32>
      %78 = arith.mulf %62, %70 : vector<2x32xf32>
      %79 = arith.addf %77, %78 : vector<2x32xf32>
      %80 = math.tanh %79 : vector<2x32xf32>
      %81 = arith.mulf %76, %80 : vector<2x32xf32>
      %82 = vector.extract_strided_slice %25 {offsets = [4, 0], sizes = [2, 128], strides = [1, 1]} : vector<8x128xf32> to vector<2x128xf32>
      %cst_36 = arith.constant dense<0.000000e+00> : vector<2x128xf32>
      %83 = tpu.matmul %81, %1, %cst_36 {dimension_numbers = #tpu.dot_dimension_numbers<[1], [0], [0], [1], [0, 0, 1, 1], [], []>} : vector<2x32xf32>, vector<32x128xf32>, vector<2x128xf32> -> vector<2x128xf32>
      %84 = arith.addf %82, %83 : vector<2x128xf32>
      %85 = vector.extract_strided_slice %84 {offsets = [0, 0], sizes = [2, 32], strides = [1, 1]} : vector<2x128xf32> to vector<2x32xf32>
      %86 = arith.negf %85 : vector<2x32xf32>
      %87 = math.exp %86 : vector<2x32xf32>
      %cst_37 = arith.constant 1.000000e+00 : f32
      %88 = vector.broadcast %cst_37 : f32 to vector<2x32xf32>
      %89 = arith.addf %88, %87 : vector<2x32xf32>
      %90 = arith.divf %88, %89 : vector<2x32xf32>
      %91 = vector.extract_strided_slice %84 {offsets = [0, 32], sizes = [2, 32], strides = [1, 1]} : vector<2x128xf32> to vector<2x32xf32>
      %92 = arith.negf %91 : vector<2x32xf32>
      %93 = math.exp %92 : vector<2x32xf32>
      %cst_38 = arith.constant 1.000000e+00 : f32
      %94 = vector.broadcast %cst_38 : f32 to vector<2x32xf32>
      %95 = arith.addf %94, %93 : vector<2x32xf32>
      %96 = arith.divf %94, %95 : vector<2x32xf32>
      %97 = vector.extract_strided_slice %84 {offsets = [0, 64], sizes = [2, 32], strides = [1, 1]} : vector<2x128xf32> to vector<2x32xf32>
      %98 = math.tanh %97 : vector<2x32xf32>
      %99 = vector.extract_strided_slice %84 {offsets = [0, 96], sizes = [2, 32], strides = [1, 1]} : vector<2x128xf32> to vector<2x32xf32>
      %100 = arith.negf %99 : vector<2x32xf32>
      %101 = math.exp %100 : vector<2x32xf32>
      %cst_39 = arith.constant 1.000000e+00 : f32
      %102 = vector.broadcast %cst_39 : f32 to vector<2x32xf32>
      %103 = arith.addf %102, %101 : vector<2x32xf32>
      %104 = arith.divf %102, %103 : vector<2x32xf32>
      %105 = arith.mulf %96, %79 : vector<2x32xf32>
      %106 = arith.mulf %90, %98 : vector<2x32xf32>
      %107 = arith.addf %105, %106 : vector<2x32xf32>
      %108 = math.tanh %107 : vector<2x32xf32>
      %109 = arith.mulf %104, %108 : vector<2x32xf32>
      %110 = vector.extract_strided_slice %25 {offsets = [6, 0], sizes = [2, 128], strides = [1, 1]} : vector<8x128xf32> to vector<2x128xf32>
      %cst_40 = arith.constant dense<0.000000e+00> : vector<2x128xf32>
      %111 = tpu.matmul %109, %1, %cst_40 {dimension_numbers = #tpu.dot_dimension_numbers<[1], [0], [0], [1], [0, 0, 1, 1], [], []>} : vector<2x32xf32>, vector<32x128xf32>, vector<2x128xf32> -> vector<2x128xf32>
      %112 = arith.addf %110, %111 : vector<2x128xf32>
      %113 = vector.extract_strided_slice %112 {offsets = [0, 0], sizes = [2, 32], strides = [1, 1]} : vector<2x128xf32> to vector<2x32xf32>
      %114 = arith.negf %113 : vector<2x32xf32>
      %115 = math.exp %114 : vector<2x32xf32>
      %cst_41 = arith.constant 1.000000e+00 : f32
      %116 = vector.broadcast %cst_41 : f32 to vector<2x32xf32>
      %117 = arith.addf %116, %115 : vector<2x32xf32>
      %118 = arith.divf %116, %117 : vector<2x32xf32>
      %119 = vector.extract_strided_slice %112 {offsets = [0, 32], sizes = [2, 32], strides = [1, 1]} : vector<2x128xf32> to vector<2x32xf32>
      %120 = arith.negf %119 : vector<2x32xf32>
      %121 = math.exp %120 : vector<2x32xf32>
      %cst_42 = arith.constant 1.000000e+00 : f32
      %122 = vector.broadcast %cst_42 : f32 to vector<2x32xf32>
      %123 = arith.addf %122, %121 : vector<2x32xf32>
      %124 = arith.divf %122, %123 : vector<2x32xf32>
      %125 = vector.extract_strided_slice %112 {offsets = [0, 64], sizes = [2, 32], strides = [1, 1]} : vector<2x128xf32> to vector<2x32xf32>
      %126 = math.tanh %125 : vector<2x32xf32>
      %127 = vector.extract_strided_slice %112 {offsets = [0, 96], sizes = [2, 32], strides = [1, 1]} : vector<2x128xf32> to vector<2x32xf32>
      %128 = arith.negf %127 : vector<2x32xf32>
      %129 = math.exp %128 : vector<2x32xf32>
      %cst_43 = arith.constant 1.000000e+00 : f32
      %130 = vector.broadcast %cst_43 : f32 to vector<2x32xf32>
      %131 = arith.addf %130, %129 : vector<2x32xf32>
      %132 = arith.divf %130, %131 : vector<2x32xf32>
      %133 = arith.mulf %124, %107 : vector<2x32xf32>
      %134 = arith.mulf %118, %126 : vector<2x32xf32>
      %135 = arith.addf %133, %134 : vector<2x32xf32>
      %136 = math.tanh %135 : vector<2x32xf32>
      %137 = arith.mulf %132, %136 : vector<2x32xf32>
      %138 = tpu.concatenate %53, %81, %109, %137 in 0 : vector<2x32xf32>, vector<2x32xf32>, vector<2x32xf32>, vector<2x32xf32> -> vector<8x32xf32>
      %139 = arith.index_cast %23 : i32 to index
      %c0_44 = arith.constant 0 : index
      %140 = vector.load %arg7[%139, %c0_44] : memref<1152x32xf32, #tpu.memory_space<vmem>>, vector<8x32xf32>
      tpu.vector_store %arg7[%139, %c0_44], %138 {strides = array<i32>} : memref<1152x32xf32, #tpu.memory_space<vmem>>, vector<8x32xf32>,
      scf.yield %137, %135 : vector<2x32xf32>, vector<2x32xf32>
    }
    %c144_i32_10 = arith.constant 144 : i32
    %c0_11 = arith.constant 0 : index
    %c0_12 = arith.constant 0 : index
    %11 = vector.load %arg4[%c0_11, %c0_12] : memref<32x128xf32, #tpu.memory_space<vmem>>, vector<32x128xf32>
    %c0_13 = arith.constant 0 : index
    %c0_14 = arith.constant 0 : index
    %12 = vector.load %arg5[%c0_13, %c0_14] : memref<32x128xf32, #tpu.memory_space<vmem>>, vector<32x128xf32>
    %c0_15 = arith.constant 0 : index
    %c0_16 = arith.constant 0 : index
    %13 = vector.load %arg6[%c0_15, %c0_16] : memref<1x128xf32, #tpu.memory_space<vmem>>, vector<1x128xf32>
    %c0_17 = arith.constant 0 : index
    %c0_18 = arith.constant 0 : index
    %14 = vector.load %arg7[%c0_17, %c0_18] : memref<1152x32xf32, #tpu.memory_space<vmem>>, vector<1152x32xf32>
    %cst_19 = arith.constant dense<0.000000e+00> : vector<1152x128xf32>
    %15 = tpu.matmul %14, %11, %cst_19 {dimension_numbers = #tpu.dot_dimension_numbers<[1], [0], [0], [1], [0, 0, 1, 1], [], []>} : vector<1152x32xf32>, vector<32x128xf32>, vector<1152x128xf32> -> vector<1152x128xf32>
    %16 = vector.broadcast %13 : vector<1x128xf32> to vector<1152x128xf32>
    %17 = arith.addf %15, %16 : vector<1152x128xf32>
    %c0_20 = arith.constant 0 : index
    %c0_21 = arith.constant 0 : index
    %18 = vector.load %arg8[%c0_20, %c0_21] : memref<1152x128xf32, #tpu.memory_space<vmem>>, vector<1152x128xf32>
    tpu.vector_store %arg8[%c0_20, %c0_21], %17 {strides = array<i32>} : memref<1152x128xf32, #tpu.memory_space<vmem>>, vector<1152x128xf32>,
    %cst_22 = arith.constant 0.000000e+00 : f32
    %19 = vector.broadcast %cst_22 : f32 to vector<2x32xf32>
    %c0_i32_23 = arith.constant 0 : i32
    %c144_i32_24 = arith.constant 144 : i32
    %20 = arith.addi %c0_i32_23, %c144_i32_24 : i32
    %c1_i32_25 = arith.constant 1 : i32
    %21:2 = scf.for %arg9 = %c0_i32_23 to %20 step %c1_i32_25 iter_args(%arg10 = %19, %arg11 = %19) -> (vector<2x32xf32>, vector<2x32xf32>)  : i32 {
      %c8_i32 = arith.constant 8 : i32
      %22 = arith.muli %arg9, %c8_i32 : i32
      %23 = tpu.assume_multiple %22, 8 : i32
      %24 = arith.index_cast %23 : i32 to index
      %c0_27 = arith.constant 0 : index
      %25 = vector.load %arg8[%24, %c0_27] : memref<1152x128xf32, #tpu.memory_space<vmem>>, vector<8x128xf32>
      %26 = vector.extract_strided_slice %25 {offsets = [0, 0], sizes = [2, 128], strides = [1, 1]} : vector<8x128xf32> to vector<2x128xf32>
      %cst_28 = arith.constant dense<0.000000e+00> : vector<2x128xf32>
      %27 = tpu.matmul %arg10, %12, %cst_28 {dimension_numbers = #tpu.dot_dimension_numbers<[1], [0], [0], [1], [0, 0, 1, 1], [], []>} : vector<2x32xf32>, vector<32x128xf32>, vector<2x128xf32> -> vector<2x128xf32>
      %28 = arith.addf %26, %27 : vector<2x128xf32>
      %29 = vector.extract_strided_slice %28 {offsets = [0, 0], sizes = [2, 32], strides = [1, 1]} : vector<2x128xf32> to vector<2x32xf32>
      %30 = arith.negf %29 : vector<2x32xf32>
      %31 = math.exp %30 : vector<2x32xf32>
      %cst_29 = arith.constant 1.000000e+00 : f32
      %32 = vector.broadcast %cst_29 : f32 to vector<2x32xf32>
      %33 = arith.addf %32, %31 : vector<2x32xf32>
      %34 = arith.divf %32, %33 : vector<2x32xf32>
      %35 = vector.extract_strided_slice %28 {offsets = [0, 32], sizes = [2, 32], strides = [1, 1]} : vector<2x128xf32> to vector<2x32xf32>
      %36 = arith.negf %35 : vector<2x32xf32>
      %37 = math.exp %36 : vector<2x32xf32>
      %cst_30 = arith.constant 1.000000e+00 : f32
      %38 = vector.broadcast %cst_30 : f32 to vector<2x32xf32>
      %39 = arith.addf %38, %37 : vector<2x32xf32>
      %40 = arith.divf %38, %39 : vector<2x32xf32>
      %41 = vector.extract_strided_slice %28 {offsets = [0, 64], sizes = [2, 32], strides = [1, 1]} : vector<2x128xf32> to vector<2x32xf32>
      %42 = math.tanh %41 : vector<2x32xf32>
      %43 = vector.extract_strided_slice %28 {offsets = [0, 96], sizes = [2, 32], strides = [1, 1]} : vector<2x128xf32> to vector<2x32xf32>
      %44 = arith.negf %43 : vector<2x32xf32>
      %45 = math.exp %44 : vector<2x32xf32>
      %cst_31 = arith.constant 1.000000e+00 : f32
      %46 = vector.broadcast %cst_31 : f32 to vector<2x32xf32>
      %47 = arith.addf %46, %45 : vector<2x32xf32>
      %48 = arith.divf %46, %47 : vector<2x32xf32>
      %49 = arith.mulf %40, %arg11 : vector<2x32xf32>
      %50 = arith.mulf %34, %42 : vector<2x32xf32>
      %51 = arith.addf %49, %50 : vector<2x32xf32>
      %52 = math.tanh %51 : vector<2x32xf32>
      %53 = arith.mulf %48, %52 : vector<2x32xf32>
      %54 = vector.extract_strided_slice %25 {offsets = [2, 0], sizes = [2, 128], strides = [1, 1]} : vector<8x128xf32> to vector<2x128xf32>
      %cst_32 = arith.constant dense<0.000000e+00> : vector<2x128xf32>
      %55 = tpu.matmul %53, %12, %cst_32 {dimension_numbers = #tpu.dot_dimension_numbers<[1], [0], [0], [1], [0, 0, 1, 1], [], []>} : vector<2x32xf32>, vector<32x128xf32>, vector<2x128xf32> -> vector<2x128xf32>
      %56 = arith.addf %54, %55 : vector<2x128xf32>
      %57 = vector.extract_strided_slice %56 {offsets = [0, 0], sizes = [2, 32], strides = [1, 1]} : vector<2x128xf32> to vector<2x32xf32>
      %58 = arith.negf %57 : vector<2x32xf32>
      %59 = math.exp %58 : vector<2x32xf32>
      %cst_33 = arith.constant 1.000000e+00 : f32
      %60 = vector.broadcast %cst_33 : f32 to vector<2x32xf32>
      %61 = arith.addf %60, %59 : vector<2x32xf32>
      %62 = arith.divf %60, %61 : vector<2x32xf32>
      %63 = vector.extract_strided_slice %56 {offsets = [0, 32], sizes = [2, 32], strides = [1, 1]} : vector<2x128xf32> to vector<2x32xf32>
      %64 = arith.negf %63 : vector<2x32xf32>
      %65 = math.exp %64 : vector<2x32xf32>
      %cst_34 = arith.constant 1.000000e+00 : f32
      %66 = vector.broadcast %cst_34 : f32 to vector<2x32xf32>
      %67 = arith.addf %66, %65 : vector<2x32xf32>
      %68 = arith.divf %66, %67 : vector<2x32xf32>
      %69 = vector.extract_strided_slice %56 {offsets = [0, 64], sizes = [2, 32], strides = [1, 1]} : vector<2x128xf32> to vector<2x32xf32>
      %70 = math.tanh %69 : vector<2x32xf32>
      %71 = vector.extract_strided_slice %56 {offsets = [0, 96], sizes = [2, 32], strides = [1, 1]} : vector<2x128xf32> to vector<2x32xf32>
      %72 = arith.negf %71 : vector<2x32xf32>
      %73 = math.exp %72 : vector<2x32xf32>
      %cst_35 = arith.constant 1.000000e+00 : f32
      %74 = vector.broadcast %cst_35 : f32 to vector<2x32xf32>
      %75 = arith.addf %74, %73 : vector<2x32xf32>
      %76 = arith.divf %74, %75 : vector<2x32xf32>
      %77 = arith.mulf %68, %51 : vector<2x32xf32>
      %78 = arith.mulf %62, %70 : vector<2x32xf32>
      %79 = arith.addf %77, %78 : vector<2x32xf32>
      %80 = math.tanh %79 : vector<2x32xf32>
      %81 = arith.mulf %76, %80 : vector<2x32xf32>
      %82 = vector.extract_strided_slice %25 {offsets = [4, 0], sizes = [2, 128], strides = [1, 1]} : vector<8x128xf32> to vector<2x128xf32>
      %cst_36 = arith.constant dense<0.000000e+00> : vector<2x128xf32>
      %83 = tpu.matmul %81, %12, %cst_36 {dimension_numbers = #tpu.dot_dimension_numbers<[1], [0], [0], [1], [0, 0, 1, 1], [], []>} : vector<2x32xf32>, vector<32x128xf32>, vector<2x128xf32> -> vector<2x128xf32>
      %84 = arith.addf %82, %83 : vector<2x128xf32>
      %85 = vector.extract_strided_slice %84 {offsets = [0, 0], sizes = [2, 32], strides = [1, 1]} : vector<2x128xf32> to vector<2x32xf32>
      %86 = arith.negf %85 : vector<2x32xf32>
      %87 = math.exp %86 : vector<2x32xf32>
      %cst_37 = arith.constant 1.000000e+00 : f32
      %88 = vector.broadcast %cst_37 : f32 to vector<2x32xf32>
      %89 = arith.addf %88, %87 : vector<2x32xf32>
      %90 = arith.divf %88, %89 : vector<2x32xf32>
      %91 = vector.extract_strided_slice %84 {offsets = [0, 32], sizes = [2, 32], strides = [1, 1]} : vector<2x128xf32> to vector<2x32xf32>
      %92 = arith.negf %91 : vector<2x32xf32>
      %93 = math.exp %92 : vector<2x32xf32>
      %cst_38 = arith.constant 1.000000e+00 : f32
      %94 = vector.broadcast %cst_38 : f32 to vector<2x32xf32>
      %95 = arith.addf %94, %93 : vector<2x32xf32>
      %96 = arith.divf %94, %95 : vector<2x32xf32>
      %97 = vector.extract_strided_slice %84 {offsets = [0, 64], sizes = [2, 32], strides = [1, 1]} : vector<2x128xf32> to vector<2x32xf32>
      %98 = math.tanh %97 : vector<2x32xf32>
      %99 = vector.extract_strided_slice %84 {offsets = [0, 96], sizes = [2, 32], strides = [1, 1]} : vector<2x128xf32> to vector<2x32xf32>
      %100 = arith.negf %99 : vector<2x32xf32>
      %101 = math.exp %100 : vector<2x32xf32>
      %cst_39 = arith.constant 1.000000e+00 : f32
      %102 = vector.broadcast %cst_39 : f32 to vector<2x32xf32>
      %103 = arith.addf %102, %101 : vector<2x32xf32>
      %104 = arith.divf %102, %103 : vector<2x32xf32>
      %105 = arith.mulf %96, %79 : vector<2x32xf32>
      %106 = arith.mulf %90, %98 : vector<2x32xf32>
      %107 = arith.addf %105, %106 : vector<2x32xf32>
      %108 = math.tanh %107 : vector<2x32xf32>
      %109 = arith.mulf %104, %108 : vector<2x32xf32>
      %110 = vector.extract_strided_slice %25 {offsets = [6, 0], sizes = [2, 128], strides = [1, 1]} : vector<8x128xf32> to vector<2x128xf32>
      %cst_40 = arith.constant dense<0.000000e+00> : vector<2x128xf32>
      %111 = tpu.matmul %109, %12, %cst_40 {dimension_numbers = #tpu.dot_dimension_numbers<[1], [0], [0], [1], [0, 0, 1, 1], [], []>} : vector<2x32xf32>, vector<32x128xf32>, vector<2x128xf32> -> vector<2x128xf32>
      %112 = arith.addf %110, %111 : vector<2x128xf32>
      %113 = vector.extract_strided_slice %112 {offsets = [0, 0], sizes = [2, 32], strides = [1, 1]} : vector<2x128xf32> to vector<2x32xf32>
      %114 = arith.negf %113 : vector<2x32xf32>
      %115 = math.exp %114 : vector<2x32xf32>
      %cst_41 = arith.constant 1.000000e+00 : f32
      %116 = vector.broadcast %cst_41 : f32 to vector<2x32xf32>
      %117 = arith.addf %116, %115 : vector<2x32xf32>
      %118 = arith.divf %116, %117 : vector<2x32xf32>
      %119 = vector.extract_strided_slice %112 {offsets = [0, 32], sizes = [2, 32], strides = [1, 1]} : vector<2x128xf32> to vector<2x32xf32>
      %120 = arith.negf %119 : vector<2x32xf32>
      %121 = math.exp %120 : vector<2x32xf32>
      %cst_42 = arith.constant 1.000000e+00 : f32
      %122 = vector.broadcast %cst_42 : f32 to vector<2x32xf32>
      %123 = arith.addf %122, %121 : vector<2x32xf32>
      %124 = arith.divf %122, %123 : vector<2x32xf32>
      %125 = vector.extract_strided_slice %112 {offsets = [0, 64], sizes = [2, 32], strides = [1, 1]} : vector<2x128xf32> to vector<2x32xf32>
      %126 = math.tanh %125 : vector<2x32xf32>
      %127 = vector.extract_strided_slice %112 {offsets = [0, 96], sizes = [2, 32], strides = [1, 1]} : vector<2x128xf32> to vector<2x32xf32>
      %128 = arith.negf %127 : vector<2x32xf32>
      %129 = math.exp %128 : vector<2x32xf32>
      %cst_43 = arith.constant 1.000000e+00 : f32
      %130 = vector.broadcast %cst_43 : f32 to vector<2x32xf32>
      %131 = arith.addf %130, %129 : vector<2x32xf32>
      %132 = arith.divf %130, %131 : vector<2x32xf32>
      %133 = arith.mulf %124, %107 : vector<2x32xf32>
      %134 = arith.mulf %118, %126 : vector<2x32xf32>
      %135 = arith.addf %133, %134 : vector<2x32xf32>
      %136 = math.tanh %135 : vector<2x32xf32>
      %137 = arith.mulf %132, %136 : vector<2x32xf32>
      %138 = tpu.concatenate %53, %81, %109, %137 in 0 : vector<2x32xf32>, vector<2x32xf32>, vector<2x32xf32>, vector<2x32xf32> -> vector<8x32xf32>
      %139 = arith.index_cast %23 : i32 to index
      %c0_44 = arith.constant 0 : index
      %140 = vector.load %arg7[%139, %c0_44] : memref<1152x32xf32, #tpu.memory_space<vmem>>, vector<8x32xf32>
      tpu.vector_store %arg7[%139, %c0_44], %138 {strides = array<i32>} : memref<1152x32xf32, #tpu.memory_space<vmem>>, vector<8x32xf32>,
      scf.yield %137, %135 : vector<2x32xf32>, vector<2x32xf32>
    }
    %c144_i32_26 = arith.constant 144 : i32
    return
  }
}

module attributes {stable_mosaic.version = 11 : i64} {
  func.func @_fused_mm_kernel(%arg0: i32, %arg1: memref<24x4608xbf16, #tpu.memory_space<vmem>>, %arg2: memref<4608x256xbf16, #tpu.memory_space<vmem>>, %arg3: memref<1x256xf32, #tpu.memory_space<vmem>>, %arg4: memref<1x256xf32, #tpu.memory_space<vmem>>, %arg5: memref<24x256xf32, #tpu.memory_space<vmem>>) attributes {dimension_semantics = [#tpu.dimension_semantics<parallel>], iteration_bounds = array<i64: 1>, scalar_prefetch = 0 : i64, scratch_operands = 0 : i64, tpu.core_type = #tpu.core_type<tc>, window_params = [{transform_indices = @transform_0, window_bounds = array<i64: 24, 4608>}, {pipeline_mode = #tpu.pipeline_mode<synchronous>, transform_indices = @transform_1, window_bounds = array<i64: 4608, 256>}, {pipeline_mode = #tpu.pipeline_mode<synchronous>, transform_indices = @transform_2, window_bounds = array<i64: 1, 256>}, {pipeline_mode = #tpu.pipeline_mode<synchronous>, transform_indices = @transform_3, window_bounds = array<i64: 1, 256>}, {transform_indices = @transform_4, window_bounds = array<i64: 24, 256>}]} {
    %c0 = arith.constant 0 : index
    %c0_0 = arith.constant 0 : index
    %0 = vector.load %arg1[%c0, %c0_0] : memref<24x4608xbf16, #tpu.memory_space<vmem>>, vector<24x4608xbf16>
    %c0_1 = arith.constant 0 : index
    %c0_2 = arith.constant 0 : index
    %1 = vector.load %arg2[%c0_1, %c0_2] : memref<4608x256xbf16, #tpu.memory_space<vmem>>, vector<4608x256xbf16>
    %cst = arith.constant dense<0.000000e+00> : vector<24x256xf32>
    %2 = tpu.matmul %0, %1, %cst {dimension_numbers = #tpu.dot_dimension_numbers<[1], [0], [0], [1], [0, 0, 1, 1], [], []>} : vector<24x4608xbf16>, vector<4608x256xbf16>, vector<24x256xf32> -> vector<24x256xf32>
    %c0_3 = arith.constant 0 : index
    %c0_4 = arith.constant 0 : index
    %3 = vector.load %arg3[%c0_3, %c0_4] : memref<1x256xf32, #tpu.memory_space<vmem>>, vector<1x256xf32>
    %4 = vector.broadcast %3 : vector<1x256xf32> to vector<24x256xf32>
    %5 = arith.mulf %2, %4 : vector<24x256xf32>
    %c0_5 = arith.constant 0 : index
    %c0_6 = arith.constant 0 : index
    %6 = vector.load %arg4[%c0_5, %c0_6] : memref<1x256xf32, #tpu.memory_space<vmem>>, vector<1x256xf32>
    %7 = vector.broadcast %6 : vector<1x256xf32> to vector<24x256xf32>
    %8 = arith.addf %5, %7 : vector<24x256xf32>
    %cst_7 = arith.constant 0.000000e+00 : f32
    %9 = vector.broadcast %cst_7 : f32 to vector<24x256xf32>
    %10 = arith.maximumf %8, %9 : vector<24x256xf32>
    %c0_8 = arith.constant 0 : index
    %c0_9 = arith.constant 0 : index
    %11 = vector.load %arg5[%c0_8, %c0_9] : memref<24x256xf32, #tpu.memory_space<vmem>>, vector<24x256xf32>
    tpu.vector_store %arg5[%c0_8, %c0_9], %10 {strides = array<i32>} : memref<24x256xf32, #tpu.memory_space<vmem>>, vector<24x256xf32>,
    return
  }
  func.func @transform_0(%arg0: i32) -> (i32, i32) {
    %c0_i32 = arith.constant 0 : i32
    %c0_i32_0 = arith.constant 0 : i32
    return %arg0, %c0_i32 : i32, i32
  }
  func.func @transform_1(%arg0: i32) -> (i32, i32) {
    %c0_i32 = arith.constant 0 : i32
    %c0_i32_0 = arith.constant 0 : i32
    %c0_i32_1 = arith.constant 0 : i32
    return %c0_i32, %c0_i32_0 : i32, i32
  }
  func.func @transform_2(%arg0: i32) -> (i32, i32) {
    %c0_i32 = arith.constant 0 : i32
    %c0_i32_0 = arith.constant 0 : i32
    %c0_i32_1 = arith.constant 0 : i32
    return %c0_i32, %c0_i32_0 : i32, i32
  }
  func.func @transform_3(%arg0: i32) -> (i32, i32) {
    %c0_i32 = arith.constant 0 : i32
    %c0_i32_0 = arith.constant 0 : i32
    %c0_i32_1 = arith.constant 0 : i32
    return %c0_i32, %c0_i32_0 : i32, i32
  }
  func.func @transform_4(%arg0: i32) -> (i32, i32) {
    %c0_i32 = arith.constant 0 : i32
    %c0_i32_0 = arith.constant 0 : i32
    return %arg0, %c0_i32 : i32, i32
  }
}

module attributes {stable_mosaic.version = 11 : i64} {
  func.func @_fused_mm_kernel(%arg0: i32, %arg1: memref<128x16xbf16, #tpu.memory_space<vmem>>, %arg2: memref<16x128xbf16, #tpu.memory_space<vmem>>, %arg3: memref<1x128xf32, #tpu.memory_space<vmem>>, %arg4: memref<128x128xf32, #tpu.memory_space<vmem>>) attributes {dimension_semantics = [#tpu.dimension_semantics<parallel>], iteration_bounds = array<i64: 1>, scalar_prefetch = 0 : i64, scratch_operands = 0 : i64, tpu.core_type = #tpu.core_type<tc>, window_params = [{transform_indices = @transform_0, window_bounds = array<i64: 128, 16>}, {pipeline_mode = #tpu.pipeline_mode<synchronous>, transform_indices = @transform_1, window_bounds = array<i64: 16, 128>}, {pipeline_mode = #tpu.pipeline_mode<synchronous>, transform_indices = @transform_2, window_bounds = array<i64: 1, 128>}, {transform_indices = @transform_3, window_bounds = array<i64: 128, 128>}]} {
    %c0 = arith.constant 0 : index
    %c0_0 = arith.constant 0 : index
    %0 = vector.load %arg1[%c0, %c0_0] : memref<128x16xbf16, #tpu.memory_space<vmem>>, vector<128x16xbf16>
    %c0_1 = arith.constant 0 : index
    %c0_2 = arith.constant 0 : index
    %1 = vector.load %arg2[%c0_1, %c0_2] : memref<16x128xbf16, #tpu.memory_space<vmem>>, vector<16x128xbf16>
    %cst = arith.constant dense<0.000000e+00> : vector<128x128xf32>
    %2 = tpu.matmul %0, %1, %cst {dimension_numbers = #tpu.dot_dimension_numbers<[1], [0], [0], [1], [0, 0, 1, 1], [], []>} : vector<128x16xbf16>, vector<16x128xbf16>, vector<128x128xf32> -> vector<128x128xf32>
    %c0_3 = arith.constant 0 : index
    %c0_4 = arith.constant 0 : index
    %3 = vector.load %arg3[%c0_3, %c0_4] : memref<1x128xf32, #tpu.memory_space<vmem>>, vector<1x128xf32>
    %4 = vector.broadcast %3 : vector<1x128xf32> to vector<128x128xf32>
    %5 = arith.addf %2, %4 : vector<128x128xf32>
    %cst_5 = arith.constant 0.000000e+00 : f32
    %6 = vector.broadcast %cst_5 : f32 to vector<128x128xf32>
    %7 = arith.maximumf %5, %6 : vector<128x128xf32>
    %c0_6 = arith.constant 0 : index
    %c0_7 = arith.constant 0 : index
    %8 = vector.load %arg4[%c0_6, %c0_7] : memref<128x128xf32, #tpu.memory_space<vmem>>, vector<128x128xf32>
    tpu.vector_store %arg4[%c0_6, %c0_7], %7 {strides = array<i32>} : memref<128x128xf32, #tpu.memory_space<vmem>>, vector<128x128xf32>,
    return
  }
  func.func @transform_0(%arg0: i32) -> (i32, i32) {
    %c0_i32 = arith.constant 0 : i32
    %c0_i32_0 = arith.constant 0 : i32
    return %arg0, %c0_i32 : i32, i32
  }
  func.func @transform_1(%arg0: i32) -> (i32, i32) {
    %c0_i32 = arith.constant 0 : i32
    %c0_i32_0 = arith.constant 0 : i32
    %c0_i32_1 = arith.constant 0 : i32
    return %c0_i32, %c0_i32_0 : i32, i32
  }
  func.func @transform_2(%arg0: i32) -> (i32, i32) {
    %c0_i32 = arith.constant 0 : i32
    %c0_i32_0 = arith.constant 0 : i32
    %c0_i32_1 = arith.constant 0 : i32
    return %c0_i32, %c0_i32_0 : i32, i32
  }
  func.func @transform_3(%arg0: i32) -> (i32, i32) {
    %c0_i32 = arith.constant 0 : i32
    %c0_i32_0 = arith.constant 0 : i32
    return %arg0, %c0_i32 : i32, i32
  }
}

module attributes {stable_mosaic.version = 11 : i64} {
  func.func @_max4_kernel(%arg0: memref<2x16x32xf32, #tpu.memory_space<vmem>>, %arg1: memref<2x16x32xf32, #tpu.memory_space<vmem>>, %arg2: memref<2x16x32xf32, #tpu.memory_space<vmem>>, %arg3: memref<2x16x32xf32, #tpu.memory_space<vmem>>, %arg4: memref<2x16x32xf32, #tpu.memory_space<vmem>>) attributes {dimension_semantics = [], scalar_prefetch = 0 : i64, scratch_operands = 0 : i64, tpu.core_type = #tpu.core_type<tc>} {
    %c0 = arith.constant 0 : index
    %c0_0 = arith.constant 0 : index
    %c0_1 = arith.constant 0 : index
    %0 = vector.load %arg0[%c0, %c0_0, %c0_1] : memref<2x16x32xf32, #tpu.memory_space<vmem>>, vector<2x16x32xf32>
    %c0_2 = arith.constant 0 : index
    %c0_3 = arith.constant 0 : index
    %c0_4 = arith.constant 0 : index
    %1 = vector.load %arg1[%c0_2, %c0_3, %c0_4] : memref<2x16x32xf32, #tpu.memory_space<vmem>>, vector<2x16x32xf32>
    %2 = arith.maximumf %0, %1 : vector<2x16x32xf32>
    %c0_5 = arith.constant 0 : index
    %c0_6 = arith.constant 0 : index
    %c0_7 = arith.constant 0 : index
    %3 = vector.load %arg2[%c0_5, %c0_6, %c0_7] : memref<2x16x32xf32, #tpu.memory_space<vmem>>, vector<2x16x32xf32>
    %c0_8 = arith.constant 0 : index
    %c0_9 = arith.constant 0 : index
    %c0_10 = arith.constant 0 : index
    %4 = vector.load %arg3[%c0_8, %c0_9, %c0_10] : memref<2x16x32xf32, #tpu.memory_space<vmem>>, vector<2x16x32xf32>
    %5 = arith.maximumf %3, %4 : vector<2x16x32xf32>
    %6 = arith.maximumf %2, %5 : vector<2x16x32xf32>
    %c0_11 = arith.constant 0 : index
    %c0_12 = arith.constant 0 : index
    %c0_13 = arith.constant 0 : index
    %7 = vector.load %arg4[%c0_11, %c0_12, %c0_13] : memref<2x16x32xf32, #tpu.memory_space<vmem>>, vector<2x16x32xf32>
    tpu.vector_store %arg4[%c0_11, %c0_12, %c0_13], %6 {strides = array<i32>} : memref<2x16x32xf32, #tpu.memory_space<vmem>>, vector<2x16x32xf32>,
    return
  }
}

module attributes {stable_mosaic.version = 11 : i64} {
  func.func @_fused_mm_kernel(%arg0: i32, %arg1: memref<32x288xbf16, #tpu.memory_space<vmem>>, %arg2: memref<288x128xbf16, #tpu.memory_space<vmem>>, %arg3: memref<1x128xf32, #tpu.memory_space<vmem>>, %arg4: memref<32x128xf32, #tpu.memory_space<vmem>>) attributes {dimension_semantics = [#tpu.dimension_semantics<parallel>], iteration_bounds = array<i64: 1>, scalar_prefetch = 0 : i64, scratch_operands = 0 : i64, tpu.core_type = #tpu.core_type<tc>, window_params = [{transform_indices = @transform_0, window_bounds = array<i64: 32, 288>}, {pipeline_mode = #tpu.pipeline_mode<synchronous>, transform_indices = @transform_1, window_bounds = array<i64: 288, 128>}, {pipeline_mode = #tpu.pipeline_mode<synchronous>, transform_indices = @transform_2, window_bounds = array<i64: 1, 128>}, {transform_indices = @transform_3, window_bounds = array<i64: 32, 128>}]} {
    %c0 = arith.constant 0 : index
    %c0_0 = arith.constant 0 : index
    %0 = vector.load %arg1[%c0, %c0_0] : memref<32x288xbf16, #tpu.memory_space<vmem>>, vector<32x288xbf16>
    %c0_1 = arith.constant 0 : index
    %c0_2 = arith.constant 0 : index
    %1 = vector.load %arg2[%c0_1, %c0_2] : memref<288x128xbf16, #tpu.memory_space<vmem>>, vector<288x128xbf16>
    %cst = arith.constant dense<0.000000e+00> : vector<32x128xf32>
    %2 = tpu.matmul %0, %1, %cst {dimension_numbers = #tpu.dot_dimension_numbers<[1], [0], [0], [1], [0, 0, 1, 1], [], []>} : vector<32x288xbf16>, vector<288x128xbf16>, vector<32x128xf32> -> vector<32x128xf32>
    %c0_3 = arith.constant 0 : index
    %c0_4 = arith.constant 0 : index
    %3 = vector.load %arg3[%c0_3, %c0_4] : memref<1x128xf32, #tpu.memory_space<vmem>>, vector<1x128xf32>
    %4 = vector.broadcast %3 : vector<1x128xf32> to vector<32x128xf32>
    %5 = arith.addf %2, %4 : vector<32x128xf32>
    %cst_5 = arith.constant 0.000000e+00 : f32
    %6 = vector.broadcast %cst_5 : f32 to vector<32x128xf32>
    %7 = arith.maximumf %5, %6 : vector<32x128xf32>
    %c0_6 = arith.constant 0 : index
    %c0_7 = arith.constant 0 : index
    %8 = vector.load %arg4[%c0_6, %c0_7] : memref<32x128xf32, #tpu.memory_space<vmem>>, vector<32x128xf32>
    tpu.vector_store %arg4[%c0_6, %c0_7], %7 {strides = array<i32>} : memref<32x128xf32, #tpu.memory_space<vmem>>, vector<32x128xf32>,
    return
  }
  func.func @transform_0(%arg0: i32) -> (i32, i32) {
    %c0_i32 = arith.constant 0 : i32
    %c0_i32_0 = arith.constant 0 : i32
    return %arg0, %c0_i32 : i32, i32
  }
  func.func @transform_1(%arg0: i32) -> (i32, i32) {
    %c0_i32 = arith.constant 0 : i32
    %c0_i32_0 = arith.constant 0 : i32
    %c0_i32_1 = arith.constant 0 : i32
    return %c0_i32, %c0_i32_0 : i32, i32
  }
  func.func @transform_2(%arg0: i32) -> (i32, i32) {
    %c0_i32 = arith.constant 0 : i32
    %c0_i32_0 = arith.constant 0 : i32
    %c0_i32_1 = arith.constant 0 : i32
    return %c0_i32, %c0_i32_0 : i32, i32
  }
  func.func @transform_3(%arg0: i32) -> (i32, i32) {
    %c0_i32 = arith.constant 0 : i32
    %c0_i32_0 = arith.constant 0 : i32
    return %arg0, %c0_i32 : i32, i32
  }
}

module attributes {stable_mosaic.version = 11 : i64} {
  func.func @_head_kernel(%arg0: memref<2x9x256xf32, #tpu.memory_space<vmem>>, %arg1: memref<2x4x128xf32, #tpu.memory_space<vmem>>, %arg2: memref<2x4x128xf32, #tpu.memory_space<vmem>>, %arg3: memref<2x4x128xf32, #tpu.memory_space<vmem>>, %arg4: memref<2x4x128xf32, #tpu.memory_space<vmem>>, %arg5: memref<256x128xf32, #tpu.memory_space<vmem>>, %arg6: memref<128x128xf32, #tpu.memory_space<vmem>>, %arg7: memref<1x128xf32, #tpu.memory_space<vmem>>, %arg8: memref<2x128xf32, #tpu.memory_space<vmem>>) attributes {dimension_semantics = [], scalar_prefetch = 0 : i64, scratch_operands = 0 : i64, tpu.core_type = #tpu.core_type<tc>} {
    %c0 = arith.constant 0 : index
    %c0_0 = arith.constant 0 : index
    %c0_1 = arith.constant 0 : index
    %0 = vector.load %arg0[%c0, %c0_0, %c0_1] : memref<2x9x256xf32, #tpu.memory_space<vmem>>, vector<2x9x256xf32>
    %cst = arith.constant dense<0.000000e+00> : vector<2x256xf32>
    %1 = vector.multi_reduction <add>, %0, %cst [1] : vector<2x9x256xf32> to vector<2x256xf32>
    %cst_2 = arith.constant 9.000000e+00 : f32
    %2 = vector.broadcast %cst_2 : f32 to vector<2x256xf32>
    %3 = arith.divf %1, %2 : vector<2x256xf32>
    %c0_3 = arith.constant 0 : index
    %c0_4 = arith.constant 0 : index
    %c0_5 = arith.constant 0 : index
    %4 = vector.load %arg1[%c0_3, %c0_4, %c0_5] : memref<2x4x128xf32, #tpu.memory_space<vmem>>, vector<2x4x128xf32>
    %c0_6 = arith.constant 0 : index
    %c0_7 = arith.constant 0 : index
    %c0_8 = arith.constant 0 : index
    %5 = vector.load %arg2[%c0_6, %c0_7, %c0_8] : memref<2x4x128xf32, #tpu.memory_space<vmem>>, vector<2x4x128xf32>
    %6 = arith.maximumf %4, %5 : vector<2x4x128xf32>
    %c0_9 = arith.constant 0 : index
    %c0_10 = arith.constant 0 : index
    %c0_11 = arith.constant 0 : index
    %7 = vector.load %arg3[%c0_9, %c0_10, %c0_11] : memref<2x4x128xf32, #tpu.memory_space<vmem>>, vector<2x4x128xf32>
    %c0_12 = arith.constant 0 : index
    %c0_13 = arith.constant 0 : index
    %c0_14 = arith.constant 0 : index
    %8 = vector.load %arg4[%c0_12, %c0_13, %c0_14] : memref<2x4x128xf32, #tpu.memory_space<vmem>>, vector<2x4x128xf32>
    %9 = arith.maximumf %7, %8 : vector<2x4x128xf32>
    %10 = arith.maximumf %6, %9 : vector<2x4x128xf32>
    %cst_15 = arith.constant dense<0.000000e+00> : vector<2x128xf32>
    %11 = vector.multi_reduction <add>, %10, %cst_15 [1] : vector<2x4x128xf32> to vector<2x128xf32>
    %cst_16 = arith.constant 4.000000e+00 : f32
    %12 = vector.broadcast %cst_16 : f32 to vector<2x128xf32>
    %13 = arith.divf %11, %12 : vector<2x128xf32>
    %c0_17 = arith.constant 0 : index
    %c0_18 = arith.constant 0 : index
    %14 = vector.load %arg5[%c0_17, %c0_18] : memref<256x128xf32, #tpu.memory_space<vmem>>, vector<256x128xf32>
    %cst_19 = arith.constant dense<0.000000e+00> : vector<2x128xf32>
    %15 = tpu.matmul %3, %14, %cst_19 {dimension_numbers = #tpu.dot_dimension_numbers<[1], [0], [0], [1], [0, 0, 1, 1], [], []>} : vector<2x256xf32>, vector<256x128xf32>, vector<2x128xf32> -> vector<2x128xf32>
    %c0_20 = arith.constant 0 : index
    %c0_21 = arith.constant 0 : index
    %16 = vector.load %arg6[%c0_20, %c0_21] : memref<128x128xf32, #tpu.memory_space<vmem>>, vector<128x128xf32>
    %cst_22 = arith.constant dense<0.000000e+00> : vector<2x128xf32>
    %17 = tpu.matmul %13, %16, %cst_22 {dimension_numbers = #tpu.dot_dimension_numbers<[1], [0], [0], [1], [0, 0, 1, 1], [], []>} : vector<2x128xf32>, vector<128x128xf32>, vector<2x128xf32> -> vector<2x128xf32>
    %18 = arith.addf %15, %17 : vector<2x128xf32>
    %c0_23 = arith.constant 0 : index
    %c0_24 = arith.constant 0 : index
    %19 = vector.load %arg7[%c0_23, %c0_24] : memref<1x128xf32, #tpu.memory_space<vmem>>, vector<1x128xf32>
    %20 = vector.broadcast %19 : vector<1x128xf32> to vector<2x128xf32>
    %21 = arith.addf %18, %20 : vector<2x128xf32>
    %c0_25 = arith.constant 0 : index
    %c0_26 = arith.constant 0 : index
    %22 = vector.load %arg8[%c0_25, %c0_26] : memref<2x128xf32, #tpu.memory_space<vmem>>, vector<2x128xf32>
    tpu.vector_store %arg8[%c0_25, %c0_26], %21 {strides = array<i32>} : memref<2x128xf32, #tpu.memory_space<vmem>>, vector<2x128xf32>,
    return
  }
}

</mosaic_0001>

<bundles_post_ra>
// kernel: squeeze.3
= control target key start
LH: loop header
LB: loop body
LE: loop exit
PB: predicated region body
PF: predicated region fallthrough
CT: control target
= control target key end

     0   :  { %s84_s14 = smov 3  ;;  %s341_s15 = smov 124   ;;  %vm205_vm0 = vcmask 900096   ;;  %vm221_vm1 = vcmask 932864   ;;  %vm66_vm2 = vcmask 179200   ;;  %vm237_vm3 = vcmask 965632   ;;  %s412_s0 = inlined_call_operand.vmem [shape: bf16[2,484], index: 0, kind: input, shape index: {}]   ;;  %s413_s1 = inlined_call_operand.vmem [shape: bf16[2,22,22,1], index: 1, kind: output, shape index: {}]  }
   0x1   :  { %v297_v0 = vld [vmem:[%s412_s0 + $0x1] sm:$0x1]  ;;  %v296_v1 = vld [vmem:[%s412_s0 + $0x2] sm:$0x1]  ;;  %v61_v4 = vld [vmem:[%s412_s0] sm:$0x1] }
   0x2   :  { %v48_v2 = vunpack.c.l.bf16 %v297_v0  ;;  %v33_v3 = vunpack.c.l.bf16 %v296_v1  ;;  %v295_v5 = vld [vmem:[%s412_s0 + $0x3] sm:$0x1]  ;;  %v62_v6 = vunpack.c.l.bf16 %v61_v4  ;;  %s76_s0 = smov 3  ;;  %s342_s16 = smov 120   ;;  %vm209_vm4 = vcmask 146432  }
   0x3   :  { %v17_v7 = vunpack.c.l.bf16 %v295_v5  ;;  %s216_s17 = smov 3  ;;  %s219_s18 = smov 3  ;;  %vm212_vm5 = vcmask 179344   ;;  %vm225_vm6 = vcmask 113664   ;;  %vm241_vm7 = vcmask 80896  }
   0x4   :  { %51 = vst [vmem:[#allocation1 + $0x8] sm:$0x3] %v48_v2  ;;  %36 = vst [vmem:[#allocation1 + $0x10] sm:$0x3] %v33_v3  ;;  %s232_s19 = smov 3  ;;  %s235_s20 = smov 3 }
   0x5   :  { %64 = vst [vmem:[#allocation1] sm:$0x3] %v62_v6  ;;  %20 = vst [vmem:[#allocation1 + $0x18] sm:$0x3] %v17_v7  ;;  %s343_s21 = smov 106   ;;  %s344_s22 = smov 116  }
   0x6   :  { %s345_s23 = smov 18   ;;  %s346_s24 = smov 102   ;;  %vm228_vm8 = vcmask 179312   ;;  %vm244_vm9 = vcmask 179280  }
   0x7   :  { %s105_s25 = smov 3  ;;  %s113_s26 = smov 3 }
   0x8   :  { %s347_s27 = smov 14   ;;  %s348_s28 = smov 10  }
   0x9   :  { %s127_s29 = smov 3  ;;  %s349_s30 = smov 98  }
   0xa   :  { %s350_s2 = smov 94   ;;  %s135_s3 = smov 3 }
   0xb   :  { %v69_v8 = vld [vmem:[#allocation1 + $0x8] sm:$0x3]   ;;  %v77_v9 = vld [vmem:[#allocation1 + $0x11] ss:$-1 sm:%s76_s0]   ;;  %s143_s4 = smov 3  ;;  %s351_s5 = smov 84  }
   0xc   :  { %70 = vrot.lane.b32.xlu1 %v69_v8, %s341_s15  ;;  %78 = vrot.lane.b32.xlu0 %v77_v9, %s342_s16  ;;  %v91_v10 = vld [vmem:[#allocation1] sm:$0x3]   ;;  %v85_v11 = vld [vmem:[#allocation1 + $0x19] ss:$-1 sm:%s84_s14]   ;;  %v204_v13 = vld [vmem:[#allocation1 + $0x8] sm:$0x3]  }
   0xd   :  { %v202_v12 = vld [vmem:[#allocation1] sm:$0x3]   ;;  %v98_v16 = vld [vmem:[#allocation1 + $0x8] sm:$0x3]   ;;  %v220_v18 = vld [vmem:[#allocation1 + $0x11] ss:$-1 sm:%s219_s18]  }
   0xe   :  { %v65_v14 = vld [vmem:[#allocation1] sm:$0x3]   ;;  %v206_v15 = vsel %vm205_vm0, %v204_v13, %v202_v12  ;;  %v217_v17 = vld [vmem:[#allocation1 + $0x9] ss:$-1 sm:%s216_s17]   ;;  %v233_v19 = vld [vmem:[#allocation1 + $0x11] ss:$-1 sm:%s232_s19]  }
   0xf   :  { %67 = vst.msk [vmem:[#allocation0] ss:$24 sm:$0x3] %vm66_vm2, %v65_v14   ;;  %v236_v20 = vld [vmem:[#allocation1 + $0x19] ss:$-1 sm:%s235_s20]   ;;  %v222_v21 = vsel %vm221_vm1, %v220_v18, %v217_v17  ;;  %s352_s6 = smov 80  }
  0x10   :  { %92 = vrot.lane.b32.xlu0 %v91_v10, %s343_s21  ;;  %86 = vrot.lane.b32.xlu1 %v85_v11, %s344_s22  ;;  %v238_v22 = vsel %vm237_vm3, %v236_v20, %v233_v19  ;;  %v106_v23 = vld [vmem:[#allocation1 + $0x11] ss:$-1 sm:%s105_s25]   ;;  %v114_v24 = vld [vmem:[#allocation1 + $0x19] ss:$-1 sm:%s113_s26]   ;;  %v120_v25 = vld [vmem:[#allocation1] sm:$0x3]  }
  0x11   :  { %v128_v26 = vld [vmem:[#allocation1 + $0x9] ss:$-1 sm:%s127_s29]   ;;  %v136_v27 = vld [vmem:[#allocation1 + $0x11] ss:$-1 sm:%s135_s3]   ;;  %v144_v28 = vld [vmem:[#allocation1 + $0x19] ss:$-1 sm:%s143_s4]  }
  0x12   :  { %s157_s7 = smov 3  ;;  %s353_s8 = smov 76   ;;  %v150_v29 = vld [vmem:[#allocation1] sm:$0x3]  }
  0x13   :  { %s354_s9 = smov 72   ;;  %v158_v30 = vld [vmem:[#allocation1 + $0x9] ss:$-1 sm:%s157_s7]   ;;  %s165_s10 = smov 3  ;;  %v180_v33 = vld [vmem:[#allocation1] sm:$0x3]  }
  0x14   :  { %207 = vrot.lane.b32.xlu0 %v206_v15, %s345_s23  ;;  %99 = vrot.lane.b32.xlu1 %v98_v16, %s346_s24  ;;  %s173_s11 = smov 3  ;;  %s355_s12 = smov 62   ;;  %v166_v31 = vld [vmem:[#allocation1 + $0x11] ss:$-1 sm:%s165_s10]  }
  0x15   :  { %s356_s13 = smov 58   ;;  %v174_v32 = vld [vmem:[#allocation1 + $0x19] ss:$-1 sm:%s173_s11]   ;;  %s187_s0 = smov 3 }
  0x16   :  { %s357_s14 = smov 54   ;;  %s358_s15 = smov 50   ;;  %v188_v34 = vld [vmem:[#allocation1 + $0x9] ss:$-1 sm:%s187_s0]  }
  0x17   :  { %s195_s16 = smov 3  ;;  %s359_s17 = smov 40  }
  0x18   :  { %223 = vrot.lane.b32.xlu0 %v222_v21, %s347_s27  ;;  %239 = vrot.lane.b32.xlu1 %v238_v22, %s348_s28  ;;  %s360_s18 = smov 36   ;;  %v196_v35 = vld [vmem:[#allocation1 + $0x11] ss:$-1 sm:%s195_s16]   ;;  %s361_s19 = smov 32  }
  0x1c   :  { %107 = vrot.lane.b32.xlu0 %v106_v23, %s349_s30  ;;  %115 = vrot.lane.b32.xlu1 %v114_v24, %s350_s2 }
  0x20   :  { %121 = vrot.lane.b32.xlu0 %v120_v25, %s351_s5  ;;  %129 = vrot.lane.b32.xlu1 %v128_v26, %s352_s6 }
  0x24   :  { %137 = vrot.lane.b32.xlu0 %v136_v27, %s353_s8  ;;  %145 = vrot.lane.b32.xlu1 %v144_v28, %s354_s9 }
  0x28   :  { %151 = vrot.lane.b32.xlu0 %v150_v29, %s355_s12  ;;  %159 = vrot.lane.b32.xlu1 %v158_v30, %s356_s13 }
  0x2c   :  { %167 = vrot.lane.b32.xlu0 %v166_v31, %s357_s14  ;;  %175 = vrot.lane.b32.xlu1 %v174_v32, %s358_s15 }
  0x30   :  { %181 = vrot.lane.b32.xlu0 %v180_v33, %s359_s17  ;;  %189 = vrot.lane.b32.xlu1 %v188_v34, %s360_s18 }
  0x34   :  { %197 = vrot.lane.b32.xlu0 %v196_v35, %s361_s19 }
  0x7e   :  { %v71_v36 = vpop.permute.xlu1 %70   ;;  %v79_v37 = vpop.permute.xlu0 %78  }
  0x7f   :  { %74 = vst.msk [vmem:[#allocation0 + $0x6] ss:$24 sm:$0x3] %vm66_vm2, %v71_v36   ;;  %82 = vst.msk [vmem:[#allocation0 + $0x24] ss:$-24 sm:$0x3] %vm66_vm2, %v79_v37  }
  0x82   :  { %v93_v38 = vpop.permute.xlu0 %92   ;;  %v87_v39 = vpop.permute.xlu1 %86  }
  0x83   :  { %96 = vst.msk [vmem:[#allocation0 + $0x1] ss:$24 sm:$0x3] %vm66_vm2, %v93_v38   ;;  %90 = vst.msk [vmem:[#allocation0 + $0x2a] ss:$-24 sm:$0x3] %vm66_vm2, %v87_v39  }
  0x86   :  { %v208_v40 = vpop.permute.xlu0 %207   ;;  %v100_v41 = vpop.permute.xlu1 %99  }
  0x87   :  { %211 = vst.msk [vmem:[#allocation0 + $0x5] ss:$24 sm:$0x3] %vm209_vm4, %v208_v40  }
  0x88   :  { %103 = vst.msk [vmem:[#allocation0 + $0x7] ss:$24 sm:$0x3] %vm66_vm2, %v100_v41  }
  0x89   :  { %214 = vst.msk [vmem:[#allocation0 + $0x5] ss:$24 sm:$0x3] %vm212_vm5, %v208_v40  }
  0x8a   :  { %v224_v42 = vpop.permute.xlu0 %223   ;;  %v240_v43 = vpop.permute.xlu1 %239  }
  0x8b   :  { %227 = vst.msk [vmem:[#allocation0 + $0x23] ss:$-24 sm:$0x3] %vm225_vm6, %v224_v42  }
  0x8c   :  { %243 = vst.msk [vmem:[#allocation0 + $0x29] ss:$-24 sm:$0x3] %vm241_vm7, %v240_v43  }
  0x8d   :  { %230 = vst.msk [vmem:[#allocation0 + $0x23] ss:$-24 sm:$0x3] %vm228_vm8, %v224_v42  }
  0x8e   :  { %246 = vst.msk [vmem:[#allocation0 + $0x29] ss:$-24 sm:$0x3] %vm244_vm9, %v240_v43   ;;  %v108_v44 = vpop.permute.xlu0 %107   ;;  %v116_v45 = vpop.permute.xlu1 %115  }
  0x8f   :  { %111 = vst.msk [vmem:[#allocation0 + $0x25] ss:$-24 sm:$0x3] %vm66_vm2, %v108_v44   ;;  %119 = vst.msk [vmem:[#allocation0 + $0x2b] ss:$-24 sm:$0x3] %vm66_vm2, %v116_v45  }
  0x92   :  { %v122_v46 = vpop.permute.xlu0 %121   ;;  %v130_v47 = vpop.permute.xlu1 %129  }
  0x93   :  { %125 = vst.msk [vmem:[#allocation0 + $0x2] ss:$24 sm:$0x3] %vm66_vm2, %v122_v46   ;;  %133 = vst.msk [vmem:[#allocation0 + $0x20] ss:$-24 sm:$0x3] %vm66_vm2, %v130_v47  }
  0x96   :  { %v138_v48 = vpop.permute.xlu0 %137   ;;  %v146_v49 = vpop.permute.xlu1 %145  }
  0x97   :  { %141 = vst.msk [vmem:[#allocation0 + $0x26] ss:$-24 sm:$0x3] %vm66_vm2, %v138_v48   ;;  %149 = vst.msk [vmem:[#allocation0 + $0x2c] ss:$-24 sm:$0x3] %vm66_vm2, %v146_v49  }
  0x9a   :  { %v152_v50 = vpop.permute.xlu0 %151   ;;  %v160_v51 = vpop.permute.xlu1 %159  }
  0x9b   :  { %155 = vst.msk [vmem:[#allocation0 + $0x3] ss:$24 sm:$0x3] %vm66_vm2, %v152_v50   ;;  %163 = vst.msk [vmem:[#allocation0 + $0x21] ss:$-24 sm:$0x3] %vm66_vm2, %v160_v51  }
  0x9e   :  { %v168_v52 = vpop.permute.xlu0 %167   ;;  %v176_v53 = vpop.permute.xlu1 %175  }
  0x9f   :  { %171 = vst.msk [vmem:[#allocation0 + $0x27] ss:$-24 sm:$0x3] %vm66_vm2, %v168_v52   ;;  %179 = vst.msk [vmem:[#allocation0 + $0x2d] ss:$-24 sm:$0x3] %vm66_vm2, %v176_v53  }
  0xa2   :  { %v182_v54 = vpop.permute.xlu0 %181   ;;  %v190_v55 = vpop.permute.xlu1 %189  }
  0xa3   :  { %185 = vst.msk [vmem:[#allocation0 + $0x4] ss:$24 sm:$0x3] %vm66_vm2, %v182_v54   ;;  %193 = vst.msk [vmem:[#allocation0 + $0x22] ss:$-24 sm:$0x3] %vm66_vm2, %v190_v55  }
  0xa6   :  { %v198_v56 = vpop.permute.xlu0 %197  }
  0xa7   :  { %201 = vst.msk [vmem:[#allocation0 + $0x28] ss:$-24 sm:$0x3] %vm66_vm2, %v198_v56  }
  0xaa   :  { %v251_v57 = vld [vmem:[#allocation0] sm:$0xff]  ;;  %v256_v58 = vld [vmem:[#allocation0 + $0x8] sm:$0xff]  ;;  %v269_v60 = vld [vmem:[#allocation0 + $0x18] sm:$0xff] }
  0xab   :  { %v306_v59 = vpack.c.bf16 %v256_v58, %v251_v57  ;;  %v276_v61 = vld [vmem:[#allocation0 + $0x20] sm:$0xff] }
  0xad   :  { %307 = vst [vmem:[%s413_s1] sm:$0xff] %v306_v59  }
  0xae   :  { %v262_v62 = vld [vmem:[#allocation0 + $0x10] sm:$0xff]  ;;  %v283_v63 = vld [vmem:[#allocation0 + $0x28] sm:$0xff] }
  0xaf   :  { %v311_v0 = vpack.c.bf16 %v269_v60, %v262_v62  ;;  %v316_v1 = vpack.c.bf16 %v283_v63, %v276_v61 }
  0xb1   :  { %318 = vst [vmem:[%s413_s1 + $0x8] sm:$0xff] %v311_v0   ;;  %319 = vst [vmem:[%s413_s1 + $0x10] sm:$0xff] %v316_v1  }

// kernel: multimoding2017_forward.14
= control target key start
LH: loop header
LB: loop body
LE: loop exit
PB: predicated region body
PF: predicated region fallthrough
CT: control target
= control target key end

     0   :  { %s887_s15 = smov 0   ;;  %s1053_s0 = inlined_call_operand.vmem [shape: bf16[1024,16], index: 0, kind: input, shape index: {}]   ;;  %s1054_s1 = inlined_call_operand.vmem [shape: bf16[16,128], index: 1, kind: input, shape index: {}]   ;;  %s1055_s2 = inlined_call_operand.vmem [shape: f32[1,128], index: 2, kind: input, shape index: {}]   ;;  %s1056_s3 = inlined_call_operand.vmem [shape: f32[1,128], index: 3, kind: input, shape index: {}]   ;;  %s1057_s4 = inlined_call_operand.vmem [shape: f32[1024,128], index: 4, kind: output, shape index: {}]  }
   0x1 LB: > { %s730_s16 = sadd.s32 4294967295, %s860_s15   ;;  %p734_p0 = scmp.ge.s32.totalorder %s860_s15, 1  ;;  %s860_s15 = sphi %s887_s15, %s14_s15  }
   0x2   : > { %p163_p1 = scmp.lt.s32.totalorder %s860_s15, 5 }
   0x4   : > { %p164_p2 = pnand %p734_p0, %p163_p1 }
   0x5   : > { %v837_v0 = vld [vmem:[%s1054_s1] sm:$0xff] (!%p164_p2)   ;;  %s735_s19 = sshll.u32 (!%p164_p2), %s730_s16, 5  ;;  %vm322_vm0 = vcmask (!%p164_p2), 130048  }
   0x6   : > { %167 = sbr.rel (%p164_p2) target bundleno = 265 (0x109), region = 36  ;;  %p190_p3 = scmp.lt.s32.totalorder (!%p164_p2), %s735_s19, 127  ;;  %793 = vmatprep.subr.bf16.mxu0 (!%p164_p2), %v837_v0  ;;  %827 = vmatprep.subr.bf16.mxu1 (!%p164_p2), %v837_v0  ;;  %v941_v17 = vld [vmem:[%s1055_s2] ss:$0 sm:$0xff] (!%p164_p2) }
   0x7   : > { %794 = vmatpush3.bf16.msra.mxu0 (!%p164_p2), %v837_v0  ;;  %828 = vmatpush3.bf16.msra.mxu1 (!%p164_p2), %v837_v0  ;;  %v946_v19 = vld [vmem:[%s1056_s3] ss:$0 sm:$0xff] (!%p164_p2) }
   0xd   : > { %s1059_s19 = smov (!%p190_p3, %s735_s19), 127 }
   0xe   : > { %s736_s20 = sshll.u32 %s1059_s19, 2  ;;  %s738_s28 = sshll.u32 %s1059_s19, 3 }
   0xf   : > { %s904_s23 = scalar_lea.vmem %s1053_s0, %s736_s20  ;;  %s958_s5 = scalar_lea.vmem %s1057_s4, %s738_s28 }
  0x10   : > { %v838_v1 = vld [vmem:[%s904_s23] sm:$0xff]   ;;  %v840_v3 = vld [vmem:[%s904_s23 + $0x8] sm:$0xff]   ;;  %v842_v5 = vld [vmem:[%s904_s23 + $0x10] sm:$0xff]  }
  0x11   : > { %v839_v2 = vld [vmem:[%s904_s23 + $0x40] sm:$0xff]   ;;  %795 = vmatprep.mubr.msk.bf16.mxu0 %vm322_vm0, %v838_v1  ;;  %v841_v4 = vld [vmem:[%s904_s23 + $0x48] sm:$0xff]   ;;  %v843_v6 = vld [vmem:[%s904_s23 + $0x50] sm:$0xff]  }
  0x12   : > { %811 = vmatprep.mubr.msk.bf16.mxu1 %vm322_vm0, %v839_v2  ;;  %796 = vmatmul.mubr.msk.bf16.vlgmr.msra.gmra.mrb[0].mxu0 %vm322_vm0, %v840_v3  ;;  %v844_v7 = vld [vmem:[%s904_s23 + $0x18] sm:$0xff]   ;;  %v846_v9 = vld [vmem:[%s904_s23 + $0x20] sm:$0xff]   ;;  %v848_v11 = vld [vmem:[%s904_s23 + $0x28] sm:$0xff]  }
  0x13   : > { %812 = vmatmul.mubr.msk.bf16.vlgmr.msra.gmra.mrb[0].mxu1 %vm322_vm0, %v841_v4  ;;  %799 = vmatprep.mubr.msk.bf16.mxu0 %vm322_vm0, %v842_v5  ;;  %v845_v8 = vld [vmem:[%s904_s23 + $0x58] sm:$0xff]   ;;  %v847_v10 = vld [vmem:[%s904_s23 + $0x60] sm:$0xff]   ;;  %v849_v12 = vld [vmem:[%s904_s23 + $0x68] sm:$0xff]  }
  0x14   : > { %815 = vmatprep.mubr.msk.bf16.mxu1 %vm322_vm0, %v843_v6  ;;  %v850_v13 = vld [vmem:[%s904_s23 + $0x30] sm:$0xff]   ;;  %v852_v15 = vld [vmem:[%s904_s23 + $0x38] sm:$0xff]  }
  0x15   : > { %v851_v14 = vld [vmem:[%s904_s23 + $0x70] sm:$0xff]   ;;  %v853_v16 = vld [vmem:[%s904_s23 + $0x78] sm:$0xff]  }
  0x1a   : > { %800 = vmatmul.mubr.msk.bf16.gmra.mrb[4].mxu0 %vm322_vm0, %v844_v7 }
  0x1b   : > { %816 = vmatmul.mubr.msk.bf16.gmra.mrb[4].mxu1 %vm322_vm0, %v845_v8  ;;  %803 = vmatprep.mubr.msk.bf16.mxu0 %vm322_vm0, %v846_v9 }
  0x1c   : > { %819 = vmatprep.mubr.msk.bf16.mxu1 %vm322_vm0, %v847_v10 }
  0x22   : > { %804 = vmatmul.mubr.msk.bf16.gmra.mrb[8].mxu0 %vm322_vm0, %v848_v11 }
  0x23   : > { %820 = vmatmul.mubr.msk.bf16.gmra.mrb[8].mxu1 %vm322_vm0, %v849_v12  ;;  %807 = vmatprep.mubr.msk.bf16.mxu0 %vm322_vm0, %v850_v13 }
  0x24   : > { %823 = vmatprep.mubr.msk.bf16.mxu1 %vm322_vm0, %v851_v14 }
  0x2a   : > { %808 = vmatmul.mubr.msk.bf16.gmra.mrb[12].mxu0 %vm322_vm0, %v852_v15 }
  0x2b   : > { %824 = vmatmul.mubr.msk.bf16.gmra.mrb[12].mxu1 %vm322_vm0, %v853_v16 }
  0xe5   : > { %v797_v18 = vpop.f32.mrb[0].mxu0 }
  0xe6   : > { %v541_v20 = vmul.f32 %v797_v18, %v941_v17  ;;  %v813_v21 = vpop.f32.mrb[0].mxu1  ;;  %v405_v22 = vpop.f32.mrb[1].mxu0 }
  0xe7   : > { %v557_v23 = vmul.f32 %v813_v21, %v941_v17  ;;  %v539_v24 = vmul.f32 %v941_v17, %v405_v22  ;;  %v469_v25 = vpop.f32.mrb[1].mxu1  ;;  %v798_v26 = vpop.f32.mrb[2].mxu0 }
  0xe8   : > { %v580_v27 = vadd.f32 %v946_v19, %v541_v20  ;;  %v555_v28 = vmul.f32 %v941_v17, %v469_v25  ;;  %v542_v29 = vmul.f32 %v798_v26, %v941_v17  ;;  %v814_v30 = vpop.f32.mrb[2].mxu1  ;;  %v408_v31 = vpop.f32.mrb[3].mxu0 }
  0xe9   : > { %v596_v32 = vadd.f32 %v946_v19, %v557_v23  ;;  %v578_v33 = vadd.f32 %v946_v19, %v539_v24  ;;  %v558_v34 = vmul.f32 %v814_v30, %v941_v17  ;;  %v540_v35 = vmul.f32 %v941_v17, %v408_v31  ;;  %v472_v36 = vpop.f32.mrb[3].mxu1 }
  0xea   : > { %v612_v37 = vmax.f32 %v580_v27, 0.0  ;;  %v594_v38 = vadd.f32 %v946_v19, %v555_v28  ;;  %v581_v39 = vadd.f32 %v946_v19, %v542_v29  ;;  %v556_v40 = vmul.f32 %v941_v17, %v472_v36 }
  0xeb   : > { %v628_v41 = vmax.f32 %v596_v32, 0.0  ;;  %v610_v42 = vmax.f32 %v578_v33, 0.0  ;;  %v597_v43 = vadd.f32 %v946_v19, %v558_v34  ;;  %v579_v44 = vadd.f32 %v946_v19, %v540_v35 }
  0xec   : > { %644 = vst [vmem:[%s958_s5 + $0x10] sm:$0xff] %v612_v37  ;;  %v626_v45 = vmax.f32 %v594_v38, 0.0  ;;  %v613_v46 = vmax.f32 %v581_v39, 0.0  ;;  %v595_v47 = vadd.f32 %v946_v19, %v556_v40 }
  0xed   : > { %660 = vst [vmem:[%s958_s5 + $0x90] sm:$0xff] %v628_v41  ;;  %642 = vst [vmem:[%s958_s5] sm:$0xff] %v610_v42  ;;  %v629_v48 = vmax.f32 %v597_v43, 0.0  ;;  %v611_v49 = vmax.f32 %v579_v44, 0.0  ;;  %v801_v50 = vpop.f32.mrb[4].mxu0 }
  0xee   : > { %658 = vst [vmem:[%s958_s5 + $0x80] sm:$0xff] %v626_v45  ;;  %645 = vst [vmem:[%s958_s5 + $0x18] sm:$0xff] %v613_v46  ;;  %v627_v51 = vmax.f32 %v595_v47, 0.0  ;;  %v545_v52 = vmul.f32 %v801_v50, %v941_v17  ;;  %v817_v53 = vpop.f32.mrb[4].mxu1  ;;  %v421_v54 = vpop.f32.mrb[5].mxu0 }
  0xef   : > { %661 = vst [vmem:[%s958_s5 + $0x98] sm:$0xff] %v629_v48  ;;  %643 = vst [vmem:[%s958_s5 + $0x8] sm:$0xff] %v611_v49  ;;  %v561_v55 = vmul.f32 %v817_v53, %v941_v17  ;;  %v543_v56 = vmul.f32 %v941_v17, %v421_v54  ;;  %v485_v57 = vpop.f32.mrb[5].mxu1  ;;  %v802_v58 = vpop.f32.mrb[6].mxu0 }
  0xf0   : > { %659 = vst [vmem:[%s958_s5 + $0x88] sm:$0xff] %v627_v51  ;;  %v584_v59 = vadd.f32 %v946_v19, %v545_v52  ;;  %v559_v60 = vmul.f32 %v941_v17, %v485_v57  ;;  %v546_v61 = vmul.f32 %v802_v58, %v941_v17  ;;  %v818_v62 = vpop.f32.mrb[6].mxu1  ;;  %v424_v63 = vpop.f32.mrb[7].mxu0 }
  0xf1   : > { %v600_v0 = vadd.f32 %v946_v19, %v561_v55  ;;  %v582_v1 = vadd.f32 %v946_v19, %v543_v56  ;;  %v562_v2 = vmul.f32 %v818_v62, %v941_v17  ;;  %v544_v3 = vmul.f32 %v941_v17, %v424_v63  ;;  %v488_v4 = vpop.f32.mrb[7].mxu1 }
  0xf2   : > { %v616_v5 = vmax.f32 %v584_v59, 0.0  ;;  %v598_v6 = vadd.f32 %v946_v19, %v559_v60  ;;  %v585_v7 = vadd.f32 %v946_v19, %v546_v61  ;;  %v560_v8 = vmul.f32 %v941_v17, %v488_v4 }
  0xf3   : > { %v632_v9 = vmax.f32 %v600_v0, 0.0  ;;  %v614_v10 = vmax.f32 %v582_v1, 0.0  ;;  %v601_v11 = vadd.f32 %v946_v19, %v562_v2  ;;  %v583_v12 = vadd.f32 %v946_v19, %v544_v3 }
  0xf4   : > { %648 = vst [vmem:[%s958_s5 + $0x30] sm:$0xff] %v616_v5  ;;  %v630_v13 = vmax.f32 %v598_v6, 0.0  ;;  %v617_v14 = vmax.f32 %v585_v7, 0.0  ;;  %v599_v15 = vadd.f32 %v946_v19, %v560_v8 }
  0xf5   : > { %664 = vst [vmem:[%s958_s5 + $0xb0] sm:$0xff] %v632_v9  ;;  %646 = vst [vmem:[%s958_s5 + $0x20] sm:$0xff] %v614_v10  ;;  %v633_v16 = vmax.f32 %v601_v11, 0.0  ;;  %v615_v18 = vmax.f32 %v583_v12, 0.0  ;;  %v805_v20 = vpop.f32.mrb[8].mxu0 }
  0xf6   : > { %662 = vst [vmem:[%s958_s5 + $0xa0] sm:$0xff] %v630_v13  ;;  %649 = vst [vmem:[%s958_s5 + $0x38] sm:$0xff] %v617_v14  ;;  %v631_v21 = vmax.f32 %v599_v15, 0.0  ;;  %v549_v22 = vmul.f32 %v805_v20, %v941_v17  ;;  %v821_v23 = vpop.f32.mrb[8].mxu1  ;;  %v437_v24 = vpop.f32.mrb[9].mxu0 }
  0xf7   : > { %665 = vst [vmem:[%s958_s5 + $0xb8] sm:$0xff] %v633_v16  ;;  %647 = vst [vmem:[%s958_s5 + $0x28] sm:$0xff] %v615_v18  ;;  %v565_v25 = vmul.f32 %v821_v23, %v941_v17  ;;  %v547_v26 = vmul.f32 %v941_v17, %v437_v24  ;;  %v501_v27 = vpop.f32.mrb[9].mxu1  ;;  %v806_v28 = vpop.f32.mrb[10].mxu0 }
  0xf8   : > { %663 = vst [vmem:[%s958_s5 + $0xa8] sm:$0xff] %v631_v21  ;;  %v588_v29 = vadd.f32 %v946_v19, %v549_v22  ;;  %v563_v30 = vmul.f32 %v941_v17, %v501_v27  ;;  %v550_v31 = vmul.f32 %v806_v28, %v941_v17  ;;  %v822_v32 = vpop.f32.mrb[10].mxu1  ;;  %v440_v33 = vpop.f32.mrb[11].mxu0 }
  0xf9   : > { %v604_v34 = vadd.f32 %v946_v19, %v565_v25  ;;  %v586_v35 = vadd.f32 %v946_v19, %v547_v26  ;;  %v566_v36 = vmul.f32 %v822_v32, %v941_v17  ;;  %v548_v37 = vmul.f32 %v941_v17, %v440_v33  ;;  %v504_v38 = vpop.f32.mrb[11].mxu1 }
  0xfa   : > { %v620_v39 = vmax.f32 %v588_v29, 0.0  ;;  %v602_v40 = vadd.f32 %v946_v19, %v563_v30  ;;  %v589_v41 = vadd.f32 %v946_v19, %v550_v31  ;;  %v564_v42 = vmul.f32 %v941_v17, %v504_v38 }
  0xfb   : > { %v636_v43 = vmax.f32 %v604_v34, 0.0  ;;  %v618_v44 = vmax.f32 %v586_v35, 0.0  ;;  %v605_v45 = vadd.f32 %v946_v19, %v566_v36  ;;  %v587_v46 = vadd.f32 %v946_v19, %v548_v37 }
  0xfc   : > { %652 = vst [vmem:[%s958_s5 + $0x50] sm:$0xff] %v620_v39  ;;  %v634_v47 = vmax.f32 %v602_v40, 0.0  ;;  %v621_v48 = vmax.f32 %v589_v41, 0.0  ;;  %v603_v49 = vadd.f32 %v946_v19, %v564_v42 }
  0xfd   : > { %668 = vst [vmem:[%s958_s5 + $0xd0] sm:$0xff] %v636_v43  ;;  %650 = vst [vmem:[%s958_s5 + $0x40] sm:$0xff] %v618_v44  ;;  %v637_v50 = vmax.f32 %v605_v45, 0.0  ;;  %v619_v51 = vmax.f32 %v587_v46, 0.0  ;;  %v809_v52 = vpop.f32.mrb[12].mxu0 }
  0xfe   : > { %666 = vst [vmem:[%s958_s5 + $0xc0] sm:$0xff] %v634_v47  ;;  %653 = vst [vmem:[%s958_s5 + $0x58] sm:$0xff] %v621_v48  ;;  %v635_v53 = vmax.f32 %v603_v49, 0.0  ;;  %v553_v54 = vmul.f32 %v809_v52, %v941_v17  ;;  %v825_v55 = vpop.f32.mrb[12].mxu1  ;;  %v453_v56 = vpop.f32.mrb[13].mxu0 }
  0xff   : > { %669 = vst [vmem:[%s958_s5 + $0xd8] sm:$0xff] %v637_v50  ;;  %651 = vst [vmem:[%s958_s5 + $0x48] sm:$0xff] %v619_v51  ;;  %v569_v57 = vmul.f32 %v825_v55, %v941_v17  ;;  %v551_v58 = vmul.f32 %v941_v17, %v453_v56  ;;  %v517_v59 = vpop.f32.mrb[13].mxu1  ;;  %v810_v60 = vpop.f32.mrb[14].mxu0 }
 0x100   : > { %667 = vst [vmem:[%s958_s5 + $0xc8] sm:$0xff] %v635_v53  ;;  %v592_v61 = vadd.f32 %v946_v19, %v553_v54  ;;  %v567_v62 = vmul.f32 %v941_v17, %v517_v59  ;;  %v554_v63 = vmul.f32 %v810_v60, %v941_v17  ;;  %v826_v0 = vpop.f32.mrb[14].mxu1  ;;  %v456_v1 = vpop.f32.mrb[15].mxu0 }
 0x101   : > { %v608_v2 = vadd.f32 %v946_v19, %v569_v57  ;;  %v590_v3 = vadd.f32 %v946_v19, %v551_v58  ;;  %v570_v4 = vmul.f32 %v826_v0, %v941_v17  ;;  %v552_v5 = vmul.f32 %v941_v17, %v456_v1  ;;  %v520_v6 = vpop.f32.mrb[15].mxu1 }
 0x102   : > { %v624_v7 = vmax.f32 %v592_v61, 0.0  ;;  %v606_v8 = vadd.f32 %v946_v19, %v567_v62  ;;  %v593_v9 = vadd.f32 %v946_v19, %v554_v63  ;;  %v568_v10 = vmul.f32 %v941_v17, %v520_v6 }
 0x103   : > { %v640_v11 = vmax.f32 %v608_v2, 0.0  ;;  %v622_v12 = vmax.f32 %v590_v3, 0.0  ;;  %v609_v13 = vadd.f32 %v946_v19, %v570_v4  ;;  %v591_v14 = vadd.f32 %v946_v19, %v552_v5 }
 0x104   : > { %656 = vst [vmem:[%s958_s5 + $0x70] sm:$0xff] %v624_v7  ;;  %v638_v15 = vmax.f32 %v606_v8, 0.0  ;;  %v625_v16 = vmax.f32 %v593_v9, 0.0  ;;  %v607_v18 = vadd.f32 %v946_v19, %v568_v10 }
 0x105   : > { %672 = vst [vmem:[%s958_s5 + $0xf0] sm:$0xff] %v640_v11  ;;  %654 = vst [vmem:[%s958_s5 + $0x60] sm:$0xff] %v622_v12  ;;  %v641_v20 = vmax.f32 %v609_v13, 0.0  ;;  %v623_v21 = vmax.f32 %v591_v14, 0.0 }
 0x106   : > { %670 = vst [vmem:[%s958_s5 + $0xe0] sm:$0xff] %v638_v15  ;;  %657 = vst [vmem:[%s958_s5 + $0x78] sm:$0xff] %v625_v16  ;;  %v639_v17 = vmax.f32 %v607_v18, 0.0 }
 0x107   : > { %673 = vst [vmem:[%s958_s5 + $0xf8] sm:$0xff] %v641_v20  ;;  %655 = vst [vmem:[%s958_s5 + $0x68] sm:$0xff] %v623_v21 }
 0x108   : > { %671 = vst [vmem:[%s958_s5 + $0xe8] sm:$0xff] %v639_v17 }
 0x109 PF: > { %s14_s15 = sadd.s32 1, %s860_s15  }
 0x10a   : > { %p11_p4 = scmp.ge.s32.totalorder %s14_s15, 6  }
 0x10c   :  { %13 = sbr.rel (!%p11_p4) target bundleno = 1 (0x1), region = 66 }

// kernel: multimoding2017_forward.15
= control target key start
LH: loop header
LB: loop body
LE: loop exit
PB: predicated region body
PF: predicated region fallthrough
CT: control target
= control target key end

     0   :  { %v1007_v0 = vmov 0   ;;  %vm274_vm0 = vcmask 130048   ;;  %s1762_s1 = inlined_call_operand.vmem [shape: bf16[144,128], index: 1, kind: input, shape index: {}]   ;;  %s1763_s0 = inlined_call_operand.vmem [shape: bf16[248,144], index: 0, kind: input, shape index: {}]   ;;  %s1764_s4 = inlined_call_operand.vmem [shape: f32[248,128], index: 4, kind: input, shape index: {}]   ;;  %s1765_s5 = inlined_call_operand.vmem [shape: f32[248,128], index: 5, kind: input, shape index: {}]   ;;  %s1766_s6 = inlined_call_operand.vmem [shape: f32[248,128], index: 6, kind: input, shape index: {}]   ;;  %s1767_s2 = inlined_call_operand.vmem [shape: f32[1,128], index: 2, kind: input, shape index: {}]   ;;  %s1768_s3 = inlined_call_operand.vmem [shape: f32[1,128], index: 3, kind: input, shape index: {}]   ;;  %s1769_s7 = inlined_call_operand.vmem [shape: f32[248,128], index: 7, kind: input, shape index: {}]   ;;  %s1770_s8 = inlined_call_operand.vmem [shape: f32[248,128], index: 8, kind: output, shape index: {}]  }
   0x1   :  { %323 = vmatprep.subr.bf16.mxu0 %v1007_v0  ;;  %932 = vmatprep.subr.bf16.mxu1 %v1007_v0  ;;  %v951_v1 = vld [vmem:[%s1762_s1] sm:$0xff]   ;;  %v952_v2 = vld [vmem:[%s1762_s1 + $0x8] sm:$0xff]   ;;  %v953_v3 = vld [vmem:[%s1762_s1 + $0x10] sm:$0xff]  }
   0x2   :  { %324 = vmatpush1.bf16.msra.mxu0 %v951_v1  ;;  %941 = vmatpush1.bf16.msra.mxu1 %v951_v1  ;;  %v954_v4 = vld [vmem:[%s1762_s1 + $0x18] sm:$0xff]   ;;  %v962_v5 = vld [vmem:[%s1763_s0 + $0x4] ss:$8 sps:$4 sm:$0xff]   ;;  %v957_v9 = vld [vmem:[%s1762_s1 + $0x30] sm:$0xff]  }
   0x3   :  { %325 = vmatprep.subr.bf16.mxu0 %v1007_v0  ;;  %933 = vmatprep.subr.bf16.mxu1 %v1007_v0  ;;  %v965_v6 = vld [vmem:[%s1763_s0 + $0x84] ss:$8 sps:$4 sm:$0xff]   ;;  %v958_v10 = vld [vmem:[%s1762_s1 + $0x38] sm:$0xff]   ;;  %v960_v12 = vld [vmem:[%s1763_s0] ss:$8 sps:$4 sm:$0xff]  }
   0x4   :  { %914 = vmatprep.mubr.msk.bf16.mxu0 %vm274_vm0, %v962_v5  ;;  %922 = vmatprep.mubr.msk.bf16.mxu1 %vm274_vm0, %v965_v6  ;;  %v955_v7 = vld [vmem:[%s1762_s1 + $0x20] sm:$0xff]   ;;  %v956_v8 = vld [vmem:[%s1762_s1 + $0x28] sm:$0xff]   ;;  %v966_v14 = vld [vmem:[%s1763_s0 + $0x14] ss:$8 sps:$4 sm:$0xff]  }
   0x5   :  { %v959_v11 = vld [vmem:[%s1762_s1 + $0x40] sm:$0xff]   ;;  %v968_v15 = vld [vmem:[%s1763_s0 + $0x94] ss:$8 sps:$4 sm:$0xff]   ;;  %v970_v16 = vld [vmem:[%s1763_s0 + $0x10] ss:$8 sps:$4 sm:$0xff]  }
   0x6   :  { %326 = vmatpush1.bf16.msra.mxu0 %v952_v2  ;;  %942 = vmatpush1.bf16.msra.mxu1 %v952_v2  ;;  %v963_v13 = vld [vmem:[%s1763_s0 + $0x80] ss:$8 sps:$4 sm:$0xff]   ;;  %v971_v17 = vld [vmem:[%s1763_s0 + $0x90] ss:$8 sps:$4 sm:$0xff]   ;;  %v972_v18 = vld [vmem:[%s1763_s0 + $0x24] ss:$8 sps:$4 sm:$0xff]  }
   0x7   :  { %327 = vmatprep.subr.bf16.mxu0 %v1007_v0  ;;  %934 = vmatprep.subr.bf16.mxu1 %v1007_v0  ;;  %v974_v19 = vld [vmem:[%s1763_s0 + $0xa4] ss:$8 sps:$4 sm:$0xff]   ;;  %v976_v20 = vld [vmem:[%s1763_s0 + $0x20] ss:$8 sps:$4 sm:$0xff]   ;;  %v978_v22 = vld [vmem:[%s1763_s0 + $0x34] ss:$8 sps:$4 sm:$0xff]  }
   0x8   :  { %v977_v21 = vld [vmem:[%s1763_s0 + $0xa0] ss:$8 sps:$4 sm:$0xff]   ;;  %v980_v23 = vld [vmem:[%s1763_s0 + $0xb4] ss:$8 sps:$4 sm:$0xff]   ;;  %v982_v24 = vld [vmem:[%s1763_s0 + $0x30] ss:$8 sps:$4 sm:$0xff]  }
   0x9   :  { %v983_v25 = vld [vmem:[%s1763_s0 + $0xb0] ss:$8 sps:$4 sm:$0xff]   ;;  %v984_v26 = vld [vmem:[%s1763_s0 + $0x44] ss:$8 sps:$4 sm:$0xff]   ;;  %v988_v28 = vld [vmem:[%s1763_s0 + $0x40] ss:$8 sps:$4 sm:$0xff]  }
   0xa   :  { %328 = vmatpush1.bf16.msra.mxu0 %v953_v3  ;;  %943 = vmatpush1.bf16.msra.mxu1 %v953_v3  ;;  %v986_v27 = vld [vmem:[%s1763_s0 + $0xc4] ss:$8 sps:$4 sm:$0xff]   ;;  %v989_v29 = vld [vmem:[%s1763_s0 + $0xc0] ss:$8 sps:$4 sm:$0xff]   ;;  %v990_v30 = vld [vmem:[%s1763_s0 + $0x54] ss:$8 sps:$4 sm:$0xff]  }
   0xb   :  { %329 = vmatprep.subr.bf16.mxu0 %v1007_v0  ;;  %935 = vmatprep.subr.bf16.mxu1 %v1007_v0  ;;  %v992_v31 = vld [vmem:[%s1763_s0 + $0xd4] ss:$8 sps:$4 sm:$0xff]   ;;  %v994_v32 = vld [vmem:[%s1763_s0 + $0x50] ss:$8 sps:$4 sm:$0xff]   ;;  %v996_v34 = vld [vmem:[%s1763_s0 + $0x64] ss:$8 sps:$4 sm:$0xff]  }
   0xc   :  { %v995_v33 = vld [vmem:[%s1763_s0 + $0xd0] ss:$8 sps:$4 sm:$0xff]   ;;  %v998_v35 = vld [vmem:[%s1763_s0 + $0xe4] ss:$8 sps:$4 sm:$0xff]   ;;  %v1000_v37 = vld [vmem:[%s1763_s0 + $0x60] ss:$8 sps:$4 sm:$0xff]  }
   0xd   :  { %v60_v36 = vld [vmem:[%s1763_s0 + $0xf0] sm:$0xff]  ;;  %v1001_v38 = vld [vmem:[%s1763_s0 + $0xe0] ss:$8 sps:$4 sm:$0xff]  }
   0xe   :  { %330 = vmatpush1.bf16.msra.mxu0 %v954_v4  ;;  %944 = vmatpush1.bf16.msra.mxu1 %v954_v4  ;;  %v1002_v39 = vld [vmem:[%s1763_s0 + $0x74] ss:$8 sps:$4 sm:$0xff]   ;;  %v904_v40 = vcombine.high %v60_v36, %v60_v36  ;;  %v1005_v41 = vld [vmem:[%s1763_s0 + $0x70] ss:$8 sps:$4 sm:$0xff]   ;;  %v903_v42 = vcombine.low %v60_v36, %v60_v36  ;;  %v590_v43 = vld [vmem:[%s1764_s4] sm:$0xff] }
   0xf   :  { %331 = vmatprep.subr.bf16.mxu0 %v1007_v0  ;;  %936 = vmatprep.subr.bf16.mxu1 %v1007_v0  ;;  %v621_v44 = vld [vmem:[%s1765_s5] sm:$0xff]  ;;  %v591_v47 = vld [vmem:[%s1764_s4 + $0x8] sm:$0xff]  ;;  %v592_v1 = vld [vmem:[%s1764_s4 + $0x10] sm:$0xff] }
  0x10   :  { %v606_v45 = vld [vmem:[%s1764_s4 + $0x80] sm:$0xff]  ;;  %v622_v48 = vld [vmem:[%s1765_s5 + $0x8] sm:$0xff]  ;;  %v652_v51 = vmax.f32 %v590_v43, %v621_v44  ;;  %v623_v2 = vld [vmem:[%s1765_s5 + $0x10] sm:$0xff] }
  0x11   :  { %v637_v46 = vld [vmem:[%s1765_s5 + $0x80] sm:$0xff]  ;;  %v607_v49 = vld [vmem:[%s1764_s4 + $0x88] sm:$0xff]  ;;  %v653_v55 = vmax.f32 %v591_v47, %v622_v48  ;;  %v608_v3 = vld [vmem:[%s1764_s4 + $0x90] sm:$0xff] }
  0x12   :  { %332 = vmatpush1.bf16.msra.mxu0 %v955_v7  ;;  %945 = vmatpush1.bf16.msra.mxu1 %v955_v7  ;;  %v638_v50 = vld [vmem:[%s1765_s5 + $0x88] sm:$0xff]  ;;  %v668_v52 = vmax.f32 %v606_v45, %v637_v46  ;;  %v683_v53 = vld [vmem:[%s1766_s6] sm:$0xff]  ;;  %v639_v4 = vld [vmem:[%s1765_s5 + $0x90] sm:$0xff] }
  0x13   :  { %333 = vmatprep.subr.bf16.mxu0 %v1007_v0  ;;  %937 = vmatprep.subr.bf16.mxu1 %v1007_v0  ;;  %v699_v54 = vld [vmem:[%s1766_s6 + $0x80] sm:$0xff]  ;;  %v669_v56 = vmax.f32 %v607_v49, %v638_v50  ;;  %v684_v58 = vld [vmem:[%s1766_s6 + $0x8] sm:$0xff]  ;;  %v714_v61 = vmax.f32 %v652_v51, %v683_v53  ;;  %v747_v44 = vld [vmem:[%s1769_s7 + $0x10] sm:$0xff] }
  0x14   :  { %v1222_v57 = vld [vmem:[%s1767_s2] ss:$0 sm:$0xff]  ;;  %v700_v59 = vld [vmem:[%s1766_s6 + $0x88] sm:$0xff]  ;;  %v730_v63 = vmax.f32 %v668_v52, %v699_v54  ;;  %v715_v7 = vmax.f32 %v653_v55, %v684_v58  ;;  %v763_v46 = vld [vmem:[%s1769_s7 + $0x90] sm:$0xff] }
  0x15   :  { %v1233_v60 = vld [vmem:[%s1768_s3] ss:$0 sm:$0xff] }
  0x16   :  { %334 = vmatpush1.bf16.msra.mxu0 %v956_v8  ;;  %946 = vmatpush1.bf16.msra.mxu1 %v956_v8  ;;  %v745_v62 = vld [vmem:[%s1769_s7] sm:$0xff]  ;;  %v746_v8 = vld [vmem:[%s1769_s7 + $0x8] sm:$0xff] }
  0x17   :  { %335 = vmatprep.subr.bf16.mxu0 %v1007_v0  ;;  %938 = vmatprep.subr.bf16.mxu1 %v1007_v0  ;;  %v594_v47 = vld [vmem:[%s1764_s4 + $0x20] sm:$0xff] }
  0x18   :  { %v625_v52 = vld [vmem:[%s1765_s5 + $0x20] sm:$0xff] }
  0x19   :  { %v610_v53 = vld [vmem:[%s1764_s4 + $0xa0] sm:$0xff] }
  0x1a   :  { %336 = vmatpush1.bf16.msra.mxu0 %v957_v9  ;;  %947 = vmatpush1.bf16.msra.mxu1 %v957_v9  ;;  %v731_v9 = vmax.f32 %v669_v56, %v700_v59  ;;  %v641_v54 = vld [vmem:[%s1765_s5 + $0xa0] sm:$0xff]  ;;  %v1314_v59 = vld [vmem:[%s1769_s7 + $0x18] sm:$0xff] }
  0x1b   :  { %337 = vmatprep.subr.bf16.mxu0 %v1007_v0  ;;  %939 = vmatprep.subr.bf16.mxu1 %v1007_v0 }
  0x1e   :  { %338 = vmatpush1.bf16.msra.mxu0 %v958_v10  ;;  %948 = vmatpush1.bf16.msra.mxu1 %v958_v10  ;;  %v762_v10 = vld [vmem:[%s1769_s7 + $0x88] sm:$0xff] }
  0x1f   :  { %339 = vmatprep.subr.bf16.mxu0 %v1007_v0  ;;  %940 = vmatprep.subr.bf16.mxu1 %v1007_v0  ;;  %v761_v0 = vld [vmem:[%s1769_s7 + $0x80] sm:$0xff] }
  0x22   :  { %340 = vmatpush1.bf16.msra.mxu0 %v959_v11  ;;  %949 = vmatpush1.bf16.msra.mxu1 %v959_v11  ;;  %v593_v11 = vld [vmem:[%s1764_s4 + $0x18] sm:$0xff] }
  0x25   :  { %356 = vmatmul.mubr.bf16.vlgmr.msra.gmra.mrb[0].mxu0 %v960_v12  ;;  %420 = vmatmul.mubr.bf16.vlgmr.msra.gmra.mrb[0].mxu1 %v963_v13 }
  0x26   :  { %915 = vmatprep.mubr.msk.bf16.mxu0 %vm274_vm0, %v966_v14  ;;  %923 = vmatprep.mubr.msk.bf16.mxu1 %vm274_vm0, %v968_v15 }
  0x2d   :  { %364 = vmatmul.mubr.bf16.gmra.mrb[4].mxu0 %v970_v16  ;;  %428 = vmatmul.mubr.bf16.gmra.mrb[4].mxu1 %v971_v17  ;;  %v624_v16 = vld [vmem:[%s1765_s5 + $0x18] sm:$0xff] }
  0x2e   :  { %916 = vmatprep.mubr.msk.bf16.mxu0 %vm274_vm0, %v972_v18  ;;  %924 = vmatprep.mubr.msk.bf16.mxu1 %vm274_vm0, %v974_v19  ;;  %v609_v17 = vld [vmem:[%s1764_s4 + $0x98] sm:$0xff]  ;;  %v776_v19 = vmax.f32 %v714_v61, %v745_v62 }
  0x2f   :  { %v640_v18 = vld [vmem:[%s1765_s5 + $0x98] sm:$0xff] }
  0x30   :  { %v671_v36 = vmax.f32 %v609_v17, %v640_v18  ;;  %v764_v62 = vld [vmem:[%s1769_s7 + $0x98] sm:$0xff] }
  0x35   :  { %372 = vmatmul.mubr.bf16.gmra.mrb[8].mxu0 %v976_v20  ;;  %436 = vmatmul.mubr.bf16.gmra.mrb[8].mxu1 %v977_v21  ;;  %v792_v20 = vmax.f32 %v730_v63, %v761_v0  ;;  %v595_v63 = vld [vmem:[%s1764_s4 + $0x28] sm:$0xff] }
  0x36   :  { %917 = vmatprep.mubr.msk.bf16.mxu0 %vm274_vm0, %v978_v22  ;;  %925 = vmatprep.mubr.msk.bf16.mxu1 %vm274_vm0, %v980_v23  ;;  %v654_v23 = vmax.f32 %v592_v1, %v623_v2 }
  0x3d   :  { %380 = vmatmul.mubr.bf16.gmra.mrb[12].mxu0 %v982_v24  ;;  %444 = vmatmul.mubr.bf16.gmra.mrb[12].mxu1 %v983_v25  ;;  %v670_v24 = vmax.f32 %v608_v3, %v639_v4 }
  0x3e   :  { %918 = vmatprep.mubr.msk.bf16.mxu0 %vm274_vm0, %v984_v26  ;;  %926 = vmatprep.mubr.msk.bf16.mxu1 %vm274_vm0, %v986_v27 }
  0x45   :  { %388 = vmatmul.mubr.bf16.gmra.mrb[16].mxu0 %v988_v28  ;;  %452 = vmatmul.mubr.bf16.gmra.mrb[16].mxu1 %v989_v29 }
  0x46   :  { %919 = vmatprep.mubr.msk.bf16.mxu0 %vm274_vm0, %v990_v30  ;;  %927 = vmatprep.mubr.msk.bf16.mxu1 %vm274_vm0, %v992_v31  ;;  %v685_v31 = vld [vmem:[%s1766_s6 + $0x10] sm:$0xff] }
  0x47   :  { %v716_v43 = vmax.f32 %v654_v23, %v685_v31  ;;  %v688_v31 = vld [vmem:[%s1766_s6 + $0x28] sm:$0xff] }
  0x4d   :  { %396 = vmatmul.mubr.bf16.gmra.mrb[20].mxu0 %v994_v32  ;;  %460 = vmatmul.mubr.bf16.gmra.mrb[20].mxu1 %v995_v33  ;;  %v701_v32 = vld [vmem:[%s1766_s6 + $0x90] sm:$0xff]  ;;  %v777_v33 = vmax.f32 %v715_v7, %v746_v8  ;;  %v611_v7 = vld [vmem:[%s1764_s4 + $0xa8] sm:$0xff] }
  0x4e   :  { %920 = vmatprep.mubr.msk.bf16.mxu0 %vm274_vm0, %v996_v34  ;;  %928 = vmatprep.mubr.msk.bf16.mxu1 %vm274_vm0, %v998_v35  ;;  %v793_v34 = vmax.f32 %v731_v9, %v762_v10  ;;  %v655_v35 = vmax.f32 %v593_v11, %v624_v16  ;;  %v732_v45 = vmax.f32 %v670_v24, %v701_v32  ;;  %v642_v8 = vld [vmem:[%s1765_s5 + $0xa8] sm:$0xff] }
  0x4f   :  { %v778_v9 = vmax.f32 %v716_v43, %v747_v44  ;;  %v704_v32 = vld [vmem:[%s1766_s6 + $0xa8] sm:$0xff]  ;;  %v612_v43 = vld [vmem:[%s1764_s4 + $0xb0] sm:$0xff] }
  0x50   :  { %v794_v10 = vmax.f32 %v732_v45, %v763_v46  ;;  %v643_v44 = vld [vmem:[%s1765_s5 + $0xb0] sm:$0xff] }
  0x55   :  { %404 = vmatmul.mubr.bf16.gmra.mrb[24].mxu0 %v1000_v37  ;;  %468 = vmatmul.mubr.bf16.gmra.mrb[24].mxu1 %v1001_v38 }
  0x56   :  { %921 = vmatprep.mubr.msk.bf16.mxu0 %vm274_vm0, %v1002_v39  ;;  %929 = vmatprep.mubr.msk.bf16.mxu1 %vm274_vm0, %v904_v40 }
  0x5d   :  { %412 = vmatmul.mubr.bf16.gmra.mrb[28].mxu0 %v1005_v41  ;;  %476 = vmatmul.mubr.bf16.gmra.mrb[28].mxu1 %v903_v42  ;;  %v686_v41 = vld [vmem:[%s1766_s6 + $0x18] sm:$0xff] }
  0x5e   :  { %v702_v42 = vld [vmem:[%s1766_s6 + $0x98] sm:$0xff]  ;;  %v1309_v58 = vmax.f32 %v655_v35, %v686_v41 }
  0x5f   :  { %v1316_v61 = vmax.f32 %v671_v36, %v702_v42  ;;  %v765_v36 = vld [vmem:[%s1769_s7 + $0xa0] sm:$0xff]  ;;  %v627_v42 = vld [vmem:[%s1765_s5 + $0x30] sm:$0xff] }
  0x60   :  { %v779_v23 = vmax.f32 %v1309_v58, %v1314_v59  ;;  %v628_v59 = vld [vmem:[%s1765_s5 + $0x38] sm:$0xff] }
  0x61   :  { %v795_v24 = vmax.f32 %v1316_v61, %v764_v62  ;;  %v613_v61 = vld [vmem:[%s1764_s4 + $0xb8] sm:$0xff] }
  0x62   :  { %v644_v62 = vld [vmem:[%s1765_s5 + $0xb8] sm:$0xff] }
  0xf8   :  { %v357_v5 = vpop.f32.mrb[0].mxu0  ;;  %v421_v6 = vpop.f32.mrb[0].mxu1 }
  0xf9   :  { %v490_v12 = vmul.f32 %v1222_v57, %v357_v5  ;;  %v506_v13 = vmul.f32 %v1222_v57, %v421_v6  ;;  %v359_v14 = vpop.f32.mrb[1].mxu0  ;;  %v423_v15 = vpop.f32.mrb[1].mxu1  ;;  %v626_v6 = vld [vmem:[%s1765_s5 + $0x28] sm:$0xff] }
  0xfa   :  { %v360_v21 = vpop.f32.mrb[2].mxu0  ;;  %v424_v22 = vpop.f32.mrb[2].mxu1  ;;  %v672_v14 = vmax.f32 %v610_v53, %v641_v54 }
  0xfb   :  { %v528_v25 = vadd.f32 %v1233_v60, %v490_v12  ;;  %v544_v26 = vadd.f32 %v1233_v60, %v506_v13  ;;  %v491_v27 = vmul.f32 %v1222_v57, %v360_v21  ;;  %v507_v28 = vmul.f32 %v1222_v57, %v424_v22  ;;  %v362_v29 = vpop.f32.mrb[3].mxu0  ;;  %v426_v30 = vpop.f32.mrb[3].mxu1  ;;  %v687_v21 = vld [vmem:[%s1766_s6 + $0x20] sm:$0xff] }
  0xfc   :  { %v656_v13 = vmax.f32 %v594_v47, %v625_v52  ;;  %v703_v22 = vld [vmem:[%s1766_s6 + $0xa0] sm:$0xff] }
  0xfd   :  { %v559_v37 = vmax.f32 %v528_v25, 0.0  ;;  %v575_v38 = vmax.f32 %v544_v26, 0.0  ;;  %v529_v39 = vadd.f32 %v1233_v60, %v491_v27  ;;  %v545_v40 = vadd.f32 %v1233_v60, %v507_v28 }
  0xfe   :  { %v657_v25 = vmax.f32 %v595_v63, %v626_v6  ;;  %v673_v26 = vmax.f32 %v611_v7, %v642_v8  ;;  %v734_v35 = vmax.f32 %v672_v14, %v703_v22  ;;  %v706_v22 = vld [vmem:[%s1766_s6 + $0xb8] sm:$0xff] }
  0xff   :  { %v807_v48 = vadd.f32 %v776_v19, %v559_v37  ;;  %v823_v49 = vadd.f32 %v792_v20, %v575_v38  ;;  %v560_v50 = vmax.f32 %v529_v39, 0.0  ;;  %v576_v51 = vmax.f32 %v545_v40, 0.0  ;;  %v596_v37 = vld [vmem:[%s1764_s4 + $0x30] sm:$0xff] }
 0x100   :  { %v365_v55 = vpop.f32.mrb[4].mxu0  ;;  %v429_v56 = vpop.f32.mrb[4].mxu1  ;;  %v1386_v47 = vmax.f32 %v657_v25, %v688_v31 }
 0x101   :  { %838 = vst [vmem:[%s1770_s8] sm:$0xff] %v807_v48  ;;  %854 = vst [vmem:[%s1770_s8 + $0x80] sm:$0xff] %v823_v49  ;;  %v808_v0 = vadd.f32 %v777_v33, %v560_v50  ;;  %v824_v1 = vadd.f32 %v793_v34, %v576_v51  ;;  %v492_v2 = vmul.f32 %v1222_v57, %v365_v55  ;;  %v367_v4 = vpop.f32.mrb[5].mxu0  ;;  %v431_v5 = vpop.f32.mrb[5].mxu1  ;;  %v749_v34 = vld [vmem:[%s1769_s7 + $0x20] sm:$0xff]  ;;  %v1391_v48 = vld [vmem:[%s1769_s7 + $0x28] sm:$0xff] }
 0x102   :  { %v508_v3 = vmul.f32 %v1222_v57, %v429_v56  ;;  %v368_v11 = vpop.f32.mrb[6].mxu0  ;;  %v432_v12 = vpop.f32.mrb[6].mxu1  ;;  %v718_v33 = vmax.f32 %v656_v13, %v687_v21  ;;  %v1393_v49 = vmax.f32 %v673_v26, %v704_v32  ;;  %v766_v50 = vld [vmem:[%s1769_s7 + $0xa8] sm:$0xff]  ;;  %v597_v51 = vld [vmem:[%s1764_s4 + $0x38] sm:$0xff]  ;;  %v674_v4 = vmax.f32 %v612_v43, %v643_v44  ;;  %v767_v26 = vld [vmem:[%s1769_s7 + $0xb0] sm:$0xff] }
 0x103   :  { %839 = vst [vmem:[%s1770_s8 + $0x8] sm:$0xff] %v808_v0  ;;  %855 = vst [vmem:[%s1770_s8 + $0x88] sm:$0xff] %v824_v1  ;;  %v530_v15 = vadd.f32 %v1233_v60, %v492_v2  ;;  %v493_v17 = vmul.f32 %v1222_v57, %v368_v11  ;;  %v509_v18 = vmul.f32 %v1222_v57, %v432_v12  ;;  %v370_v19 = vpop.f32.mrb[7].mxu0  ;;  %v434_v20 = vpop.f32.mrb[7].mxu1  ;;  %v689_v11 = vld [vmem:[%s1766_s6 + $0x30] sm:$0xff]  ;;  %v690_v21 = vld [vmem:[%s1766_s6 + $0x38] sm:$0xff] }
 0x104   :  { %v546_v16 = vadd.f32 %v1233_v60, %v508_v3  ;;  %v780_v63 = vmax.f32 %v718_v33, %v749_v34  ;;  %v796_v0 = vmax.f32 %v734_v35, %v765_v36  ;;  %v658_v3 = vmax.f32 %v596_v37, %v627_v42  ;;  %v705_v12 = vld [vmem:[%s1766_s6 + $0xb0] sm:$0xff]  ;;  %v629_v32 = vld [vmem:[%s1765_s5 + $0x40] sm:$0xff] }
 0x105   :  { %v561_v27 = vmax.f32 %v530_v15, 0.0  ;;  %v531_v29 = vadd.f32 %v1233_v60, %v493_v17  ;;  %v547_v30 = vadd.f32 %v1233_v60, %v509_v18  ;;  %v781_v13 = vmax.f32 %v1386_v47, %v1391_v48  ;;  %v614_v33 = vld [vmem:[%s1764_s4 + $0xc0] sm:$0xff]  ;;  %v630_v48 = vld [vmem:[%s1765_s5 + $0x48] sm:$0xff] }
 0x106   :  { %v577_v28 = vmax.f32 %v546_v16, 0.0  ;;  %v797_v14 = vmax.f32 %v1393_v49, %v766_v50  ;;  %v659_v15 = vmax.f32 %v597_v51, %v628_v59  ;;  %v675_v16 = vmax.f32 %v613_v61, %v644_v62  ;;  %v645_v34 = vld [vmem:[%s1765_s5 + $0xc0] sm:$0xff]  ;;  %v615_v49 = vld [vmem:[%s1764_s4 + $0xc8] sm:$0xff] }
 0x107   :  { %v809_v38 = vadd.f32 %v778_v9, %v561_v27  ;;  %v562_v40 = vmax.f32 %v531_v29, 0.0  ;;  %v578_v41 = vmax.f32 %v547_v30, 0.0  ;;  %v736_v25 = vmax.f32 %v674_v4, %v705_v12  ;;  %v598_v27 = vld [vmem:[%s1764_s4 + $0x40] sm:$0xff]  ;;  %v646_v50 = vld [vmem:[%s1765_s5 + $0xc8] sm:$0xff] }
 0x108   :  { %v825_v39 = vadd.f32 %v794_v10, %v577_v28  ;;  %v373_v45 = vpop.f32.mrb[8].mxu0  ;;  %v437_v46 = vpop.f32.mrb[8].mxu1  ;;  %v1463_v37 = vmax.f32 %v659_v15, %v690_v21  ;;  %v708_v12 = vld [vmem:[%s1766_s6 + $0xc8] sm:$0xff] }
 0x109   :  { %840 = vst [vmem:[%s1770_s8 + $0x10] sm:$0xff] %v809_v38  ;;  %v810_v52 = vadd.f32 %v779_v23, %v562_v40  ;;  %v826_v53 = vadd.f32 %v795_v24, %v578_v41  ;;  %v494_v54 = vmul.f32 %v1222_v57, %v373_v45  ;;  %v510_v55 = vmul.f32 %v1222_v57, %v437_v46  ;;  %v375_v56 = vpop.f32.mrb[9].mxu0  ;;  %v439_v58 = vpop.f32.mrb[9].mxu1  ;;  %v751_v24 = vld [vmem:[%s1769_s7 + $0x30] sm:$0xff]  ;;  %v1468_v38 = vld [vmem:[%s1769_s7 + $0x38] sm:$0xff]  ;;  %v599_v41 = vld [vmem:[%s1764_s4 + $0x48] sm:$0xff] }
 0x10a   :  { %856 = vst [vmem:[%s1770_s8 + $0x90] sm:$0xff] %v825_v39  ;;  %v376_v1 = vpop.f32.mrb[10].mxu0  ;;  %v440_v2 = vpop.f32.mrb[10].mxu1  ;;  %v720_v23 = vmax.f32 %v658_v3, %v689_v11  ;;  %v1470_v39 = vmax.f32 %v675_v16, %v706_v22  ;;  %v768_v40 = vld [vmem:[%s1769_s7 + $0xb8] sm:$0xff]  ;;  %v676_v56 = vmax.f32 %v614_v33, %v645_v34  ;;  %v783_v3 = vmax.f32 %v1463_v37, %v1468_v38  ;;  %v692_v11 = vld [vmem:[%s1766_s6 + $0x48] sm:$0xff]  ;;  %v769_v16 = vld [vmem:[%s1769_s7 + $0xc0] sm:$0xff] }
 0x10b   :  { %841 = vst [vmem:[%s1770_s8 + $0x18] sm:$0xff] %v810_v52  ;;  %857 = vst [vmem:[%s1770_s8 + $0x98] sm:$0xff] %v826_v53  ;;  %v532_v5 = vadd.f32 %v1233_v60, %v494_v54  ;;  %v548_v6 = vadd.f32 %v1233_v60, %v510_v55  ;;  %v495_v7 = vmul.f32 %v1222_v57, %v376_v1  ;;  %v378_v9 = vpop.f32.mrb[11].mxu0  ;;  %v442_v10 = vpop.f32.mrb[11].mxu1  ;;  %v691_v1 = vld [vmem:[%s1766_s6 + $0x40] sm:$0xff]  ;;  %v631_v22 = vld [vmem:[%s1765_s5 + $0x50] sm:$0xff] }
 0x10c   :  { %v511_v8 = vmul.f32 %v1222_v57, %v440_v2  ;;  %v782_v51 = vmax.f32 %v720_v23, %v751_v24  ;;  %v798_v52 = vmax.f32 %v736_v25, %v767_v26  ;;  %v660_v55 = vmax.f32 %v598_v27, %v629_v32  ;;  %v707_v2 = vld [vmem:[%s1766_s6 + $0xc0] sm:$0xff]  ;;  %v616_v23 = vld [vmem:[%s1764_s4 + $0xd0] sm:$0xff]  ;;  %v632_v38 = vld [vmem:[%s1765_s5 + $0x58] sm:$0xff] }
 0x10d   :  { %v563_v17 = vmax.f32 %v532_v5, 0.0  ;;  %v579_v18 = vmax.f32 %v548_v6, 0.0  ;;  %v533_v19 = vadd.f32 %v1233_v60, %v495_v7  ;;  %v799_v4 = vmax.f32 %v1470_v39, %v768_v40  ;;  %v647_v24 = vld [vmem:[%s1765_s5 + $0xd0] sm:$0xff]  ;;  %v617_v39 = vld [vmem:[%s1764_s4 + $0xd8] sm:$0xff] }
 0x10e   :  { %v549_v20 = vadd.f32 %v1233_v60, %v511_v8  ;;  %v661_v5 = vmax.f32 %v599_v41, %v630_v48  ;;  %v677_v6 = vmax.f32 %v615_v49, %v646_v50  ;;  %v738_v15 = vmax.f32 %v676_v56, %v707_v2  ;;  %v648_v40 = vld [vmem:[%s1765_s5 + $0xd8] sm:$0xff] }
 0x10f   :  { %v811_v28 = vadd.f32 %v780_v63, %v563_v17  ;;  %v827_v29 = vadd.f32 %v796_v0, %v579_v18  ;;  %v564_v30 = vmax.f32 %v533_v19, 0.0  ;;  %v600_v17 = vld [vmem:[%s1764_s4 + $0x50] sm:$0xff]  ;;  %v710_v2 = vld [vmem:[%s1766_s6 + $0xd8] sm:$0xff] }
 0x110   :  { %v580_v31 = vmax.f32 %v549_v20, 0.0  ;;  %v381_v35 = vpop.f32.mrb[12].mxu0  ;;  %v445_v36 = vpop.f32.mrb[12].mxu1  ;;  %v1540_v27 = vmax.f32 %v661_v5, %v692_v11 }
 0x111   :  { %842 = vst [vmem:[%s1770_s8 + $0x20] sm:$0xff] %v811_v28  ;;  %858 = vst [vmem:[%s1770_s8 + $0xa0] sm:$0xff] %v827_v29  ;;  %v812_v42 = vadd.f32 %v781_v13, %v564_v30  ;;  %v496_v44 = vmul.f32 %v1222_v57, %v381_v35  ;;  %v512_v45 = vmul.f32 %v1222_v57, %v445_v36  ;;  %v383_v46 = vpop.f32.mrb[13].mxu0  ;;  %v447_v47 = vpop.f32.mrb[13].mxu1  ;;  %v1545_v28 = vld [vmem:[%s1769_s7 + $0x48] sm:$0xff] }
 0x112   :  { %v828_v43 = vadd.f32 %v797_v14, %v580_v31  ;;  %v384_v53 = vpop.f32.mrb[14].mxu0  ;;  %v448_v54 = vpop.f32.mrb[14].mxu1  ;;  %v722_v13 = vmax.f32 %v660_v55, %v691_v1  ;;  %v753_v14 = vld [vmem:[%s1769_s7 + $0x40] sm:$0xff]  ;;  %v1547_v29 = vmax.f32 %v677_v6, %v708_v12  ;;  %v770_v30 = vld [vmem:[%s1769_s7 + $0xc8] sm:$0xff]  ;;  %v601_v31 = vld [vmem:[%s1764_s4 + $0x58] sm:$0xff]  ;;  %v678_v46 = vmax.f32 %v616_v23, %v647_v24 }
 0x113   :  { %843 = vst [vmem:[%s1770_s8 + $0x28] sm:$0xff] %v812_v42  ;;  %v534_v58 = vadd.f32 %v1233_v60, %v496_v44  ;;  %v550_v59 = vadd.f32 %v1233_v60, %v512_v45  ;;  %v497_v61 = vmul.f32 %v1222_v57, %v384_v53  ;;  %v513_v62 = vmul.f32 %v1222_v57, %v448_v54  ;;  %v386_v63 = vpop.f32.mrb[15].mxu0  ;;  %v450_v0 = vpop.f32.mrb[15].mxu1  ;;  %v693_v53 = vld [vmem:[%s1766_s6 + $0x50] sm:$0xff]  ;;  %v694_v1 = vld [vmem:[%s1766_s6 + $0x58] sm:$0xff]  ;;  %v633_v12 = vld [vmem:[%s1765_s5 + $0x60] sm:$0xff] }
 0x114   :  { %859 = vst [vmem:[%s1770_s8 + $0xa8] sm:$0xff] %v828_v43  ;;  %v784_v41 = vmax.f32 %v722_v13, %v753_v14  ;;  %v800_v42 = vmax.f32 %v738_v15, %v769_v16  ;;  %v662_v45 = vmax.f32 %v600_v17, %v631_v22  ;;  %v709_v54 = vld [vmem:[%s1766_s6 + $0xd0] sm:$0xff]  ;;  %v785_v55 = vmax.f32 %v1540_v27, %v1545_v28  ;;  %v618_v13 = vld [vmem:[%s1764_s4 + $0xe0] sm:$0xff]  ;;  %v634_v28 = vld [vmem:[%s1765_s5 + $0x68] sm:$0xff] }
 0x115   :  { %v565_v7 = vmax.f32 %v534_v58, 0.0  ;;  %v581_v8 = vmax.f32 %v550_v59, 0.0  ;;  %v535_v9 = vadd.f32 %v1233_v60, %v497_v61  ;;  %v551_v10 = vadd.f32 %v1233_v60, %v513_v62  ;;  %v771_v6 = vld [vmem:[%s1769_s7 + $0xd0] sm:$0xff]  ;;  %v649_v14 = vld [vmem:[%s1765_s5 + $0xe0] sm:$0xff] }
 0x116   :  { %v801_v56 = vmax.f32 %v1547_v29, %v770_v30  ;;  %v663_v58 = vmax.f32 %v601_v31, %v632_v38  ;;  %v679_v59 = vmax.f32 %v617_v39, %v648_v40  ;;  %v740_v5 = vmax.f32 %v678_v46, %v709_v54  ;;  %v619_v29 = vld [vmem:[%s1764_s4 + $0xe8] sm:$0xff] }
 0x117   :  { %v813_v18 = vadd.f32 %v782_v51, %v565_v7  ;;  %v829_v19 = vadd.f32 %v798_v52, %v581_v8  ;;  %v566_v20 = vmax.f32 %v535_v9, 0.0  ;;  %v582_v21 = vmax.f32 %v551_v10, 0.0  ;;  %v602_v7 = vld [vmem:[%s1764_s4 + $0x60] sm:$0xff]  ;;  %v650_v30 = vld [vmem:[%s1765_s5 + $0xe8] sm:$0xff] }
 0x118   :  { %v389_v25 = vpop.f32.mrb[16].mxu0  ;;  %v453_v26 = vpop.f32.mrb[16].mxu1  ;;  %v725_v17 = vmax.f32 %v663_v58, %v694_v1  ;;  %v712_v54 = vld [vmem:[%s1766_s6 + $0xe8] sm:$0xff] }
 0x119   :  { %844 = vst [vmem:[%s1770_s8 + $0x30] sm:$0xff] %v813_v18  ;;  %860 = vst [vmem:[%s1770_s8 + $0xb0] sm:$0xff] %v829_v19  ;;  %v814_v32 = vadd.f32 %v783_v3, %v566_v20  ;;  %v830_v33 = vadd.f32 %v799_v4, %v582_v21  ;;  %v498_v34 = vmul.f32 %v1222_v57, %v389_v25  ;;  %v391_v36 = vpop.f32.mrb[17].mxu0  ;;  %v455_v37 = vpop.f32.mrb[17].mxu1  ;;  %v755_v4 = vld [vmem:[%s1769_s7 + $0x50] sm:$0xff]  ;;  %v756_v18 = vld [vmem:[%s1769_s7 + $0x58] sm:$0xff] }
 0x11a   :  { %v514_v35 = vmul.f32 %v1222_v57, %v453_v26  ;;  %v392_v43 = vpop.f32.mrb[18].mxu0  ;;  %v456_v44 = vpop.f32.mrb[18].mxu1  ;;  %v724_v3 = vmax.f32 %v662_v45, %v693_v53  ;;  %v741_v19 = vmax.f32 %v679_v59, %v710_v2  ;;  %v772_v20 = vld [vmem:[%s1769_s7 + $0xd8] sm:$0xff]  ;;  %v603_v21 = vld [vmem:[%s1764_s4 + $0x68] sm:$0xff]  ;;  %v680_v36 = vmax.f32 %v618_v13, %v649_v14  ;;  %v773_v59 = vld [vmem:[%s1769_s7 + $0xe0] sm:$0xff] }
 0x11b   :  { %845 = vst [vmem:[%s1770_s8 + $0x38] sm:$0xff] %v814_v32  ;;  %861 = vst [vmem:[%s1770_s8 + $0xb8] sm:$0xff] %v830_v33  ;;  %v536_v47 = vadd.f32 %v1233_v60, %v498_v34  ;;  %v499_v49 = vmul.f32 %v1222_v57, %v392_v43  ;;  %v515_v50 = vmul.f32 %v1222_v57, %v456_v44  ;;  %v394_v51 = vpop.f32.mrb[19].mxu0  ;;  %v458_v52 = vpop.f32.mrb[19].mxu1  ;;  %v695_v43 = vld [vmem:[%s1766_s6 + $0x60] sm:$0xff]  ;;  %v696_v53 = vld [vmem:[%s1766_s6 + $0x68] sm:$0xff] }
 0x11c   :  { %v552_v48 = vadd.f32 %v1233_v60, %v514_v35  ;;  %v786_v31 = vmax.f32 %v724_v3, %v755_v4  ;;  %v802_v32 = vmax.f32 %v740_v5, %v771_v6  ;;  %v664_v35 = vmax.f32 %v602_v7, %v633_v12  ;;  %v711_v44 = vld [vmem:[%s1766_s6 + $0xe0] sm:$0xff]  ;;  %v635_v2 = vld [vmem:[%s1765_s5 + $0x70] sm:$0xff] }
 0x11d   :  { %v567_v61 = vmax.f32 %v536_v47, 0.0  ;;  %v537_v63 = vadd.f32 %v1233_v60, %v499_v49  ;;  %v553_v0 = vadd.f32 %v1233_v60, %v515_v50  ;;  %v787_v45 = vmax.f32 %v725_v17, %v756_v18  ;;  %v620_v3 = vld [vmem:[%s1764_s4 + $0xf0] sm:$0xff]  ;;  %v605_v17 = vld [vmem:[%s1764_s4 + $0x78] sm:$0xff] }
 0x11e   :  { %v583_v62 = vmax.f32 %v552_v48, 0.0  ;;  %v803_v46 = vmax.f32 %v741_v19, %v772_v20  ;;  %v665_v47 = vmax.f32 %v603_v21, %v634_v28  ;;  %v681_v48 = vmax.f32 %v619_v29, %v650_v30  ;;  %v651_v4 = vld [vmem:[%s1765_s5 + $0xf0] sm:$0xff]  ;;  %v636_v18 = vld [vmem:[%s1765_s5 + $0x78] sm:$0xff] }
 0x11f   :  { %v815_v8 = vadd.f32 %v784_v41, %v567_v61  ;;  %v568_v10 = vmax.f32 %v537_v63, 0.0  ;;  %v584_v11 = vmax.f32 %v553_v0, 0.0  ;;  %v742_v58 = vmax.f32 %v680_v36, %v711_v44  ;;  %v604_v61 = vld [vmem:[%s1764_s4 + $0x70] sm:$0xff] }
 0x120   :  { %v831_v9 = vadd.f32 %v800_v42, %v583_v62  ;;  %v397_v15 = vpop.f32.mrb[20].mxu0  ;;  %v461_v16 = vpop.f32.mrb[20].mxu1  ;;  %v727_v7 = vmax.f32 %v665_v47, %v696_v53  ;;  %v759_v47 = vld [vmem:[%s1769_s7 + $0x70] sm:$0xff] }
 0x121   :  { %846 = vst [vmem:[%s1770_s8 + $0x40] sm:$0xff] %v815_v8  ;;  %v816_v22 = vadd.f32 %v785_v55, %v568_v10  ;;  %v832_v23 = vadd.f32 %v801_v56, %v584_v11  ;;  %v500_v24 = vmul.f32 %v1222_v57, %v397_v15  ;;  %v516_v25 = vmul.f32 %v1222_v57, %v461_v16  ;;  %v399_v26 = vpop.f32.mrb[21].mxu0  ;;  %v463_v27 = vpop.f32.mrb[21].mxu1  ;;  %v757_v56 = vld [vmem:[%s1769_s7 + $0x60] sm:$0xff]  ;;  %v758_v8 = vld [vmem:[%s1769_s7 + $0x68] sm:$0xff] }
 0x122   :  { %862 = vst [vmem:[%s1770_s8 + $0xc0] sm:$0xff] %v831_v9  ;;  %v400_v33 = vpop.f32.mrb[22].mxu0  ;;  %v464_v34 = vpop.f32.mrb[22].mxu1  ;;  %v726_v55 = vmax.f32 %v664_v35, %v695_v43  ;;  %v743_v9 = vmax.f32 %v681_v48, %v712_v54  ;;  %v774_v16 = vld [vmem:[%s1769_s7 + $0xe8] sm:$0xff]  ;;  %v804_v20 = vmax.f32 %v742_v58, %v773_v59  ;;  %v667_v35 = vmax.f32 %v605_v17, %v636_v18 }
 0x123   :  { %847 = vst [vmem:[%s1770_s8 + $0x48] sm:$0xff] %v816_v22  ;;  %863 = vst [vmem:[%s1770_s8 + $0xc8] sm:$0xff] %v832_v23  ;;  %v538_v37 = vadd.f32 %v1233_v60, %v500_v24  ;;  %v554_v38 = vadd.f32 %v1233_v60, %v516_v25  ;;  %v501_v39 = vmul.f32 %v1222_v57, %v400_v33  ;;  %v402_v41 = vpop.f32.mrb[23].mxu0  ;;  %v466_v42 = vpop.f32.mrb[23].mxu1 }
 0x124   :  { %v517_v40 = vmul.f32 %v1222_v57, %v464_v34  ;;  %v788_v19 = vmax.f32 %v726_v55, %v757_v56  ;;  %v666_v23 = vmax.f32 %v604_v61, %v635_v2  ;;  %v682_v24 = vmax.f32 %v620_v3, %v651_v4 }
 0x125   :  { %v569_v49 = vmax.f32 %v538_v37, 0.0  ;;  %v585_v50 = vmax.f32 %v554_v38, 0.0  ;;  %v539_v51 = vadd.f32 %v1233_v60, %v501_v39  ;;  %v789_v33 = vmax.f32 %v727_v7, %v758_v8 }
 0x126   :  { %v555_v52 = vadd.f32 %v1233_v60, %v517_v40  ;;  %v805_v34 = vmax.f32 %v743_v9, %v774_v16  ;;  %v698_v40 = vld [vmem:[%s1766_s6 + $0x78] sm:$0xff] }
 0x127   :  { %v817_v62 = vadd.f32 %v786_v31, %v569_v49  ;;  %v833_v63 = vadd.f32 %v802_v32, %v585_v50  ;;  %v570_v0 = vmax.f32 %v539_v51, 0.0  ;;  %v697_v31 = vld [vmem:[%s1766_s6 + $0x70] sm:$0xff]  ;;  %v729_v51 = vmax.f32 %v667_v35, %v698_v40 }
 0x128   :  { %v586_v1 = vmax.f32 %v555_v52, 0.0  ;;  %v405_v5 = vpop.f32.mrb[24].mxu0  ;;  %v469_v6 = vpop.f32.mrb[24].mxu1  ;;  %v713_v32 = vld [vmem:[%s1766_s6 + $0xf0] sm:$0xff]  ;;  %v728_v41 = vmax.f32 %v666_v23, %v697_v31 }
 0x129   :  { %848 = vst [vmem:[%s1770_s8 + $0x50] sm:$0xff] %v817_v62  ;;  %864 = vst [vmem:[%s1770_s8 + $0xd0] sm:$0xff] %v833_v63  ;;  %v818_v10 = vadd.f32 %v787_v45, %v570_v0  ;;  %v502_v12 = vmul.f32 %v1222_v57, %v405_v5  ;;  %v518_v13 = vmul.f32 %v1222_v57, %v469_v6  ;;  %v407_v14 = vpop.f32.mrb[25].mxu0  ;;  %v471_v15 = vpop.f32.mrb[25].mxu1  ;;  %v775_v50 = vld [vmem:[%s1769_s7 + $0xf0] sm:$0xff]  ;;  %v760_v62 = vld [vmem:[%s1769_s7 + $0x78] sm:$0xff] }
 0x12a   :  { %v834_v11 = vadd.f32 %v803_v46, %v586_v1  ;;  %v408_v21 = vpop.f32.mrb[26].mxu0  ;;  %v472_v22 = vpop.f32.mrb[26].mxu1  ;;  %v744_v42 = vmax.f32 %v682_v24, %v713_v32  ;;  %v790_v59 = vmax.f32 %v728_v41, %v759_v47  ;;  %v791_v9 = vmax.f32 %v729_v51, %v760_v62 }
 0x12b   :  { %849 = vst [vmem:[%s1770_s8 + $0x58] sm:$0xff] %v818_v10  ;;  %v540_v25 = vadd.f32 %v1233_v60, %v502_v12  ;;  %v556_v26 = vadd.f32 %v1233_v60, %v518_v13  ;;  %v503_v27 = vmul.f32 %v1222_v57, %v408_v21  ;;  %v519_v28 = vmul.f32 %v1222_v57, %v472_v22  ;;  %v410_v29 = vpop.f32.mrb[27].mxu0  ;;  %v474_v30 = vpop.f32.mrb[27].mxu1 }
 0x12c   :  { %865 = vst [vmem:[%s1770_s8 + $0xd8] sm:$0xff] %v834_v11  ;;  %v806_v2 = vmax.f32 %v744_v42, %v775_v50 }
 0x12d   :  { %v571_v36 = vmax.f32 %v540_v25, 0.0  ;;  %v587_v37 = vmax.f32 %v556_v26, 0.0  ;;  %v541_v38 = vadd.f32 %v1233_v60, %v503_v27  ;;  %v557_v39 = vadd.f32 %v1233_v60, %v519_v28 }
 0x12f   :  { %v819_v43 = vadd.f32 %v788_v19, %v571_v36  ;;  %v835_v44 = vadd.f32 %v804_v20, %v587_v37  ;;  %v572_v45 = vmax.f32 %v541_v38, 0.0  ;;  %v588_v46 = vmax.f32 %v557_v39, 0.0 }
 0x130   :  { %v413_v48 = vpop.f32.mrb[28].mxu0  ;;  %v477_v49 = vpop.f32.mrb[28].mxu1 }
 0x131   :  { %850 = vst [vmem:[%s1770_s8 + $0x60] sm:$0xff] %v819_v43  ;;  %866 = vst [vmem:[%s1770_s8 + $0xe0] sm:$0xff] %v835_v44  ;;  %v820_v52 = vadd.f32 %v789_v33, %v572_v45  ;;  %v836_v53 = vadd.f32 %v805_v34, %v588_v46  ;;  %v504_v54 = vmul.f32 %v1222_v57, %v413_v48  ;;  %v415_v56 = vpop.f32.mrb[29].mxu0  ;;  %v479_v58 = vpop.f32.mrb[29].mxu1 }
 0x132   :  { %v520_v55 = vmul.f32 %v1222_v57, %v477_v49  ;;  %v416_v61 = vpop.f32.mrb[30].mxu0  ;;  %v480_v63 = vpop.f32.mrb[30].mxu1 }
 0x133   :  { %851 = vst [vmem:[%s1770_s8 + $0x68] sm:$0xff] %v820_v52  ;;  %867 = vst [vmem:[%s1770_s8 + $0xe8] sm:$0xff] %v836_v53  ;;  %v542_v0 = vadd.f32 %v1233_v60, %v504_v54  ;;  %v505_v3 = vmul.f32 %v1222_v57, %v416_v61  ;;  %v418_v4 = vpop.f32.mrb[31].mxu0  ;;  %v481_v5 = vpop.f32.mrb[31].mxu1 }
 0x134   :  { %v558_v1 = vadd.f32 %v1233_v60, %v520_v55 }
 0x135   :  { %v573_v6 = vmax.f32 %v542_v0, 0.0  ;;  %v543_v8 = vadd.f32 %v1233_v60, %v505_v3 }
 0x136   :  { %v589_v7 = vmax.f32 %v558_v1, 0.0 }
 0x137   :  { %v821_v10 = vadd.f32 %v790_v59, %v573_v6  ;;  %v574_v12 = vmax.f32 %v543_v8, 0.0 }
 0x138   :  { %v837_v11 = vadd.f32 %v806_v2, %v589_v7 }
 0x139   :  { %852 = vst [vmem:[%s1770_s8 + $0x70] sm:$0xff] %v821_v10  ;;  %v822_v13 = vadd.f32 %v791_v9, %v574_v12 }
 0x13a   :  { %868 = vst [vmem:[%s1770_s8 + $0xf0] sm:$0xff] %v837_v11 }
 0x13b   :  { %853 = vst [vmem:[%s1770_s8 + $0x78] sm:$0xff] %v822_v13 }

// kernel: multimoding2017_forward.17
= control target key start
LH: loop header
LB: loop body
LE: loop exit
PB: predicated region body
PF: predicated region fallthrough
CT: control target
= control target key end

     0   :  { %vm163_vm0 = vcmask 523264   ;;  %s757_s1 = inlined_call_operand.vmem [shape: bf16[64,128], index: 1, kind: input, shape index: {}]   ;;  %s758_s0 = inlined_call_operand.vmem [shape: bf16[248,64], index: 0, kind: input, shape index: {}]   ;;  %s759_s2 = inlined_call_operand.vmem [shape: f32[1,128], index: 2, kind: input, shape index: {}]   ;;  %s760_s3 = inlined_call_operand.vmem [shape: f32[248,128], index: 3, kind: output, shape index: {}]  }
   0x1   :  { %v512_v0 = vld [vmem:[%s757_s1] sm:$0xff]   ;;  %v513_v1 = vld [vmem:[%s757_s1 + $0x8] sm:$0xff]   ;;  %v514_v2 = vld [vmem:[%s757_s1 + $0x10] sm:$0xff]  }
   0x2   :  { %464 = vmatprep.subr.bf16.mxu0 %v512_v0  ;;  %504 = vmatprep.subr.bf16.mxu1 %v512_v0  ;;  %v516_v3 = vld [vmem:[%s758_s0] sm:$0xff]   ;;  %v515_v5 = vld [vmem:[%s757_s1 + $0x18] sm:$0xff]   ;;  %v518_v6 = vld [vmem:[%s758_s0 + $0x8] sm:$0xff]  }
   0x3   :  { %465 = vmatpush3.bf16.msra.mxu0 %v512_v0  ;;  %508 = vmatpush3.bf16.msra.mxu1 %v512_v0  ;;  %v517_v4 = vld [vmem:[%s758_s0 + $0x40] sm:$0xff]   ;;  %v519_v7 = vld [vmem:[%s758_s0 + $0x48] sm:$0xff]   ;;  %v520_v8 = vld [vmem:[%s758_s0 + $0x10] sm:$0xff]  }
   0x4   :  { %466 = vmatprep.subr.bf16.mxu0 %v513_v1  ;;  %505 = vmatprep.subr.bf16.mxu1 %v513_v1  ;;  %v521_v9 = vld [vmem:[%s758_s0 + $0x50] sm:$0xff]   ;;  %v522_v10 = vld [vmem:[%s758_s0 + $0x18] sm:$0xff]   ;;  %v524_v12 = vld [vmem:[%s758_s0 + $0x20] sm:$0xff]  }
   0x5   :  { %472 = vmatprep.mubr.msk.bf16.mxu0 %vm163_vm0, %v516_v3  ;;  %488 = vmatprep.mubr.msk.bf16.mxu1 %vm163_vm0, %v517_v4  ;;  %v523_v11 = vld [vmem:[%s758_s0 + $0x58] sm:$0xff]   ;;  %v525_v13 = vld [vmem:[%s758_s0 + $0x60] sm:$0xff]   ;;  %v526_v14 = vld [vmem:[%s758_s0 + $0x28] sm:$0xff]  }
   0x6   :  { %v527_v15 = vld [vmem:[%s758_s0 + $0x68] sm:$0xff]   ;;  %v528_v16 = vld [vmem:[%s758_s0 + $0x30] sm:$0xff]   ;;  %v530_v18 = vld [vmem:[%s758_s0 + $0x38] sm:$0xff]  }
   0x7   :  { %467 = vmatpush3.bf16.msra.mxu0 %v513_v1  ;;  %509 = vmatpush3.bf16.msra.mxu1 %v513_v1  ;;  %v529_v17 = vld [vmem:[%s758_s0 + $0x70] sm:$0xff]   ;;  %v531_v19 = vld [vmem:[%s758_s0 + $0x78] ss:$0 sps:$4 sm:$0xff]   ;;  %v631_v20 = vld [vmem:[%s759_s2] ss:$0 sm:$0xff] }
   0x8   :  { %468 = vmatprep.subr.bf16.mxu0 %v514_v2  ;;  %506 = vmatprep.subr.bf16.mxu1 %v514_v2 }
   0xb   :  { %469 = vmatpush3.bf16.msra.mxu0 %v514_v2  ;;  %510 = vmatpush3.bf16.msra.mxu1 %v514_v2 }
   0xc   :  { %470 = vmatprep.subr.bf16.mxu0 %v515_v5  ;;  %507 = vmatprep.subr.bf16.mxu1 %v515_v5 }
   0xf   :  { %471 = vmatpush3.bf16.msra.mxu0 %v515_v5  ;;  %511 = vmatpush3.bf16.msra.mxu1 %v515_v5 }
  0x12   :  { %473 = vmatmul.mubr.msk.bf16.vlgmr.msra.gmra.mrb[0].mxu0 %vm163_vm0, %v518_v6  ;;  %489 = vmatmul.mubr.msk.bf16.vlgmr.msra.gmra.mrb[0].mxu1 %vm163_vm0, %v519_v7 }
  0x13   :  { %476 = vmatprep.mubr.msk.bf16.mxu0 %vm163_vm0, %v520_v8  ;;  %492 = vmatprep.mubr.msk.bf16.mxu1 %vm163_vm0, %v521_v9 }
  0x1a   :  { %477 = vmatmul.mubr.msk.bf16.gmra.mrb[4].mxu0 %vm163_vm0, %v522_v10  ;;  %493 = vmatmul.mubr.msk.bf16.gmra.mrb[4].mxu1 %vm163_vm0, %v523_v11 }
  0x1b   :  { %480 = vmatprep.mubr.msk.bf16.mxu0 %vm163_vm0, %v524_v12  ;;  %496 = vmatprep.mubr.msk.bf16.mxu1 %vm163_vm0, %v525_v13 }
  0x22   :  { %481 = vmatmul.mubr.msk.bf16.gmra.mrb[8].mxu0 %vm163_vm0, %v526_v14  ;;  %497 = vmatmul.mubr.msk.bf16.gmra.mrb[8].mxu1 %vm163_vm0, %v527_v15 }
  0x23   :  { %484 = vmatprep.mubr.msk.bf16.mxu0 %vm163_vm0, %v528_v16  ;;  %500 = vmatprep.mubr.msk.bf16.mxu1 %vm163_vm0, %v529_v17 }
  0x2a   :  { %485 = vmatmul.mubr.msk.bf16.gmra.mrb[12].mxu0 %vm163_vm0, %v530_v18  ;;  %501 = vmatmul.mubr.msk.bf16.gmra.mrb[12].mxu1 %vm163_vm0, %v531_v19 }
  0xe5   :  { %v474_v21 = vpop.f32.mrb[0].mxu0  ;;  %v490_v22 = vpop.f32.mrb[0].mxu1 }
  0xe6   :  { %v255_v23 = vadd.f32 %v474_v21, %v631_v20  ;;  %v319_v24 = vadd.f32 %v490_v22, %v631_v20  ;;  %v246_v25 = vpop.f32.mrb[1].mxu0  ;;  %v310_v26 = vpop.f32.mrb[1].mxu1 }
  0xe7   :  { %v247_v27 = vadd.f32 %v631_v20, %v246_v25  ;;  %v311_v28 = vadd.f32 %v631_v20, %v310_v26  ;;  %v475_v29 = vpop.f32.mrb[2].mxu0  ;;  %v491_v30 = vpop.f32.mrb[2].mxu1 }
  0xe8   :  { %374 = vst [vmem:[%s760_s3 + $0x10] sm:$0xff] %v255_v23  ;;  %390 = vst [vmem:[%s760_s3 + $0x90] sm:$0xff] %v319_v24  ;;  %v258_v31 = vadd.f32 %v475_v29, %v631_v20  ;;  %v322_v32 = vadd.f32 %v491_v30, %v631_v20  ;;  %v249_v33 = vpop.f32.mrb[3].mxu0  ;;  %v313_v34 = vpop.f32.mrb[3].mxu1 }
  0xe9   :  { %372 = vst [vmem:[%s760_s3] sm:$0xff] %v247_v27  ;;  %388 = vst [vmem:[%s760_s3 + $0x80] sm:$0xff] %v311_v28  ;;  %v250_v35 = vadd.f32 %v631_v20, %v249_v33  ;;  %v314_v36 = vadd.f32 %v631_v20, %v313_v34 }
  0xea   :  { %375 = vst [vmem:[%s760_s3 + $0x18] sm:$0xff] %v258_v31  ;;  %391 = vst [vmem:[%s760_s3 + $0x98] sm:$0xff] %v322_v32 }
  0xeb   :  { %373 = vst [vmem:[%s760_s3 + $0x8] sm:$0xff] %v250_v35  ;;  %389 = vst [vmem:[%s760_s3 + $0x88] sm:$0xff] %v314_v36 }
  0xed   :  { %v478_v37 = vpop.f32.mrb[4].mxu0  ;;  %v494_v38 = vpop.f32.mrb[4].mxu1 }
  0xee   :  { %v271_v39 = vadd.f32 %v478_v37, %v631_v20  ;;  %v335_v40 = vadd.f32 %v494_v38, %v631_v20  ;;  %v262_v41 = vpop.f32.mrb[5].mxu0  ;;  %v326_v42 = vpop.f32.mrb[5].mxu1 }
  0xef   :  { %v263_v43 = vadd.f32 %v631_v20, %v262_v41  ;;  %v327_v44 = vadd.f32 %v631_v20, %v326_v42  ;;  %v479_v45 = vpop.f32.mrb[6].mxu0  ;;  %v495_v46 = vpop.f32.mrb[6].mxu1 }
  0xf0   :  { %378 = vst [vmem:[%s760_s3 + $0x30] sm:$0xff] %v271_v39  ;;  %394 = vst [vmem:[%s760_s3 + $0xb0] sm:$0xff] %v335_v40  ;;  %v274_v47 = vadd.f32 %v479_v45, %v631_v20  ;;  %v338_v48 = vadd.f32 %v495_v46, %v631_v20  ;;  %v265_v49 = vpop.f32.mrb[7].mxu0  ;;  %v329_v50 = vpop.f32.mrb[7].mxu1 }
  0xf1   :  { %376 = vst [vmem:[%s760_s3 + $0x20] sm:$0xff] %v263_v43  ;;  %392 = vst [vmem:[%s760_s3 + $0xa0] sm:$0xff] %v327_v44  ;;  %v266_v51 = vadd.f32 %v631_v20, %v265_v49  ;;  %v330_v52 = vadd.f32 %v631_v20, %v329_v50 }
  0xf2   :  { %379 = vst [vmem:[%s760_s3 + $0x38] sm:$0xff] %v274_v47  ;;  %395 = vst [vmem:[%s760_s3 + $0xb8] sm:$0xff] %v338_v48 }
  0xf3   :  { %377 = vst [vmem:[%s760_s3 + $0x28] sm:$0xff] %v266_v51  ;;  %393 = vst [vmem:[%s760_s3 + $0xa8] sm:$0xff] %v330_v52 }
  0xf5   :  { %v482_v53 = vpop.f32.mrb[8].mxu0  ;;  %v498_v54 = vpop.f32.mrb[8].mxu1 }
  0xf6   :  { %v287_v55 = vadd.f32 %v482_v53, %v631_v20  ;;  %v351_v56 = vadd.f32 %v498_v54, %v631_v20  ;;  %v278_v57 = vpop.f32.mrb[9].mxu0  ;;  %v342_v58 = vpop.f32.mrb[9].mxu1 }
  0xf7   :  { %v279_v59 = vadd.f32 %v631_v20, %v278_v57  ;;  %v343_v60 = vadd.f32 %v631_v20, %v342_v58  ;;  %v483_v61 = vpop.f32.mrb[10].mxu0  ;;  %v499_v62 = vpop.f32.mrb[10].mxu1 }
  0xf8   :  { %382 = vst [vmem:[%s760_s3 + $0x50] sm:$0xff] %v287_v55  ;;  %398 = vst [vmem:[%s760_s3 + $0xd0] sm:$0xff] %v351_v56  ;;  %v290_v63 = vadd.f32 %v483_v61, %v631_v20  ;;  %v354_v0 = vadd.f32 %v499_v62, %v631_v20  ;;  %v281_v1 = vpop.f32.mrb[11].mxu0  ;;  %v345_v2 = vpop.f32.mrb[11].mxu1 }
  0xf9   :  { %380 = vst [vmem:[%s760_s3 + $0x40] sm:$0xff] %v279_v59  ;;  %396 = vst [vmem:[%s760_s3 + $0xc0] sm:$0xff] %v343_v60  ;;  %v282_v3 = vadd.f32 %v631_v20, %v281_v1  ;;  %v346_v4 = vadd.f32 %v631_v20, %v345_v2 }
  0xfa   :  { %383 = vst [vmem:[%s760_s3 + $0x58] sm:$0xff] %v290_v63  ;;  %399 = vst [vmem:[%s760_s3 + $0xd8] sm:$0xff] %v354_v0 }
  0xfb   :  { %381 = vst [vmem:[%s760_s3 + $0x48] sm:$0xff] %v282_v3  ;;  %397 = vst [vmem:[%s760_s3 + $0xc8] sm:$0xff] %v346_v4 }
  0xfd   :  { %v486_v5 = vpop.f32.mrb[12].mxu0  ;;  %v502_v6 = vpop.f32.mrb[12].mxu1 }
  0xfe   :  { %v303_v7 = vadd.f32 %v486_v5, %v631_v20  ;;  %v367_v8 = vadd.f32 %v502_v6, %v631_v20  ;;  %v294_v9 = vpop.f32.mrb[13].mxu0  ;;  %v358_v10 = vpop.f32.mrb[13].mxu1 }
  0xff   :  { %v295_v11 = vadd.f32 %v631_v20, %v294_v9  ;;  %v359_v12 = vadd.f32 %v631_v20, %v358_v10  ;;  %v487_v13 = vpop.f32.mrb[14].mxu0  ;;  %v503_v14 = vpop.f32.mrb[14].mxu1 }
 0x100   :  { %386 = vst [vmem:[%s760_s3 + $0x70] sm:$0xff] %v303_v7  ;;  %402 = vst [vmem:[%s760_s3 + $0xf0] sm:$0xff] %v367_v8  ;;  %v306_v15 = vadd.f32 %v487_v13, %v631_v20  ;;  %v297_v16 = vpop.f32.mrb[15].mxu0  ;;  %v361_v17 = vpop.f32.mrb[15].mxu1 }
 0x101   :  { %384 = vst [vmem:[%s760_s3 + $0x60] sm:$0xff] %v295_v11  ;;  %400 = vst [vmem:[%s760_s3 + $0xe0] sm:$0xff] %v359_v12  ;;  %v298_v18 = vadd.f32 %v631_v20, %v297_v16  ;;  %v362_v19 = vadd.f32 %v631_v20, %v361_v17 }
 0x102   :  { %387 = vst [vmem:[%s760_s3 + $0x78] sm:$0xff] %v306_v15 }
 0x103   :  { %385 = vst [vmem:[%s760_s3 + $0x68] sm:$0xff] %v298_v18  ;;  %401 = vst [vmem:[%s760_s3 + $0xe8] sm:$0xff] %v362_v19 }

// kernel: multimoding2017_forward.16
= control target key start
LH: loop header
LB: loop body
LE: loop exit
PB: predicated region body
PF: predicated region fallthrough
CT: control target
= control target key end

     0   :  { %vm459_vm0 = vcmask 261120   ;;  %vm1090_vm1 = vcmask 523264   ;;  %s2182_s1 = inlined_call_operand.vmem [shape: bf16[288,128], index: 1, kind: input, shape index: {}]   ;;  %s2183_s0 = inlined_call_operand.vmem [shape: bf16[248,288], index: 0, kind: input, shape index: {}]   ;;  %s2184_s2 = inlined_call_operand.vmem [shape: f32[1,128], index: 2, kind: input, shape index: {}]   ;;  %s2185_s3 = inlined_call_operand.vmem [shape: f32[1,128], index: 3, kind: input, shape index: {}]   ;;  %s2186_s4 = inlined_call_operand.vmem [shape: f32[248,64], index: 4, kind: output, shape index: {}]  }
   0x1   :  { %v1393_v0 = vld [vmem:[%s2182_s1 + $0x40] sm:$0xff]   ;;  %v1395_v2 = vld [vmem:[%s2182_s1 + $0x48] sm:$0xff]   ;;  %v1397_v4 = vld [vmem:[%s2182_s1 + $0x50] sm:$0xff]  }
   0x2   :  { %v1394_v1 = vld [vmem:[%s2182_s1] sm:$0xff]   ;;  %1210 = vmatprep.subr.bf16.mxu0 %v1393_v0  ;;  %1376 = vmatprep.subr.bf16.mxu1 %v1393_v0  ;;  %v1396_v3 = vld [vmem:[%s2182_s1 + $0x8] sm:$0xff]   ;;  %v1398_v5 = vld [vmem:[%s2182_s1 + $0x10] sm:$0xff]  }
   0x3   :  { %1211 = vmatpush3.bf16.msra.mxu0 %v1394_v1  ;;  %1384 = vmatpush3.bf16.msra.mxu1 %v1394_v1  ;;  %v1399_v6 = vld [vmem:[%s2182_s1 + $0x58] sm:$0xff]   ;;  %v1401_v8 = vld [vmem:[%s2182_s1 + $0x60] sm:$0xff]   ;;  %v1403_v10 = vld [vmem:[%s2182_s1 + $0x68] sm:$0xff]  }
   0x4   :  { %1212 = vmatprep.subr.bf16.mxu0 %v1395_v2  ;;  %1377 = vmatprep.subr.bf16.mxu1 %v1395_v2  ;;  %v1400_v7 = vld [vmem:[%s2182_s1 + $0x18] sm:$0xff]   ;;  %v1402_v9 = vld [vmem:[%s2182_s1 + $0x20] sm:$0xff]   ;;  %v1404_v13 = vld [vmem:[%s2182_s1 + $0x28] sm:$0xff]  }
   0x5   :  { %v1411_v11 = vld [vmem:[%s2183_s0 + $0x4] ss:$12 sps:$4 sm:$0xff]   ;;  %v1407_v16 = vld [vmem:[%s2182_s1 + $0x78] sm:$0xff]   ;;  %v1409_v19 = vld [vmem:[%s2183_s0] ss:$12 sps:$4 sm:$0xff]  }
   0x6   :  { %v1414_v12 = vld [vmem:[%s2183_s0 + $0x124] ss:$12 sps:$4 sm:$0xff]   ;;  %540 = vmatprep.mubr.bf16.mxu0 %v1411_v11  ;;  %v1408_v17 = vld [vmem:[%s2182_s1 + $0x38] sm:$0xff]   ;;  %v1412_v20 = vld [vmem:[%s2183_s0 + $0x120] ss:$12 sps:$4 sm:$0xff]  }
   0x7   :  { %1213 = vmatpush3.bf16.msra.mxu0 %v1396_v3  ;;  %1385 = vmatpush3.bf16.msra.mxu1 %v1396_v3  ;;  %v1405_v14 = vld [vmem:[%s2182_s1 + $0x70] sm:$0xff]   ;;  %v1415_v18 = vld [vmem:[%s2182_s1 + $0x80] sm:$0xff]   ;;  %v1416_v21 = vld [vmem:[%s2183_s0 + $0x1c] ss:$12 sps:$4 sm:$0xff]  }
   0x8   :  { %1214 = vmatprep.subr.bf16.mxu0 %v1397_v4  ;;  %1378 = vmatprep.subr.bf16.mxu1 %v1397_v4  ;;  %v1406_v15 = vld [vmem:[%s2182_s1 + $0x30] sm:$0xff]   ;;  %v1418_v22 = vld [vmem:[%s2183_s0 + $0x13c] ss:$12 sps:$4 sm:$0xff]   ;;  %v1420_v24 = vld [vmem:[%s2183_s0 + $0x18] ss:$12 sps:$4 sm:$0xff]  }
   0x9   :  { %636 = vmatprep.mubr.bf16.mxu1 %v1414_v12  ;;  %v1428_v23 = vld [vmem:[%s2182_s1 + $0x88] sm:$0xff]   ;;  %v1421_v25 = vld [vmem:[%s2183_s0 + $0x138] ss:$12 sps:$4 sm:$0xff]   ;;  %v1422_v26 = vld [vmem:[%s2183_s0 + $0x34] ss:$12 sps:$4 sm:$0xff]  }
   0xa   :  { %v1424_v27 = vld [vmem:[%s2183_s0 + $0x154] ss:$12 sps:$4 sm:$0xff]   ;;  %v78_v28 = vld [vmem:[%s2183_s0 + $0x168] sm:$0xff]  ;;  %v1426_v29 = vld [vmem:[%s2183_s0 + $0x30] ss:$12 sps:$4 sm:$0xff]  }
   0xb   :  { %1215 = vmatpush3.bf16.msra.mxu0 %v1398_v5  ;;  %1386 = vmatpush3.bf16.msra.mxu1 %v1398_v5  ;;  %v1427_v30 = vld [vmem:[%s2183_s0 + $0x150] ss:$12 sps:$4 sm:$0xff]   ;;  %v1429_v31 = vld [vmem:[%s2183_s0 + $0x4c] ss:$12 sps:$4 sm:$0xff]   ;;  %v1172_v32 = vcombine.high %v78_v28, %v78_v28  ;;  %v1432_v33 = vld [vmem:[%s2183_s0 + $0x48] ss:$12 sps:$4 sm:$0xff]   ;;  %v1171_v34 = vcombine.low %v78_v28, %v78_v28 }
   0xc   :  { %1216 = vmatprep.subr.bf16.mxu0 %v1399_v6  ;;  %1379 = vmatprep.subr.bf16.mxu1 %v1399_v6  ;;  %v1434_v35 = vld [vmem:[%s2183_s0 + $0x64] ss:$12 sps:$4 sm:$0xff]   ;;  %v1436_v36 = vld [vmem:[%s2183_s0 + $0x8] ss:$12 sps:$4 sm:$0xff]   ;;  %v1437_v37 = vld [vmem:[%s2183_s0 + $0x60] ss:$12 sps:$4 sm:$0xff]  }
   0xd   :  { %v1438_v38 = vld [vmem:[%s2183_s0 + $0x20] ss:$12 sps:$4 sm:$0xff]   ;;  %v1439_v39 = vld [vmem:[%s2183_s0 + $0x7c] ss:$12 sps:$4 sm:$0xff]   ;;  %v1441_v40 = vld [vmem:[%s2183_s0 + $0x38] ss:$12 sps:$4 sm:$0xff]  }
   0xe   :  { %v1442_v41 = vld [vmem:[%s2183_s0 + $0x78] ss:$12 sps:$4 sm:$0xff]   ;;  %v1443_v42 = vld [vmem:[%s2183_s0 + $0x50] ss:$12 sps:$4 sm:$0xff]   ;;  %v1444_v43 = vld [vmem:[%s2183_s0 + $0x94] ss:$12 sps:$4 sm:$0xff]  }
   0xf   :  { %1217 = vmatpush3.bf16.msra.mxu0 %v1400_v7  ;;  %1387 = vmatpush3.bf16.msra.mxu1 %v1400_v7  ;;  %v1446_v44 = vld [vmem:[%s2183_s0 + $0x68] ss:$12 sps:$4 sm:$0xff]   ;;  %v1447_v45 = vld [vmem:[%s2183_s0 + $0x90] ss:$12 sps:$4 sm:$0xff]   ;;  %v1448_v46 = vld [vmem:[%s2183_s0 + $0x80] ss:$12 sps:$4 sm:$0xff]  }
  0x10   :  { %1218 = vmatprep.subr.bf16.mxu0 %v1401_v8  ;;  %1380 = vmatprep.subr.bf16.mxu1 %v1401_v8  ;;  %v1449_v47 = vld [vmem:[%s2183_s0 + $0xac] ss:$12 sps:$4 sm:$0xff]   ;;  %v1452_v49 = vld [vmem:[%s2183_s0 + $0xa8] ss:$12 sps:$4 sm:$0xff]   ;;  %v1453_v50 = vld [vmem:[%s2183_s0 + $0xb0] ss:$12 sps:$4 sm:$0xff]  }
  0x11   :  { %v1451_v48 = vld [vmem:[%s2183_s0 + $0x98] ss:$12 sps:$4 sm:$0xff]   ;;  %v1456_v52 = vld [vmem:[%s2183_s0 + $0xc8] ss:$12 sps:$4 sm:$0xff]   ;;  %v1457_v53 = vld [vmem:[%s2183_s0 + $0xc0] ss:$12 sps:$4 sm:$0xff]  }
  0x12   :  { %v1454_v51 = vld [vmem:[%s2183_s0 + $0xc4] ss:$12 sps:$4 sm:$0xff]   ;;  %v1458_v54 = vld [vmem:[%s2183_s0 + $0xe0] ss:$12 sps:$4 sm:$0xff]   ;;  %v1459_v55 = vld [vmem:[%s2183_s0 + $0xdc] ss:$12 sps:$4 sm:$0xff]  }
  0x13   :  { %1219 = vmatpush3.bf16.msra.mxu0 %v1402_v9  ;;  %1388 = vmatpush3.bf16.msra.mxu1 %v1402_v9  ;;  %v1461_v56 = vld [vmem:[%s2183_s0 + $0xf8] ss:$12 sps:$4 sm:$0xff]   ;;  %v1463_v58 = vld [vmem:[%s2183_s0 + $0x110] ss:$12 sps:$4 sm:$0xff]   ;;  %v1464_v59 = vld [vmem:[%s2183_s0 + $0xf4] ss:$12 sps:$4 sm:$0xff]  }
  0x14   :  { %1220 = vmatprep.subr.bf16.mxu0 %v1403_v10  ;;  %1381 = vmatprep.subr.bf16.mxu1 %v1403_v10  ;;  %v1462_v57 = vld [vmem:[%s2183_s0 + $0xd8] ss:$12 sps:$4 sm:$0xff]   ;;  %v1466_v60 = vld [vmem:[%s2183_s0 + $0x128] ss:$12 sps:$4 sm:$0xff]   ;;  %v1467_v61 = vld [vmem:[%s2183_s0 + $0xf0] ss:$12 sps:$4 sm:$0xff]  }
  0x15   :  { %v1468_v62 = vld [vmem:[%s2183_s0 + $0x140] ss:$12 sps:$4 sm:$0xff]   ;;  %v1471_v0 = vld [vmem:[%s2183_s0 + $0x158] ss:$12 sps:$4 sm:$0xff]   ;;  %v1472_v1 = vld [vmem:[%s2183_s0 + $0x108] ss:$12 sps:$4 sm:$0xff]  }
  0x16   :  { %v1469_v63 = vld [vmem:[%s2183_s0 + $0x10c] ss:$12 sps:$4 sm:$0xff]   ;;  %v1473_v2 = vld [vmem:[%s2183_s0 + $0x170] ss:$0 sps:$4 sm:$0xff]  }
  0x17   :  { %1221 = vmatpush3.bf16.msra.mxu0 %v1404_v13  ;;  %1389 = vmatpush3.bf16.msra.mxu1 %v1404_v13 }
  0x18   :  { %1222 = vmatprep.subr.bf16.mxu0 %v1405_v14  ;;  %1382 = vmatprep.subr.bf16.mxu1 %v1405_v14 }
  0x1b   :  { %1223 = vmatpush3.bf16.msra.mxu0 %v1406_v15  ;;  %1390 = vmatpush3.bf16.msra.mxu1 %v1406_v15 }
  0x1c   :  { %1224 = vmatprep.subr.bf16.mxu0 %v1407_v16  ;;  %1383 = vmatprep.subr.bf16.mxu1 %v1407_v16 }
  0x1f   :  { %1225 = vmatpush3.bf16.msra.mxu0 %v1408_v17  ;;  %1391 = vmatpush3.bf16.msra.mxu1 %v1408_v17 }
  0x20   :  { %1340 = vmatprep.subr.bf16.mxu1 %v1415_v18 }
  0x22   :  { %541 = vmatmul.mubr.bf16.vlgmr.msra.gmra.mrb[0].mxu0 %v1409_v19  ;;  %637 = vmatmul.mubr.bf16.vlgmr.msra.gmra.mrb[0].mxu1 %v1412_v20 }
  0x23   :  { %1341 = vmatpush3.bf16.msra.mxu1 %v1415_v18  ;;  %548 = vmatprep.mubr.bf16.mxu0 %v1416_v21 }
  0x24   :  { %644 = vmatprep.mubr.bf16.mxu1 %v1418_v22  ;;  %1342 = vmatprep.subr.bf16.mxu1 %v1428_v23 }
  0x27   :  { %1343 = vmatpush3.bf16.msra.mxu1 %v1428_v23 }
  0x2a   :  { %549 = vmatmul.mubr.bf16.gmra.mrb[4].mxu0 %v1420_v24  ;;  %645 = vmatmul.mubr.bf16.gmra.mrb[4].mxu1 %v1421_v25 }
  0x2b   :  { %556 = vmatprep.mubr.bf16.mxu0 %v1422_v26  ;;  %652 = vmatprep.mubr.bf16.mxu1 %v1424_v27 }
  0x32   :  { %557 = vmatmul.mubr.bf16.gmra.mrb[8].mxu0 %v1426_v29  ;;  %653 = vmatmul.mubr.bf16.gmra.mrb[8].mxu1 %v1427_v30 }
  0x33   :  { %564 = vmatprep.mubr.bf16.mxu0 %v1429_v31  ;;  %660 = vmatprep.mubr.bf16.mxu1 %v1172_v32 }
  0x3a   :  { %565 = vmatmul.mubr.bf16.gmra.mrb[12].mxu0 %v1432_v33  ;;  %661 = vmatmul.mubr.bf16.gmra.mrb[12].mxu1 %v1171_v34 }
  0x3b   :  { %572 = vmatprep.mubr.bf16.mxu0 %v1434_v35  ;;  %1344 = vmatprep.mubr.msk.bf16.mxu1 %vm459_vm0, %v1436_v36 }
  0x42   :  { %573 = vmatmul.mubr.bf16.gmra.mrb[16].mxu0 %v1437_v37  ;;  %1345 = vmatmul.mubr.msk.bf16.vlgmr.msra.gmra.mrb[16].mxu1 %vm459_vm0, %v1438_v38 }
  0x43   :  { %580 = vmatprep.mubr.bf16.mxu0 %v1439_v39  ;;  %1348 = vmatprep.mubr.msk.bf16.mxu1 %vm459_vm0, %v1441_v40 }
  0x4a   :  { %581 = vmatmul.mubr.bf16.gmra.mrb[20].mxu0 %v1442_v41  ;;  %1349 = vmatmul.mubr.msk.bf16.gmra.mrb[20].mxu1 %vm459_vm0, %v1443_v42 }
  0x4b   :  { %588 = vmatprep.mubr.bf16.mxu0 %v1444_v43  ;;  %1352 = vmatprep.mubr.msk.bf16.mxu1 %vm459_vm0, %v1446_v44 }
  0x52   :  { %589 = vmatmul.mubr.bf16.gmra.mrb[24].mxu0 %v1447_v45  ;;  %1353 = vmatmul.mubr.msk.bf16.gmra.mrb[24].mxu1 %vm459_vm0, %v1448_v46 }
  0x53   :  { %596 = vmatprep.mubr.bf16.mxu0 %v1449_v47  ;;  %1356 = vmatprep.mubr.msk.bf16.mxu1 %vm459_vm0, %v1451_v48 }
  0x5a   :  { %597 = vmatmul.mubr.bf16.gmra.mrb[28].mxu0 %v1452_v49  ;;  %1357 = vmatmul.mubr.msk.bf16.gmra.mrb[28].mxu1 %vm459_vm0, %v1453_v50 }
  0x5b   :  { %604 = vmatprep.mubr.bf16.mxu0 %v1454_v51  ;;  %1360 = vmatprep.mubr.msk.bf16.mxu1 %vm459_vm0, %v1456_v52  ;;  %v1728_v52 = vld [vmem:[%s2184_s2] ss:$0 sm:$0xff]  ;;  %s1474_s2 = smov 64  }
  0x62   :  { %605 = vmatmul.mubr.bf16.gmra.mrb[32].mxu0 %v1457_v53  ;;  %1361 = vmatmul.mubr.msk.bf16.gmra.mrb[32].mxu1 %vm459_vm0, %v1458_v54 }
  0x63   :  { %612 = vmatprep.mubr.bf16.mxu0 %v1459_v55  ;;  %1364 = vmatprep.mubr.msk.bf16.mxu1 %vm459_vm0, %v1461_v56 }
  0x6a   :  { %613 = vmatmul.mubr.bf16.gmra.mrb[36].mxu0 %v1462_v57  ;;  %1365 = vmatmul.mubr.msk.bf16.gmra.mrb[36].mxu1 %vm459_vm0, %v1463_v58 }
  0x6b   :  { %620 = vmatprep.mubr.bf16.mxu0 %v1464_v59  ;;  %1368 = vmatprep.mubr.msk.bf16.mxu1 %vm459_vm0, %v1466_v60  ;;  %v1733_v60 = vld [vmem:[%s2185_s3] ss:$0 sm:$0xff] }
  0x72   :  { %621 = vmatmul.mubr.bf16.gmra.mrb[40].mxu0 %v1467_v61  ;;  %1369 = vmatmul.mubr.msk.bf16.gmra.mrb[40].mxu1 %vm459_vm0, %v1468_v62 }
  0x73   :  { %628 = vmatprep.mubr.bf16.mxu0 %v1469_v63  ;;  %1372 = vmatprep.mubr.msk.bf16.mxu1 %vm459_vm0, %v1471_v0 }
  0x7a   :  { %629 = vmatmul.mubr.bf16.gmra.mrb[44].mxu0 %v1472_v1  ;;  %1373 = vmatmul.mubr.msk.bf16.gmra.mrb[44].mxu1 %vm459_vm0, %v1473_v2 }
  0xf5   :  { %v1226_v3 = vpop.f32.mrb[0].mxu0  ;;  %v1298_v4 = vpop.f32.mrb[0].mxu1 }
  0xf6   :  { %v1227_v5 = vpop.f32.mrb[1].mxu0  ;;  %v1299_v6 = vpop.f32.mrb[1].mxu1 }
  0xf7   :  { %v1228_v7 = vadd.f32 %v1227_v5, %v1226_v3  ;;  %v1711_v8 = vadd.f32 %v1299_v6, %v1298_v4  ;;  %v1229_v9 = vpop.f32.mrb[2].mxu0  ;;  %v1301_v10 = vpop.f32.mrb[2].mxu1 }
  0xf8   :  { %v1230_v11 = vpop.f32.mrb[3].mxu0  ;;  %v1302_v12 = vpop.f32.mrb[3].mxu1 }
  0xf9   :  { %v1231_v13 = vadd.f32 %v1230_v11, %v1229_v9  ;;  %v1713_v14 = vadd.f32 %v1302_v12, %v1301_v10 }
  0xfd   :  { %v1232_v15 = vpop.f32.mrb[4].mxu0  ;;  %v1304_v16 = vpop.f32.mrb[4].mxu1 }
  0xfe   :  { %v1233_v17 = vpop.f32.mrb[5].mxu0  ;;  %v1305_v18 = vpop.f32.mrb[5].mxu1 }
  0xff   :  { %v1234_v19 = vadd.f32 %v1233_v17, %v1232_v15  ;;  %v1715_v20 = vadd.f32 %v1305_v18, %v1304_v16  ;;  %v1235_v21 = vpop.f32.mrb[6].mxu0  ;;  %v1307_v22 = vpop.f32.mrb[6].mxu1 }
 0x100   :  { %v1236_v23 = vpop.f32.mrb[7].mxu0  ;;  %v1308_v24 = vpop.f32.mrb[7].mxu1 }
 0x101   :  { %v1237_v25 = vadd.f32 %v1236_v23, %v1235_v21  ;;  %v1717_v26 = vadd.f32 %v1308_v24, %v1307_v22 }
 0x105   :  { %v1238_v27 = vpop.f32.mrb[8].mxu0  ;;  %v1310_v28 = vpop.f32.mrb[8].mxu1 }
 0x106   :  { %v1239_v29 = vpop.f32.mrb[9].mxu0  ;;  %v1311_v30 = vpop.f32.mrb[9].mxu1 }
 0x107   :  { %v1240_v31 = vadd.f32 %v1239_v29, %v1238_v27  ;;  %v1719_v32 = vadd.f32 %v1311_v30, %v1310_v28  ;;  %v1241_v33 = vpop.f32.mrb[10].mxu0  ;;  %v1313_v34 = vpop.f32.mrb[10].mxu1 }
 0x108   :  { %v1242_v35 = vpop.f32.mrb[11].mxu0  ;;  %v1314_v36 = vpop.f32.mrb[11].mxu1 }
 0x109   :  { %v1243_v37 = vadd.f32 %v1242_v35, %v1241_v33  ;;  %v1721_v38 = vadd.f32 %v1314_v36, %v1313_v34 }
 0x10d   :  { %v1244_v39 = vpop.f32.mrb[12].mxu0  ;;  %v1316_v40 = vpop.f32.mrb[12].mxu1 }
 0x10e   :  { %v1245_v41 = vpop.f32.mrb[13].mxu0  ;;  %v1317_v42 = vpop.f32.mrb[13].mxu1 }
 0x10f   :  { %v1246_v43 = vadd.f32 %v1245_v41, %v1244_v39  ;;  %v1723_v44 = vadd.f32 %v1317_v42, %v1316_v40  ;;  %v1247_v45 = vpop.f32.mrb[14].mxu0  ;;  %v1319_v46 = vpop.f32.mrb[14].mxu1 }
 0x110   :  { %v1248_v47 = vpop.f32.mrb[15].mxu0  ;;  %v1320_v48 = vpop.f32.mrb[15].mxu1 }
 0x111   :  { %v1249_v49 = vadd.f32 %v1248_v47, %v1247_v45 }
 0x115   :  { %v1250_v50 = vpop.f32.mrb[16].mxu0  ;;  %v1346_v51 = vpop.f32.mrb[16].mxu1 }
 0x116   :  { %v711_v53 = vadd.f32 %v1346_v51, %v1234_v19  ;;  %v1251_v54 = vpop.f32.mrb[17].mxu0  ;;  %v702_v55 = vpop.f32.mrb[17].mxu1 }
 0x117   :  { %v1252_v56 = vadd.f32 %v1251_v54, %v1250_v50  ;;  %v703_v57 = vadd.f32 %v1228_v7, %v702_v55  ;;  %v1253_v58 = vpop.f32.mrb[18].mxu0  ;;  %v1347_v59 = vpop.f32.mrb[18].mxu1 }
 0x118   :  { %v837_v61 = vmul.f32 %v1728_v52, %v711_v53  ;;  %v714_v62 = vadd.f32 %v1347_v59, %v1237_v25  ;;  %v1254_v63 = vpop.f32.mrb[19].mxu0  ;;  %v705_v0 = vpop.f32.mrb[19].mxu1 }
 0x119   :  { %v835_v1 = vmul.f32 %v1728_v52, %v703_v57  ;;  %v1255_v2 = vadd.f32 %v1254_v63, %v1253_v58  ;;  %v706_v3 = vadd.f32 %v1231_v13, %v705_v0 }
 0x11a   :  { %v838_v4 = vmul.f32 %v1728_v52, %v714_v62  ;;  %v1739_v5 = vadd.f32 %v1733_v60, %v837_v61 }
 0x11b   :  { %v836_v6 = vmul.f32 %v1728_v52, %v706_v3  ;;  %v1743_v7 = vadd.f32 %v1733_v60, %v835_v1 }
 0x11c   :  { %v906_v9 = vmax.f32 %v1739_v5, 0.0  ;;  %v1747_v10 = vadd.f32 %v1733_v60, %v838_v4 }
 0x11d   :  { %v1256_v11 = vpop.f32.mrb[20].mxu0  ;;  %v1350_v12 = vpop.f32.mrb[20].mxu1  ;;  %v904_v15 = vmax.f32 %v1743_v7, 0.0  ;;  %v1751_v13 = vadd.f32 %v1733_v60, %v836_v6 }
 0x11e   :  { %v727_v16 = vadd.f32 %v1350_v12, %v1246_v43  ;;  %v1257_v17 = vpop.f32.mrb[21].mxu0  ;;  %v718_v18 = vpop.f32.mrb[21].mxu1  ;;  %970 = vrot.lane.b32.xlu1 %v906_v9, %s1474_s2  ;;  %v907_v29 = vmax.f32 %v1747_v10, 0.0 }
 0x11f   :  { %v1258_v19 = vadd.f32 %v1257_v17, %v1256_v11  ;;  %v719_v21 = vadd.f32 %v1240_v31, %v718_v18  ;;  %v1259_v22 = vpop.f32.mrb[22].mxu0  ;;  %v1351_v23 = vpop.f32.mrb[22].mxu1  ;;  %966 = vrot.lane.b32.xlu0 %v904_v15, %s1474_s2  ;;  %v905_v35 = vmax.f32 %v1751_v13, 0.0 }
 0x120   :  { %v841_v24 = vmul.f32 %v1728_v52, %v727_v16  ;;  %v730_v25 = vadd.f32 %v1351_v23, %v1249_v49  ;;  %v1260_v27 = vpop.f32.mrb[23].mxu0  ;;  %v721_v28 = vpop.f32.mrb[23].mxu1 }
 0x121   :  { %v839_v30 = vmul.f32 %v1728_v52, %v719_v21  ;;  %v1261_v33 = vadd.f32 %v1260_v27, %v1259_v22  ;;  %v722_v34 = vadd.f32 %v1243_v37, %v721_v28 }
 0x122   :  { %v842_v31 = vmul.f32 %v1728_v52, %v730_v25  ;;  %972 = vrot.lane.b32.xlu1 %v907_v29, %s1474_s2  ;;  %v1768_v36 = vadd.f32 %v1733_v60, %v841_v24 }
 0x123   :  { %v840_v39 = vmul.f32 %v1728_v52, %v722_v34  ;;  %968 = vrot.lane.b32.xlu0 %v905_v35, %s1474_s2  ;;  %v1779_v43 = vadd.f32 %v1733_v60, %v839_v30 }
 0x124   :  { %v910_v40 = vmax.f32 %v1768_v36, 0.0  ;;  %v1776_v37 = vadd.f32 %v1733_v60, %v842_v31 }
 0x125   :  { %v1262_v41 = vpop.f32.mrb[24].mxu0  ;;  %v1354_v42 = vpop.f32.mrb[24].mxu1  ;;  %v1783_v49 = vadd.f32 %v1733_v60, %v840_v39 }
 0x126   :  { %v743_v45 = vadd.f32 %v1354_v42, %v1258_v19  ;;  %v1263_v46 = vpop.f32.mrb[25].mxu0  ;;  %v734_v47 = vpop.f32.mrb[25].mxu1  ;;  %v911_v48 = vmax.f32 %v1776_v37, 0.0 }
 0x127   :  { %v1264_v50 = vadd.f32 %v1263_v46, %v1262_v41  ;;  %v735_v51 = vadd.f32 %v1252_v56, %v734_v47  ;;  %v1265_v53 = vpop.f32.mrb[26].mxu0  ;;  %v1355_v54 = vpop.f32.mrb[26].mxu1  ;;  %978 = vrot.lane.b32.xlu0 %v910_v40, %s1474_s2  ;;  %v908_v56 = vmax.f32 %v1779_v43, 0.0  ;;  %v909_v1 = vmax.f32 %v1783_v49, 0.0 }
 0x128   :  { %v845_v55 = vmul.f32 %v1728_v52, %v743_v45  ;;  %v746_v57 = vadd.f32 %v1355_v54, %v1261_v33  ;;  %v1266_v58 = vpop.f32.mrb[27].mxu0  ;;  %v737_v59 = vpop.f32.mrb[27].mxu1  ;;  %980 = vrot.lane.b32.xlu1 %v911_v48, %s1474_s2 }
 0x129   :  { %v843_v61 = vmul.f32 %v1728_v52, %v735_v51  ;;  %v1267_v62 = vadd.f32 %v1266_v58, %v1265_v53  ;;  %v738_v63 = vadd.f32 %v1255_v2, %v737_v59 }
 0x12a   :  { %v846_v0 = vmul.f32 %v1728_v52, %v746_v57  ;;  %v1797_v3 = vadd.f32 %v1733_v60, %v845_v55 }
 0x12b   :  { %v844_v4 = vmul.f32 %v1728_v52, %v738_v63  ;;  %974 = vrot.lane.b32.xlu0 %v908_v56, %s1474_s2  ;;  %v1811_v11 = vadd.f32 %v1733_v60, %v843_v61 }
 0x12c   :  { %976 = vrot.lane.b32.xlu1 %v909_v1, %s1474_s2  ;;  %v914_v2 = vmax.f32 %v1797_v3, 0.0  ;;  %v1808_v6 = vadd.f32 %v1733_v60, %v846_v0 }
 0x12d   :  { %v1268_v12 = vpop.f32.mrb[28].mxu0  ;;  %v1358_v16 = vpop.f32.mrb[28].mxu1  ;;  %v1815_v21 = vadd.f32 %v1733_v60, %v844_v4  ;;  %v912_v30 = vmax.f32 %v1811_v11, 0.0 }
 0x12e   :  { %v1269_v17 = vpop.f32.mrb[29].mxu0  ;;  %v750_v18 = vpop.f32.mrb[29].mxu1  ;;  %v915_v19 = vmax.f32 %v1808_v6, 0.0 }
 0x12f   :  { %v1270_v22 = vadd.f32 %v1269_v17, %v1268_v12  ;;  %v751_v23 = vadd.f32 %v1264_v50, %v750_v18  ;;  %v1271_v24 = vpop.f32.mrb[30].mxu0  ;;  %v1359_v25 = vpop.f32.mrb[30].mxu1  ;;  %986 = vrot.lane.b32.xlu0 %v914_v2, %s1474_s2  ;;  %v913_v41 = vmax.f32 %v1815_v21, 0.0 }
 0x130   :  { %v1272_v27 = vpop.f32.mrb[31].mxu0  ;;  %v753_v28 = vpop.f32.mrb[31].mxu1  ;;  %988 = vrot.lane.b32.xlu1 %v915_v19, %s1474_s2 }
 0x131   :  { %v759_v33 = vadd.f32 %v1358_v16, %v1270_v22  ;;  %v847_v34 = vmul.f32 %v1728_v52, %v751_v23  ;;  %v1273_v31 = vadd.f32 %v1272_v27, %v1271_v24  ;;  %v754_v39 = vadd.f32 %v1267_v62, %v753_v28 }
 0x133   :  { %v849_v42 = vmul.f32 %v1728_v52, %v759_v33  ;;  %v762_v45 = vadd.f32 %v1359_v25, %v1273_v31  ;;  %v848_v46 = vmul.f32 %v1728_v52, %v754_v39  ;;  %982 = vrot.lane.b32.xlu0 %v912_v30, %s1474_s2  ;;  %v1832_v47 = vadd.f32 %v1733_v60, %v847_v34 }
 0x134   :  { %984 = vrot.lane.b32.xlu1 %v913_v41, %s1474_s2 }
 0x135   :  { %v850_v50 = vmul.f32 %v1728_v52, %v762_v45  ;;  %v1274_v51 = vpop.f32.mrb[32].mxu0  ;;  %v1362_v53 = vpop.f32.mrb[32].mxu1  ;;  %v916_v54 = vmax.f32 %v1832_v47, 0.0  ;;  %v1840_v55 = vadd.f32 %v1733_v60, %v848_v46  ;;  %v1843_v57 = vadd.f32 %v1733_v60, %v849_v42 }
 0x136   :  { %v1275_v58 = vpop.f32.mrb[33].mxu0  ;;  %v766_v59 = vpop.f32.mrb[33].mxu1 }
 0x137   :  { %v1276_v61 = vadd.f32 %v1275_v58, %v1274_v51  ;;  %v1277_v62 = vpop.f32.mrb[34].mxu0  ;;  %v1363_v63 = vpop.f32.mrb[34].mxu1  ;;  %990 = vrot.lane.b32.xlu0 %v916_v54, %s1474_s2  ;;  %v917_v0 = vmax.f32 %v1840_v55, 0.0  ;;  %v1850_v4 = vadd.f32 %v1733_v60, %v850_v50  ;;  %v918_v22 = vmax.f32 %v1843_v57, 0.0 }
 0x138   :  { %v1278_v12 = vpop.f32.mrb[35].mxu0  ;;  %v769_v16 = vpop.f32.mrb[35].mxu1 }
 0x139   :  { %v767_v17 = vadd.f32 %v1276_v61, %v766_v59  ;;  %v1279_v18 = vadd.f32 %v1278_v12, %v1277_v62  ;;  %992 = vrot.lane.b32.xlu1 %v917_v0, %s1474_s2  ;;  %v2189_v25 = vmax.f32 %v1850_v4, 0.0 }
 0x13b   :  { %v851_v23 = vmul.f32 %v1728_v52, %v767_v17  ;;  %v770_v24 = vadd.f32 %v1279_v18, %v769_v16  ;;  %994 = vrot.lane.b32.xlu0 %v918_v22, %s1474_s2 }
 0x13d   :  { %v852_v27 = vmul.f32 %v1728_v52, %v770_v24  ;;  %v1280_v28 = vpop.f32.mrb[36].mxu0  ;;  %v1862_v33 = vpop.f32.mrb[36].mxu1  ;;  %996 = vrot.lane.b32.xlu1 %v2189_v25, %s1474_s2  ;;  %v1868_v34 = vadd.f32 %v1733_v60, %v851_v23 }
 0x13e   :  { %v1281_v31 = vpop.f32.mrb[37].mxu0  ;;  %v782_v39 = vpop.f32.mrb[37].mxu1 }
 0x13f   :  { %v1282_v42 = vadd.f32 %v1281_v31, %v1280_v28  ;;  %v1283_v45 = vpop.f32.mrb[38].mxu0  ;;  %v1870_v46 = vpop.f32.mrb[38].mxu1  ;;  %v2188_v50 = vmax.f32 %v1868_v34, 0.0  ;;  %v1874_v51 = vadd.f32 %v1733_v60, %v852_v27 }
 0x140   :  { %v1284_v58 = vpop.f32.mrb[39].mxu0  ;;  %v785_v59 = vpop.f32.mrb[39].mxu1 }
 0x141   :  { %v775_v61 = vadd.f32 %v1362_v53, %v1282_v42  ;;  %v1285_v62 = vadd.f32 %v1284_v58, %v1283_v45  ;;  %998 = vrot.lane.b32.xlu0 %v2188_v50, %s1474_s2  ;;  %v2187_v12 = vmax.f32 %v1874_v51, 0.0 }
 0x143   :  { %v853_v16 = vmul.f32 %v1728_v52, %v775_v61  ;;  %v778_v17 = vadd.f32 %v1363_v63, %v1285_v62  ;;  %1000 = vrot.lane.b32.xlu1 %v2187_v12, %s1474_s2 }
 0x145   :  { %v854_v18 = vmul.f32 %v1728_v52, %v778_v17  ;;  %v1286_v23 = vpop.f32.mrb[40].mxu0  ;;  %v1370_v24 = vpop.f32.mrb[40].mxu1  ;;  %v1886_v53 = vadd.f32 %v1733_v60, %v853_v16 }
 0x146   :  { %v807_v27 = vadd.f32 %v1370_v24, %v1715_v20  ;;  %v1287_v28 = vpop.f32.mrb[41].mxu0  ;;  %v798_v31 = vpop.f32.mrb[41].mxu1 }
 0x147   :  { %v1288_v42 = vadd.f32 %v1287_v28, %v1286_v23  ;;  %v799_v45 = vadd.f32 %v1711_v8, %v798_v31  ;;  %v1289_v58 = vpop.f32.mrb[42].mxu0  ;;  %v1371_v63 = vpop.f32.mrb[42].mxu1  ;;  %v922_v61 = vmax.f32 %v1886_v53, 0.0  ;;  %v1892_v62 = vadd.f32 %v1733_v60, %v854_v18 }
 0x148   :  { %v861_v17 = vmul.f32 %v1728_v52, %v807_v27  ;;  %v810_v12 = vadd.f32 %v1371_v63, %v1717_v26  ;;  %v1290_v16 = vpop.f32.mrb[43].mxu0  ;;  %v801_v50 = vpop.f32.mrb[43].mxu1 }
 0x149   :  { %v783_v25 = vadd.f32 %v1288_v42, %v782_v39  ;;  %v859_v20 = vmul.f32 %v1728_v52, %v799_v45  ;;  %v1291_v24 = vadd.f32 %v1290_v16, %v1289_v58  ;;  %v802_v23 = vadd.f32 %v1713_v14, %v801_v50  ;;  %1002 = vrot.lane.b32.xlu0 %v922_v61, %s1474_s2 }
 0x14a   :  { %v862_v8 = vmul.f32 %v1728_v52, %v810_v12  ;;  %v923_v18 = vmax.f32 %v1892_v62, 0.0  ;;  %v1904_v27 = vadd.f32 %v1733_v60, %v861_v17 }
 0x14b   :  { %v786_v26 = vadd.f32 %v1291_v24, %v785_v59  ;;  %v860_v28 = vmul.f32 %v1728_v52, %v802_v23  ;;  %v855_v39 = vmul.f32 %v1728_v52, %v783_v25  ;;  %v1916_v12 = vadd.f32 %v1733_v60, %v859_v20 }
 0x14c   :  { %1004 = vrot.lane.b32.xlu1 %v923_v18, %s1474_s2  ;;  %v2190_v14 = vmax.f32 %v1904_v27, 0.0  ;;  %v1913_v50 = vadd.f32 %v1733_v60, %v862_v8 }
 0x14d   :  { %v1292_v31 = vpop.f32.mrb[44].mxu0  ;;  %v1374_v42 = vpop.f32.mrb[44].mxu1  ;;  %v856_v59 = vmul.f32 %v1728_v52, %v786_v26  ;;  %v1925_v17 = vadd.f32 %v1733_v60, %v860_v28 }
 0x14e   :  { %v823_v45 = vadd.f32 %v1374_v42, %v1723_v44  ;;  %v1293_v58 = vpop.f32.mrb[45].mxu0  ;;  %v814_v25 = vpop.f32.mrb[45].mxu1  ;;  %1018 = vrot.lane.b32.xlu0 %v2190_v14, %s1474_s2  ;;  %v931_v63 = vmax.f32 %v1913_v50, 0.0  ;;  %v928_v42 = vmax.f32 %v1916_v12, 0.0  ;;  %v1934_v14 = vadd.f32 %v1733_v60, %v855_v39 }
 0x14f   :  { %v1294_v16 = vadd.f32 %v1293_v58, %v1292_v31  ;;  %v815_v20 = vadd.f32 %v1719_v32, %v814_v25  ;;  %v1295_v24 = vpop.f32.mrb[46].mxu0  ;;  %v1375_v23 = vpop.f32.mrb[46].mxu1  ;;  %v1944_v25 = vadd.f32 %v1733_v60, %v856_v59 }
 0x150   :  { %v865_v8 = vmul.f32 %v1728_v52, %v823_v45  ;;  %v1296_v26 = vpop.f32.mrb[47].mxu0  ;;  %v817_v44 = vpop.f32.mrb[47].mxu1  ;;  %1020 = vrot.lane.b32.xlu1 %v931_v63, %s1474_s2  ;;  %v929_v45 = vmax.f32 %v1925_v17, 0.0 }
 0x151   :  { %v791_v28 = vadd.f32 %v1862_v33, %v1294_v16  ;;  %v863_v31 = vmul.f32 %v1728_v52, %v815_v20  ;;  %v1297_v32 = vadd.f32 %v1296_v26, %v1295_v24  ;;  %v818_v58 = vadd.f32 %v1721_v38, %v817_v44 }
 0x152   :  { %1014 = vrot.lane.b32.xlu0 %v928_v42, %s1474_s2  ;;  %v1947_v23 = vadd.f32 %v1733_v60, %v865_v8  ;;  %v924_v38 = vmax.f32 %v1934_v14, 0.0 }
 0x153   :  { %v857_v39 = vmul.f32 %v1728_v52, %v791_v28  ;;  %v794_v33 = vadd.f32 %v1870_v46, %v1297_v32  ;;  %v864_v16 = vmul.f32 %v1728_v52, %v818_v58  ;;  %v1957_v20 = vadd.f32 %v1733_v60, %v863_v31 }
 0x154   :  { %1016 = vrot.lane.b32.xlu1 %v929_v45, %s1474_s2  ;;  %v925_v46 = vmax.f32 %v1944_v25, 0.0  ;;  %v934_v31 = vmax.f32 %v1947_v23, 0.0 }
 0x155   :  { %v858_v59 = vmul.f32 %v1728_v52, %v794_v33  ;;  %v1961_v24 = vadd.f32 %v1733_v60, %v857_v39  ;;  %v1964_v8 = vadd.f32 %v1733_v60, %v864_v16  ;;  %v932_v52 = vmax.f32 %v1957_v20, 0.0 }
 0x156   :  { %1006 = vrot.lane.b32.xlu0 %v924_v38, %s1474_s2 }
 0x157   :  { %v1971_v26 = vadd.f32 %v1733_v60, %v858_v59  ;;  %v926_v28 = vmax.f32 %v1961_v24, 0.0  ;;  %v933_v60 = vmax.f32 %v1964_v8, 0.0 }
 0x158   :  { %1008 = vrot.lane.b32.xlu1 %v925_v46, %s1474_s2 }
 0x159   :  { %v927_v44 = vmax.f32 %v1971_v26, 0.0 }
 0x15a   :  { %1022 = vrot.lane.b32.xlu0 %v932_v52, %s1474_s2 }
 0x15c   :  { %1012 = vrot.lane.b32.xlu1 %v927_v44, %s1474_s2 }
 0x15e   :  { %1010 = vrot.lane.b32.xlu0 %v926_v28, %s1474_s2 }
 0x160   :  { %1024 = vrot.lane.b32.xlu1 %v933_v60, %s1474_s2 }
 0x162   :  { %1026 = vrot.lane.b32.xlu0 %v934_v31, %s1474_s2 }
 0x190   :  { %v971_v32 = vpop.permute.xlu1 %970 }
 0x191   :  { %v1061_v58 = vadd.f32 %v971_v32, %v906_v9  ;;  %v967_v39 = vpop.permute.xlu0 %966 }
 0x192   :  { %v1059_v33 = vadd.f32 %v967_v39, %v904_v15 }
 0x193   :  { %1093 = vst.msk [vmem:[%s2186_s4 + $0x10] sm:$0xff] %vm1090_vm1, %v1061_v58 }
 0x194   :  { %1091 = vst.msk [vmem:[%s2186_s4] sm:$0xff] %vm1090_vm1, %v1059_v33  ;;  %v973_v16 = vpop.permute.xlu1 %972 }
 0x195   :  { %v1062_v59 = vadd.f32 %v973_v16, %v907_v29  ;;  %v969_v5 = vpop.permute.xlu0 %968 }
 0x196   :  { %v1060_v9 = vadd.f32 %v969_v5, %v905_v35 }
 0x197   :  { %1094 = vst.msk [vmem:[%s2186_s4 + $0x18] sm:$0xff] %vm1090_vm1, %v1062_v59  ;;  %v2194_v59 = vmax.f32 %v1904_v27, 0.0 }
 0x198   :  { %1092 = vst.msk [vmem:[%s2186_s4 + $0x8] sm:$0xff] %vm1090_vm1, %v1060_v9 }
 0x199   :  { %v979_v7 = vpop.permute.xlu0 %978 }
 0x19a   :  { %v1065_v15 = vadd.f32 %v979_v7, %v910_v40  ;;  %v981_v10 = vpop.permute.xlu1 %980 }
 0x19b   :  { %v1066_v29 = vadd.f32 %v981_v10, %v911_v48 }
 0x19c   :  { %1097 = vst.msk [vmem:[%s2186_s4 + $0x30] sm:$0xff] %vm1090_vm1, %v1065_v15 }
 0x19d   :  { %1098 = vst.msk [vmem:[%s2186_s4 + $0x38] sm:$0xff] %vm1090_vm1, %v1066_v29  ;;  %v975_v13 = vpop.permute.xlu0 %974 }
 0x19e   :  { %v1063_v35 = vadd.f32 %v975_v13, %v908_v56  ;;  %v977_v36 = vpop.permute.xlu1 %976 }
 0x19f   :  { %v1064_v40 = vadd.f32 %v977_v36, %v909_v1 }
 0x1a0   :  { %1095 = vst.msk [vmem:[%s2186_s4 + $0x20] sm:$0xff] %vm1090_vm1, %v1063_v35 }
 0x1a1   :  { %1096 = vst.msk [vmem:[%s2186_s4 + $0x28] sm:$0xff] %vm1090_vm1, %v1064_v40  ;;  %v987_v37 = vpop.permute.xlu0 %986 }
 0x1a2   :  { %v1069_v48 = vadd.f32 %v987_v37, %v914_v2  ;;  %v989_v43 = vpop.permute.xlu1 %988 }
 0x1a3   :  { %v1070_v56 = vadd.f32 %v989_v43, %v915_v19 }
 0x1a4   :  { %1101 = vst.msk [vmem:[%s2186_s4 + $0x50] sm:$0xff] %vm1090_vm1, %v1069_v48 }
 0x1a5   :  { %1102 = vst.msk [vmem:[%s2186_s4 + $0x58] sm:$0xff] %vm1090_vm1, %v1070_v56  ;;  %v983_v49 = vpop.permute.xlu0 %982 }
 0x1a6   :  { %v1067_v1 = vadd.f32 %v983_v49, %v912_v30  ;;  %v985_v3 = vpop.permute.xlu1 %984 }
 0x1a7   :  { %v1068_v2 = vadd.f32 %v985_v3, %v913_v41 }
 0x1a8   :  { %1099 = vst.msk [vmem:[%s2186_s4 + $0x40] sm:$0xff] %vm1090_vm1, %v1067_v1 }
 0x1a9   :  { %1100 = vst.msk [vmem:[%s2186_s4 + $0x48] sm:$0xff] %vm1090_vm1, %v1068_v2  ;;  %v991_v6 = vpop.permute.xlu0 %990 }
 0x1aa   :  { %v1071_v19 = vadd.f32 %v991_v6, %v916_v54  ;;  %v2191_v54 = vmax.f32 %v1850_v4, 0.0 }
 0x1ab   :  { %v993_v11 = vpop.permute.xlu1 %992 }
 0x1ac   :  { %1103 = vst.msk [vmem:[%s2186_s4 + $0x60] sm:$0xff] %vm1090_vm1, %v1071_v19  ;;  %v1072_v21 = vadd.f32 %v993_v11, %v917_v0  ;;  %v2192_v0 = vmax.f32 %v1868_v34, 0.0 }
 0x1ad   :  { %v995_v30 = vpop.permute.xlu0 %994 }
 0x1ae   :  { %1104 = vst.msk [vmem:[%s2186_s4 + $0x68] sm:$0xff] %vm1090_vm1, %v1072_v21  ;;  %v1073_v41 = vadd.f32 %v995_v30, %v918_v22  ;;  %v2193_v22 = vmax.f32 %v1874_v51, 0.0 }
 0x1af   :  { %v997_v47 = vpop.permute.xlu1 %996 }
 0x1b0   :  { %1105 = vst.msk [vmem:[%s2186_s4 + $0x70] sm:$0xff] %vm1090_vm1, %v1073_v41  ;;  %v1074_v32 = vadd.f32 %v997_v47, %v2191_v54 }
 0x1b2   :  { %1106 = vst.msk [vmem:[%s2186_s4 + $0x78] sm:$0xff] %vm1090_vm1, %v1074_v32 }
 0x1b3   :  { %v999_v55 = vpop.permute.xlu0 %998 }
 0x1b4   :  { %v1075_v58 = vadd.f32 %v999_v55, %v2192_v0 }
 0x1b5   :  { %v1001_v57 = vpop.permute.xlu1 %1000 }
 0x1b6   :  { %1107 = vst.msk [vmem:[%s2186_s4 + $0x80] sm:$0xff] %vm1090_vm1, %v1075_v58  ;;  %v1076_v39 = vadd.f32 %v1001_v57, %v2193_v22 }
 0x1b8   :  { %1108 = vst.msk [vmem:[%s2186_s4 + $0x88] sm:$0xff] %vm1090_vm1, %v1076_v39 }
 0x1bb   :  { %v1003_v4 = vpop.permute.xlu0 %1002 }
 0x1bc   :  { %v1077_v33 = vadd.f32 %v1003_v4, %v922_v61 }
 0x1be   :  { %1109 = vst.msk [vmem:[%s2186_s4 + $0x90] sm:$0xff] %vm1090_vm1, %v1077_v33  ;;  %v1005_v34 = vpop.permute.xlu1 %1004 }
 0x1bf   :  { %v1078_v16 = vadd.f32 %v1005_v34, %v923_v18 }
 0x1c0   :  { %v1019_v51 = vpop.permute.xlu0 %1018 }
 0x1c1   :  { %1110 = vst.msk [vmem:[%s2186_s4 + $0x98] sm:$0xff] %vm1090_vm1, %v1078_v16  ;;  %v1085_v5 = vadd.f32 %v1019_v51, %v2194_v59 }
 0x1c2   :  { %v1021_v53 = vpop.permute.xlu1 %1020 }
 0x1c3   :  { %1117 = vst.msk [vmem:[%s2186_s4 + $0xd0] sm:$0xff] %vm1090_vm1, %v1085_v5  ;;  %v1086_v61 = vadd.f32 %v1021_v53, %v931_v63 }
 0x1c4   :  { %v1015_v62 = vpop.permute.xlu0 %1014 }
 0x1c5   :  { %1118 = vst.msk [vmem:[%s2186_s4 + $0xd8] sm:$0xff] %vm1090_vm1, %v1086_v61  ;;  %v1083_v18 = vadd.f32 %v1015_v62, %v928_v42 }
 0x1c6   :  { %v1017_v27 = vpop.permute.xlu1 %1016 }
 0x1c7   :  { %1115 = vst.msk [vmem:[%s2186_s4 + $0xc0] sm:$0xff] %vm1090_vm1, %v1083_v18  ;;  %v1084_v9 = vadd.f32 %v1017_v27, %v929_v45 }
 0x1c8   :  { %v1007_v50 = vpop.permute.xlu0 %1006 }
 0x1c9   :  { %1116 = vst.msk [vmem:[%s2186_s4 + $0xc8] sm:$0xff] %vm1090_vm1, %v1084_v9  ;;  %v1079_v63 = vadd.f32 %v1007_v50, %v924_v38 }
 0x1ca   :  { %v1009_v12 = vpop.permute.xlu1 %1008 }
 0x1cb   :  { %1111 = vst.msk [vmem:[%s2186_s4 + $0xa0] sm:$0xff] %vm1090_vm1, %v1079_v63  ;;  %v1080_v42 = vadd.f32 %v1009_v12, %v925_v46 }
 0x1cc   :  { %v1023_v17 = vpop.permute.xlu0 %1022 }
 0x1cd   :  { %1112 = vst.msk [vmem:[%s2186_s4 + $0xa8] sm:$0xff] %vm1090_vm1, %v1080_v42  ;;  %v1087_v45 = vadd.f32 %v1023_v17, %v932_v52 }
 0x1ce   :  { %v1013_v14 = vpop.permute.xlu1 %1012 }
 0x1cf   :  { %1119 = vst.msk [vmem:[%s2186_s4 + $0xe0] sm:$0xff] %vm1090_vm1, %v1087_v45  ;;  %v1082_v38 = vadd.f32 %v1013_v14, %v927_v44 }
 0x1d0   :  { %v1011_v25 = vpop.permute.xlu0 %1010 }
 0x1d1   :  { %1114 = vst.msk [vmem:[%s2186_s4 + $0xb8] sm:$0xff] %vm1090_vm1, %v1082_v38  ;;  %v1081_v46 = vadd.f32 %v1011_v25, %v926_v28 }
 0x1d2   :  { %v1025_v20 = vpop.permute.xlu1 %1024 }
 0x1d3   :  { %1113 = vst.msk [vmem:[%s2186_s4 + $0xb0] sm:$0xff] %vm1090_vm1, %v1081_v46  ;;  %v1088_v52 = vadd.f32 %v1025_v20, %v933_v60 }
 0x1d4   :  { %v1027_v26 = vpop.permute.xlu0 %1026 }
 0x1d5   :  { %1120 = vst.msk [vmem:[%s2186_s4 + $0xe8] sm:$0xff] %vm1090_vm1, %v1088_v52  ;;  %v1089_v44 = vadd.f32 %v1027_v26, %v934_v31 }
 0x1d7   :  { %1121 = vst.msk [vmem:[%s2186_s4 + $0xf0] sm:$0xff] %vm1090_vm1, %v1089_v44 }

// kernel: multimoding2017_forward.18
= control target key start
LH: loop header
LB: loop body
LE: loop exit
PB: predicated region body
PF: predicated region fallthrough
CT: control target
= control target key end

     0   :  { %v1125_v34 = vmov 0.0   ;;  %vm1126_vm0 = vmmov 0   ;;  %vm465_vm1 = vcmask 523264   ;;  %s1640_s1 = inlined_call_operand.vmem [shape: bf16[576,128], index: 1, kind: input, shape index: {}]   ;;  %s1641_s0 = inlined_call_operand.vmem [shape: bf16[72,576], index: 0, kind: input, shape index: {}]   ;;  %s1642_s4 = inlined_call_operand.vmem [shape: f32[72,128], index: 4, kind: input, shape index: {}]   ;;  %s1643_s5 = inlined_call_operand.vmem [shape: f32[72,128], index: 5, kind: input, shape index: {}]   ;;  %s1644_s6 = inlined_call_operand.vmem [shape: f32[72,128], index: 6, kind: input, shape index: {}]   ;;  %s1645_s7 = inlined_call_operand.vmem [shape: f32[72,128], index: 7, kind: input, shape index: {}]   ;;  %s1646_s9 = inlined_call_operand.vmem [shape: f32[72,128], index: 9, kind: output, shape index: {1}]   ;;  %s1647_s2 = inlined_call_operand.vmem [shape: f32[1,128], index: 2, kind: input, shape index: {}]   ;;  %s1648_s3 = inlined_call_operand.vmem [shape: f32[1,128], index: 3, kind: input, shape index: {}]   ;;  %s1649_s8 = inlined_call_operand.vmem [shape: f32[72,128], index: 8, kind: output, shape index: {0}]   ;;  %s1650_s10 = inlined_call_operand.vmem [shape: f32[72,128], index: 10, kind: output, shape index: {2}]  }
   0x1   :  { %v1056_v0 = vld [vmem:[%s1640_s1 + $0x40] sm:$0xff]   ;;  %v1060_v4 = vld [vmem:[%s1640_s1 + $0x48] sm:$0xff]   ;;  %v1064_v8 = vld [vmem:[%s1640_s1 + $0x50] sm:$0xff]  }
   0x2   :  { %v1057_v1 = vld [vmem:[%s1640_s1 + $0xc0] sm:$0xff]   ;;  %917 = vmatprep.subr.bf16.mxu0 %v1056_v0  ;;  %v1061_v5 = vld [vmem:[%s1640_s1 + $0xc8] sm:$0xff]   ;;  %v1065_v9 = vld [vmem:[%s1640_s1 + $0xd0] sm:$0xff]  }
   0x3   :  { %v1058_v2 = vld [vmem:[%s1640_s1] sm:$0xff]   ;;  %963 = vmatprep.subr.bf16.mxu1 %v1057_v1  ;;  %v1062_v6 = vld [vmem:[%s1640_s1 + $0x8] sm:$0xff]   ;;  %v1066_v10 = vld [vmem:[%s1640_s1 + $0x10] sm:$0xff]  }
   0x4   :  { %v1059_v3 = vld [vmem:[%s1640_s1 + $0x80] sm:$0xff]   ;;  %918 = vmatpush3.bf16.msra.mxu0 %v1058_v2  ;;  %v1063_v7 = vld [vmem:[%s1640_s1 + $0x88] sm:$0xff]   ;;  %v1067_v11 = vld [vmem:[%s1640_s1 + $0x90] sm:$0xff]  }
   0x5   :  { %964 = vmatpush3.bf16.msra.mxu1 %v1059_v3  ;;  %919 = vmatprep.subr.bf16.mxu0 %v1060_v4  ;;  %v1068_v12 = vld [vmem:[%s1640_s1 + $0x58] sm:$0xff]   ;;  %v1072_v16 = vld [vmem:[%s1640_s1 + $0x60] sm:$0xff]   ;;  %v1076_v20 = vld [vmem:[%s1640_s1 + $0x68] sm:$0xff]  }
   0x6   :  { %965 = vmatprep.subr.bf16.mxu1 %v1061_v5  ;;  %v1069_v13 = vld [vmem:[%s1640_s1 + $0xd8] sm:$0xff]   ;;  %v1073_v17 = vld [vmem:[%s1640_s1 + $0xe0] sm:$0xff]   ;;  %v1077_v21 = vld [vmem:[%s1640_s1 + $0xe8] sm:$0xff]  }
   0x7   :  { %v1070_v14 = vld [vmem:[%s1640_s1 + $0x18] sm:$0xff]   ;;  %v1074_v18 = vld [vmem:[%s1640_s1 + $0x20] sm:$0xff]   ;;  %v1078_v22 = vld [vmem:[%s1640_s1 + $0x28] sm:$0xff]  }
   0x8   :  { %920 = vmatpush3.bf16.msra.mxu0 %v1062_v6  ;;  %v1071_v15 = vld [vmem:[%s1640_s1 + $0x98] sm:$0xff]   ;;  %v1075_v19 = vld [vmem:[%s1640_s1 + $0xa0] sm:$0xff]   ;;  %v1079_v23 = vld [vmem:[%s1640_s1 + $0xa8] sm:$0xff]  }
   0x9   :  { %966 = vmatpush3.bf16.msra.mxu1 %v1063_v7  ;;  %921 = vmatprep.subr.bf16.mxu0 %v1064_v8  ;;  %v1080_v24 = vld [vmem:[%s1640_s1 + $0x70] sm:$0xff]   ;;  %v1084_v28 = vld [vmem:[%s1640_s1 + $0x78] sm:$0xff]   ;;  %v1093_v36 = vld [vmem:[%s1641_s0 + $0xc] ss:$20 sps:$4 sm:$0xff]  }
   0xa   :  { %967 = vmatprep.subr.bf16.mxu1 %v1065_v9  ;;  %v1081_v25 = vld [vmem:[%s1640_s1 + $0xf0] sm:$0xff]   ;;  %v1085_v29 = vld [vmem:[%s1640_s1 + $0xf8] sm:$0xff]   ;;  %v1094_v37 = vld [vmem:[%s1640_s1 + $0x100] sm:$0xff]   ;;  %585 = vmatprep.mubr.bf16.mxu1 %v1093_v36 }
   0xb   :  { %v1082_v26 = vld [vmem:[%s1640_s1 + $0x30] sm:$0xff]   ;;  %v1086_v30 = vld [vmem:[%s1640_s1 + $0x38] sm:$0xff]   ;;  %v1095_v38 = vld [vmem:[%s1641_s0 + $0x2c] ss:$20 sps:$4 sm:$0xff]  }
   0xc   :  { %922 = vmatpush3.bf16.msra.mxu0 %v1066_v10  ;;  %v1083_v27 = vld [vmem:[%s1640_s1 + $0xb0] sm:$0xff]   ;;  %v1087_v31 = vld [vmem:[%s1640_s1 + $0xb8] sm:$0xff]   ;;  %v1101_v40 = vld [vmem:[%s1640_s1 + $0x108] sm:$0xff]  }
   0xd   :  { %968 = vmatpush3.bf16.msra.mxu1 %v1067_v11  ;;  %923 = vmatprep.subr.bf16.mxu0 %v1068_v12  ;;  %v1088_v32 = vld [vmem:[%s1641_s0] ss:$20 sps:$4 sm:$0xff]   ;;  %v1090_v33 = vld [vmem:[%s1641_s0 + $0x4] ss:$20 sps:$4 sm:$0xff]   ;;  %v1091_v35 = vld [vmem:[%s1641_s0 + $0x8] ss:$20 sps:$4 sm:$0xff]  }
   0xe   :  { %969 = vmatprep.subr.bf16.mxu1 %v1069_v13  ;;  %513 = vmatprep.mubr.bf16.mxu0 %v1090_v33  ;;  %v1097_v39 = vld [vmem:[%s1641_s0 + $0x34] ss:$20 sps:$4 sm:$0xff]   ;;  %v1100_v42 = vld [vmem:[%s1641_s0 + $0x30] ss:$20 sps:$4 sm:$0xff]   ;;  %v1117_v47 = vld [vmem:[%s1640_s1 + $0x118] sm:$0xff]  }
   0xf   :  { %v1099_v41 = vld [vmem:[%s1641_s0 + $0x28] ss:$20 sps:$4 sm:$0xff]   ;;  %v1108_v45 = vld [vmem:[%s1640_s1 + $0x110] sm:$0xff]   ;;  %v1107_v48 = vld [vmem:[%s1641_s0 + $0x58] ss:$20 sps:$4 sm:$0xff]  }
  0x10   :  { %924 = vmatpush3.bf16.msra.mxu0 %v1070_v14  ;;  %v1102_v43 = vld [vmem:[%s1641_s0 + $0x54] ss:$20 sps:$4 sm:$0xff]   ;;  %v1104_v44 = vld [vmem:[%s1641_s0 + $0x5c] ss:$20 sps:$4 sm:$0xff]   ;;  %v1111_v50 = vld [vmem:[%s1641_s0 + $0x84] ss:$20 sps:$4 sm:$0xff]  }
  0x11   :  { %970 = vmatpush3.bf16.msra.mxu1 %v1071_v15  ;;  %925 = vmatprep.subr.bf16.mxu0 %v1072_v16  ;;  %v1106_v46 = vld [vmem:[%s1641_s0 + $0x50] ss:$20 sps:$4 sm:$0xff]   ;;  %v58_v52 = vld [vmem:[%s1641_s0 + $0xa8] sm:$0xff]  ;;  %v1114_v54 = vld [vmem:[%s1641_s0 + $0x80] ss:$20 sps:$4 sm:$0xff]  }
  0x12   :  { %971 = vmatprep.subr.bf16.mxu1 %v1073_v17  ;;  %v1109_v49 = vld [vmem:[%s1641_s0 + $0x7c] ss:$20 sps:$4 sm:$0xff]   ;;  %v57_v51 = vld [vmem:[%s1641_s0 + $0xa0] sm:$0xff]  ;;  %v1113_v53 = vld [vmem:[%s1641_s0 + $0x78] ss:$20 sps:$4 sm:$0xff]   ;;  %v872_v56 = vcombine.high %v58_v52, %v58_v52  ;;  %v871_v58 = vcombine.low %v58_v52, %v58_v52 }
  0x13   :  { %v870_v55 = vcombine.high %v57_v51, %v57_v51  ;;  %v869_v57 = vcombine.low %v57_v51, %v57_v51  ;;  %v1120_v59 = vld [vmem:[%s1641_s0 + $0x10] ss:$20 sps:$4 sm:$0xff]   ;;  %v1121_v60 = vld [vmem:[%s1641_s0 + $0x88] ss:$20 sps:$4 sm:$0xff]   ;;  %v1122_v61 = vld [vmem:[%s1641_s0 + $0x38] ss:$20 sps:$4 sm:$0xff]  }
  0x14   :  { %926 = vmatpush3.bf16.msra.mxu0 %v1074_v18  ;;  %v1123_v62 = vld [vmem:[%s1641_s0 + $0xb0] ss:$0 sps:$4 sm:$0xff]   ;;  %v1124_v63 = vld [vmem:[%s1641_s0 + $0x60] ss:$20 sps:$4 sm:$0xff]   ;;  %v739_v8 = vld [vmem:[%s1642_s4 + $0x8] sm:$0xff] }
  0x15   :  { %972 = vmatpush3.bf16.msra.mxu1 %v1075_v19  ;;  %927 = vmatprep.subr.bf16.mxu0 %v1076_v20  ;;  %v738_v0 = vld [vmem:[%s1642_s4] sm:$0xff]  ;;  %v744_v3 = vld [vmem:[%s1642_s4 + $0x30] sm:$0xff]  ;;  %v748_v10 = vld [vmem:[%s1643_s5 + $0x8] sm:$0xff] }
  0x16   :  { %973 = vmatprep.subr.bf16.mxu1 %v1077_v21  ;;  %v747_v1 = vld [vmem:[%s1643_s5] sm:$0xff]  ;;  %v753_v4 = vld [vmem:[%s1643_s5 + $0x30] sm:$0xff]  ;;  %v745_v11 = vld [vmem:[%s1642_s4 + $0x38] sm:$0xff]  ;;  %v757_v16 = vmax.f32 %v739_v8, %v748_v10 }
  0x17   :  { %v756_v2 = vmax.f32 %v738_v0, %v747_v1  ;;  %v765_v5 = vld [vmem:[%s1644_s6] sm:$0xff]  ;;  %v762_v6 = vmax.f32 %v744_v3, %v753_v4  ;;  %v771_v7 = vld [vmem:[%s1644_s6 + $0x30] sm:$0xff]  ;;  %v754_v12 = vld [vmem:[%s1643_s5 + $0x38] sm:$0xff] }
  0x18   :  { %928 = vmatpush3.bf16.msra.mxu0 %v1078_v22  ;;  %v783_v13 = vld [vmem:[%s1645_s7] sm:$0xff]  ;;  %v789_v15 = vld [vmem:[%s1645_s7 + $0x30] sm:$0xff]  ;;  %v766_v17 = vld [vmem:[%s1644_s6 + $0x8] sm:$0xff]  ;;  %v763_v18 = vmax.f32 %v745_v11, %v754_v12 }
  0x19   :  { %974 = vmatpush3.bf16.msra.mxu1 %v1079_v23  ;;  %929 = vmatprep.subr.bf16.mxu0 %v1080_v24  ;;  %v774_v9 = vmax.f32 %v756_v2, %v765_v5  ;;  %v780_v14 = vmax.f32 %v762_v6, %v771_v7  ;;  %v772_v20 = vld [vmem:[%s1644_s6 + $0x38] sm:$0xff]  ;;  %v775_v22 = vmax.f32 %v757_v16, %v766_v17  ;;  %v784_v23 = vld [vmem:[%s1645_s7 + $0x8] sm:$0xff]  ;;  %v767_v33 = vld [vmem:[%s1644_s6 + $0x10] sm:$0xff] }
  0x1a   :  { %975 = vmatprep.subr.bf16.mxu1 %v1081_v25  ;;  %v781_v24 = vmax.f32 %v763_v18, %v772_v20  ;;  %v790_v25 = vld [vmem:[%s1645_s7 + $0x38] sm:$0xff]  ;;  %v769_v52 = vld [vmem:[%s1644_s6 + $0x20] sm:$0xff] }
  0x1b   :  { %v1411_v19 = vmax.f32 %v774_v9, %v783_v13  ;;  %v1416_v21 = vmax.f32 %v780_v14, %v789_v15  ;;  %v741_v36 = vld [vmem:[%s1642_s4 + $0x18] sm:$0xff] }
  0x1c   :  { %930 = vmatpush3.bf16.msra.mxu0 %v1082_v26  ;;  %v1432_v26 = vmax.f32 %v775_v22, %v784_v23 }
  0x1d   :  { %976 = vmatpush3.bf16.msra.mxu1 %v1083_v27  ;;  %931 = vmatprep.subr.bf16.mxu0 %v1084_v28  ;;  %810 = vst [vmem:[%s1646_s9] sm:$0xff] %v1411_v19  ;;  %816 = vst [vmem:[%s1646_s9 + $0x30] sm:$0xff] %v1416_v21  ;;  %v1434_v27 = vmax.f32 %v781_v24, %v790_v25  ;;  %v740_v28 = vld [vmem:[%s1642_s4 + $0x10] sm:$0xff] }
  0x1e   :  { %977 = vmatprep.subr.bf16.mxu1 %v1085_v29  ;;  %v749_v29 = vld [vmem:[%s1643_s5 + $0x10] sm:$0xff]  ;;  %811 = vst [vmem:[%s1646_s9 + $0x8] sm:$0xff] %v1432_v26 }
  0x1f   :  { %817 = vst [vmem:[%s1646_s9 + $0x38] sm:$0xff] %v1434_v27 }
  0x20   :  { %932 = vmatpush3.bf16.msra.mxu0 %v1086_v30  ;;  %v746_v30 = vld [vmem:[%s1642_s4 + $0x40] sm:$0xff] }
  0x21   :  { %978 = vmatpush3.bf16.msra.mxu1 %v1087_v31  ;;  %1018 = vmatprep.subr.bf16.mxu0 %v1125_v34  ;;  %v758_v31 = vmax.f32 %v740_v28, %v749_v29 }
  0x22   :  { %1046 = vmatprep.subr.bf16.mxu1 %v1125_v34 }
  0x23   :  { %514 = vmatmul.mubr.bf16.vlgmr.msra.gmra.mrb[0].mxu0 %v1088_v32  ;;  %v755_v32 = vld [vmem:[%s1643_s5 + $0x40] sm:$0xff] }
  0x24   :  { %586 = vmatmul.mubr.bf16.vlgmr.msra.gmra.mrb[0].mxu1 %v1091_v35  ;;  %1019 = vmatpush3.bf16.msra.mxu0 %v1094_v37  ;;  %v773_v35 = vld [vmem:[%s1644_s6 + $0x40] sm:$0xff] }
  0x25   :  { %521 = vmatprep.mubr.bf16.mxu0 %v1095_v38  ;;  %1020 = vmatprep.subr.bf16.mxu0 %v1125_v34  ;;  %v750_v38 = vld [vmem:[%s1643_s5 + $0x18] sm:$0xff] }
  0x26   :  { %593 = vmatprep.mubr.bf16.mxu1 %v1097_v39  ;;  %1050 = vmatpush3.bf16.msra.mxu1 %v1094_v37  ;;  %v776_v37 = vmax.f32 %v758_v31, %v767_v33  ;;  %v785_v39 = vld [vmem:[%s1645_s7 + $0x10] sm:$0xff] }
  0x27   :  { %1047 = vmatprep.subr.bf16.mxu1 %v1125_v34 }
  0x28   :  { %1021 = vmatpush3.bf16.msra.mxu0 %v1101_v40 }
  0x29   :  { %1022 = vmatprep.subr.bf16.mxu0 %v1125_v34 }
  0x2a   :  { %1051 = vmatpush3.bf16.msra.mxu1 %v1101_v40 }
  0x2b   :  { %522 = vmatmul.mubr.bf16.gmra.mrb[4].mxu0 %v1099_v41  ;;  %1048 = vmatprep.subr.bf16.mxu1 %v1125_v34  ;;  %v791_v41 = vld [vmem:[%s1645_s7 + $0x40] sm:$0xff] }
  0x2c   :  { %594 = vmatmul.mubr.bf16.gmra.mrb[4].mxu1 %v1100_v42  ;;  %529 = vmatprep.mubr.bf16.mxu0 %v1102_v43  ;;  %v759_v42 = vmax.f32 %v741_v36, %v750_v38  ;;  %v768_v43 = vld [vmem:[%s1644_s6 + $0x18] sm:$0xff] }
  0x2d   :  { %601 = vmatprep.mubr.bf16.mxu1 %v1104_v44  ;;  %1023 = vmatpush3.bf16.msra.mxu0 %v1108_v45  ;;  %v1477_v44 = vmax.f32 %v776_v37, %v785_v39 }
  0x2e   :  { %1024 = vmatprep.subr.bf16.mxu0 %v1125_v34  ;;  %1052 = vmatpush3.bf16.msra.mxu1 %v1108_v45 }
  0x2f   :  { %1049 = vmatprep.subr.bf16.mxu1 %v1125_v34  ;;  %812 = vst [vmem:[%s1646_s9 + $0x10] sm:$0xff] %v1477_v44 }
  0x31   :  { %1025 = vmatpush3.bf16.msra.mxu0 %v1117_v47 }
  0x32   :  { %1053 = vmatpush3.bf16.msra.mxu1 %v1117_v47  ;;  %v786_v47 = vld [vmem:[%s1645_s7 + $0x18] sm:$0xff] }
  0x33   :  { %530 = vmatmul.mubr.bf16.gmra.mrb[8].mxu0 %v1106_v46  ;;  %v777_v46 = vmax.f32 %v759_v42, %v768_v43 }
  0x34   :  { %602 = vmatmul.mubr.bf16.gmra.mrb[8].mxu1 %v1107_v48  ;;  %537 = vmatprep.mubr.bf16.mxu0 %v1109_v49  ;;  %v742_v49 = vld [vmem:[%s1642_s4 + $0x20] sm:$0xff] }
  0x35   :  { %609 = vmatprep.mubr.bf16.mxu1 %v1111_v50  ;;  %v1492_v48 = vmax.f32 %v777_v46, %v786_v47  ;;  %v751_v50 = vld [vmem:[%s1643_s5 + $0x20] sm:$0xff] }
  0x36   :  { %v760_v51 = vmax.f32 %v742_v49, %v751_v50 }
  0x37   :  { %813 = vst [vmem:[%s1646_s9 + $0x18] sm:$0xff] %v1492_v48 }
  0x3b   :  { %538 = vmatmul.mubr.bf16.gmra.mrb[12].mxu0 %v1113_v53  ;;  %v743_v53 = vld [vmem:[%s1642_s4 + $0x28] sm:$0xff] }
  0x3c   :  { %610 = vmatmul.mubr.bf16.gmra.mrb[12].mxu1 %v1114_v54  ;;  %545 = vmatprep.mubr.bf16.mxu0 %v870_v55  ;;  %v752_v54 = vld [vmem:[%s1643_s5 + $0x28] sm:$0xff]  ;;  %v778_v55 = vmax.f32 %v760_v51, %v769_v52 }
  0x3d   :  { %617 = vmatprep.mubr.bf16.mxu1 %v872_v56  ;;  %v761_v56 = vmax.f32 %v743_v53, %v752_v54 }
  0x43   :  { %546 = vmatmul.mubr.bf16.gmra.mrb[16].mxu0 %v869_v57  ;;  %v787_v57 = vld [vmem:[%s1645_s7 + $0x20] sm:$0xff] }
  0x44   :  { %618 = vmatmul.mubr.bf16.gmra.mrb[16].mxu1 %v871_v58  ;;  %1026 = vmatprep.mubr.msk.bf16.mxu0 %vm1126_vm0, %v1125_v34  ;;  %v770_v58 = vld [vmem:[%s1644_s6 + $0x28] sm:$0xff] }
  0x45   :  { %1038 = vmatprep.mubr.msk.bf16.mxu1 %vm1126_vm0, %v1125_v34 }
  0x4b   :  { %1027 = vmatmul.mubr.msk.bf16.vlgmr.msra.gmra.mrb[20].mxu0 %vm465_vm1, %v1120_v59  ;;  %v1519_v59 = vmax.f32 %v778_v55, %v787_v57 }
  0x4c   :  { %1039 = vmatmul.mubr.msk.bf16.vlgmr.msra.gmra.mrb[20].mxu1 %vm465_vm1, %v1121_v60  ;;  %1030 = vmatprep.mubr.msk.bf16.mxu0 %vm1126_vm0, %v1125_v34  ;;  %v779_v60 = vmax.f32 %v761_v56, %v770_v58 }
  0x4d   :  { %1042 = vmatprep.mubr.msk.bf16.mxu1 %vm1126_vm0, %v1125_v34  ;;  %814 = vst [vmem:[%s1646_s9 + $0x20] sm:$0xff] %v1519_v59 }
  0x53   :  { %1031 = vmatmul.mubr.msk.bf16.gmra.mrb[24].mxu0 %vm465_vm1, %v1122_v61  ;;  %v788_v61 = vld [vmem:[%s1645_s7 + $0x28] sm:$0xff] }
  0x54   :  { %1043 = vmatmul.mubr.msk.bf16.gmra.mrb[24].mxu1 %vm465_vm1, %v1123_v62  ;;  %1034 = vmatprep.mubr.msk.bf16.mxu0 %vm1126_vm0, %v1125_v34  ;;  %v764_v34 = vmax.f32 %v746_v30, %v755_v32  ;;  %v1528_v62 = vmax.f32 %v779_v60, %v788_v61 }
  0x56   :  { %v782_v40 = vmax.f32 %v764_v34, %v773_v35  ;;  %815 = vst [vmem:[%s1646_s9 + $0x28] sm:$0xff] %v1528_v62 }
  0x58   :  { %v1479_v45 = vmax.f32 %v782_v40, %v791_v41 }
  0x5a   :  { %818 = vst [vmem:[%s1646_s9 + $0x40] sm:$0xff] %v1479_v45 }
  0x5b   :  { %1035 = vmatmul.mubr.msk.bf16.gmra.mrb[28].mxu0 %vm465_vm1, %v1124_v63 }
  0xf6   :  { %v933_v63 = vpop.f32.mrb[0].mxu0 }
  0xf7   :  { %v979_v0 = vpop.f32.mrb[0].mxu1  ;;  %v934_v1 = vpop.f32.mrb[1].mxu0 }
  0xf8   :  { %v935_v2 = vadd.f32 %v934_v1, %v933_v63  ;;  %v980_v3 = vpop.f32.mrb[1].mxu1  ;;  %v936_v4 = vpop.f32.mrb[2].mxu0 }
  0xf9   :  { %v981_v5 = vadd.f32 %v980_v3, %v979_v0  ;;  %v982_v6 = vpop.f32.mrb[2].mxu1  ;;  %v937_v7 = vpop.f32.mrb[3].mxu0 }
  0xfa   :  { %v938_v8 = vadd.f32 %v937_v7, %v936_v4  ;;  %v983_v9 = vpop.f32.mrb[3].mxu1 }
  0xfb   :  { %v984_v10 = vadd.f32 %v983_v9, %v982_v6  ;;  %v588_v11 = vadd.f32 %v981_v5, %v935_v2 }
  0xfd   :  { %v1534_v12 = vadd.f32 %v984_v10, %v938_v8 }
  0xfe   :  { %v939_v13 = vpop.f32.mrb[4].mxu0 }
  0xff   :  { %v985_v14 = vpop.f32.mrb[4].mxu1  ;;  %v940_v15 = vpop.f32.mrb[5].mxu0 }
 0x100   :  { %v941_v16 = vadd.f32 %v940_v15, %v939_v13  ;;  %v986_v17 = vpop.f32.mrb[5].mxu1  ;;  %v942_v18 = vpop.f32.mrb[6].mxu0 }
 0x101   :  { %v987_v20 = vadd.f32 %v986_v17, %v985_v14  ;;  %v988_v22 = vpop.f32.mrb[6].mxu1  ;;  %v943_v23 = vpop.f32.mrb[7].mxu0  ;;  %v1547_v14 = vld [vmem:[%s1647_s2] ss:$0 sm:$0xff] }
 0x102   :  { %v944_v24 = vadd.f32 %v943_v23, %v942_v18  ;;  %v989_v25 = vpop.f32.mrb[7].mxu1  ;;  %v1552_v18 = vld [vmem:[%s1648_s3] ss:$0 sm:$0xff] }
 0x103   :  { %v990_v28 = vadd.f32 %v989_v25, %v988_v22  ;;  %v1536_v29 = vadd.f32 %v987_v20, %v941_v16 }
 0x105   :  { %v1538_v30 = vadd.f32 %v990_v28, %v944_v24 }
 0x106   :  { %v945_v31 = vpop.f32.mrb[8].mxu0 }
 0x107   :  { %v991_v32 = vpop.f32.mrb[8].mxu1  ;;  %v946_v33 = vpop.f32.mrb[9].mxu0 }
 0x108   :  { %v947_v34 = vadd.f32 %v946_v33, %v945_v31  ;;  %v992_v35 = vpop.f32.mrb[9].mxu1  ;;  %v948_v36 = vpop.f32.mrb[10].mxu0 }
 0x109   :  { %v993_v37 = vadd.f32 %v992_v35, %v991_v32  ;;  %v994_v38 = vpop.f32.mrb[10].mxu1  ;;  %v949_v39 = vpop.f32.mrb[11].mxu0 }
 0x10a   :  { %v950_v40 = vadd.f32 %v949_v39, %v948_v36  ;;  %v995_v41 = vpop.f32.mrb[11].mxu1 }
 0x10b   :  { %v996_v42 = vadd.f32 %v995_v41, %v994_v38  ;;  %v1540_v43 = vadd.f32 %v993_v37, %v947_v34 }
 0x10d   :  { %v1542_v46 = vadd.f32 %v996_v42, %v950_v40 }
 0x10e   :  { %v951_v47 = vpop.f32.mrb[12].mxu0 }
 0x10f   :  { %v997_v49 = vpop.f32.mrb[12].mxu1  ;;  %v952_v50 = vpop.f32.mrb[13].mxu0 }
 0x110   :  { %v953_v51 = vadd.f32 %v952_v50, %v951_v47  ;;  %v998_v52 = vpop.f32.mrb[13].mxu1  ;;  %v954_v53 = vpop.f32.mrb[14].mxu0 }
 0x111   :  { %v999_v54 = vadd.f32 %v998_v52, %v997_v49  ;;  %v1000_v55 = vpop.f32.mrb[14].mxu1  ;;  %v955_v56 = vpop.f32.mrb[15].mxu0 }
 0x112   :  { %v956_v57 = vadd.f32 %v955_v56, %v954_v53  ;;  %v1001_v58 = vpop.f32.mrb[15].mxu1 }
 0x113   :  { %v1002_v60 = vadd.f32 %v1001_v58, %v1000_v55  ;;  %v612_v61 = vadd.f32 %v999_v54, %v953_v51 }
 0x115   :  { %v615_v63 = vadd.f32 %v1002_v60, %v956_v57 }
 0x116   :  { %v957_v0 = vpop.f32.mrb[16].mxu0 }
 0x117   :  { %v1003_v1 = vpop.f32.mrb[16].mxu1  ;;  %v958_v2 = vpop.f32.mrb[17].mxu0 }
 0x118   :  { %v959_v3 = vadd.f32 %v958_v2, %v957_v0  ;;  %v1004_v4 = vpop.f32.mrb[17].mxu1  ;;  %v960_v5 = vpop.f32.mrb[18].mxu0 }
 0x119   :  { %v1005_v6 = vadd.f32 %v1004_v4, %v1003_v1  ;;  %v961_v7 = vpop.f32.mrb[19].mxu0  ;;  %v1006_v8 = vpop.f32.mrb[18].mxu1 }
 0x11a   :  { %v1007_v9 = vpop.f32.mrb[19].mxu1 }
 0x11b   :  { %v620_v10 = vadd.f32 %v1005_v6, %v959_v3 }
 0x11e   :  { %v659_v13 = vpop.f32.mrb[20].mxu0 }
 0x11f   :  { %v660_v15 = vadd.f32 %v659_v13, %v588_v11  ;;  %v683_v16 = vpop.f32.mrb[20].mxu1  ;;  %v1028_v17 = vpop.f32.mrb[21].mxu0 }
 0x120   :  { %v684_v20 = vadd.f32 %v683_v16, %v612_v61  ;;  %v1040_v22 = vpop.f32.mrb[21].mxu1  ;;  %v662_v23 = vpop.f32.mrb[22].mxu0 }
 0x121   :  { %v704_v24 = vmul.f32 %v1547_v14, %v660_v15  ;;  %v663_v25 = vadd.f32 %v662_v23, %v1534_v12  ;;  %v686_v28 = vpop.f32.mrb[22].mxu1  ;;  %v1029_v31 = vpop.f32.mrb[23].mxu0 }
 0x122   :  { %v710_v32 = vmul.f32 %v1547_v14, %v684_v20  ;;  %v687_v33 = vadd.f32 %v686_v28, %v615_v63  ;;  %v1041_v11 = vpop.f32.mrb[23].mxu1 }
 0x123   :  { %v720_v34 = vadd.f32 %v1552_v18, %v704_v24  ;;  %v705_v35 = vmul.f32 %v1547_v14, %v663_v25 }
 0x124   :  { %v726_v36 = vadd.f32 %v1552_v18, %v710_v32  ;;  %v711_v37 = vmul.f32 %v1547_v14, %v687_v33 }
 0x125   :  { %v729_v38 = vmax.f32 %v720_v34, 0.0  ;;  %v721_v39 = vadd.f32 %v1552_v18, %v705_v35 }
 0x126   :  { %v735_v40 = vmax.f32 %v726_v36, 0.0  ;;  %v727_v12 = vadd.f32 %v1552_v18, %v711_v37  ;;  %v667_v41 = vpop.f32.mrb[24].mxu0 }
 0x127   :  { %801 = vst [vmem:[%s1649_s8] sm:$0xff] %v729_v38  ;;  %v819_v42 = vadd.f32 %v1411_v19, %v729_v38  ;;  %v730_v47 = vmax.f32 %v721_v39, 0.0  ;;  %v668_v49 = vadd.f32 %v667_v41, %v1536_v29  ;;  %v691_v50 = vpop.f32.mrb[24].mxu1  ;;  %v1032_v51 = vpop.f32.mrb[25].mxu0 }
 0x128   :  { %807 = vst [vmem:[%s1649_s8 + $0x30] sm:$0xff] %v735_v40  ;;  %v825_v52 = vadd.f32 %v1416_v21, %v735_v40  ;;  %v736_v53 = vmax.f32 %v727_v12, 0.0  ;;  %v692_v54 = vadd.f32 %v691_v50, %v620_v10  ;;  %v670_v55 = vpop.f32.mrb[26].mxu0  ;;  %v1044_v56 = vpop.f32.mrb[25].mxu1 }
 0x129   :  { %828 = vst [vmem:[%s1650_s10] sm:$0xff] %v819_v42  ;;  %802 = vst [vmem:[%s1649_s8 + $0x8] sm:$0xff] %v730_v47  ;;  %v820_v19 = vadd.f32 %v1432_v26, %v730_v47  ;;  %v706_v29 = vmul.f32 %v1547_v14, %v668_v49  ;;  %v671_v57 = vadd.f32 %v670_v55, %v1538_v30  ;;  %v1033_v58 = vpop.f32.mrb[27].mxu0  ;;  %v694_v21 = vpop.f32.mrb[26].mxu1 }
 0x12a   :  { %834 = vst [vmem:[%s1650_s10 + $0x30] sm:$0xff] %v825_v52  ;;  %808 = vst [vmem:[%s1649_s8 + $0x38] sm:$0xff] %v736_v53  ;;  %v826_v60 = vadd.f32 %v1434_v27, %v736_v53  ;;  %v712_v61 = vmul.f32 %v1547_v14, %v692_v54  ;;  %v1045_v63 = vpop.f32.mrb[27].mxu1 }
 0x12b   :  { %829 = vst [vmem:[%s1650_s10 + $0x8] sm:$0xff] %v820_v19  ;;  %v722_v26 = vadd.f32 %v1552_v18, %v706_v29  ;;  %v707_v30 = vmul.f32 %v1547_v14, %v671_v57 }
 0x12c   :  { %835 = vst [vmem:[%s1650_s10 + $0x38] sm:$0xff] %v826_v60  ;;  %v728_v0 = vadd.f32 %v1552_v18, %v712_v61 }
 0x12d   :  { %v731_v1 = vmax.f32 %v722_v26, 0.0  ;;  %v723_v27 = vadd.f32 %v1552_v18, %v707_v30 }
 0x12e   :  { %v737_v2 = vmax.f32 %v728_v0, 0.0  ;;  %v675_v3 = vpop.f32.mrb[28].mxu0 }
 0x12f   :  { %803 = vst [vmem:[%s1649_s8 + $0x10] sm:$0xff] %v731_v1  ;;  %v821_v4 = vadd.f32 %v1477_v44, %v731_v1  ;;  %v732_v5 = vmax.f32 %v723_v27, 0.0  ;;  %v676_v6 = vadd.f32 %v675_v3, %v1540_v43  ;;  %v1036_v7 = vpop.f32.mrb[29].mxu0 }
 0x130   :  { %809 = vst [vmem:[%s1649_s8 + $0x40] sm:$0xff] %v737_v2  ;;  %v827_v8 = vadd.f32 %v1479_v45, %v737_v2  ;;  %v678_v9 = vpop.f32.mrb[30].mxu0 }
 0x131   :  { %830 = vst [vmem:[%s1650_s10 + $0x10] sm:$0xff] %v821_v4  ;;  %804 = vst [vmem:[%s1649_s8 + $0x18] sm:$0xff] %v732_v5  ;;  %v822_v44 = vadd.f32 %v1492_v48, %v732_v5  ;;  %v708_v43 = vmul.f32 %v1547_v14, %v676_v6  ;;  %v679_v10 = vadd.f32 %v678_v9, %v1542_v46  ;;  %v1037_v13 = vpop.f32.mrb[31].mxu0 }
 0x132   :  { %836 = vst [vmem:[%s1650_s10 + $0x40] sm:$0xff] %v827_v8 }
 0x133   :  { %831 = vst [vmem:[%s1650_s10 + $0x18] sm:$0xff] %v822_v44  ;;  %v724_v45 = vadd.f32 %v1552_v18, %v708_v43  ;;  %v709_v15 = vmul.f32 %v1547_v14, %v679_v10 }
 0x135   :  { %v733_v16 = vmax.f32 %v724_v45, 0.0  ;;  %v725_v48 = vadd.f32 %v1552_v18, %v709_v15 }
 0x137   :  { %805 = vst [vmem:[%s1649_s8 + $0x20] sm:$0xff] %v733_v16  ;;  %v823_v46 = vadd.f32 %v1519_v59, %v733_v16  ;;  %v734_v17 = vmax.f32 %v725_v48, 0.0 }
 0x139   :  { %832 = vst [vmem:[%s1650_s10 + $0x20] sm:$0xff] %v823_v46  ;;  %806 = vst [vmem:[%s1649_s8 + $0x28] sm:$0xff] %v734_v17  ;;  %v824_v14 = vadd.f32 %v1528_v62, %v734_v17 }
 0x13b   :  { %833 = vst [vmem:[%s1650_s10 + $0x28] sm:$0xff] %v824_v14 }

// kernel: multimoding2017_forward.19
= control target key start
LH: loop header
LB: loop body
LE: loop exit
PB: predicated region body
PF: predicated region fallthrough
CT: control target
= control target key end

     0   :  { %vm185_vm0 = vcmask 261120   ;;  %s7119_s1 = inlined_call_operand.vmem [shape: f32[32,128], index: 1, kind: input, shape index: {}]   ;;  %s7120_s2 = inlined_call_operand.vmem [shape: f32[32,128], index: 2, kind: input, shape index: {}]   ;;  %s7121_s4 = inlined_call_operand.vmem [shape: f32[32,128], index: 4, kind: input, shape index: {}]   ;;  %s7122_s5 = inlined_call_operand.vmem [shape: f32[32,128], index: 5, kind: input, shape index: {}]   ;;  %s7123_s6 = inlined_call_operand.vmem [shape: f32[1,128], index: 6, kind: input, shape index: {}]   ;;  %s7124_s7 = inlined_call_operand.vmem [shape: f32[1152,32], index: 7, kind: output, shape index: {}]   ;;  %s7125_s0 = inlined_call_operand.vmem [shape: f32[1152,32], index: 0, kind: input, shape index: {}]   ;;  %s7126_s3 = inlined_call_operand.vmem [shape: f32[1,128], index: 3, kind: input, shape index: {}]  }
   0x1   :  { %v26_v0 = vld [vmem:[%s7119_s1] sm:$0xff]  ;;  %v27_v1 = vld [vmem:[%s7119_s1 + $0x8] sm:$0xff]  ;;  %v5486_v4 = vld [vmem:[%s7120_s2 + $0x10] sm:$0xff] }
   0x2   :  { %v5476_v2 = vld [vmem:[%s7120_s2] sm:$0xff]  ;;  %v5481_v3 = vld [vmem:[%s7120_s2 + $0x8] sm:$0xff]  ;;  %v5491_v5 = vld [vmem:[%s7120_s2 + $0x18] sm:$0xff]  ;;  %v5175_v6 = vpack.c.bf16 %v27_v1, %v26_v0 }
   0x3   :  { %v28_v7 = vld [vmem:[%s7119_s1 + $0x10] sm:$0xff]  ;;  %v29_v8 = vld [vmem:[%s7119_s1 + $0x18] sm:$0xff]  ;;  %v35_v10 = vld [vmem:[%s7125_s0] sm:$0xff] }
   0x4   :  { %5176 = vmatprep.subr.bf16.mxu0 %v5175_v6  ;;  %5239 = vmatprep.subr.bf16.mxu1 %v5175_v6  ;;  %v5179_v9 = vpack.c.bf16 %v29_v8, %v28_v7  ;;  %v107_v11 = vld [vmem:[%s7125_s0 + $0x240] sm:$0xff]  ;;  %v36_v12 = vld [vmem:[%s7125_s0 + $0x8] sm:$0xff]  ;;  %v37_v14 = vld [vmem:[%s7125_s0 + $0x10] sm:$0xff] }
   0x5   :  { %5178 = vmatpush3.bf16.msra.mxu0 %v5175_v6  ;;  %5241 = vmatpush3.bf16.msra.mxu1 %v5175_v6  ;;  %v108_v13 = vld [vmem:[%s7125_s0 + $0x248] sm:$0xff]  ;;  %v109_v15 = vld [vmem:[%s7125_s0 + $0x250] sm:$0xff]  ;;  %v38_v16 = vld [vmem:[%s7125_s0 + $0x18] sm:$0xff] }
   0x6   :  { %5180 = vmatprep.subr.bf16.mxu0 %v5179_v9  ;;  %5240 = vmatprep.subr.bf16.mxu1 %v5179_v9  ;;  %v110_v17 = vld [vmem:[%s7125_s0 + $0x258] sm:$0xff]  ;;  %v39_v18 = vld [vmem:[%s7125_s0 + $0x20] sm:$0xff]  ;;  %v40_v20 = vld [vmem:[%s7125_s0 + $0x28] sm:$0xff] }
   0x7   :  { %4647 = vmatprep.mubr.msk.f32.mxu0 %vm185_vm0, %v35_v10  ;;  %4755 = vmatprep.mubr.msk.f32.mxu1 %vm185_vm0, %v107_v11  ;;  %v111_v19 = vld [vmem:[%s7125_s0 + $0x260] sm:$0xff]  ;;  %v112_v21 = vld [vmem:[%s7125_s0 + $0x268] sm:$0xff]  ;;  %v41_v22 = vld [vmem:[%s7125_s0 + $0x30] sm:$0xff] }
   0x8   :  { %v113_v23 = vld [vmem:[%s7125_s0 + $0x270] sm:$0xff]  ;;  %v42_v24 = vld [vmem:[%s7125_s0 + $0x38] sm:$0xff]  ;;  %v43_v26 = vld [vmem:[%s7125_s0 + $0x40] sm:$0xff] }
   0x9   :  { %5182 = vmatpush3.bf16.msra.mxu0 %v5179_v9  ;;  %5242 = vmatpush3.bf16.msra.mxu1 %v5179_v9  ;;  %v114_v25 = vld [vmem:[%s7125_s0 + $0x278] sm:$0xff]  ;;  %v115_v27 = vld [vmem:[%s7125_s0 + $0x280] sm:$0xff]  ;;  %v44_v28 = vld [vmem:[%s7125_s0 + $0x48] sm:$0xff] }
   0xa   :  { %v116_v29 = vld [vmem:[%s7125_s0 + $0x288] sm:$0xff]  ;;  %v45_v30 = vld [vmem:[%s7125_s0 + $0x50] sm:$0xff]  ;;  %v46_v32 = vld [vmem:[%s7125_s0 + $0x58] sm:$0xff] }
   0xb   :  { %v117_v31 = vld [vmem:[%s7125_s0 + $0x290] sm:$0xff]  ;;  %v118_v33 = vld [vmem:[%s7125_s0 + $0x298] sm:$0xff]  ;;  %v47_v34 = vld [vmem:[%s7125_s0 + $0x60] sm:$0xff] }
   0xc   :  { %4648 = vmatmul.mubr.msk.f32.vlgmr.msra.gmra.mrb[0].mxu0 %vm185_vm0, %v36_v12  ;;  %4756 = vmatmul.mubr.msk.f32.vlgmr.msra.gmra.mrb[0].mxu1 %vm185_vm0, %v108_v13  ;;  %v119_v35 = vld [vmem:[%s7125_s0 + $0x2a0] sm:$0xff]  ;;  %v48_v36 = vld [vmem:[%s7125_s0 + $0x68] sm:$0xff]  ;;  %v49_v38 = vld [vmem:[%s7125_s0 + $0x70] sm:$0xff] }
   0xd   :  { %4650 = vmatprep.mubr.msk.f32.mxu0 %vm185_vm0, %v37_v14  ;;  %4758 = vmatprep.mubr.msk.f32.mxu1 %vm185_vm0, %v109_v15  ;;  %v120_v37 = vld [vmem:[%s7125_s0 + $0x2a8] sm:$0xff]  ;;  %v121_v39 = vld [vmem:[%s7125_s0 + $0x2b0] sm:$0xff]  ;;  %v50_v40 = vld [vmem:[%s7125_s0 + $0x78] sm:$0xff] }
   0xe   :  { %v122_v41 = vld [vmem:[%s7125_s0 + $0x2b8] sm:$0xff]  ;;  %v51_v42 = vld [vmem:[%s7125_s0 + $0x80] sm:$0xff]  ;;  %v52_v44 = vld [vmem:[%s7125_s0 + $0x88] sm:$0xff] }
   0xf   :  { %v123_v43 = vld [vmem:[%s7125_s0 + $0x2c0] sm:$0xff]  ;;  %v124_v45 = vld [vmem:[%s7125_s0 + $0x2c8] sm:$0xff]  ;;  %v53_v46 = vld [vmem:[%s7125_s0 + $0x90] sm:$0xff] }
  0x10   :  { %4651 = vmatmul.mubr.msk.f32.gmra.mrb[2].mxu0 %vm185_vm0, %v38_v16  ;;  %4759 = vmatmul.mubr.msk.f32.gmra.mrb[2].mxu1 %vm185_vm0, %v110_v17  ;;  %v125_v47 = vld [vmem:[%s7125_s0 + $0x2d0] sm:$0xff]  ;;  %v54_v48 = vld [vmem:[%s7125_s0 + $0x98] sm:$0xff]  ;;  %v55_v50 = vld [vmem:[%s7125_s0 + $0xa0] sm:$0xff] }
  0x11   :  { %4653 = vmatprep.mubr.msk.f32.mxu0 %vm185_vm0, %v39_v18  ;;  %4761 = vmatprep.mubr.msk.f32.mxu1 %vm185_vm0, %v111_v19  ;;  %v126_v49 = vld [vmem:[%s7125_s0 + $0x2d8] sm:$0xff]  ;;  %v127_v51 = vld [vmem:[%s7125_s0 + $0x2e0] sm:$0xff]  ;;  %v56_v52 = vld [vmem:[%s7125_s0 + $0xa8] sm:$0xff] }
  0x12   :  { %v128_v53 = vld [vmem:[%s7125_s0 + $0x2e8] sm:$0xff]  ;;  %v57_v54 = vld [vmem:[%s7125_s0 + $0xb0] sm:$0xff]  ;;  %v58_v56 = vld [vmem:[%s7125_s0 + $0xb8] sm:$0xff] }
  0x13   :  { %v129_v55 = vld [vmem:[%s7125_s0 + $0x2f0] sm:$0xff]  ;;  %v130_v57 = vld [vmem:[%s7125_s0 + $0x2f8] sm:$0xff]  ;;  %v59_v58 = vld [vmem:[%s7125_s0 + $0xc0] sm:$0xff] }
  0x14   :  { %4654 = vmatmul.mubr.msk.f32.gmra.mrb[4].mxu0 %vm185_vm0, %v40_v20  ;;  %4762 = vmatmul.mubr.msk.f32.gmra.mrb[4].mxu1 %vm185_vm0, %v112_v21  ;;  %v131_v59 = vld [vmem:[%s7125_s0 + $0x300] sm:$0xff]  ;;  %v60_v60 = vld [vmem:[%s7125_s0 + $0xc8] sm:$0xff]  ;;  %v61_v62 = vld [vmem:[%s7125_s0 + $0xd0] sm:$0xff] }
  0x15   :  { %4656 = vmatprep.mubr.msk.f32.mxu0 %vm185_vm0, %v41_v22  ;;  %4764 = vmatprep.mubr.msk.f32.mxu1 %vm185_vm0, %v113_v23  ;;  %v132_v61 = vld [vmem:[%s7125_s0 + $0x308] sm:$0xff]  ;;  %v133_v63 = vld [vmem:[%s7125_s0 + $0x310] sm:$0xff]  ;;  %v62_v0 = vld [vmem:[%s7125_s0 + $0xd8] sm:$0xff] }
  0x16   :  { %v134_v1 = vld [vmem:[%s7125_s0 + $0x318] sm:$0xff]  ;;  %v63_v6 = vld [vmem:[%s7125_s0 + $0xe0] sm:$0xff]  ;;  %v64_v8 = vld [vmem:[%s7125_s0 + $0xe8] sm:$0xff] }
  0x17   :  { %v135_v7 = vld [vmem:[%s7125_s0 + $0x320] sm:$0xff]  ;;  %v136_v9 = vld [vmem:[%s7125_s0 + $0x328] sm:$0xff]  ;;  %v65_v10 = vld [vmem:[%s7125_s0 + $0xf0] sm:$0xff] }
  0x18   :  { %4657 = vmatmul.mubr.msk.f32.gmra.mrb[6].mxu0 %vm185_vm0, %v42_v24  ;;  %4765 = vmatmul.mubr.msk.f32.gmra.mrb[6].mxu1 %vm185_vm0, %v114_v25  ;;  %v137_v11 = vld [vmem:[%s7125_s0 + $0x330] sm:$0xff]  ;;  %v66_v12 = vld [vmem:[%s7125_s0 + $0xf8] sm:$0xff]  ;;  %v67_v14 = vld [vmem:[%s7125_s0 + $0x100] sm:$0xff] }
  0x19   :  { %4659 = vmatprep.mubr.msk.f32.mxu0 %vm185_vm0, %v43_v26  ;;  %4767 = vmatprep.mubr.msk.f32.mxu1 %vm185_vm0, %v115_v27  ;;  %v138_v13 = vld [vmem:[%s7125_s0 + $0x338] sm:$0xff]  ;;  %v139_v15 = vld [vmem:[%s7125_s0 + $0x340] sm:$0xff]  ;;  %v68_v16 = vld [vmem:[%s7125_s0 + $0x108] sm:$0xff] }
  0x1a   :  { %v140_v17 = vld [vmem:[%s7125_s0 + $0x348] sm:$0xff]  ;;  %v69_v18 = vld [vmem:[%s7125_s0 + $0x110] sm:$0xff]  ;;  %v70_v20 = vld [vmem:[%s7125_s0 + $0x118] sm:$0xff] }
  0x1b   :  { %v141_v19 = vld [vmem:[%s7125_s0 + $0x350] sm:$0xff]  ;;  %v142_v21 = vld [vmem:[%s7125_s0 + $0x358] sm:$0xff]  ;;  %v71_v22 = vld [vmem:[%s7125_s0 + $0x120] sm:$0xff] }
  0x1c   :  { %4660 = vmatmul.mubr.msk.f32.gmra.mrb[8].mxu0 %vm185_vm0, %v44_v28  ;;  %4768 = vmatmul.mubr.msk.f32.gmra.mrb[8].mxu1 %vm185_vm0, %v116_v29  ;;  %v143_v23 = vld [vmem:[%s7125_s0 + $0x360] sm:$0xff]  ;;  %v72_v24 = vld [vmem:[%s7125_s0 + $0x128] sm:$0xff]  ;;  %v73_v26 = vld [vmem:[%s7125_s0 + $0x130] sm:$0xff] }
  0x1d   :  { %4662 = vmatprep.mubr.msk.f32.mxu0 %vm185_vm0, %v45_v30  ;;  %4770 = vmatprep.mubr.msk.f32.mxu1 %vm185_vm0, %v117_v31  ;;  %v144_v25 = vld [vmem:[%s7125_s0 + $0x368] sm:$0xff]  ;;  %v145_v27 = vld [vmem:[%s7125_s0 + $0x370] sm:$0xff]  ;;  %v74_v28 = vld [vmem:[%s7125_s0 + $0x138] sm:$0xff] }
  0x1e   :  { %v146_v29 = vld [vmem:[%s7125_s0 + $0x378] sm:$0xff]  ;;  %v75_v30 = vld [vmem:[%s7125_s0 + $0x140] sm:$0xff] }
  0x1f   :  { %v147_v31 = vld [vmem:[%s7125_s0 + $0x380] sm:$0xff] }
  0x20   :  { %4663 = vmatmul.mubr.msk.f32.gmra.mrb[10].mxu0 %vm185_vm0, %v46_v32  ;;  %4771 = vmatmul.mubr.msk.f32.gmra.mrb[10].mxu1 %vm185_vm0, %v118_v33  ;;  %v76_v32 = vld [vmem:[%s7125_s0 + $0x148] sm:$0xff] }
  0x21   :  { %4665 = vmatprep.mubr.msk.f32.mxu0 %vm185_vm0, %v47_v34  ;;  %4773 = vmatprep.mubr.msk.f32.mxu1 %vm185_vm0, %v119_v35  ;;  %v148_v33 = vld [vmem:[%s7125_s0 + $0x388] sm:$0xff]  ;;  %v77_v34 = vld [vmem:[%s7125_s0 + $0x150] sm:$0xff] }
  0x22   :  { %v149_v35 = vld [vmem:[%s7125_s0 + $0x390] sm:$0xff] }
  0x24   :  { %4666 = vmatmul.mubr.msk.f32.gmra.mrb[12].mxu0 %vm185_vm0, %v48_v36  ;;  %4774 = vmatmul.mubr.msk.f32.gmra.mrb[12].mxu1 %vm185_vm0, %v120_v37  ;;  %v78_v36 = vld [vmem:[%s7125_s0 + $0x158] sm:$0xff] }
  0x25   :  { %4668 = vmatprep.mubr.msk.f32.mxu0 %vm185_vm0, %v49_v38  ;;  %4776 = vmatprep.mubr.msk.f32.mxu1 %vm185_vm0, %v121_v39  ;;  %v150_v37 = vld [vmem:[%s7125_s0 + $0x398] sm:$0xff]  ;;  %v79_v38 = vld [vmem:[%s7125_s0 + $0x160] sm:$0xff] }
  0x26   :  { %v151_v39 = vld [vmem:[%s7125_s0 + $0x3a0] sm:$0xff] }
  0x28   :  { %4669 = vmatmul.mubr.msk.f32.gmra.mrb[14].mxu0 %vm185_vm0, %v50_v40  ;;  %4777 = vmatmul.mubr.msk.f32.gmra.mrb[14].mxu1 %vm185_vm0, %v122_v41  ;;  %v80_v40 = vld [vmem:[%s7125_s0 + $0x168] sm:$0xff] }
  0x29   :  { %4671 = vmatprep.mubr.msk.f32.mxu0 %vm185_vm0, %v51_v42  ;;  %4779 = vmatprep.mubr.msk.f32.mxu1 %vm185_vm0, %v123_v43  ;;  %v152_v41 = vld [vmem:[%s7125_s0 + $0x3a8] sm:$0xff]  ;;  %v81_v42 = vld [vmem:[%s7125_s0 + $0x170] sm:$0xff] }
  0x2a   :  { %v153_v43 = vld [vmem:[%s7125_s0 + $0x3b0] sm:$0xff] }
  0x2c   :  { %4672 = vmatmul.mubr.msk.f32.gmra.mrb[16].mxu0 %vm185_vm0, %v52_v44  ;;  %4780 = vmatmul.mubr.msk.f32.gmra.mrb[16].mxu1 %vm185_vm0, %v124_v45  ;;  %v82_v44 = vld [vmem:[%s7125_s0 + $0x178] sm:$0xff] }
  0x2d   :  { %4674 = vmatprep.mubr.msk.f32.mxu0 %vm185_vm0, %v53_v46  ;;  %4782 = vmatprep.mubr.msk.f32.mxu1 %vm185_vm0, %v125_v47  ;;  %v154_v45 = vld [vmem:[%s7125_s0 + $0x3b8] sm:$0xff]  ;;  %v83_v46 = vld [vmem:[%s7125_s0 + $0x180] sm:$0xff] }
  0x2e   :  { %v155_v47 = vld [vmem:[%s7125_s0 + $0x3c0] sm:$0xff] }
  0x30   :  { %4675 = vmatmul.mubr.msk.f32.gmra.mrb[18].mxu0 %vm185_vm0, %v54_v48  ;;  %4783 = vmatmul.mubr.msk.f32.gmra.mrb[18].mxu1 %vm185_vm0, %v126_v49  ;;  %v84_v48 = vld [vmem:[%s7125_s0 + $0x188] sm:$0xff] }
  0x31   :  { %4677 = vmatprep.mubr.msk.f32.mxu0 %vm185_vm0, %v55_v50  ;;  %4785 = vmatprep.mubr.msk.f32.mxu1 %vm185_vm0, %v127_v51  ;;  %v156_v49 = vld [vmem:[%s7125_s0 + $0x3c8] sm:$0xff]  ;;  %v85_v50 = vld [vmem:[%s7125_s0 + $0x190] sm:$0xff] }
  0x32   :  { %v157_v51 = vld [vmem:[%s7125_s0 + $0x3d0] sm:$0xff] }
  0x34   :  { %4678 = vmatmul.mubr.msk.f32.gmra.mrb[20].mxu0 %vm185_vm0, %v56_v52  ;;  %4786 = vmatmul.mubr.msk.f32.gmra.mrb[20].mxu1 %vm185_vm0, %v128_v53  ;;  %v86_v52 = vld [vmem:[%s7125_s0 + $0x198] sm:$0xff] }
  0x35   :  { %4680 = vmatprep.mubr.msk.f32.mxu0 %vm185_vm0, %v57_v54  ;;  %4788 = vmatprep.mubr.msk.f32.mxu1 %vm185_vm0, %v129_v55  ;;  %v158_v53 = vld [vmem:[%s7125_s0 + $0x3d8] sm:$0xff]  ;;  %v87_v54 = vld [vmem:[%s7125_s0 + $0x1a0] sm:$0xff] }
  0x36   :  { %v159_v55 = vld [vmem:[%s7125_s0 + $0x3e0] sm:$0xff] }
  0x38   :  { %4681 = vmatmul.mubr.msk.f32.gmra.mrb[22].mxu0 %vm185_vm0, %v58_v56  ;;  %4789 = vmatmul.mubr.msk.f32.gmra.mrb[22].mxu1 %vm185_vm0, %v130_v57  ;;  %v88_v56 = vld [vmem:[%s7125_s0 + $0x1a8] sm:$0xff] }
  0x39   :  { %4683 = vmatprep.mubr.msk.f32.mxu0 %vm185_vm0, %v59_v58  ;;  %4791 = vmatprep.mubr.msk.f32.mxu1 %vm185_vm0, %v131_v59  ;;  %v160_v57 = vld [vmem:[%s7125_s0 + $0x3e8] sm:$0xff]  ;;  %v89_v58 = vld [vmem:[%s7125_s0 + $0x1b0] sm:$0xff] }
  0x3a   :  { %v161_v59 = vld [vmem:[%s7125_s0 + $0x3f0] sm:$0xff] }
  0x3c   :  { %4684 = vmatmul.mubr.msk.f32.gmra.mrb[24].mxu0 %vm185_vm0, %v60_v60  ;;  %4792 = vmatmul.mubr.msk.f32.gmra.mrb[24].mxu1 %vm185_vm0, %v132_v61  ;;  %v90_v60 = vld [vmem:[%s7125_s0 + $0x1b8] sm:$0xff] }
  0x3d   :  { %4686 = vmatprep.mubr.msk.f32.mxu0 %vm185_vm0, %v61_v62  ;;  %4794 = vmatprep.mubr.msk.f32.mxu1 %vm185_vm0, %v133_v63  ;;  %v162_v61 = vld [vmem:[%s7125_s0 + $0x3f8] sm:$0xff]  ;;  %v91_v62 = vld [vmem:[%s7125_s0 + $0x1c0] sm:$0xff] }
  0x3e   :  { %v163_v63 = vld [vmem:[%s7125_s0 + $0x400] sm:$0xff] }
  0x40   :  { %4687 = vmatmul.mubr.msk.f32.gmra.mrb[26].mxu0 %vm185_vm0, %v62_v0  ;;  %4795 = vmatmul.mubr.msk.f32.gmra.mrb[26].mxu1 %vm185_vm0, %v134_v1  ;;  %v92_v0 = vld [vmem:[%s7125_s0 + $0x1c8] sm:$0xff] }
  0x41   :  { %4689 = vmatprep.mubr.msk.f32.mxu0 %vm185_vm0, %v63_v6  ;;  %4797 = vmatprep.mubr.msk.f32.mxu1 %vm185_vm0, %v135_v7  ;;  %v164_v1 = vld [vmem:[%s7125_s0 + $0x408] sm:$0xff]  ;;  %v93_v6 = vld [vmem:[%s7125_s0 + $0x1d0] sm:$0xff] }
  0x42   :  { %v165_v7 = vld [vmem:[%s7125_s0 + $0x410] sm:$0xff] }
  0x44   :  { %4690 = vmatmul.mubr.msk.f32.gmra.mrb[28].mxu0 %vm185_vm0, %v64_v8  ;;  %4798 = vmatmul.mubr.msk.f32.gmra.mrb[28].mxu1 %vm185_vm0, %v136_v9  ;;  %v94_v8 = vld [vmem:[%s7125_s0 + $0x1d8] sm:$0xff] }
  0x45   :  { %4692 = vmatprep.mubr.msk.f32.mxu0 %vm185_vm0, %v65_v10  ;;  %4800 = vmatprep.mubr.msk.f32.mxu1 %vm185_vm0, %v137_v11  ;;  %v166_v9 = vld [vmem:[%s7125_s0 + $0x418] sm:$0xff]  ;;  %v95_v10 = vld [vmem:[%s7125_s0 + $0x1e0] sm:$0xff] }
  0x46   :  { %v167_v11 = vld [vmem:[%s7125_s0 + $0x420] sm:$0xff] }
  0x48   :  { %4693 = vmatmul.mubr.msk.f32.gmra.mrb[30].mxu0 %vm185_vm0, %v66_v12  ;;  %4801 = vmatmul.mubr.msk.f32.gmra.mrb[30].mxu1 %vm185_vm0, %v138_v13  ;;  %v96_v12 = vld [vmem:[%s7125_s0 + $0x1e8] sm:$0xff] }
  0x49   :  { %4695 = vmatprep.mubr.msk.f32.mxu0 %vm185_vm0, %v67_v14  ;;  %4803 = vmatprep.mubr.msk.f32.mxu1 %vm185_vm0, %v139_v15  ;;  %v168_v13 = vld [vmem:[%s7125_s0 + $0x428] sm:$0xff]  ;;  %v97_v14 = vld [vmem:[%s7125_s0 + $0x1f0] sm:$0xff] }
  0x4a   :  { %v169_v15 = vld [vmem:[%s7125_s0 + $0x430] sm:$0xff] }
  0x4c   :  { %4696 = vmatmul.mubr.msk.f32.gmra.mrb[32].mxu0 %vm185_vm0, %v68_v16  ;;  %4804 = vmatmul.mubr.msk.f32.gmra.mrb[32].mxu1 %vm185_vm0, %v140_v17  ;;  %v98_v16 = vld [vmem:[%s7125_s0 + $0x1f8] sm:$0xff] }
  0x4d   :  { %4698 = vmatprep.mubr.msk.f32.mxu0 %vm185_vm0, %v69_v18  ;;  %4806 = vmatprep.mubr.msk.f32.mxu1 %vm185_vm0, %v141_v19  ;;  %v170_v17 = vld [vmem:[%s7125_s0 + $0x438] sm:$0xff]  ;;  %v99_v18 = vld [vmem:[%s7125_s0 + $0x200] sm:$0xff] }
  0x4e   :  { %v171_v19 = vld [vmem:[%s7125_s0 + $0x440] sm:$0xff] }
  0x50   :  { %4699 = vmatmul.mubr.msk.f32.gmra.mrb[34].mxu0 %vm185_vm0, %v70_v20  ;;  %4807 = vmatmul.mubr.msk.f32.gmra.mrb[34].mxu1 %vm185_vm0, %v142_v21  ;;  %v100_v20 = vld [vmem:[%s7125_s0 + $0x208] sm:$0xff] }
  0x51   :  { %4701 = vmatprep.mubr.msk.f32.mxu0 %vm185_vm0, %v71_v22  ;;  %4809 = vmatprep.mubr.msk.f32.mxu1 %vm185_vm0, %v143_v23  ;;  %v172_v21 = vld [vmem:[%s7125_s0 + $0x448] sm:$0xff]  ;;  %v101_v22 = vld [vmem:[%s7125_s0 + $0x210] sm:$0xff] }
  0x52   :  { %v173_v23 = vld [vmem:[%s7125_s0 + $0x450] sm:$0xff] }
  0x54   :  { %4702 = vmatmul.mubr.msk.f32.gmra.mrb[36].mxu0 %vm185_vm0, %v72_v24  ;;  %4810 = vmatmul.mubr.msk.f32.gmra.mrb[36].mxu1 %vm185_vm0, %v144_v25  ;;  %v102_v24 = vld [vmem:[%s7125_s0 + $0x218] sm:$0xff] }
  0x55   :  { %4704 = vmatprep.mubr.msk.f32.mxu0 %vm185_vm0, %v73_v26  ;;  %4812 = vmatprep.mubr.msk.f32.mxu1 %vm185_vm0, %v145_v27  ;;  %v174_v25 = vld [vmem:[%s7125_s0 + $0x458] sm:$0xff]  ;;  %v103_v26 = vld [vmem:[%s7125_s0 + $0x220] sm:$0xff] }
  0x56   :  { %v175_v27 = vld [vmem:[%s7125_s0 + $0x460] sm:$0xff] }
  0x58   :  { %4705 = vmatmul.mubr.msk.f32.gmra.mrb[38].mxu0 %vm185_vm0, %v74_v28  ;;  %4813 = vmatmul.mubr.msk.f32.gmra.mrb[38].mxu1 %vm185_vm0, %v146_v29  ;;  %v104_v28 = vld [vmem:[%s7125_s0 + $0x228] sm:$0xff] }
  0x59   :  { %4707 = vmatprep.mubr.msk.f32.mxu0 %vm185_vm0, %v75_v30  ;;  %4815 = vmatprep.mubr.msk.f32.mxu1 %vm185_vm0, %v147_v31  ;;  %v176_v29 = vld [vmem:[%s7125_s0 + $0x468] sm:$0xff]  ;;  %v105_v30 = vld [vmem:[%s7125_s0 + $0x230] sm:$0xff] }
  0x5a   :  { %v177_v31 = vld [vmem:[%s7125_s0 + $0x470] sm:$0xff] }
  0x5c   :  { %4708 = vmatmul.mubr.msk.f32.gmra.mrb[40].mxu0 %vm185_vm0, %v76_v32  ;;  %4816 = vmatmul.mubr.msk.f32.gmra.mrb[40].mxu1 %vm185_vm0, %v148_v33  ;;  %v106_v32 = vld [vmem:[%s7125_s0 + $0x238] sm:$0xff] }
  0x5d   :  { %4710 = vmatprep.mubr.msk.f32.mxu0 %vm185_vm0, %v77_v34  ;;  %4818 = vmatprep.mubr.msk.f32.mxu1 %vm185_vm0, %v149_v35  ;;  %v178_v33 = vld [vmem:[%s7125_s0 + $0x478] sm:$0xff]  ;;  %v6078_v34 = vld [vmem:[%s7126_s3] ss:$0 sm:$0xff]  ;;  %s6228_s0 = smov 0  }
  0x60   :  { %4711 = vmatmul.mubr.msk.f32.gmra.mrb[42].mxu0 %vm185_vm0, %v78_v36  ;;  %4819 = vmatmul.mubr.msk.f32.gmra.mrb[42].mxu1 %vm185_vm0, %v150_v37 }
  0x61   :  { %4713 = vmatprep.mubr.msk.f32.mxu0 %vm185_vm0, %v79_v38  ;;  %4821 = vmatprep.mubr.msk.f32.mxu1 %vm185_vm0, %v151_v39 }
  0x64   :  { %4714 = vmatmul.mubr.msk.f32.gmra.mrb[44].mxu0 %vm185_vm0, %v80_v40  ;;  %4822 = vmatmul.mubr.msk.f32.gmra.mrb[44].mxu1 %vm185_vm0, %v152_v41 }
  0x65   :  { %4716 = vmatprep.mubr.msk.f32.mxu0 %vm185_vm0, %v81_v42  ;;  %4824 = vmatprep.mubr.msk.f32.mxu1 %vm185_vm0, %v153_v43 }
  0x68   :  { %4717 = vmatmul.mubr.msk.f32.gmra.mrb[46].mxu0 %vm185_vm0, %v82_v44  ;;  %4825 = vmatmul.mubr.msk.f32.gmra.mrb[46].mxu1 %vm185_vm0, %v154_v45 }
  0x69   :  { %4719 = vmatprep.mubr.msk.f32.mxu0 %vm185_vm0, %v83_v46  ;;  %4827 = vmatprep.mubr.msk.f32.mxu1 %vm185_vm0, %v155_v47 }
  0x6c   :  { %4720 = vmatmul.mubr.msk.f32.gmra.mrb[48].mxu0 %vm185_vm0, %v84_v48  ;;  %4828 = vmatmul.mubr.msk.f32.gmra.mrb[48].mxu1 %vm185_vm0, %v156_v49 }
  0x6d   :  { %4722 = vmatprep.mubr.msk.f32.mxu0 %vm185_vm0, %v85_v50  ;;  %4830 = vmatprep.mubr.msk.f32.mxu1 %vm185_vm0, %v157_v51 }
  0x70   :  { %4723 = vmatmul.mubr.msk.f32.gmra.mrb[50].mxu0 %vm185_vm0, %v86_v52  ;;  %4831 = vmatmul.mubr.msk.f32.gmra.mrb[50].mxu1 %vm185_vm0, %v158_v53 }
  0x71   :  { %4725 = vmatprep.mubr.msk.f32.mxu0 %vm185_vm0, %v87_v54  ;;  %4833 = vmatprep.mubr.msk.f32.mxu1 %vm185_vm0, %v159_v55 }
  0x74   :  { %4726 = vmatmul.mubr.msk.f32.gmra.mrb[52].mxu0 %vm185_vm0, %v88_v56  ;;  %4834 = vmatmul.mubr.msk.f32.gmra.mrb[52].mxu1 %vm185_vm0, %v160_v57 }
  0x75   :  { %4728 = vmatprep.mubr.msk.f32.mxu0 %vm185_vm0, %v89_v58  ;;  %4836 = vmatprep.mubr.msk.f32.mxu1 %vm185_vm0, %v161_v59 }
  0x78   :  { %4729 = vmatmul.mubr.msk.f32.gmra.mrb[54].mxu0 %vm185_vm0, %v90_v60  ;;  %4837 = vmatmul.mubr.msk.f32.gmra.mrb[54].mxu1 %vm185_vm0, %v162_v61 }
  0x79   :  { %4731 = vmatprep.mubr.msk.f32.mxu0 %vm185_vm0, %v91_v62  ;;  %4839 = vmatprep.mubr.msk.f32.mxu1 %vm185_vm0, %v163_v63 }
  0x7c   :  { %4732 = vmatmul.mubr.msk.f32.gmra.mrb[56].mxu0 %vm185_vm0, %v92_v0  ;;  %4840 = vmatmul.mubr.msk.f32.gmra.mrb[56].mxu1 %vm185_vm0, %v164_v1 }
  0x7d   :  { %4734 = vmatprep.mubr.msk.f32.mxu0 %vm185_vm0, %v93_v6  ;;  %4842 = vmatprep.mubr.msk.f32.mxu1 %vm185_vm0, %v165_v7 }
  0x80   :  { %4735 = vmatmul.mubr.msk.f32.gmra.mrb[58].mxu0 %vm185_vm0, %v94_v8  ;;  %4843 = vmatmul.mubr.msk.f32.gmra.mrb[58].mxu1 %vm185_vm0, %v166_v9 }
  0x81   :  { %4737 = vmatprep.mubr.msk.f32.mxu0 %vm185_vm0, %v95_v10  ;;  %4845 = vmatprep.mubr.msk.f32.mxu1 %vm185_vm0, %v167_v11 }
  0x84   :  { %4738 = vmatmul.mubr.msk.f32.gmra.mrb[60].mxu0 %vm185_vm0, %v96_v12  ;;  %4846 = vmatmul.mubr.msk.f32.gmra.mrb[60].mxu1 %vm185_vm0, %v168_v13 }
  0x85   :  { %4740 = vmatprep.mubr.msk.f32.mxu0 %vm185_vm0, %v97_v14  ;;  %4848 = vmatprep.mubr.msk.f32.mxu1 %vm185_vm0, %v169_v15 }
  0x88   :  { %4741 = vmatmul.mubr.msk.f32.gmra.mrb[62].mxu0 %vm185_vm0, %v98_v16  ;;  %4849 = vmatmul.mubr.msk.f32.gmra.mrb[62].mxu1 %vm185_vm0, %v170_v17 }
  0x89   :  { %4743 = vmatprep.mubr.msk.f32.mxu0 %vm185_vm0, %v99_v18  ;;  %4851 = vmatprep.mubr.msk.f32.mxu1 %vm185_vm0, %v171_v19 }
  0x8c   :  { %4744 = vmatmul.mubr.msk.f32.gmra.mrb[64].mxu0 %vm185_vm0, %v100_v20  ;;  %4852 = vmatmul.mubr.msk.f32.gmra.mrb[64].mxu1 %vm185_vm0, %v172_v21 }
  0x8d   :  { %4746 = vmatprep.mubr.msk.f32.mxu0 %vm185_vm0, %v101_v22  ;;  %4854 = vmatprep.mubr.msk.f32.mxu1 %vm185_vm0, %v173_v23 }
  0x90   :  { %4747 = vmatmul.mubr.msk.f32.gmra.mrb[66].mxu0 %vm185_vm0, %v102_v24  ;;  %4855 = vmatmul.mubr.msk.f32.gmra.mrb[66].mxu1 %vm185_vm0, %v174_v25 }
  0x91   :  { %4749 = vmatprep.mubr.msk.f32.mxu0 %vm185_vm0, %v103_v26  ;;  %4857 = vmatprep.mubr.msk.f32.mxu1 %vm185_vm0, %v175_v27 }
  0x94   :  { %4750 = vmatmul.mubr.msk.f32.gmra.mrb[68].mxu0 %vm185_vm0, %v104_v28  ;;  %4858 = vmatmul.mubr.msk.f32.gmra.mrb[68].mxu1 %vm185_vm0, %v176_v29 }
  0x95   :  { %4752 = vmatprep.mubr.msk.f32.mxu0 %vm185_vm0, %v105_v30  ;;  %4860 = vmatprep.mubr.msk.f32.mxu1 %vm185_vm0, %v177_v31 }
  0x98   :  { %4753 = vmatmul.mubr.msk.f32.gmra.mrb[70].mxu0 %vm185_vm0, %v106_v32  ;;  %4861 = vmatmul.mubr.msk.f32.gmra.mrb[70].mxu1 %vm185_vm0, %v178_v33 }
  0xdf   :  { %v4649_v35 = vpop.f32.mrb[0].mxu0  ;;  %v4757_v36 = vpop.f32.mrb[0].mxu1 }
  0xe0   :  { %v690_v37 = vadd.f32 %v4649_v35, %v6078_v34  ;;  %v1050_v38 = vadd.f32 %v4757_v36, %v6078_v34  ;;  %v684_v39 = vpop.f32.mrb[1].mxu0  ;;  %v1044_v40 = vpop.f32.mrb[1].mxu1 }
  0xe1   :  { %v685_v41 = vadd.f32 %v6078_v34, %v684_v39  ;;  %v1045_v42 = vadd.f32 %v6078_v34, %v1044_v40 }
  0xe2   :  { %1404 = vst [vmem:[#allocation2 + $0x8] sm:$0xff] %v690_v37  ;;  %1476 = vst [vmem:[#allocation2 + $0x248] sm:$0xff] %v1050_v38 }
  0xe3   :  { %1403 = vst [vmem:[#allocation2] sm:$0xff] %v685_v41  ;;  %1475 = vst [vmem:[#allocation2 + $0x240] sm:$0xff] %v1045_v42  ;;  %v4652_v43 = vpop.f32.mrb[2].mxu0  ;;  %v4760_v44 = vpop.f32.mrb[2].mxu1 }
  0xe4   :  { %v700_v45 = vadd.f32 %v4652_v43, %v6078_v34  ;;  %v1060_v46 = vadd.f32 %v4760_v44, %v6078_v34  ;;  %v694_v47 = vpop.f32.mrb[3].mxu0  ;;  %v1054_v48 = vpop.f32.mrb[3].mxu1 }
  0xe5   :  { %v695_v49 = vadd.f32 %v6078_v34, %v694_v47  ;;  %v1055_v50 = vadd.f32 %v6078_v34, %v1054_v48 }
  0xe6   :  { %1406 = vst [vmem:[#allocation2 + $0x18] sm:$0xff] %v700_v45  ;;  %1478 = vst [vmem:[#allocation2 + $0x258] sm:$0xff] %v1060_v46 }
  0xe7   :  { %1405 = vst [vmem:[#allocation2 + $0x10] sm:$0xff] %v695_v49  ;;  %1477 = vst [vmem:[#allocation2 + $0x250] sm:$0xff] %v1055_v50  ;;  %v4655_v51 = vpop.f32.mrb[4].mxu0  ;;  %v4763_v52 = vpop.f32.mrb[4].mxu1 }
  0xe8   :  { %v710_v53 = vadd.f32 %v4655_v51, %v6078_v34  ;;  %v1070_v54 = vadd.f32 %v4763_v52, %v6078_v34  ;;  %v704_v55 = vpop.f32.mrb[5].mxu0  ;;  %v1064_v56 = vpop.f32.mrb[5].mxu1 }
  0xe9   :  { %v705_v57 = vadd.f32 %v6078_v34, %v704_v55  ;;  %v1065_v58 = vadd.f32 %v6078_v34, %v1064_v56 }
  0xea   :  { %1408 = vst [vmem:[#allocation2 + $0x28] sm:$0xff] %v710_v53  ;;  %1480 = vst [vmem:[#allocation2 + $0x268] sm:$0xff] %v1070_v54 }
  0xeb   :  { %1407 = vst [vmem:[#allocation2 + $0x20] sm:$0xff] %v705_v57  ;;  %1479 = vst [vmem:[#allocation2 + $0x260] sm:$0xff] %v1065_v58  ;;  %v4658_v59 = vpop.f32.mrb[6].mxu0  ;;  %v4766_v60 = vpop.f32.mrb[6].mxu1 }
  0xec   :  { %v720_v61 = vadd.f32 %v4658_v59, %v6078_v34  ;;  %v1080_v62 = vadd.f32 %v4766_v60, %v6078_v34  ;;  %v714_v63 = vpop.f32.mrb[7].mxu0  ;;  %v1074_v0 = vpop.f32.mrb[7].mxu1 }
  0xed   :  { %v715_v1 = vadd.f32 %v6078_v34, %v714_v63  ;;  %v1075_v6 = vadd.f32 %v6078_v34, %v1074_v0 }
  0xee   :  { %1410 = vst [vmem:[#allocation2 + $0x38] sm:$0xff] %v720_v61  ;;  %1482 = vst [vmem:[#allocation2 + $0x278] sm:$0xff] %v1080_v62 }
  0xef   :  { %1409 = vst [vmem:[#allocation2 + $0x30] sm:$0xff] %v715_v1  ;;  %1481 = vst [vmem:[#allocation2 + $0x270] sm:$0xff] %v1075_v6  ;;  %v4661_v7 = vpop.f32.mrb[8].mxu0  ;;  %v4769_v8 = vpop.f32.mrb[8].mxu1 }
  0xf0   :  { %v730_v9 = vadd.f32 %v4661_v7, %v6078_v34  ;;  %v1090_v10 = vadd.f32 %v4769_v8, %v6078_v34  ;;  %v724_v11 = vpop.f32.mrb[9].mxu0  ;;  %v1084_v12 = vpop.f32.mrb[9].mxu1 }
  0xf1   :  { %v725_v13 = vadd.f32 %v6078_v34, %v724_v11  ;;  %v1085_v14 = vadd.f32 %v6078_v34, %v1084_v12 }
  0xf2   :  { %1412 = vst [vmem:[#allocation2 + $0x48] sm:$0xff] %v730_v9  ;;  %1484 = vst [vmem:[#allocation2 + $0x288] sm:$0xff] %v1090_v10 }
  0xf3   :  { %1411 = vst [vmem:[#allocation2 + $0x40] sm:$0xff] %v725_v13  ;;  %1483 = vst [vmem:[#allocation2 + $0x280] sm:$0xff] %v1085_v14  ;;  %v4664_v15 = vpop.f32.mrb[10].mxu0  ;;  %v4772_v16 = vpop.f32.mrb[10].mxu1 }
  0xf4   :  { %v740_v17 = vadd.f32 %v4664_v15, %v6078_v34  ;;  %v1100_v18 = vadd.f32 %v4772_v16, %v6078_v34  ;;  %v734_v19 = vpop.f32.mrb[11].mxu0  ;;  %v1094_v20 = vpop.f32.mrb[11].mxu1 }
  0xf5   :  { %v735_v21 = vadd.f32 %v6078_v34, %v734_v19  ;;  %v1095_v22 = vadd.f32 %v6078_v34, %v1094_v20 }
  0xf6   :  { %1414 = vst [vmem:[#allocation2 + $0x58] sm:$0xff] %v740_v17  ;;  %1486 = vst [vmem:[#allocation2 + $0x298] sm:$0xff] %v1100_v18 }
  0xf7   :  { %1413 = vst [vmem:[#allocation2 + $0x50] sm:$0xff] %v735_v21  ;;  %1485 = vst [vmem:[#allocation2 + $0x290] sm:$0xff] %v1095_v22  ;;  %v4667_v23 = vpop.f32.mrb[12].mxu0  ;;  %v4775_v24 = vpop.f32.mrb[12].mxu1 }
  0xf8   :  { %v750_v25 = vadd.f32 %v4667_v23, %v6078_v34  ;;  %v1110_v26 = vadd.f32 %v4775_v24, %v6078_v34  ;;  %v744_v27 = vpop.f32.mrb[13].mxu0  ;;  %v1104_v28 = vpop.f32.mrb[13].mxu1 }
  0xf9   :  { %v745_v29 = vadd.f32 %v6078_v34, %v744_v27  ;;  %v1105_v30 = vadd.f32 %v6078_v34, %v1104_v28 }
  0xfa   :  { %1416 = vst [vmem:[#allocation2 + $0x68] sm:$0xff] %v750_v25  ;;  %1488 = vst [vmem:[#allocation2 + $0x2a8] sm:$0xff] %v1110_v26 }
  0xfb   :  { %1415 = vst [vmem:[#allocation2 + $0x60] sm:$0xff] %v745_v29  ;;  %1487 = vst [vmem:[#allocation2 + $0x2a0] sm:$0xff] %v1105_v30  ;;  %v4670_v31 = vpop.f32.mrb[14].mxu0  ;;  %v4778_v32 = vpop.f32.mrb[14].mxu1 }
  0xfc   :  { %v760_v33 = vadd.f32 %v4670_v31, %v6078_v34  ;;  %v1120_v35 = vadd.f32 %v4778_v32, %v6078_v34  ;;  %v754_v36 = vpop.f32.mrb[15].mxu0  ;;  %v1114_v37 = vpop.f32.mrb[15].mxu1 }
  0xfd   :  { %v755_v38 = vadd.f32 %v6078_v34, %v754_v36  ;;  %v1115_v39 = vadd.f32 %v6078_v34, %v1114_v37 }
  0xfe   :  { %1418 = vst [vmem:[#allocation2 + $0x78] sm:$0xff] %v760_v33  ;;  %1490 = vst [vmem:[#allocation2 + $0x2b8] sm:$0xff] %v1120_v35 }
  0xff   :  { %1417 = vst [vmem:[#allocation2 + $0x70] sm:$0xff] %v755_v38  ;;  %1489 = vst [vmem:[#allocation2 + $0x2b0] sm:$0xff] %v1115_v39  ;;  %v4673_v40 = vpop.f32.mrb[16].mxu0  ;;  %v4781_v41 = vpop.f32.mrb[16].mxu1 }
 0x100   :  { %v770_v42 = vadd.f32 %v4673_v40, %v6078_v34  ;;  %v1130_v43 = vadd.f32 %v4781_v41, %v6078_v34  ;;  %v764_v44 = vpop.f32.mrb[17].mxu0  ;;  %v1124_v45 = vpop.f32.mrb[17].mxu1 }
 0x101   :  { %v765_v46 = vadd.f32 %v6078_v34, %v764_v44  ;;  %v1125_v47 = vadd.f32 %v6078_v34, %v1124_v45 }
 0x102   :  { %1420 = vst [vmem:[#allocation2 + $0x88] sm:$0xff] %v770_v42  ;;  %1492 = vst [vmem:[#allocation2 + $0x2c8] sm:$0xff] %v1130_v43 }
 0x103   :  { %1419 = vst [vmem:[#allocation2 + $0x80] sm:$0xff] %v765_v46  ;;  %1491 = vst [vmem:[#allocation2 + $0x2c0] sm:$0xff] %v1125_v47  ;;  %v4676_v48 = vpop.f32.mrb[18].mxu0  ;;  %v4784_v49 = vpop.f32.mrb[18].mxu1 }
 0x104   :  { %v780_v50 = vadd.f32 %v4676_v48, %v6078_v34  ;;  %v1140_v51 = vadd.f32 %v4784_v49, %v6078_v34  ;;  %v774_v52 = vpop.f32.mrb[19].mxu0  ;;  %v1134_v53 = vpop.f32.mrb[19].mxu1 }
 0x105   :  { %v775_v54 = vadd.f32 %v6078_v34, %v774_v52  ;;  %v1135_v55 = vadd.f32 %v6078_v34, %v1134_v53 }
 0x106   :  { %1422 = vst [vmem:[#allocation2 + $0x98] sm:$0xff] %v780_v50  ;;  %1494 = vst [vmem:[#allocation2 + $0x2d8] sm:$0xff] %v1140_v51 }
 0x107   :  { %1421 = vst [vmem:[#allocation2 + $0x90] sm:$0xff] %v775_v54  ;;  %1493 = vst [vmem:[#allocation2 + $0x2d0] sm:$0xff] %v1135_v55  ;;  %v4679_v56 = vpop.f32.mrb[20].mxu0  ;;  %v4787_v57 = vpop.f32.mrb[20].mxu1 }
 0x108   :  { %v790_v58 = vadd.f32 %v4679_v56, %v6078_v34  ;;  %v1150_v59 = vadd.f32 %v4787_v57, %v6078_v34  ;;  %v784_v60 = vpop.f32.mrb[21].mxu0  ;;  %v1144_v61 = vpop.f32.mrb[21].mxu1 }
 0x109   :  { %v785_v62 = vadd.f32 %v6078_v34, %v784_v60  ;;  %v1145_v63 = vadd.f32 %v6078_v34, %v1144_v61 }
 0x10a   :  { %1424 = vst [vmem:[#allocation2 + $0xa8] sm:$0xff] %v790_v58  ;;  %1496 = vst [vmem:[#allocation2 + $0x2e8] sm:$0xff] %v1150_v59 }
 0x10b   :  { %1423 = vst [vmem:[#allocation2 + $0xa0] sm:$0xff] %v785_v62  ;;  %1495 = vst [vmem:[#allocation2 + $0x2e0] sm:$0xff] %v1145_v63  ;;  %v4682_v0 = vpop.f32.mrb[22].mxu0  ;;  %v4790_v1 = vpop.f32.mrb[22].mxu1 }
 0x10c   :  { %v800_v6 = vadd.f32 %v4682_v0, %v6078_v34  ;;  %v1160_v7 = vadd.f32 %v4790_v1, %v6078_v34  ;;  %v794_v8 = vpop.f32.mrb[23].mxu0  ;;  %v1154_v9 = vpop.f32.mrb[23].mxu1 }
 0x10d   :  { %v795_v10 = vadd.f32 %v6078_v34, %v794_v8  ;;  %v1155_v11 = vadd.f32 %v6078_v34, %v1154_v9 }
 0x10e   :  { %1426 = vst [vmem:[#allocation2 + $0xb8] sm:$0xff] %v800_v6  ;;  %1498 = vst [vmem:[#allocation2 + $0x2f8] sm:$0xff] %v1160_v7 }
 0x10f   :  { %1425 = vst [vmem:[#allocation2 + $0xb0] sm:$0xff] %v795_v10  ;;  %1497 = vst [vmem:[#allocation2 + $0x2f0] sm:$0xff] %v1155_v11  ;;  %v4685_v12 = vpop.f32.mrb[24].mxu0  ;;  %v4793_v13 = vpop.f32.mrb[24].mxu1 }
 0x110   :  { %v810_v14 = vadd.f32 %v4685_v12, %v6078_v34  ;;  %v1170_v15 = vadd.f32 %v4793_v13, %v6078_v34  ;;  %v804_v16 = vpop.f32.mrb[25].mxu0  ;;  %v1164_v17 = vpop.f32.mrb[25].mxu1 }
 0x111   :  { %v805_v18 = vadd.f32 %v6078_v34, %v804_v16  ;;  %v1165_v19 = vadd.f32 %v6078_v34, %v1164_v17 }
 0x112   :  { %1428 = vst [vmem:[#allocation2 + $0xc8] sm:$0xff] %v810_v14  ;;  %1500 = vst [vmem:[#allocation2 + $0x308] sm:$0xff] %v1170_v15 }
 0x113   :  { %1427 = vst [vmem:[#allocation2 + $0xc0] sm:$0xff] %v805_v18  ;;  %1499 = vst [vmem:[#allocation2 + $0x300] sm:$0xff] %v1165_v19  ;;  %v4688_v20 = vpop.f32.mrb[26].mxu0  ;;  %v4796_v21 = vpop.f32.mrb[26].mxu1 }
 0x114   :  { %v820_v22 = vadd.f32 %v4688_v20, %v6078_v34  ;;  %v1180_v23 = vadd.f32 %v4796_v21, %v6078_v34  ;;  %v814_v24 = vpop.f32.mrb[27].mxu0  ;;  %v1174_v25 = vpop.f32.mrb[27].mxu1 }
 0x115   :  { %v815_v26 = vadd.f32 %v6078_v34, %v814_v24  ;;  %v1175_v27 = vadd.f32 %v6078_v34, %v1174_v25 }
 0x116   :  { %1430 = vst [vmem:[#allocation2 + $0xd8] sm:$0xff] %v820_v22  ;;  %1502 = vst [vmem:[#allocation2 + $0x318] sm:$0xff] %v1180_v23 }
 0x117   :  { %1429 = vst [vmem:[#allocation2 + $0xd0] sm:$0xff] %v815_v26  ;;  %1501 = vst [vmem:[#allocation2 + $0x310] sm:$0xff] %v1175_v27  ;;  %v4691_v28 = vpop.f32.mrb[28].mxu0  ;;  %v4799_v29 = vpop.f32.mrb[28].mxu1 }
 0x118   :  { %v830_v30 = vadd.f32 %v4691_v28, %v6078_v34  ;;  %v1190_v31 = vadd.f32 %v4799_v29, %v6078_v34  ;;  %v824_v32 = vpop.f32.mrb[29].mxu0  ;;  %v1184_v33 = vpop.f32.mrb[29].mxu1 }
 0x119   :  { %v825_v35 = vadd.f32 %v6078_v34, %v824_v32  ;;  %v1185_v36 = vadd.f32 %v6078_v34, %v1184_v33 }
 0x11a   :  { %1432 = vst [vmem:[#allocation2 + $0xe8] sm:$0xff] %v830_v30  ;;  %1504 = vst [vmem:[#allocation2 + $0x328] sm:$0xff] %v1190_v31 }
 0x11b   :  { %1431 = vst [vmem:[#allocation2 + $0xe0] sm:$0xff] %v825_v35  ;;  %1503 = vst [vmem:[#allocation2 + $0x320] sm:$0xff] %v1185_v36  ;;  %v4694_v37 = vpop.f32.mrb[30].mxu0  ;;  %v4802_v38 = vpop.f32.mrb[30].mxu1 }
 0x11c   :  { %v840_v39 = vadd.f32 %v4694_v37, %v6078_v34  ;;  %v1200_v40 = vadd.f32 %v4802_v38, %v6078_v34  ;;  %v834_v41 = vpop.f32.mrb[31].mxu0  ;;  %v1194_v42 = vpop.f32.mrb[31].mxu1 }
 0x11d   :  { %v835_v43 = vadd.f32 %v6078_v34, %v834_v41  ;;  %v1195_v44 = vadd.f32 %v6078_v34, %v1194_v42 }
 0x11e   :  { %1434 = vst [vmem:[#allocation2 + $0xf8] sm:$0xff] %v840_v39  ;;  %1506 = vst [vmem:[#allocation2 + $0x338] sm:$0xff] %v1200_v40 }
 0x11f   :  { %1433 = vst [vmem:[#allocation2 + $0xf0] sm:$0xff] %v835_v43  ;;  %1505 = vst [vmem:[#allocation2 + $0x330] sm:$0xff] %v1195_v44  ;;  %v4697_v45 = vpop.f32.mrb[32].mxu0  ;;  %v4805_v46 = vpop.f32.mrb[32].mxu1 }
 0x120   :  { %v850_v47 = vadd.f32 %v4697_v45, %v6078_v34  ;;  %v1210_v48 = vadd.f32 %v4805_v46, %v6078_v34  ;;  %v844_v49 = vpop.f32.mrb[33].mxu0  ;;  %v1204_v50 = vpop.f32.mrb[33].mxu1 }
 0x121   :  { %v845_v51 = vadd.f32 %v6078_v34, %v844_v49  ;;  %v1205_v52 = vadd.f32 %v6078_v34, %v1204_v50 }
 0x122   :  { %1436 = vst [vmem:[#allocation2 + $0x108] sm:$0xff] %v850_v47  ;;  %1508 = vst [vmem:[#allocation2 + $0x348] sm:$0xff] %v1210_v48 }
 0x123   :  { %1435 = vst [vmem:[#allocation2 + $0x100] sm:$0xff] %v845_v51  ;;  %1507 = vst [vmem:[#allocation2 + $0x340] sm:$0xff] %v1205_v52  ;;  %v4700_v53 = vpop.f32.mrb[34].mxu0  ;;  %v4808_v54 = vpop.f32.mrb[34].mxu1 }
 0x124   :  { %v860_v55 = vadd.f32 %v4700_v53, %v6078_v34  ;;  %v1220_v56 = vadd.f32 %v4808_v54, %v6078_v34  ;;  %v854_v57 = vpop.f32.mrb[35].mxu0  ;;  %v1214_v58 = vpop.f32.mrb[35].mxu1 }
 0x125   :  { %v855_v59 = vadd.f32 %v6078_v34, %v854_v57  ;;  %v1215_v60 = vadd.f32 %v6078_v34, %v1214_v58 }
 0x126   :  { %1438 = vst [vmem:[#allocation2 + $0x118] sm:$0xff] %v860_v55  ;;  %1510 = vst [vmem:[#allocation2 + $0x358] sm:$0xff] %v1220_v56 }
 0x127   :  { %1437 = vst [vmem:[#allocation2 + $0x110] sm:$0xff] %v855_v59  ;;  %1509 = vst [vmem:[#allocation2 + $0x350] sm:$0xff] %v1215_v60  ;;  %v4703_v61 = vpop.f32.mrb[36].mxu0  ;;  %v4811_v62 = vpop.f32.mrb[36].mxu1 }
 0x128   :  { %v870_v63 = vadd.f32 %v4703_v61, %v6078_v34  ;;  %v1230_v0 = vadd.f32 %v4811_v62, %v6078_v34  ;;  %v864_v1 = vpop.f32.mrb[37].mxu0  ;;  %v1224_v6 = vpop.f32.mrb[37].mxu1 }
 0x129   :  { %v865_v7 = vadd.f32 %v6078_v34, %v864_v1  ;;  %v1225_v8 = vadd.f32 %v6078_v34, %v1224_v6 }
 0x12a   :  { %1440 = vst [vmem:[#allocation2 + $0x128] sm:$0xff] %v870_v63  ;;  %1512 = vst [vmem:[#allocation2 + $0x368] sm:$0xff] %v1230_v0 }
 0x12b   :  { %1439 = vst [vmem:[#allocation2 + $0x120] sm:$0xff] %v865_v7  ;;  %1511 = vst [vmem:[#allocation2 + $0x360] sm:$0xff] %v1225_v8  ;;  %v4706_v9 = vpop.f32.mrb[38].mxu0  ;;  %v4814_v10 = vpop.f32.mrb[38].mxu1 }
 0x12c   :  { %v880_v11 = vadd.f32 %v4706_v9, %v6078_v34  ;;  %v1240_v12 = vadd.f32 %v4814_v10, %v6078_v34  ;;  %v874_v13 = vpop.f32.mrb[39].mxu0  ;;  %v1234_v14 = vpop.f32.mrb[39].mxu1 }
 0x12d   :  { %v875_v15 = vadd.f32 %v6078_v34, %v874_v13  ;;  %v1235_v16 = vadd.f32 %v6078_v34, %v1234_v14 }
 0x12e   :  { %1442 = vst [vmem:[#allocation2 + $0x138] sm:$0xff] %v880_v11  ;;  %1514 = vst [vmem:[#allocation2 + $0x378] sm:$0xff] %v1240_v12 }
 0x12f   :  { %1441 = vst [vmem:[#allocation2 + $0x130] sm:$0xff] %v875_v15  ;;  %1513 = vst [vmem:[#allocation2 + $0x370] sm:$0xff] %v1235_v16  ;;  %v4709_v17 = vpop.f32.mrb[40].mxu0  ;;  %v4817_v18 = vpop.f32.mrb[40].mxu1 }
 0x130   :  { %v890_v19 = vadd.f32 %v4709_v17, %v6078_v34  ;;  %v1250_v20 = vadd.f32 %v4817_v18, %v6078_v34  ;;  %v884_v21 = vpop.f32.mrb[41].mxu0  ;;  %v1244_v22 = vpop.f32.mrb[41].mxu1 }
 0x131   :  { %v885_v23 = vadd.f32 %v6078_v34, %v884_v21  ;;  %v1245_v24 = vadd.f32 %v6078_v34, %v1244_v22 }
 0x132   :  { %1444 = vst [vmem:[#allocation2 + $0x148] sm:$0xff] %v890_v19  ;;  %1516 = vst [vmem:[#allocation2 + $0x388] sm:$0xff] %v1250_v20 }
 0x133   :  { %1443 = vst [vmem:[#allocation2 + $0x140] sm:$0xff] %v885_v23  ;;  %1515 = vst [vmem:[#allocation2 + $0x380] sm:$0xff] %v1245_v24  ;;  %v4712_v25 = vpop.f32.mrb[42].mxu0  ;;  %v4820_v26 = vpop.f32.mrb[42].mxu1 }
 0x134   :  { %v900_v27 = vadd.f32 %v4712_v25, %v6078_v34  ;;  %v1260_v28 = vadd.f32 %v4820_v26, %v6078_v34  ;;  %v894_v29 = vpop.f32.mrb[43].mxu0  ;;  %v1254_v30 = vpop.f32.mrb[43].mxu1 }
 0x135   :  { %v895_v31 = vadd.f32 %v6078_v34, %v894_v29  ;;  %v1255_v32 = vadd.f32 %v6078_v34, %v1254_v30 }
 0x136   :  { %1446 = vst [vmem:[#allocation2 + $0x158] sm:$0xff] %v900_v27  ;;  %1518 = vst [vmem:[#allocation2 + $0x398] sm:$0xff] %v1260_v28 }
 0x137   :  { %1445 = vst [vmem:[#allocation2 + $0x150] sm:$0xff] %v895_v31  ;;  %1517 = vst [vmem:[#allocation2 + $0x390] sm:$0xff] %v1255_v32  ;;  %v4715_v33 = vpop.f32.mrb[44].mxu0  ;;  %v4823_v35 = vpop.f32.mrb[44].mxu1 }
 0x138   :  { %v910_v36 = vadd.f32 %v4715_v33, %v6078_v34  ;;  %v1270_v37 = vadd.f32 %v4823_v35, %v6078_v34  ;;  %v904_v38 = vpop.f32.mrb[45].mxu0  ;;  %v1264_v39 = vpop.f32.mrb[45].mxu1 }
 0x139   :  { %v905_v40 = vadd.f32 %v6078_v34, %v904_v38  ;;  %v1265_v41 = vadd.f32 %v6078_v34, %v1264_v39 }
 0x13a   :  { %1448 = vst [vmem:[#allocation2 + $0x168] sm:$0xff] %v910_v36  ;;  %1520 = vst [vmem:[#allocation2 + $0x3a8] sm:$0xff] %v1270_v37 }
 0x13b   :  { %1447 = vst [vmem:[#allocation2 + $0x160] sm:$0xff] %v905_v40  ;;  %1519 = vst [vmem:[#allocation2 + $0x3a0] sm:$0xff] %v1265_v41  ;;  %v4718_v42 = vpop.f32.mrb[46].mxu0  ;;  %v4826_v43 = vpop.f32.mrb[46].mxu1 }
 0x13c   :  { %v920_v44 = vadd.f32 %v4718_v42, %v6078_v34  ;;  %v1280_v45 = vadd.f32 %v4826_v43, %v6078_v34  ;;  %v914_v46 = vpop.f32.mrb[47].mxu0  ;;  %v1274_v47 = vpop.f32.mrb[47].mxu1 }
 0x13d   :  { %v915_v48 = vadd.f32 %v6078_v34, %v914_v46  ;;  %v1275_v49 = vadd.f32 %v6078_v34, %v1274_v47 }
 0x13e   :  { %1450 = vst [vmem:[#allocation2 + $0x178] sm:$0xff] %v920_v44  ;;  %1522 = vst [vmem:[#allocation2 + $0x3b8] sm:$0xff] %v1280_v45 }
 0x13f   :  { %1449 = vst [vmem:[#allocation2 + $0x170] sm:$0xff] %v915_v48  ;;  %1521 = vst [vmem:[#allocation2 + $0x3b0] sm:$0xff] %v1275_v49  ;;  %v4721_v50 = vpop.f32.mrb[48].mxu0  ;;  %v4829_v51 = vpop.f32.mrb[48].mxu1 }
 0x140   :  { %v930_v52 = vadd.f32 %v4721_v50, %v6078_v34  ;;  %v1290_v53 = vadd.f32 %v4829_v51, %v6078_v34  ;;  %v924_v54 = vpop.f32.mrb[49].mxu0  ;;  %v1284_v55 = vpop.f32.mrb[49].mxu1 }
 0x141   :  { %v925_v56 = vadd.f32 %v6078_v34, %v924_v54  ;;  %v1285_v57 = vadd.f32 %v6078_v34, %v1284_v55 }
 0x142   :  { %1452 = vst [vmem:[#allocation2 + $0x188] sm:$0xff] %v930_v52  ;;  %1524 = vst [vmem:[#allocation2 + $0x3c8] sm:$0xff] %v1290_v53 }
 0x143   :  { %1451 = vst [vmem:[#allocation2 + $0x180] sm:$0xff] %v925_v56  ;;  %1523 = vst [vmem:[#allocation2 + $0x3c0] sm:$0xff] %v1285_v57  ;;  %v4724_v58 = vpop.f32.mrb[50].mxu0  ;;  %v4832_v59 = vpop.f32.mrb[50].mxu1 }
 0x144   :  { %v940_v60 = vadd.f32 %v4724_v58, %v6078_v34  ;;  %v1300_v61 = vadd.f32 %v4832_v59, %v6078_v34  ;;  %v934_v62 = vpop.f32.mrb[51].mxu0  ;;  %v1294_v63 = vpop.f32.mrb[51].mxu1 }
 0x145   :  { %v935_v0 = vadd.f32 %v6078_v34, %v934_v62  ;;  %v1295_v1 = vadd.f32 %v6078_v34, %v1294_v63 }
 0x146   :  { %1454 = vst [vmem:[#allocation2 + $0x198] sm:$0xff] %v940_v60  ;;  %1526 = vst [vmem:[#allocation2 + $0x3d8] sm:$0xff] %v1300_v61 }
 0x147   :  { %1453 = vst [vmem:[#allocation2 + $0x190] sm:$0xff] %v935_v0  ;;  %1525 = vst [vmem:[#allocation2 + $0x3d0] sm:$0xff] %v1295_v1  ;;  %v4727_v6 = vpop.f32.mrb[52].mxu0  ;;  %v4835_v7 = vpop.f32.mrb[52].mxu1 }
 0x148   :  { %v950_v8 = vadd.f32 %v4727_v6, %v6078_v34  ;;  %v1310_v9 = vadd.f32 %v4835_v7, %v6078_v34  ;;  %v944_v10 = vpop.f32.mrb[53].mxu0  ;;  %v1304_v11 = vpop.f32.mrb[53].mxu1 }
 0x149   :  { %v945_v12 = vadd.f32 %v6078_v34, %v944_v10  ;;  %v1305_v13 = vadd.f32 %v6078_v34, %v1304_v11 }
 0x14a   :  { %1456 = vst [vmem:[#allocation2 + $0x1a8] sm:$0xff] %v950_v8  ;;  %1528 = vst [vmem:[#allocation2 + $0x3e8] sm:$0xff] %v1310_v9 }
 0x14b   :  { %1455 = vst [vmem:[#allocation2 + $0x1a0] sm:$0xff] %v945_v12  ;;  %1527 = vst [vmem:[#allocation2 + $0x3e0] sm:$0xff] %v1305_v13  ;;  %v4730_v14 = vpop.f32.mrb[54].mxu0  ;;  %v4838_v15 = vpop.f32.mrb[54].mxu1 }
 0x14c   :  { %v960_v16 = vadd.f32 %v4730_v14, %v6078_v34  ;;  %v1320_v17 = vadd.f32 %v4838_v15, %v6078_v34  ;;  %v954_v18 = vpop.f32.mrb[55].mxu0  ;;  %v1314_v19 = vpop.f32.mrb[55].mxu1 }
 0x14d   :  { %v955_v20 = vadd.f32 %v6078_v34, %v954_v18  ;;  %v1315_v21 = vadd.f32 %v6078_v34, %v1314_v19 }
 0x14e   :  { %1458 = vst [vmem:[#allocation2 + $0x1b8] sm:$0xff] %v960_v16  ;;  %1530 = vst [vmem:[#allocation2 + $0x3f8] sm:$0xff] %v1320_v17 }
 0x14f   :  { %1457 = vst [vmem:[#allocation2 + $0x1b0] sm:$0xff] %v955_v20  ;;  %1529 = vst [vmem:[#allocation2 + $0x3f0] sm:$0xff] %v1315_v21  ;;  %v4733_v22 = vpop.f32.mrb[56].mxu0  ;;  %v4841_v23 = vpop.f32.mrb[56].mxu1 }
 0x150   :  { %v970_v24 = vadd.f32 %v4733_v22, %v6078_v34  ;;  %v1330_v25 = vadd.f32 %v4841_v23, %v6078_v34  ;;  %v964_v26 = vpop.f32.mrb[57].mxu0  ;;  %v1324_v27 = vpop.f32.mrb[57].mxu1 }
 0x151   :  { %v965_v28 = vadd.f32 %v6078_v34, %v964_v26  ;;  %v1325_v29 = vadd.f32 %v6078_v34, %v1324_v27  ;;  %v6224_v27 = vmov 0.0  }
 0x152   :  { %1460 = vst [vmem:[#allocation2 + $0x1c8] sm:$0xff] %v970_v24  ;;  %1532 = vst [vmem:[#allocation2 + $0x408] sm:$0xff] %v1330_v25 }
 0x153   :  { %1459 = vst [vmem:[#allocation2 + $0x1c0] sm:$0xff] %v965_v28  ;;  %1531 = vst [vmem:[#allocation2 + $0x400] sm:$0xff] %v1325_v29  ;;  %v4736_v30 = vpop.f32.mrb[58].mxu0  ;;  %v4844_v31 = vpop.f32.mrb[58].mxu1  ;;  %v6226_v28 = vmov 0.0  }
 0x154   :  { %v980_v32 = vadd.f32 %v4736_v30, %v6078_v34  ;;  %v1340_v33 = vadd.f32 %v4844_v31, %v6078_v34  ;;  %v974_v35 = vpop.f32.mrb[59].mxu0  ;;  %v1334_v36 = vpop.f32.mrb[59].mxu1 }
 0x155   :  { %v975_v37 = vadd.f32 %v6078_v34, %v974_v35  ;;  %v1335_v38 = vadd.f32 %v6078_v34, %v1334_v36 }
 0x156   :  { %1462 = vst [vmem:[#allocation2 + $0x1d8] sm:$0xff] %v980_v32  ;;  %1534 = vst [vmem:[#allocation2 + $0x418] sm:$0xff] %v1340_v33 }
 0x157   :  { %1461 = vst [vmem:[#allocation2 + $0x1d0] sm:$0xff] %v975_v37  ;;  %1533 = vst [vmem:[#allocation2 + $0x410] sm:$0xff] %v1335_v38  ;;  %v4739_v39 = vpop.f32.mrb[60].mxu0  ;;  %v4847_v40 = vpop.f32.mrb[60].mxu1 }
 0x158   :  { %v990_v41 = vadd.f32 %v4739_v39, %v6078_v34  ;;  %v1350_v42 = vadd.f32 %v4847_v40, %v6078_v34  ;;  %v984_v43 = vpop.f32.mrb[61].mxu0  ;;  %v1344_v44 = vpop.f32.mrb[61].mxu1 }
 0x159   :  { %v985_v45 = vadd.f32 %v6078_v34, %v984_v43  ;;  %v1345_v46 = vadd.f32 %v6078_v34, %v1344_v44 }
 0x15a   :  { %1464 = vst [vmem:[#allocation2 + $0x1e8] sm:$0xff] %v990_v41  ;;  %1536 = vst [vmem:[#allocation2 + $0x428] sm:$0xff] %v1350_v42 }
 0x15b   :  { %1463 = vst [vmem:[#allocation2 + $0x1e0] sm:$0xff] %v985_v45  ;;  %1535 = vst [vmem:[#allocation2 + $0x420] sm:$0xff] %v1345_v46  ;;  %v4742_v47 = vpop.f32.mrb[62].mxu0  ;;  %v4850_v48 = vpop.f32.mrb[62].mxu1 }
 0x15c   :  { %v1000_v49 = vadd.f32 %v4742_v47, %v6078_v34  ;;  %v1360_v50 = vadd.f32 %v4850_v48, %v6078_v34  ;;  %v994_v51 = vpop.f32.mrb[63].mxu0  ;;  %v1354_v52 = vpop.f32.mrb[63].mxu1 }
 0x15d   :  { %v995_v53 = vadd.f32 %v6078_v34, %v994_v51  ;;  %v1355_v54 = vadd.f32 %v6078_v34, %v1354_v52 }
 0x15e   :  { %1466 = vst [vmem:[#allocation2 + $0x1f8] sm:$0xff] %v1000_v49  ;;  %1538 = vst [vmem:[#allocation2 + $0x438] sm:$0xff] %v1360_v50 }
 0x15f   :  { %1465 = vst [vmem:[#allocation2 + $0x1f0] sm:$0xff] %v995_v53  ;;  %1537 = vst [vmem:[#allocation2 + $0x430] sm:$0xff] %v1355_v54  ;;  %v4745_v55 = vpop.f32.mrb[64].mxu0  ;;  %v4853_v56 = vpop.f32.mrb[64].mxu1 }
 0x160   :  { %v1010_v57 = vadd.f32 %v4745_v55, %v6078_v34  ;;  %v1370_v58 = vadd.f32 %v4853_v56, %v6078_v34  ;;  %v1004_v59 = vpop.f32.mrb[65].mxu0  ;;  %v1364_v60 = vpop.f32.mrb[65].mxu1 }
 0x161   :  { %v1005_v61 = vadd.f32 %v6078_v34, %v1004_v59  ;;  %v1365_v62 = vadd.f32 %v6078_v34, %v1364_v60 }
 0x162   :  { %1468 = vst [vmem:[#allocation2 + $0x208] sm:$0xff] %v1010_v57  ;;  %1540 = vst [vmem:[#allocation2 + $0x448] sm:$0xff] %v1370_v58 }
 0x163   :  { %1467 = vst [vmem:[#allocation2 + $0x200] sm:$0xff] %v1005_v61  ;;  %1539 = vst [vmem:[#allocation2 + $0x440] sm:$0xff] %v1365_v62  ;;  %v4748_v63 = vpop.f32.mrb[66].mxu0  ;;  %v4856_v0 = vpop.f32.mrb[66].mxu1 }
 0x164   :  { %v1020_v1 = vadd.f32 %v4748_v63, %v6078_v34  ;;  %v1380_v6 = vadd.f32 %v4856_v0, %v6078_v34  ;;  %v1014_v7 = vpop.f32.mrb[67].mxu0  ;;  %v1374_v8 = vpop.f32.mrb[67].mxu1 }
 0x165   :  { %v1015_v9 = vadd.f32 %v6078_v34, %v1014_v7  ;;  %v1375_v10 = vadd.f32 %v6078_v34, %v1374_v8 }
 0x166   :  { %1470 = vst [vmem:[#allocation2 + $0x218] sm:$0xff] %v1020_v1  ;;  %1542 = vst [vmem:[#allocation2 + $0x458] sm:$0xff] %v1380_v6 }
 0x167   :  { %1469 = vst [vmem:[#allocation2 + $0x210] sm:$0xff] %v1015_v9  ;;  %1541 = vst [vmem:[#allocation2 + $0x450] sm:$0xff] %v1375_v10  ;;  %v4751_v11 = vpop.f32.mrb[68].mxu0  ;;  %v4859_v12 = vpop.f32.mrb[68].mxu1 }
 0x168   :  { %v1030_v13 = vadd.f32 %v4751_v11, %v6078_v34  ;;  %v1390_v14 = vadd.f32 %v4859_v12, %v6078_v34  ;;  %v1024_v15 = vpop.f32.mrb[69].mxu0  ;;  %v1384_v16 = vpop.f32.mrb[69].mxu1 }
 0x169   :  { %v1025_v17 = vadd.f32 %v6078_v34, %v1024_v15  ;;  %v1385_v18 = vadd.f32 %v6078_v34, %v1384_v16 }
 0x16a   :  { %1472 = vst [vmem:[#allocation2 + $0x228] sm:$0xff] %v1030_v13  ;;  %1544 = vst [vmem:[#allocation2 + $0x468] sm:$0xff] %v1390_v14 }
 0x16b   :  { %1471 = vst [vmem:[#allocation2 + $0x220] sm:$0xff] %v1025_v17  ;;  %1543 = vst [vmem:[#allocation2 + $0x460] sm:$0xff] %v1385_v18  ;;  %v4754_v19 = vpop.f32.mrb[70].mxu0  ;;  %v4862_v20 = vpop.f32.mrb[70].mxu1 }
 0x16c   :  { %v1040_v21 = vadd.f32 %v4754_v19, %v6078_v34  ;;  %v1400_v22 = vadd.f32 %v4862_v20, %v6078_v34  ;;  %v1034_v23 = vpop.f32.mrb[71].mxu0  ;;  %v1394_v24 = vpop.f32.mrb[71].mxu1 }
 0x16d   :  { %v1035_v25 = vadd.f32 %v6078_v34, %v1034_v23  ;;  %v1395_v26 = vadd.f32 %v6078_v34, %v1394_v24 }
 0x16e   :  { %1474 = vst [vmem:[#allocation2 + $0x238] sm:$0xff] %v1040_v21  ;;  %1546 = vst [vmem:[#allocation2 + $0x478] sm:$0xff] %v1400_v22 }
 0x16f   :  { %1473 = vst [vmem:[#allocation2 + $0x230] sm:$0xff] %v1035_v25  ;;  %1545 = vst [vmem:[#allocation2 + $0x470] sm:$0xff] %v1395_v26 }
 0x170 LB: > { %v5184_v34 = vpack.c.bf16 %v5481_v3, %v5476_v2  ;;  %v5417_v29 = vmov 0.0|0.0   ;;  %v1559_v30 = vrot.slane %v5399_v28, 6  ;;  %v5187_v31 = vpack.c.bf16 %v5491_v5, %v5486_v4  ;;  %s5420_s3 = smov 32   ;;  %s4140_s30 = sshll.u32 %s5403_s0, 3  ;;  %s5403_s0 = sphi %s6228_s0, %s1552_s0   ;;  %v5399_v28 = vphi %v6226_v28, %v1981_v28   ;;  %v5395_v27 = vphi %v6224_v27, %v1975_v27  }
 0x171   : > { %5183 = vmatprep.subr.bf16.mxu0 %v5417_v29  ;;  %5189 = vmatprep.subr.bf16.mxu1 %v5417_v29  ;;  %vm5418_vm1 = vmmov 0   ;;  %v5419_v32 = vmov 0.0   ;;  %s1556_s8 = scalar_lea.vmem [#allocation2], %s4140_s30  ;;  %s5421_s9 = smov 64   ;;  %v1643_v46 = vrot.slane %v5395_v27, 6  ;;  %vm1982_vm2 = vcmask 1041408  }
 0x172   : > { %5185 = vmatpush3.bf16.msra.mxu0 %v5184_v34  ;;  %4871 = vmatprep.mubr.msk.f32.mxu0 %vm5418_vm1, %v5419_v32  ;;  %vm1984_vm3 = vcmask 1043456   ;;  %vm1986_vm4 = vcmask 1045504   ;;  %s1992_s12 = scalar_lea.vmem %s7124_s7, %s4140_s30  ;;  %s1552_s0 = sadd.s32 1, %s5403_s0  }
 0x173   : > { %5186 = vmatprep.subr.bf16.mxu0 %v5417_v29  ;;  %5191 = vmatpush3.bf16.msra.mxu1 %v5184_v34  ;;  %p1549_p0 = scmp.ge.s32.totalorder %s1552_s0, 144  }
 0x174   : > { %1560 = vrot.lane.b32.xlu0 %v1559_v30, %s5420_s3  ;;  %5192 = vmatprep.subr.bf16.mxu1 %v5417_v29  ;;  %v6312_v2 = vld [vmem:[%s7122_s5 + $0x10] sm:$0xff] (%p1549_p0)  ;;  %v6317_v3 = vld [vmem:[%s7122_s5 + $0x18] sm:$0xff] (%p1549_p0) }
 0x175   : > { %4882 = vmatprep.mubr.msk.f32.mxu1 %vm5418_vm1, %v5419_v32  ;;  %v1996_v5 = vld [vmem:[%s7121_s4 + $0x10] sm:$0xff] (%p1549_p0) }
 0x176   : > { %5188 = vmatpush3.bf16.msra.mxu0 %v5187_v31  ;;  %v6247_v35 = vld [vmem:[%s1556_s8] sm:$0xff] }
 0x177   : > { %5194 = vmatpush3.bf16.msra.mxu1 %v5187_v31  ;;  %5195 = vmatprep.subr.bf16.mxu0 %v5417_v29 }
 0x178   : > { %5201 = vmatprep.subr.bf16.mxu1 %v5417_v29 }
 0x1e6   : > { %v1561_v33 = vpop.permute.xlu0 %1560 }
 0x1e7   : > { %4872 = vmatmul.mubr.msk.f32.vlgmr.msra.gmra.mrb[0].mxu0 %vm185_vm0, %v1561_v33 }
 0x1e8   : > { %5197 = vmatpush3.bf16.msra.mxu0 %v5184_v34  ;;  %4893 = vmatprep.mubr.msk.f32.mxu0 %vm5418_vm1, %v5419_v32 }
 0x1e9   : > { %5198 = vmatprep.subr.bf16.mxu0 %v5417_v29 }
 0x1ec   : > { %5200 = vmatpush3.bf16.msra.mxu0 %v5187_v31 }
 0x2ba   : > { %v1630_v36 = vpop.f32.mrb[0].mxu0 }
 0x2bb   : > { %v1634_v37 = vadd.f32 %v1630_v36, %v6247_v35  ;;  %v4873_v38 = vpop.f32.mrb[1].mxu0 }
 0x2bd   : > { %5305 = vtanh.f32 %v1634_v37  ;;  %v4142_v40 = vmul.f32 -1.442695, %v1634_v37 }
 0x2bf   : > { %5307 = vpow2.f32 %v4142_v40 }
 0x2c7   : > { %v5306_v39 = vpop.eup %5305 }
 0x2c8   : > { %1647 = vrot.lane.b32.xlu0 %v5306_v39, %s5421_s9 }
 0x2c9   : > { %v5308_v41 = vpop.eup %5307 }
 0x2ca   : > { %v1638_v42 = vadd.f32 1.0, %v5308_v41 }
 0x2cc   : > { %5309 = vrcp.f32 %v1638_v42 }
 0x2d6   : > { %v5310_v43 = vpop.eup %5309 }
 0x2d7   : > { %v1645_v47 = vmul.f32 %v5310_v43, %v1643_v46 }
 0x33a   : > { %v1648_v44 = vpop.permute.xlu0 %1647 }
 0x33b   : > { %v1650_v45 = vmul.f32 %v5310_v43, %v1648_v44 }
 0x33d   : > { %1652 = vrot.lane.b32.xlu1 %v1650_v45, %s5420_s3 }
 0x3af   : > { %v1653_v48 = vpop.permute.xlu1 %1652 }
 0x3b0   : > { %v1655_v49 = vadd.f32 %v1653_v48, %v1645_v47 }
 0x3b2   : > { %5311 = vtanh.f32 %v1655_v49  ;;  %v1749_v1 = vrot.slane %v1655_v49, 6 }
 0x3bc   : > { %v5312_v50 = vpop.eup %5311 }
 0x3bd   : > { %1658 = vrot.lane.b32.xlu1 %v5312_v50, %s5421_s9 }
 0x42f   : > { %v1659_v51 = vpop.permute.xlu1 %1658 }
 0x430   : > { %v6253_v52 = vmul.f32 %v5310_v43, %v1659_v51 }
 0x432   : > { %1663 = vrot.lane.b32.xlu0 %v6253_v52, %s5420_s3 }
 0x4a4   : > { %v1664_v53 = vpop.permute.xlu0 %1663 }
 0x4a5   : > { %4883 = vmatmul.mubr.msk.f32.vlgmr.msra.gmra.mrb[0].mxu1 %vm185_vm0, %v1664_v53 }
 0x4a6   : > { %5203 = vmatpush3.bf16.msra.mxu1 %v5184_v34  ;;  %4904 = vmatprep.mubr.msk.f32.mxu1 %vm5418_vm1, %v5419_v32 }
 0x4a7   : > { %5204 = vmatprep.subr.bf16.mxu1 %v5417_v29 }
 0x4aa   : > { %5206 = vmatpush3.bf16.msra.mxu1 %v5187_v31 }
 0x578   : > { %v1733_v54 = vpop.f32.mrb[0].mxu1 }
 0x579   : > { %v1738_v55 = vrot.slane %v1733_v54, 6  ;;  %v4884_v56 = vpop.f32.mrb[1].mxu1  ;;  %v1994_v54 = vld [vmem:[%s7121_s4] sm:$0xff] (%p1549_p0) }
 0x57a   :  { %v6302_v56 = vld [vmem:[%s7122_s5] sm:$0xff] (%p1549_p0) }
 0x57b   : > { %v1740_v57 = vadd.f32 %v1738_v55, %v6247_v35  ;;  %v1995_v55 = vld [vmem:[%s7121_s4 + $0x8] sm:$0xff] (%p1549_p0) }
 0x57c   :  { %v5207_v4 = vpack.c.bf16 (%p1549_p0), %v1995_v55, %v1994_v54 }
 0x57d   : > { %5313 = vtanh.f32 %v1740_v57  ;;  %v4144_v59 = vmul.f32 -1.442695, %v1740_v57  ;;  %v6307_v57 = vld [vmem:[%s7122_s5 + $0x8] sm:$0xff] (%p1549_p0) }
 0x57e   :  { %5208 = vmatprep.subr.bf16.mxu0 (%p1549_p0), %v5207_v4  ;;  %5243 = vmatprep.subr.bf16.mxu1 (%p1549_p0), %v5207_v4 }
 0x57f   : > { %5315 = vpow2.f32 %v4144_v59 }
 0x587   : > { %v5314_v58 = vpop.eup %5313 }
 0x588   : > { %1753 = vrot.lane.b32.xlu1 %v5314_v58, %s5421_s9  ;;  %v1997_v58 = vld [vmem:[%s7121_s4 + $0x18] sm:$0xff] (%p1549_p0) }
 0x589   : > { %v5316_v60 = vpop.eup %5315  ;;  %v5211_v59 = vpack.c.bf16 (%p1549_p0), %v1997_v58, %v1996_v5 }
 0x58a   : > { %v1744_v61 = vadd.f32 1.0, %v5316_v60 }
 0x58c   : > { %5317 = vrcp.f32 %v1744_v61 }
 0x596   : > { %v5318_v62 = vpop.eup %5317 }
 0x597   : > { %v1751_v6 = vmul.f32 %v5318_v62, %v1749_v1 }
 0x5fa   : > { %v1754_v63 = vpop.permute.xlu1 %1753 }
 0x5fb   : > { %v1756_v0 = vmul.f32 %v5318_v62, %v1754_v63 }
 0x5fd   : > { %1758 = vrot.lane.b32.xlu0 %v1756_v0, %s5420_s3 }
 0x66f   : > { %v1759_v7 = vpop.permute.xlu0 %1758 }
 0x670   : > { %v1761_v8 = vadd.f32 %v1759_v7, %v1751_v6 }
 0x672   : > { %5319 = vtanh.f32 %v1761_v8  ;;  %v1856_v25 = vrot.slane %v1761_v8, 6 }
 0x67c   : > { %v5320_v9 = vpop.eup %5319 }
 0x67d   : > { %1764 = vrot.lane.b32.xlu1 %v5320_v9, %s5421_s9 }
 0x6ef   : > { %v1765_v10 = vpop.permute.xlu1 %1764 }
 0x6f0   : > { %v1767_v11 = vmul.f32 %v5318_v62, %v1765_v10 }
 0x6f2   : > { %v1769_v12 = vrot.slane %v1767_v11, 2  ;;  %v1983_v31 = vsel %vm1982_vm2, %v6253_v52, %v1767_v11 }
 0x6f4   : > { %1770 = vrot.lane.b32.xlu0 %v1769_v12, %s5420_s3 }
 0x766   : > { %v1771_v13 = vpop.permute.xlu0 %1770 }
 0x767   : > { %4894 = vmatmul.mubr.msk.f32.vlgmr.msra.gmra.mrb[2].mxu0 %vm185_vm0, %v1771_v13 }
 0x768   :  { %5210 = vmatpush3.bf16.msra.mxu0 (%p1549_p0), %v5207_v4 }
 0x769   :  { %5212 = vmatprep.subr.bf16.mxu0 (%p1549_p0), %v5211_v59 }
 0x76c   :  { %5214 = vmatpush3.bf16.msra.mxu0 (%p1549_p0), %v5211_v59 }
 0x83a   : > { %v1840_v14 = vpop.f32.mrb[2].mxu0 }
 0x83b   : > { %v1845_v15 = vrot.slane %v1840_v14, 4  ;;  %v4895_v16 = vpop.f32.mrb[3].mxu0 }
 0x83d   : > { %v1847_v17 = vadd.f32 %v1845_v15, %v6247_v35 }
 0x83f   : > { %5321 = vtanh.f32 %v1847_v17  ;;  %v4146_v19 = vmul.f32 -1.442695, %v1847_v17 }
 0x841   : > { %5323 = vpow2.f32 %v4146_v19 }
 0x849   : > { %v5322_v18 = vpop.eup %5321 }
 0x84a   : > { %1860 = vrot.lane.b32.xlu1 %v5322_v18, %s5421_s9 }
 0x84b   : > { %v5324_v20 = vpop.eup %5323 }
 0x84c   : > { %v1851_v21 = vadd.f32 1.0, %v5324_v20 }
 0x84e   : > { %5325 = vrcp.f32 %v1851_v21 }
 0x858   : > { %v5326_v22 = vpop.eup %5325 }
 0x859   : > { %v1858_v26 = vmul.f32 %v5326_v22, %v1856_v25 }
 0x8bc   : > { %v1861_v23 = vpop.permute.xlu1 %1860 }
 0x8bd   : > { %v1863_v24 = vmul.f32 %v5326_v22, %v1861_v23 }
 0x8bf   : > { %1865 = vrot.lane.b32.xlu0 %v1863_v24, %s5420_s3 }
 0x931   : > { %v1866_v27 = vpop.permute.xlu0 %1865 }
 0x932   : > { %v1868_v28 = vadd.f32 %v1866_v27, %v1858_v26 }
 0x934   : > { %5327 = vtanh.f32 %v1868_v28  ;;  %v1963_v48 = vrot.slane %v1868_v28, 6 }
 0x93e   : > { %v5328_v34 = vpop.eup %5327 }
 0x93f   : > { %1871 = vrot.lane.b32.xlu1 %v5328_v34, %s5421_s9 }
 0x9b1   : > { %v1872_v29 = vpop.permute.xlu1 %1871 }
 0x9b2   : > { %v1874_v30 = vmul.f32 %v5326_v22, %v1872_v29 }
 0x9b4   : > { %v1876_v32 = vrot.slane %v1874_v30, 4  ;;  %v1985_v33 = vsel %vm1984_vm3, %v1983_v31, %v1874_v30 }
 0x9b6   : > { %1877 = vrot.lane.b32.xlu0 %v1876_v32, %s5420_s3 }
 0xa28   : > { %v1878_v36 = vpop.permute.xlu0 %1877 }
 0xa29   : > { %4905 = vmatmul.mubr.msk.f32.vlgmr.msra.gmra.mrb[2].mxu1 %vm185_vm0, %v1878_v36 }
 0xa2a   :  { %5245 = vmatpush3.bf16.msra.mxu1 (%p1549_p0), %v5207_v4 }
 0xa2b   :  { %5244 = vmatprep.subr.bf16.mxu1 (%p1549_p0), %v5211_v59 }
 0xa2e   :  { %5246 = vmatpush3.bf16.msra.mxu1 (%p1549_p0), %v5211_v59 }
 0xafc   : > { %v1947_v37 = vpop.f32.mrb[2].mxu1 }
 0xafd   : > { %v1952_v38 = vrot.slane %v1947_v37, 2  ;;  %v4906_v39 = vpop.f32.mrb[3].mxu1 }
 0xaff   : > { %v1954_v40 = vadd.f32 %v1952_v38, %v6247_v35 }
 0xb01   : > { %5329 = vtanh.f32 %v1954_v40  ;;  %v4148_v42 = vmul.f32 -1.442695, %v1954_v40 }
 0xb03   : > { %5331 = vpow2.f32 %v4148_v42 }
 0xb0b   : > { %v5330_v41 = vpop.eup %5329 }
 0xb0c   : > { %1967 = vrot.lane.b32.xlu1 %v5330_v41, %s5421_s9 }
 0xb0d   : > { %v5332_v43 = vpop.eup %5331 }
 0xb0e   : > { %v1958_v44 = vadd.f32 1.0, %v5332_v43 }
 0xb10   : > { %5333 = vrcp.f32 %v1958_v44 }
 0xb1a   : > { %v5334_v45 = vpop.eup %5333 }
 0xb1b   : > { %v1965_v49 = vmul.f32 %v5334_v45, %v1963_v48 }
 0xb7e   : > { %v1968_v46 = vpop.permute.xlu1 %1967 }
 0xb7f   : > { %v1970_v47 = vmul.f32 %v5334_v45, %v1968_v46 }
 0xb81   : > { %1972 = vrot.lane.b32.xlu0 %v1970_v47, %s5420_s3 }
 0xbf3   : > { %v1973_v50 = vpop.permute.xlu0 %1972 }
 0xbf4   : > { %v1975_v27 = vadd.f32 %v1973_v50, %v1965_v49  }
 0xbf6   : > { %5335 = vtanh.f32 %v1975_v27 }
 0xc00   : > { %v5336_v35 = vpop.eup %5335 }
 0xc01   : > { %1978 = vrot.lane.b32.xlu1 %v5336_v35, %s5421_s9 }
 0xc73   : > { %v1979_v51 = vpop.permute.xlu1 %1978 }
 0xc74   : > { %v1981_v28 = vmul.f32 %v5334_v45, %v1979_v51  }
 0xc76   : > { %v1987_v52 = vsel %vm1986_vm4, %v1985_v33, %v1981_v28 }
 0xc77   : > { %1989 = vrot.lane.b32.xlu0 %v1987_v52, %s5420_s3 }
 0xce4   :  { %1551 = sbr.rel (!%p1549_p0) target bundleno = 368 (0x170), region = 66 }
 0xce9   : > { %v1990_v53 = vpop.permute.xlu0 %1989 }
 0xcea   : > { %1993 = vst.msk [vmem:[%s1992_s12] sm:$0xff] %vm185_vm0, %v1990_v53 }
 0xcf1   :  { %v2003_v60 = vld [vmem:[%s7124_s7] sm:$0xff]  ;;  %v2004_v62 = vld [vmem:[%s7124_s7 + $0x8] sm:$0xff]  ;;  %v2005_v0 = vld [vmem:[%s7124_s7 + $0x10] sm:$0xff] }
 0xcf2   :  { %v2075_v61 = vld [vmem:[%s7124_s7 + $0x240] sm:$0xff]  ;;  %4915 = vmatprep.mubr.msk.f32.mxu0 %vm185_vm0, %v2003_v60  ;;  %v2076_v63 = vld [vmem:[%s7124_s7 + $0x248] sm:$0xff]  ;;  %v2077_v1 = vld [vmem:[%s7124_s7 + $0x250] sm:$0xff] }
 0xcf3   :  { %5023 = vmatprep.mubr.msk.f32.mxu1 %vm185_vm0, %v2075_v61  ;;  %4916 = vmatmul.mubr.msk.f32.vlgmr.msra.gmra.mrb[0].mxu0 %vm185_vm0, %v2004_v62  ;;  %v2006_v6 = vld [vmem:[%s7124_s7 + $0x18] sm:$0xff]  ;;  %v2007_v8 = vld [vmem:[%s7124_s7 + $0x20] sm:$0xff]  ;;  %v2008_v10 = vld [vmem:[%s7124_s7 + $0x28] sm:$0xff] }
 0xcf4   :  { %5024 = vmatmul.mubr.msk.f32.vlgmr.msra.gmra.mrb[0].mxu1 %vm185_vm0, %v2076_v63  ;;  %4918 = vmatprep.mubr.msk.f32.mxu0 %vm185_vm0, %v2005_v0  ;;  %v2078_v7 = vld [vmem:[%s7124_s7 + $0x258] sm:$0xff]  ;;  %v2079_v9 = vld [vmem:[%s7124_s7 + $0x260] sm:$0xff]  ;;  %v2080_v11 = vld [vmem:[%s7124_s7 + $0x268] sm:$0xff] }
 0xcf5   :  { %5026 = vmatprep.mubr.msk.f32.mxu1 %vm185_vm0, %v2077_v1  ;;  %v2009_v12 = vld [vmem:[%s7124_s7 + $0x30] sm:$0xff]  ;;  %v2010_v14 = vld [vmem:[%s7124_s7 + $0x38] sm:$0xff]  ;;  %v2011_v16 = vld [vmem:[%s7124_s7 + $0x40] sm:$0xff] }
 0xcf6   :  { %v2081_v13 = vld [vmem:[%s7124_s7 + $0x270] sm:$0xff]  ;;  %v2082_v15 = vld [vmem:[%s7124_s7 + $0x278] sm:$0xff]  ;;  %v2083_v17 = vld [vmem:[%s7124_s7 + $0x280] sm:$0xff] }
 0xcf7   :  { %4919 = vmatmul.mubr.msk.f32.gmra.mrb[2].mxu0 %vm185_vm0, %v2006_v6  ;;  %v2012_v18 = vld [vmem:[%s7124_s7 + $0x48] sm:$0xff]  ;;  %v2013_v20 = vld [vmem:[%s7124_s7 + $0x50] sm:$0xff]  ;;  %v2014_v22 = vld [vmem:[%s7124_s7 + $0x58] sm:$0xff] }
 0xcf8   :  { %5027 = vmatmul.mubr.msk.f32.gmra.mrb[2].mxu1 %vm185_vm0, %v2078_v7  ;;  %4921 = vmatprep.mubr.msk.f32.mxu0 %vm185_vm0, %v2007_v8  ;;  %v2084_v19 = vld [vmem:[%s7124_s7 + $0x288] sm:$0xff]  ;;  %v2085_v21 = vld [vmem:[%s7124_s7 + $0x290] sm:$0xff]  ;;  %v2086_v23 = vld [vmem:[%s7124_s7 + $0x298] sm:$0xff] }
 0xcf9   :  { %5029 = vmatprep.mubr.msk.f32.mxu1 %vm185_vm0, %v2079_v9  ;;  %v2015_v24 = vld [vmem:[%s7124_s7 + $0x60] sm:$0xff]  ;;  %v2016_v26 = vld [vmem:[%s7124_s7 + $0x68] sm:$0xff]  ;;  %v2017_v28 = vld [vmem:[%s7124_s7 + $0x70] sm:$0xff] }
 0xcfa   :  { %v2087_v25 = vld [vmem:[%s7124_s7 + $0x2a0] sm:$0xff]  ;;  %v2088_v27 = vld [vmem:[%s7124_s7 + $0x2a8] sm:$0xff]  ;;  %v2089_v34 = vld [vmem:[%s7124_s7 + $0x2b0] sm:$0xff] }
 0xcfb   :  { %4922 = vmatmul.mubr.msk.f32.gmra.mrb[4].mxu0 %vm185_vm0, %v2008_v10  ;;  %v2018_v29 = vld [vmem:[%s7124_s7 + $0x78] sm:$0xff]  ;;  %v2019_v31 = vld [vmem:[%s7124_s7 + $0x80] sm:$0xff]  ;;  %v2020_v33 = vld [vmem:[%s7124_s7 + $0x88] sm:$0xff] }
 0xcfc   :  { %5030 = vmatmul.mubr.msk.f32.gmra.mrb[4].mxu1 %vm185_vm0, %v2080_v11  ;;  %4924 = vmatprep.mubr.msk.f32.mxu0 %vm185_vm0, %v2009_v12  ;;  %v2090_v30 = vld [vmem:[%s7124_s7 + $0x2b8] sm:$0xff]  ;;  %v2091_v32 = vld [vmem:[%s7124_s7 + $0x2c0] sm:$0xff]  ;;  %v2092_v36 = vld [vmem:[%s7124_s7 + $0x2c8] sm:$0xff] }
 0xcfd   :  { %5032 = vmatprep.mubr.msk.f32.mxu1 %vm185_vm0, %v2081_v13  ;;  %v2021_v37 = vld [vmem:[%s7124_s7 + $0x90] sm:$0xff]  ;;  %v2022_v39 = vld [vmem:[%s7124_s7 + $0x98] sm:$0xff]  ;;  %v2023_v41 = vld [vmem:[%s7124_s7 + $0xa0] sm:$0xff] }
 0xcfe   :  { %v2093_v38 = vld [vmem:[%s7124_s7 + $0x2d0] sm:$0xff]  ;;  %v2094_v40 = vld [vmem:[%s7124_s7 + $0x2d8] sm:$0xff]  ;;  %v2095_v42 = vld [vmem:[%s7124_s7 + $0x2e0] sm:$0xff] }
 0xcff   :  { %4925 = vmatmul.mubr.msk.f32.gmra.mrb[6].mxu0 %vm185_vm0, %v2010_v14  ;;  %v2024_v43 = vld [vmem:[%s7124_s7 + $0xa8] sm:$0xff]  ;;  %v2025_v45 = vld [vmem:[%s7124_s7 + $0xb0] sm:$0xff]  ;;  %v2026_v47 = vld [vmem:[%s7124_s7 + $0xb8] sm:$0xff] }
 0xd00   :  { %5033 = vmatmul.mubr.msk.f32.gmra.mrb[6].mxu1 %vm185_vm0, %v2082_v15  ;;  %4927 = vmatprep.mubr.msk.f32.mxu0 %vm185_vm0, %v2011_v16  ;;  %v2096_v44 = vld [vmem:[%s7124_s7 + $0x2e8] sm:$0xff]  ;;  %v2097_v46 = vld [vmem:[%s7124_s7 + $0x2f0] sm:$0xff]  ;;  %v2098_v48 = vld [vmem:[%s7124_s7 + $0x2f8] sm:$0xff] }
 0xd01   :  { %5035 = vmatprep.mubr.msk.f32.mxu1 %vm185_vm0, %v2083_v17  ;;  %v2027_v49 = vld [vmem:[%s7124_s7 + $0xc0] sm:$0xff]  ;;  %v2028_v35 = vld [vmem:[%s7124_s7 + $0xc8] sm:$0xff]  ;;  %v2029_v52 = vld [vmem:[%s7124_s7 + $0xd0] sm:$0xff] }
 0xd02   :  { %v2099_v50 = vld [vmem:[%s7124_s7 + $0x300] sm:$0xff]  ;;  %v2100_v51 = vld [vmem:[%s7124_s7 + $0x308] sm:$0xff]  ;;  %v2101_v53 = vld [vmem:[%s7124_s7 + $0x310] sm:$0xff] }
 0xd03   :  { %4928 = vmatmul.mubr.msk.f32.gmra.mrb[8].mxu0 %vm185_vm0, %v2012_v18  ;;  %v2030_v54 = vld [vmem:[%s7124_s7 + $0xd8] sm:$0xff]  ;;  %v2031_v4 = vld [vmem:[%s7124_s7 + $0xe0] sm:$0xff]  ;;  %v2032_v58 = vld [vmem:[%s7124_s7 + $0xe8] sm:$0xff] }
 0xd04   :  { %5036 = vmatmul.mubr.msk.f32.gmra.mrb[8].mxu1 %vm185_vm0, %v2084_v19  ;;  %4930 = vmatprep.mubr.msk.f32.mxu0 %vm185_vm0, %v2013_v20  ;;  %v2102_v55 = vld [vmem:[%s7124_s7 + $0x318] sm:$0xff]  ;;  %v2103_v5 = vld [vmem:[%s7124_s7 + $0x320] sm:$0xff]  ;;  %v2104_v59 = vld [vmem:[%s7124_s7 + $0x328] sm:$0xff] }
 0xd05   :  { %5038 = vmatprep.mubr.msk.f32.mxu1 %vm185_vm0, %v2085_v21  ;;  %v2033_v60 = vld [vmem:[%s7124_s7 + $0xf0] sm:$0xff]  ;;  %v2034_v62 = vld [vmem:[%s7124_s7 + $0xf8] sm:$0xff]  ;;  %v2035_v0 = vld [vmem:[%s7124_s7 + $0x100] sm:$0xff] }
 0xd06   :  { %v2105_v61 = vld [vmem:[%s7124_s7 + $0x330] sm:$0xff]  ;;  %v2106_v63 = vld [vmem:[%s7124_s7 + $0x338] sm:$0xff]  ;;  %v2107_v1 = vld [vmem:[%s7124_s7 + $0x340] sm:$0xff] }
 0xd07   :  { %4931 = vmatmul.mubr.msk.f32.gmra.mrb[10].mxu0 %vm185_vm0, %v2014_v22  ;;  %v2036_v6 = vld [vmem:[%s7124_s7 + $0x108] sm:$0xff]  ;;  %v2037_v8 = vld [vmem:[%s7124_s7 + $0x110] sm:$0xff]  ;;  %v2038_v10 = vld [vmem:[%s7124_s7 + $0x118] sm:$0xff] }
 0xd08   :  { %5039 = vmatmul.mubr.msk.f32.gmra.mrb[10].mxu1 %vm185_vm0, %v2086_v23  ;;  %4933 = vmatprep.mubr.msk.f32.mxu0 %vm185_vm0, %v2015_v24  ;;  %v2108_v7 = vld [vmem:[%s7124_s7 + $0x348] sm:$0xff]  ;;  %v2109_v9 = vld [vmem:[%s7124_s7 + $0x350] sm:$0xff]  ;;  %v2110_v11 = vld [vmem:[%s7124_s7 + $0x358] sm:$0xff] }
 0xd09   :  { %5041 = vmatprep.mubr.msk.f32.mxu1 %vm185_vm0, %v2087_v25  ;;  %v2039_v12 = vld [vmem:[%s7124_s7 + $0x120] sm:$0xff]  ;;  %v2040_v14 = vld [vmem:[%s7124_s7 + $0x128] sm:$0xff]  ;;  %v2041_v16 = vld [vmem:[%s7124_s7 + $0x130] sm:$0xff] }
 0xd0a   :  { %v2111_v13 = vld [vmem:[%s7124_s7 + $0x360] sm:$0xff]  ;;  %v2112_v15 = vld [vmem:[%s7124_s7 + $0x368] sm:$0xff]  ;;  %v2113_v17 = vld [vmem:[%s7124_s7 + $0x370] sm:$0xff] }
 0xd0b   :  { %4934 = vmatmul.mubr.msk.f32.gmra.mrb[12].mxu0 %vm185_vm0, %v2016_v26  ;;  %v2042_v18 = vld [vmem:[%s7124_s7 + $0x138] sm:$0xff]  ;;  %v2043_v20 = vld [vmem:[%s7124_s7 + $0x140] sm:$0xff]  ;;  %v2044_v22 = vld [vmem:[%s7124_s7 + $0x148] sm:$0xff] }
 0xd0c   :  { %5042 = vmatmul.mubr.msk.f32.gmra.mrb[12].mxu1 %vm185_vm0, %v2088_v27  ;;  %4936 = vmatprep.mubr.msk.f32.mxu0 %vm185_vm0, %v2017_v28  ;;  %v2114_v19 = vld [vmem:[%s7124_s7 + $0x378] sm:$0xff]  ;;  %v2115_v21 = vld [vmem:[%s7124_s7 + $0x380] sm:$0xff]  ;;  %v2116_v23 = vld [vmem:[%s7124_s7 + $0x388] sm:$0xff] }
 0xd0d   :  { %5044 = vmatprep.mubr.msk.f32.mxu1 %vm185_vm0, %v2089_v34  ;;  %v2045_v24 = vld [vmem:[%s7124_s7 + $0x150] sm:$0xff]  ;;  %v2046_v26 = vld [vmem:[%s7124_s7 + $0x158] sm:$0xff]  ;;  %v2047_v28 = vld [vmem:[%s7124_s7 + $0x160] sm:$0xff] }
 0xd0e   :  { %v2117_v25 = vld [vmem:[%s7124_s7 + $0x390] sm:$0xff]  ;;  %v2118_v27 = vld [vmem:[%s7124_s7 + $0x398] sm:$0xff]  ;;  %v2119_v34 = vld [vmem:[%s7124_s7 + $0x3a0] sm:$0xff] }
 0xd0f   :  { %4937 = vmatmul.mubr.msk.f32.gmra.mrb[14].mxu0 %vm185_vm0, %v2018_v29  ;;  %v2048_v29 = vld [vmem:[%s7124_s7 + $0x168] sm:$0xff] }
 0xd10   :  { %5045 = vmatmul.mubr.msk.f32.gmra.mrb[14].mxu1 %vm185_vm0, %v2090_v30  ;;  %4939 = vmatprep.mubr.msk.f32.mxu0 %vm185_vm0, %v2019_v31  ;;  %v2120_v30 = vld [vmem:[%s7124_s7 + $0x3a8] sm:$0xff]  ;;  %v2049_v31 = vld [vmem:[%s7124_s7 + $0x170] sm:$0xff] }
 0xd11   :  { %5047 = vmatprep.mubr.msk.f32.mxu1 %vm185_vm0, %v2091_v32  ;;  %v2121_v32 = vld [vmem:[%s7124_s7 + $0x3b0] sm:$0xff] }
 0xd13   :  { %4940 = vmatmul.mubr.msk.f32.gmra.mrb[16].mxu0 %vm185_vm0, %v2020_v33  ;;  %v2050_v33 = vld [vmem:[%s7124_s7 + $0x178] sm:$0xff] }
 0xd14   :  { %5048 = vmatmul.mubr.msk.f32.gmra.mrb[16].mxu1 %vm185_vm0, %v2092_v36  ;;  %4942 = vmatprep.mubr.msk.f32.mxu0 %vm185_vm0, %v2021_v37  ;;  %v2122_v36 = vld [vmem:[%s7124_s7 + $0x3b8] sm:$0xff]  ;;  %v2051_v37 = vld [vmem:[%s7124_s7 + $0x180] sm:$0xff] }
 0xd15   :  { %5050 = vmatprep.mubr.msk.f32.mxu1 %vm185_vm0, %v2093_v38  ;;  %v2123_v38 = vld [vmem:[%s7124_s7 + $0x3c0] sm:$0xff] }
 0xd17   :  { %4943 = vmatmul.mubr.msk.f32.gmra.mrb[18].mxu0 %vm185_vm0, %v2022_v39  ;;  %v2052_v39 = vld [vmem:[%s7124_s7 + $0x188] sm:$0xff] }
 0xd18   :  { %5051 = vmatmul.mubr.msk.f32.gmra.mrb[18].mxu1 %vm185_vm0, %v2094_v40  ;;  %4945 = vmatprep.mubr.msk.f32.mxu0 %vm185_vm0, %v2023_v41  ;;  %v2124_v40 = vld [vmem:[%s7124_s7 + $0x3c8] sm:$0xff]  ;;  %v2053_v41 = vld [vmem:[%s7124_s7 + $0x190] sm:$0xff] }
 0xd19   :  { %5053 = vmatprep.mubr.msk.f32.mxu1 %vm185_vm0, %v2095_v42  ;;  %v2125_v42 = vld [vmem:[%s7124_s7 + $0x3d0] sm:$0xff] }
 0xd1b   :  { %4946 = vmatmul.mubr.msk.f32.gmra.mrb[20].mxu0 %vm185_vm0, %v2024_v43  ;;  %v2054_v43 = vld [vmem:[%s7124_s7 + $0x198] sm:$0xff] }
 0xd1c   :  { %5054 = vmatmul.mubr.msk.f32.gmra.mrb[20].mxu1 %vm185_vm0, %v2096_v44  ;;  %4948 = vmatprep.mubr.msk.f32.mxu0 %vm185_vm0, %v2025_v45  ;;  %v2126_v44 = vld [vmem:[%s7124_s7 + $0x3d8] sm:$0xff]  ;;  %v2055_v45 = vld [vmem:[%s7124_s7 + $0x1a0] sm:$0xff] }
 0xd1d   :  { %5056 = vmatprep.mubr.msk.f32.mxu1 %vm185_vm0, %v2097_v46  ;;  %v2127_v46 = vld [vmem:[%s7124_s7 + $0x3e0] sm:$0xff] }
 0xd1f   :  { %4949 = vmatmul.mubr.msk.f32.gmra.mrb[22].mxu0 %vm185_vm0, %v2026_v47  ;;  %v2056_v47 = vld [vmem:[%s7124_s7 + $0x1a8] sm:$0xff] }
 0xd20   :  { %5057 = vmatmul.mubr.msk.f32.gmra.mrb[22].mxu1 %vm185_vm0, %v2098_v48  ;;  %4951 = vmatprep.mubr.msk.f32.mxu0 %vm185_vm0, %v2027_v49  ;;  %v2128_v48 = vld [vmem:[%s7124_s7 + $0x3e8] sm:$0xff]  ;;  %v2057_v49 = vld [vmem:[%s7124_s7 + $0x1b0] sm:$0xff] }
 0xd21   :  { %5059 = vmatprep.mubr.msk.f32.mxu1 %vm185_vm0, %v2099_v50  ;;  %v2129_v50 = vld [vmem:[%s7124_s7 + $0x3f0] sm:$0xff] }
 0xd23   :  { %4952 = vmatmul.mubr.msk.f32.gmra.mrb[24].mxu0 %vm185_vm0, %v2028_v35  ;;  %v2058_v35 = vld [vmem:[%s7124_s7 + $0x1b8] sm:$0xff] }
 0xd24   :  { %5060 = vmatmul.mubr.msk.f32.gmra.mrb[24].mxu1 %vm185_vm0, %v2100_v51  ;;  %4954 = vmatprep.mubr.msk.f32.mxu0 %vm185_vm0, %v2029_v52  ;;  %v2130_v51 = vld [vmem:[%s7124_s7 + $0x3f8] sm:$0xff]  ;;  %v2059_v52 = vld [vmem:[%s7124_s7 + $0x1c0] sm:$0xff] }
 0xd25   :  { %5062 = vmatprep.mubr.msk.f32.mxu1 %vm185_vm0, %v2101_v53  ;;  %v2131_v53 = vld [vmem:[%s7124_s7 + $0x400] sm:$0xff] }
 0xd27   :  { %4955 = vmatmul.mubr.msk.f32.gmra.mrb[26].mxu0 %vm185_vm0, %v2030_v54  ;;  %v2060_v54 = vld [vmem:[%s7124_s7 + $0x1c8] sm:$0xff] }
 0xd28   :  { %5063 = vmatmul.mubr.msk.f32.gmra.mrb[26].mxu1 %vm185_vm0, %v2102_v55  ;;  %4957 = vmatprep.mubr.msk.f32.mxu0 %vm185_vm0, %v2031_v4  ;;  %v2132_v55 = vld [vmem:[%s7124_s7 + $0x408] sm:$0xff]  ;;  %v2061_v4 = vld [vmem:[%s7124_s7 + $0x1d0] sm:$0xff] }
 0xd29   :  { %5065 = vmatprep.mubr.msk.f32.mxu1 %vm185_vm0, %v2103_v5  ;;  %v2133_v5 = vld [vmem:[%s7124_s7 + $0x410] sm:$0xff] }
 0xd2b   :  { %4958 = vmatmul.mubr.msk.f32.gmra.mrb[28].mxu0 %vm185_vm0, %v2032_v58  ;;  %v2062_v58 = vld [vmem:[%s7124_s7 + $0x1d8] sm:$0xff] }
 0xd2c   :  { %5066 = vmatmul.mubr.msk.f32.gmra.mrb[28].mxu1 %vm185_vm0, %v2104_v59  ;;  %4960 = vmatprep.mubr.msk.f32.mxu0 %vm185_vm0, %v2033_v60  ;;  %v2134_v59 = vld [vmem:[%s7124_s7 + $0x418] sm:$0xff]  ;;  %v2063_v60 = vld [vmem:[%s7124_s7 + $0x1e0] sm:$0xff] }
 0xd2d   :  { %5068 = vmatprep.mubr.msk.f32.mxu1 %vm185_vm0, %v2105_v61  ;;  %v2135_v61 = vld [vmem:[%s7124_s7 + $0x420] sm:$0xff] }
 0xd2f   :  { %4961 = vmatmul.mubr.msk.f32.gmra.mrb[30].mxu0 %vm185_vm0, %v2034_v62  ;;  %v2064_v62 = vld [vmem:[%s7124_s7 + $0x1e8] sm:$0xff] }
 0xd30   :  { %5069 = vmatmul.mubr.msk.f32.gmra.mrb[30].mxu1 %vm185_vm0, %v2106_v63  ;;  %4963 = vmatprep.mubr.msk.f32.mxu0 %vm185_vm0, %v2035_v0  ;;  %v2136_v63 = vld [vmem:[%s7124_s7 + $0x428] sm:$0xff]  ;;  %v2065_v0 = vld [vmem:[%s7124_s7 + $0x1f0] sm:$0xff] }
 0xd31   :  { %5071 = vmatprep.mubr.msk.f32.mxu1 %vm185_vm0, %v2107_v1  ;;  %v2137_v1 = vld [vmem:[%s7124_s7 + $0x430] sm:$0xff] }
 0xd33   :  { %4964 = vmatmul.mubr.msk.f32.gmra.mrb[32].mxu0 %vm185_vm0, %v2036_v6  ;;  %v2066_v6 = vld [vmem:[%s7124_s7 + $0x1f8] sm:$0xff] }
 0xd34   :  { %5072 = vmatmul.mubr.msk.f32.gmra.mrb[32].mxu1 %vm185_vm0, %v2108_v7  ;;  %4966 = vmatprep.mubr.msk.f32.mxu0 %vm185_vm0, %v2037_v8  ;;  %v2138_v7 = vld [vmem:[%s7124_s7 + $0x438] sm:$0xff]  ;;  %v2067_v8 = vld [vmem:[%s7124_s7 + $0x200] sm:$0xff] }
 0xd35   :  { %5074 = vmatprep.mubr.msk.f32.mxu1 %vm185_vm0, %v2109_v9  ;;  %v2139_v9 = vld [vmem:[%s7124_s7 + $0x440] sm:$0xff] }
 0xd37   :  { %4967 = vmatmul.mubr.msk.f32.gmra.mrb[34].mxu0 %vm185_vm0, %v2038_v10  ;;  %v2068_v10 = vld [vmem:[%s7124_s7 + $0x208] sm:$0xff] }
 0xd38   :  { %5075 = vmatmul.mubr.msk.f32.gmra.mrb[34].mxu1 %vm185_vm0, %v2110_v11  ;;  %4969 = vmatprep.mubr.msk.f32.mxu0 %vm185_vm0, %v2039_v12  ;;  %v2140_v11 = vld [vmem:[%s7124_s7 + $0x448] sm:$0xff]  ;;  %v2069_v12 = vld [vmem:[%s7124_s7 + $0x210] sm:$0xff] }
 0xd39   :  { %5077 = vmatprep.mubr.msk.f32.mxu1 %vm185_vm0, %v2111_v13  ;;  %v2141_v13 = vld [vmem:[%s7124_s7 + $0x450] sm:$0xff] }
 0xd3b   :  { %4970 = vmatmul.mubr.msk.f32.gmra.mrb[36].mxu0 %vm185_vm0, %v2040_v14  ;;  %v2070_v14 = vld [vmem:[%s7124_s7 + $0x218] sm:$0xff] }
 0xd3c   :  { %5078 = vmatmul.mubr.msk.f32.gmra.mrb[36].mxu1 %vm185_vm0, %v2112_v15  ;;  %4972 = vmatprep.mubr.msk.f32.mxu0 %vm185_vm0, %v2041_v16  ;;  %v2142_v15 = vld [vmem:[%s7124_s7 + $0x458] sm:$0xff]  ;;  %v2071_v16 = vld [vmem:[%s7124_s7 + $0x220] sm:$0xff] }
 0xd3d   :  { %5080 = vmatprep.mubr.msk.f32.mxu1 %vm185_vm0, %v2113_v17  ;;  %v2143_v17 = vld [vmem:[%s7124_s7 + $0x460] sm:$0xff] }
 0xd3f   :  { %4973 = vmatmul.mubr.msk.f32.gmra.mrb[38].mxu0 %vm185_vm0, %v2042_v18  ;;  %v2072_v18 = vld [vmem:[%s7124_s7 + $0x228] sm:$0xff] }
 0xd40   :  { %5081 = vmatmul.mubr.msk.f32.gmra.mrb[38].mxu1 %vm185_vm0, %v2114_v19  ;;  %4975 = vmatprep.mubr.msk.f32.mxu0 %vm185_vm0, %v2043_v20  ;;  %v2144_v19 = vld [vmem:[%s7124_s7 + $0x468] sm:$0xff]  ;;  %v2073_v20 = vld [vmem:[%s7124_s7 + $0x230] sm:$0xff] }
 0xd41   :  { %5083 = vmatprep.mubr.msk.f32.mxu1 %vm185_vm0, %v2115_v21  ;;  %v2145_v21 = vld [vmem:[%s7124_s7 + $0x470] sm:$0xff] }
 0xd43   :  { %4976 = vmatmul.mubr.msk.f32.gmra.mrb[40].mxu0 %vm185_vm0, %v2044_v22  ;;  %v2074_v22 = vld [vmem:[%s7124_s7 + $0x238] sm:$0xff] }
 0xd44   :  { %5084 = vmatmul.mubr.msk.f32.gmra.mrb[40].mxu1 %vm185_vm0, %v2116_v23  ;;  %4978 = vmatprep.mubr.msk.f32.mxu0 %vm185_vm0, %v2045_v24  ;;  %v2146_v23 = vld [vmem:[%s7124_s7 + $0x478] sm:$0xff]  ;;  %v6904_v24 = vld [vmem:[%s7123_s6] ss:$0 sm:$0xff]  ;;  %s7054_s6 = smov 0  }
 0xd45   :  { %5086 = vmatprep.mubr.msk.f32.mxu1 %vm185_vm0, %v2117_v25 }
 0xd47   :  { %4979 = vmatmul.mubr.msk.f32.gmra.mrb[42].mxu0 %vm185_vm0, %v2046_v26 }
 0xd48   :  { %5087 = vmatmul.mubr.msk.f32.gmra.mrb[42].mxu1 %vm185_vm0, %v2118_v27  ;;  %4981 = vmatprep.mubr.msk.f32.mxu0 %vm185_vm0, %v2047_v28 }
 0xd49   :  { %5089 = vmatprep.mubr.msk.f32.mxu1 %vm185_vm0, %v2119_v34 }
 0xd4b   :  { %4982 = vmatmul.mubr.msk.f32.gmra.mrb[44].mxu0 %vm185_vm0, %v2048_v29 }
 0xd4c   :  { %5090 = vmatmul.mubr.msk.f32.gmra.mrb[44].mxu1 %vm185_vm0, %v2120_v30  ;;  %4984 = vmatprep.mubr.msk.f32.mxu0 %vm185_vm0, %v2049_v31 }
 0xd4d   :  { %5092 = vmatprep.mubr.msk.f32.mxu1 %vm185_vm0, %v2121_v32 }
 0xd4f   :  { %4985 = vmatmul.mubr.msk.f32.gmra.mrb[46].mxu0 %vm185_vm0, %v2050_v33 }
 0xd50   :  { %5093 = vmatmul.mubr.msk.f32.gmra.mrb[46].mxu1 %vm185_vm0, %v2122_v36  ;;  %4987 = vmatprep.mubr.msk.f32.mxu0 %vm185_vm0, %v2051_v37 }
 0xd51   :  { %5095 = vmatprep.mubr.msk.f32.mxu1 %vm185_vm0, %v2123_v38 }
 0xd53   :  { %4988 = vmatmul.mubr.msk.f32.gmra.mrb[48].mxu0 %vm185_vm0, %v2052_v39 }
 0xd54   :  { %5096 = vmatmul.mubr.msk.f32.gmra.mrb[48].mxu1 %vm185_vm0, %v2124_v40  ;;  %4990 = vmatprep.mubr.msk.f32.mxu0 %vm185_vm0, %v2053_v41 }
 0xd55   :  { %5098 = vmatprep.mubr.msk.f32.mxu1 %vm185_vm0, %v2125_v42 }
 0xd57   :  { %4991 = vmatmul.mubr.msk.f32.gmra.mrb[50].mxu0 %vm185_vm0, %v2054_v43 }
 0xd58   :  { %5099 = vmatmul.mubr.msk.f32.gmra.mrb[50].mxu1 %vm185_vm0, %v2126_v44  ;;  %4993 = vmatprep.mubr.msk.f32.mxu0 %vm185_vm0, %v2055_v45 }
 0xd59   :  { %5101 = vmatprep.mubr.msk.f32.mxu1 %vm185_vm0, %v2127_v46 }
 0xd5b   :  { %4994 = vmatmul.mubr.msk.f32.gmra.mrb[52].mxu0 %vm185_vm0, %v2056_v47 }
 0xd5c   :  { %5102 = vmatmul.mubr.msk.f32.gmra.mrb[52].mxu1 %vm185_vm0, %v2128_v48  ;;  %4996 = vmatprep.mubr.msk.f32.mxu0 %vm185_vm0, %v2057_v49 }
 0xd5d   :  { %5104 = vmatprep.mubr.msk.f32.mxu1 %vm185_vm0, %v2129_v50 }
 0xd5f   :  { %4997 = vmatmul.mubr.msk.f32.gmra.mrb[54].mxu0 %vm185_vm0, %v2058_v35 }
 0xd60   :  { %5105 = vmatmul.mubr.msk.f32.gmra.mrb[54].mxu1 %vm185_vm0, %v2130_v51  ;;  %4999 = vmatprep.mubr.msk.f32.mxu0 %vm185_vm0, %v2059_v52 }
 0xd61   :  { %5107 = vmatprep.mubr.msk.f32.mxu1 %vm185_vm0, %v2131_v53 }
 0xd63   :  { %5000 = vmatmul.mubr.msk.f32.gmra.mrb[56].mxu0 %vm185_vm0, %v2060_v54 }
 0xd64   :  { %5108 = vmatmul.mubr.msk.f32.gmra.mrb[56].mxu1 %vm185_vm0, %v2132_v55  ;;  %5002 = vmatprep.mubr.msk.f32.mxu0 %vm185_vm0, %v2061_v4 }
 0xd65   :  { %5110 = vmatprep.mubr.msk.f32.mxu1 %vm185_vm0, %v2133_v5 }
 0xd67   :  { %5003 = vmatmul.mubr.msk.f32.gmra.mrb[58].mxu0 %vm185_vm0, %v2062_v58 }
 0xd68   :  { %5111 = vmatmul.mubr.msk.f32.gmra.mrb[58].mxu1 %vm185_vm0, %v2134_v59  ;;  %5005 = vmatprep.mubr.msk.f32.mxu0 %vm185_vm0, %v2063_v60 }
 0xd69   :  { %5113 = vmatprep.mubr.msk.f32.mxu1 %vm185_vm0, %v2135_v61 }
 0xd6b   :  { %5006 = vmatmul.mubr.msk.f32.gmra.mrb[60].mxu0 %vm185_vm0, %v2064_v62 }
 0xd6c   :  { %5114 = vmatmul.mubr.msk.f32.gmra.mrb[60].mxu1 %vm185_vm0, %v2136_v63  ;;  %5008 = vmatprep.mubr.msk.f32.mxu0 %vm185_vm0, %v2065_v0 }
 0xd6d   :  { %5116 = vmatprep.mubr.msk.f32.mxu1 %vm185_vm0, %v2137_v1 }
 0xd6f   :  { %5009 = vmatmul.mubr.msk.f32.gmra.mrb[62].mxu0 %vm185_vm0, %v2066_v6 }
 0xd70   :  { %5117 = vmatmul.mubr.msk.f32.gmra.mrb[62].mxu1 %vm185_vm0, %v2138_v7  ;;  %5011 = vmatprep.mubr.msk.f32.mxu0 %vm185_vm0, %v2067_v8 }
 0xd71   :  { %5119 = vmatprep.mubr.msk.f32.mxu1 %vm185_vm0, %v2139_v9 }
 0xd73   :  { %5012 = vmatmul.mubr.msk.f32.gmra.mrb[64].mxu0 %vm185_vm0, %v2068_v10 }
 0xd74   :  { %5120 = vmatmul.mubr.msk.f32.gmra.mrb[64].mxu1 %vm185_vm0, %v2140_v11  ;;  %5014 = vmatprep.mubr.msk.f32.mxu0 %vm185_vm0, %v2069_v12 }
 0xd75   :  { %5122 = vmatprep.mubr.msk.f32.mxu1 %vm185_vm0, %v2141_v13 }
 0xd77   :  { %5015 = vmatmul.mubr.msk.f32.gmra.mrb[66].mxu0 %vm185_vm0, %v2070_v14 }
 0xd78   :  { %5123 = vmatmul.mubr.msk.f32.gmra.mrb[66].mxu1 %vm185_vm0, %v2142_v15  ;;  %5017 = vmatprep.mubr.msk.f32.mxu0 %vm185_vm0, %v2071_v16 }
 0xd79   :  { %5125 = vmatprep.mubr.msk.f32.mxu1 %vm185_vm0, %v2143_v17 }
 0xd7b   :  { %5018 = vmatmul.mubr.msk.f32.gmra.mrb[68].mxu0 %vm185_vm0, %v2072_v18 }
 0xd7c   :  { %5126 = vmatmul.mubr.msk.f32.gmra.mrb[68].mxu1 %vm185_vm0, %v2144_v19  ;;  %5020 = vmatprep.mubr.msk.f32.mxu0 %vm185_vm0, %v2073_v20 }
 0xd7d   :  { %5128 = vmatprep.mubr.msk.f32.mxu1 %vm185_vm0, %v2145_v21 }
 0xd7f   :  { %5021 = vmatmul.mubr.msk.f32.gmra.mrb[70].mxu0 %vm185_vm0, %v2074_v22 }
 0xd80   :  { %5129 = vmatmul.mubr.msk.f32.gmra.mrb[70].mxu1 %vm185_vm0, %v2146_v23 }
 0xdc6   :  { %v4917_v25 = vpop.f32.mrb[0].mxu0 }
 0xdc7   :  { %v5025_v26 = vpop.f32.mrb[0].mxu1  ;;  %v2657_v27 = vadd.f32 %v4917_v25, %v6904_v24  ;;  %v2651_v34 = vpop.f32.mrb[1].mxu0 }
 0xdc8   :  { %v3017_v28 = vadd.f32 %v5025_v26, %v6904_v24  ;;  %v3011_v29 = vpop.f32.mrb[1].mxu1  ;;  %v2652_v30 = vadd.f32 %v6904_v24, %v2651_v34 }
 0xdc9   :  { %v3012_v31 = vadd.f32 %v6904_v24, %v3011_v29  ;;  %3371 = vst [vmem:[#allocation2 + $0x8] sm:$0xff] %v2657_v27 }
 0xdca   :  { %3443 = vst [vmem:[#allocation2 + $0x248] sm:$0xff] %v3017_v28  ;;  %3370 = vst [vmem:[#allocation2] sm:$0xff] %v2652_v30  ;;  %v4920_v32 = vpop.f32.mrb[2].mxu0 }
 0xdcb   :  { %3442 = vst [vmem:[#allocation2 + $0x240] sm:$0xff] %v3012_v31  ;;  %v5028_v33 = vpop.f32.mrb[2].mxu1  ;;  %v2667_v36 = vadd.f32 %v4920_v32, %v6904_v24  ;;  %v2661_v38 = vpop.f32.mrb[3].mxu0 }
 0xdcc   :  { %v3027_v37 = vadd.f32 %v5028_v33, %v6904_v24  ;;  %v3021_v39 = vpop.f32.mrb[3].mxu1  ;;  %v2662_v40 = vadd.f32 %v6904_v24, %v2661_v38 }
 0xdcd   :  { %v3022_v41 = vadd.f32 %v6904_v24, %v3021_v39  ;;  %3373 = vst [vmem:[#allocation2 + $0x18] sm:$0xff] %v2667_v36 }
 0xdce   :  { %3445 = vst [vmem:[#allocation2 + $0x258] sm:$0xff] %v3027_v37  ;;  %3372 = vst [vmem:[#allocation2 + $0x10] sm:$0xff] %v2662_v40  ;;  %v4923_v42 = vpop.f32.mrb[4].mxu0 }
 0xdcf   :  { %3444 = vst [vmem:[#allocation2 + $0x250] sm:$0xff] %v3022_v41  ;;  %v5031_v43 = vpop.f32.mrb[4].mxu1  ;;  %v2677_v44 = vadd.f32 %v4923_v42, %v6904_v24  ;;  %v2671_v46 = vpop.f32.mrb[5].mxu0 }
 0xdd0   :  { %v3037_v45 = vadd.f32 %v5031_v43, %v6904_v24  ;;  %v3031_v47 = vpop.f32.mrb[5].mxu1  ;;  %v2672_v48 = vadd.f32 %v6904_v24, %v2671_v46 }
 0xdd1   :  { %v3032_v49 = vadd.f32 %v6904_v24, %v3031_v47  ;;  %3375 = vst [vmem:[#allocation2 + $0x28] sm:$0xff] %v2677_v44 }
 0xdd2   :  { %3447 = vst [vmem:[#allocation2 + $0x268] sm:$0xff] %v3037_v45  ;;  %3374 = vst [vmem:[#allocation2 + $0x20] sm:$0xff] %v2672_v48  ;;  %v4926_v50 = vpop.f32.mrb[6].mxu0 }
 0xdd3   :  { %3446 = vst [vmem:[#allocation2 + $0x260] sm:$0xff] %v3032_v49  ;;  %v5034_v35 = vpop.f32.mrb[6].mxu1  ;;  %v2687_v51 = vadd.f32 %v4926_v50, %v6904_v24  ;;  %v2681_v53 = vpop.f32.mrb[7].mxu0 }
 0xdd4   :  { %v3047_v52 = vadd.f32 %v5034_v35, %v6904_v24  ;;  %v3041_v54 = vpop.f32.mrb[7].mxu1  ;;  %v2682_v55 = vadd.f32 %v6904_v24, %v2681_v53 }
 0xdd5   :  { %v3042_v4 = vadd.f32 %v6904_v24, %v3041_v54  ;;  %3377 = vst [vmem:[#allocation2 + $0x38] sm:$0xff] %v2687_v51 }
 0xdd6   :  { %3449 = vst [vmem:[#allocation2 + $0x278] sm:$0xff] %v3047_v52  ;;  %3376 = vst [vmem:[#allocation2 + $0x30] sm:$0xff] %v2682_v55  ;;  %v4929_v5 = vpop.f32.mrb[8].mxu0 }
 0xdd7   :  { %3448 = vst [vmem:[#allocation2 + $0x270] sm:$0xff] %v3042_v4  ;;  %v5037_v58 = vpop.f32.mrb[8].mxu1  ;;  %v2697_v59 = vadd.f32 %v4929_v5, %v6904_v24  ;;  %v2691_v61 = vpop.f32.mrb[9].mxu0 }
 0xdd8   :  { %v3057_v60 = vadd.f32 %v5037_v58, %v6904_v24  ;;  %v3051_v62 = vpop.f32.mrb[9].mxu1  ;;  %v2692_v63 = vadd.f32 %v6904_v24, %v2691_v61 }
 0xdd9   :  { %v3052_v0 = vadd.f32 %v6904_v24, %v3051_v62  ;;  %3379 = vst [vmem:[#allocation2 + $0x48] sm:$0xff] %v2697_v59 }
 0xdda   :  { %3451 = vst [vmem:[#allocation2 + $0x288] sm:$0xff] %v3057_v60  ;;  %3378 = vst [vmem:[#allocation2 + $0x40] sm:$0xff] %v2692_v63  ;;  %v4932_v1 = vpop.f32.mrb[10].mxu0 }
 0xddb   :  { %3450 = vst [vmem:[#allocation2 + $0x280] sm:$0xff] %v3052_v0  ;;  %v5040_v6 = vpop.f32.mrb[10].mxu1  ;;  %v2707_v7 = vadd.f32 %v4932_v1, %v6904_v24  ;;  %v2701_v9 = vpop.f32.mrb[11].mxu0 }
 0xddc   :  { %v3067_v8 = vadd.f32 %v5040_v6, %v6904_v24  ;;  %v3061_v10 = vpop.f32.mrb[11].mxu1  ;;  %v2702_v11 = vadd.f32 %v6904_v24, %v2701_v9 }
 0xddd   :  { %v3062_v12 = vadd.f32 %v6904_v24, %v3061_v10  ;;  %3381 = vst [vmem:[#allocation2 + $0x58] sm:$0xff] %v2707_v7 }
 0xdde   :  { %3453 = vst [vmem:[#allocation2 + $0x298] sm:$0xff] %v3067_v8  ;;  %3380 = vst [vmem:[#allocation2 + $0x50] sm:$0xff] %v2702_v11  ;;  %v4935_v13 = vpop.f32.mrb[12].mxu0 }
 0xddf   :  { %3452 = vst [vmem:[#allocation2 + $0x290] sm:$0xff] %v3062_v12  ;;  %v5043_v14 = vpop.f32.mrb[12].mxu1  ;;  %v2717_v15 = vadd.f32 %v4935_v13, %v6904_v24  ;;  %v2711_v17 = vpop.f32.mrb[13].mxu0 }
 0xde0   :  { %v3077_v16 = vadd.f32 %v5043_v14, %v6904_v24  ;;  %v3071_v18 = vpop.f32.mrb[13].mxu1  ;;  %v2712_v19 = vadd.f32 %v6904_v24, %v2711_v17 }
 0xde1   :  { %v3072_v20 = vadd.f32 %v6904_v24, %v3071_v18  ;;  %3383 = vst [vmem:[#allocation2 + $0x68] sm:$0xff] %v2717_v15 }
 0xde2   :  { %3455 = vst [vmem:[#allocation2 + $0x2a8] sm:$0xff] %v3077_v16  ;;  %3382 = vst [vmem:[#allocation2 + $0x60] sm:$0xff] %v2712_v19  ;;  %v4938_v21 = vpop.f32.mrb[14].mxu0 }
 0xde3   :  { %3454 = vst [vmem:[#allocation2 + $0x2a0] sm:$0xff] %v3072_v20  ;;  %v5046_v22 = vpop.f32.mrb[14].mxu1  ;;  %v2727_v23 = vadd.f32 %v4938_v21, %v6904_v24  ;;  %v2721_v26 = vpop.f32.mrb[15].mxu0 }
 0xde4   :  { %v3087_v25 = vadd.f32 %v5046_v22, %v6904_v24  ;;  %v3081_v27 = vpop.f32.mrb[15].mxu1  ;;  %v2722_v28 = vadd.f32 %v6904_v24, %v2721_v26 }
 0xde5   :  { %v3082_v34 = vadd.f32 %v6904_v24, %v3081_v27  ;;  %3385 = vst [vmem:[#allocation2 + $0x78] sm:$0xff] %v2727_v23 }
 0xde6   :  { %3457 = vst [vmem:[#allocation2 + $0x2b8] sm:$0xff] %v3087_v25  ;;  %3384 = vst [vmem:[#allocation2 + $0x70] sm:$0xff] %v2722_v28  ;;  %v4941_v29 = vpop.f32.mrb[16].mxu0 }
 0xde7   :  { %3456 = vst [vmem:[#allocation2 + $0x2b0] sm:$0xff] %v3082_v34  ;;  %v5049_v30 = vpop.f32.mrb[16].mxu1  ;;  %v2737_v31 = vadd.f32 %v4941_v29, %v6904_v24  ;;  %v2731_v33 = vpop.f32.mrb[17].mxu0 }
 0xde8   :  { %v3097_v32 = vadd.f32 %v5049_v30, %v6904_v24  ;;  %v3091_v36 = vpop.f32.mrb[17].mxu1  ;;  %v2732_v37 = vadd.f32 %v6904_v24, %v2731_v33 }
 0xde9   :  { %v3092_v38 = vadd.f32 %v6904_v24, %v3091_v36  ;;  %3387 = vst [vmem:[#allocation2 + $0x88] sm:$0xff] %v2737_v31 }
 0xdea   :  { %3459 = vst [vmem:[#allocation2 + $0x2c8] sm:$0xff] %v3097_v32  ;;  %3386 = vst [vmem:[#allocation2 + $0x80] sm:$0xff] %v2732_v37  ;;  %v4944_v39 = vpop.f32.mrb[18].mxu0 }
 0xdeb   :  { %3458 = vst [vmem:[#allocation2 + $0x2c0] sm:$0xff] %v3092_v38  ;;  %v5052_v40 = vpop.f32.mrb[18].mxu1  ;;  %v2747_v41 = vadd.f32 %v4944_v39, %v6904_v24  ;;  %v2741_v43 = vpop.f32.mrb[19].mxu0 }
 0xdec   :  { %v3107_v42 = vadd.f32 %v5052_v40, %v6904_v24  ;;  %v3101_v44 = vpop.f32.mrb[19].mxu1  ;;  %v2742_v45 = vadd.f32 %v6904_v24, %v2741_v43 }
 0xded   :  { %v3102_v46 = vadd.f32 %v6904_v24, %v3101_v44  ;;  %3389 = vst [vmem:[#allocation2 + $0x98] sm:$0xff] %v2747_v41 }
 0xdee   :  { %3461 = vst [vmem:[#allocation2 + $0x2d8] sm:$0xff] %v3107_v42  ;;  %3388 = vst [vmem:[#allocation2 + $0x90] sm:$0xff] %v2742_v45  ;;  %v4947_v47 = vpop.f32.mrb[20].mxu0 }
 0xdef   :  { %3460 = vst [vmem:[#allocation2 + $0x2d0] sm:$0xff] %v3102_v46  ;;  %v5055_v48 = vpop.f32.mrb[20].mxu1  ;;  %v2757_v49 = vadd.f32 %v4947_v47, %v6904_v24  ;;  %v2751_v35 = vpop.f32.mrb[21].mxu0 }
 0xdf0   :  { %v3117_v50 = vadd.f32 %v5055_v48, %v6904_v24  ;;  %v3111_v51 = vpop.f32.mrb[21].mxu1  ;;  %v2752_v52 = vadd.f32 %v6904_v24, %v2751_v35 }
 0xdf1   :  { %v3112_v53 = vadd.f32 %v6904_v24, %v3111_v51  ;;  %3391 = vst [vmem:[#allocation2 + $0xa8] sm:$0xff] %v2757_v49 }
 0xdf2   :  { %3463 = vst [vmem:[#allocation2 + $0x2e8] sm:$0xff] %v3117_v50  ;;  %3390 = vst [vmem:[#allocation2 + $0xa0] sm:$0xff] %v2752_v52  ;;  %v4950_v54 = vpop.f32.mrb[22].mxu0 }
 0xdf3   :  { %3462 = vst [vmem:[#allocation2 + $0x2e0] sm:$0xff] %v3112_v53  ;;  %v5058_v55 = vpop.f32.mrb[22].mxu1  ;;  %v2767_v4 = vadd.f32 %v4950_v54, %v6904_v24  ;;  %v2761_v58 = vpop.f32.mrb[23].mxu0 }
 0xdf4   :  { %v3127_v5 = vadd.f32 %v5058_v55, %v6904_v24  ;;  %v3121_v59 = vpop.f32.mrb[23].mxu1  ;;  %v2762_v60 = vadd.f32 %v6904_v24, %v2761_v58 }
 0xdf5   :  { %v3122_v61 = vadd.f32 %v6904_v24, %v3121_v59  ;;  %3393 = vst [vmem:[#allocation2 + $0xb8] sm:$0xff] %v2767_v4 }
 0xdf6   :  { %3465 = vst [vmem:[#allocation2 + $0x2f8] sm:$0xff] %v3127_v5  ;;  %3392 = vst [vmem:[#allocation2 + $0xb0] sm:$0xff] %v2762_v60  ;;  %v4953_v62 = vpop.f32.mrb[24].mxu0 }
 0xdf7   :  { %3464 = vst [vmem:[#allocation2 + $0x2f0] sm:$0xff] %v3122_v61  ;;  %v5061_v63 = vpop.f32.mrb[24].mxu1  ;;  %v2777_v0 = vadd.f32 %v4953_v62, %v6904_v24  ;;  %v2771_v6 = vpop.f32.mrb[25].mxu0 }
 0xdf8   :  { %v3137_v1 = vadd.f32 %v5061_v63, %v6904_v24  ;;  %v3131_v7 = vpop.f32.mrb[25].mxu1  ;;  %v2772_v8 = vadd.f32 %v6904_v24, %v2771_v6 }
 0xdf9   :  { %v3132_v9 = vadd.f32 %v6904_v24, %v3131_v7  ;;  %3395 = vst [vmem:[#allocation2 + $0xc8] sm:$0xff] %v2777_v0 }
 0xdfa   :  { %3467 = vst [vmem:[#allocation2 + $0x308] sm:$0xff] %v3137_v1  ;;  %3394 = vst [vmem:[#allocation2 + $0xc0] sm:$0xff] %v2772_v8  ;;  %v4956_v10 = vpop.f32.mrb[26].mxu0 }
 0xdfb   :  { %3466 = vst [vmem:[#allocation2 + $0x300] sm:$0xff] %v3132_v9  ;;  %v5064_v11 = vpop.f32.mrb[26].mxu1  ;;  %v2787_v12 = vadd.f32 %v4956_v10, %v6904_v24  ;;  %v2781_v14 = vpop.f32.mrb[27].mxu0 }
 0xdfc   :  { %v3147_v13 = vadd.f32 %v5064_v11, %v6904_v24  ;;  %v3141_v15 = vpop.f32.mrb[27].mxu1  ;;  %v2782_v16 = vadd.f32 %v6904_v24, %v2781_v14 }
 0xdfd   :  { %v3142_v17 = vadd.f32 %v6904_v24, %v3141_v15  ;;  %3397 = vst [vmem:[#allocation2 + $0xd8] sm:$0xff] %v2787_v12 }
 0xdfe   :  { %3469 = vst [vmem:[#allocation2 + $0x318] sm:$0xff] %v3147_v13  ;;  %3396 = vst [vmem:[#allocation2 + $0xd0] sm:$0xff] %v2782_v16  ;;  %v4959_v18 = vpop.f32.mrb[28].mxu0 }
 0xdff   :  { %3468 = vst [vmem:[#allocation2 + $0x310] sm:$0xff] %v3142_v17  ;;  %v5067_v19 = vpop.f32.mrb[28].mxu1  ;;  %v2797_v20 = vadd.f32 %v4959_v18, %v6904_v24  ;;  %v2791_v22 = vpop.f32.mrb[29].mxu0 }
 0xe00   :  { %v3157_v21 = vadd.f32 %v5067_v19, %v6904_v24  ;;  %v3151_v23 = vpop.f32.mrb[29].mxu1  ;;  %v2792_v25 = vadd.f32 %v6904_v24, %v2791_v22 }
 0xe01   :  { %v3152_v26 = vadd.f32 %v6904_v24, %v3151_v23  ;;  %3399 = vst [vmem:[#allocation2 + $0xe8] sm:$0xff] %v2797_v20 }
 0xe02   :  { %3471 = vst [vmem:[#allocation2 + $0x328] sm:$0xff] %v3157_v21  ;;  %3398 = vst [vmem:[#allocation2 + $0xe0] sm:$0xff] %v2792_v25  ;;  %v4962_v27 = vpop.f32.mrb[30].mxu0 }
 0xe03   :  { %3470 = vst [vmem:[#allocation2 + $0x320] sm:$0xff] %v3152_v26  ;;  %v5070_v28 = vpop.f32.mrb[30].mxu1  ;;  %v2807_v34 = vadd.f32 %v4962_v27, %v6904_v24  ;;  %v2801_v30 = vpop.f32.mrb[31].mxu0 }
 0xe04   :  { %v3167_v29 = vadd.f32 %v5070_v28, %v6904_v24  ;;  %v3161_v31 = vpop.f32.mrb[31].mxu1  ;;  %v2802_v32 = vadd.f32 %v6904_v24, %v2801_v30 }
 0xe05   :  { %v3162_v33 = vadd.f32 %v6904_v24, %v3161_v31  ;;  %3401 = vst [vmem:[#allocation2 + $0xf8] sm:$0xff] %v2807_v34 }
 0xe06   :  { %3473 = vst [vmem:[#allocation2 + $0x338] sm:$0xff] %v3167_v29  ;;  %3400 = vst [vmem:[#allocation2 + $0xf0] sm:$0xff] %v2802_v32  ;;  %v4965_v36 = vpop.f32.mrb[32].mxu0 }
 0xe07   :  { %3472 = vst [vmem:[#allocation2 + $0x330] sm:$0xff] %v3162_v33  ;;  %v5073_v37 = vpop.f32.mrb[32].mxu1  ;;  %v2817_v38 = vadd.f32 %v4965_v36, %v6904_v24  ;;  %v2811_v40 = vpop.f32.mrb[33].mxu0 }
 0xe08   :  { %v3177_v39 = vadd.f32 %v5073_v37, %v6904_v24  ;;  %v3171_v41 = vpop.f32.mrb[33].mxu1  ;;  %v2812_v42 = vadd.f32 %v6904_v24, %v2811_v40 }
 0xe09   :  { %v3172_v43 = vadd.f32 %v6904_v24, %v3171_v41  ;;  %3403 = vst [vmem:[#allocation2 + $0x108] sm:$0xff] %v2817_v38 }
 0xe0a   :  { %3475 = vst [vmem:[#allocation2 + $0x348] sm:$0xff] %v3177_v39  ;;  %3402 = vst [vmem:[#allocation2 + $0x100] sm:$0xff] %v2812_v42  ;;  %v4968_v44 = vpop.f32.mrb[34].mxu0 }
 0xe0b   :  { %3474 = vst [vmem:[#allocation2 + $0x340] sm:$0xff] %v3172_v43  ;;  %v5076_v45 = vpop.f32.mrb[34].mxu1  ;;  %v2827_v46 = vadd.f32 %v4968_v44, %v6904_v24  ;;  %v2821_v48 = vpop.f32.mrb[35].mxu0 }
 0xe0c   :  { %v3187_v47 = vadd.f32 %v5076_v45, %v6904_v24  ;;  %v3181_v49 = vpop.f32.mrb[35].mxu1  ;;  %v2822_v50 = vadd.f32 %v6904_v24, %v2821_v48 }
 0xe0d   :  { %v3182_v35 = vadd.f32 %v6904_v24, %v3181_v49  ;;  %3405 = vst [vmem:[#allocation2 + $0x118] sm:$0xff] %v2827_v46 }
 0xe0e   :  { %3477 = vst [vmem:[#allocation2 + $0x358] sm:$0xff] %v3187_v47  ;;  %3404 = vst [vmem:[#allocation2 + $0x110] sm:$0xff] %v2822_v50  ;;  %v4971_v51 = vpop.f32.mrb[36].mxu0 }
 0xe0f   :  { %3476 = vst [vmem:[#allocation2 + $0x350] sm:$0xff] %v3182_v35  ;;  %v5079_v52 = vpop.f32.mrb[36].mxu1  ;;  %v2837_v53 = vadd.f32 %v4971_v51, %v6904_v24  ;;  %v2831_v55 = vpop.f32.mrb[37].mxu0 }
 0xe10   :  { %v3197_v54 = vadd.f32 %v5079_v52, %v6904_v24  ;;  %v3191_v4 = vpop.f32.mrb[37].mxu1  ;;  %v2832_v5 = vadd.f32 %v6904_v24, %v2831_v55 }
 0xe11   :  { %v3192_v58 = vadd.f32 %v6904_v24, %v3191_v4  ;;  %3407 = vst [vmem:[#allocation2 + $0x128] sm:$0xff] %v2837_v53 }
 0xe12   :  { %3479 = vst [vmem:[#allocation2 + $0x368] sm:$0xff] %v3197_v54  ;;  %3406 = vst [vmem:[#allocation2 + $0x120] sm:$0xff] %v2832_v5  ;;  %v4974_v59 = vpop.f32.mrb[38].mxu0 }
 0xe13   :  { %3478 = vst [vmem:[#allocation2 + $0x360] sm:$0xff] %v3192_v58  ;;  %v5082_v60 = vpop.f32.mrb[38].mxu1  ;;  %v2847_v61 = vadd.f32 %v4974_v59, %v6904_v24  ;;  %v2841_v63 = vpop.f32.mrb[39].mxu0 }
 0xe14   :  { %v3207_v62 = vadd.f32 %v5082_v60, %v6904_v24  ;;  %v3201_v0 = vpop.f32.mrb[39].mxu1  ;;  %v2842_v1 = vadd.f32 %v6904_v24, %v2841_v63 }
 0xe15   :  { %v3202_v6 = vadd.f32 %v6904_v24, %v3201_v0  ;;  %3409 = vst [vmem:[#allocation2 + $0x138] sm:$0xff] %v2847_v61 }
 0xe16   :  { %3481 = vst [vmem:[#allocation2 + $0x378] sm:$0xff] %v3207_v62  ;;  %3408 = vst [vmem:[#allocation2 + $0x130] sm:$0xff] %v2842_v1  ;;  %v4977_v7 = vpop.f32.mrb[40].mxu0 }
 0xe17   :  { %3480 = vst [vmem:[#allocation2 + $0x370] sm:$0xff] %v3202_v6  ;;  %v5085_v8 = vpop.f32.mrb[40].mxu1  ;;  %v2857_v9 = vadd.f32 %v4977_v7, %v6904_v24  ;;  %v2851_v11 = vpop.f32.mrb[41].mxu0 }
 0xe18   :  { %v3217_v10 = vadd.f32 %v5085_v8, %v6904_v24  ;;  %v3211_v12 = vpop.f32.mrb[41].mxu1  ;;  %v2852_v13 = vadd.f32 %v6904_v24, %v2851_v11 }
 0xe19   :  { %v3212_v14 = vadd.f32 %v6904_v24, %v3211_v12  ;;  %3411 = vst [vmem:[#allocation2 + $0x148] sm:$0xff] %v2857_v9 }
 0xe1a   :  { %3483 = vst [vmem:[#allocation2 + $0x388] sm:$0xff] %v3217_v10  ;;  %3410 = vst [vmem:[#allocation2 + $0x140] sm:$0xff] %v2852_v13  ;;  %v4980_v15 = vpop.f32.mrb[42].mxu0 }
 0xe1b   :  { %3482 = vst [vmem:[#allocation2 + $0x380] sm:$0xff] %v3212_v14  ;;  %v5088_v16 = vpop.f32.mrb[42].mxu1  ;;  %v2867_v17 = vadd.f32 %v4980_v15, %v6904_v24  ;;  %v2861_v19 = vpop.f32.mrb[43].mxu0 }
 0xe1c   :  { %v3227_v18 = vadd.f32 %v5088_v16, %v6904_v24  ;;  %v3221_v20 = vpop.f32.mrb[43].mxu1  ;;  %v2862_v21 = vadd.f32 %v6904_v24, %v2861_v19 }
 0xe1d   :  { %v3222_v22 = vadd.f32 %v6904_v24, %v3221_v20  ;;  %3413 = vst [vmem:[#allocation2 + $0x158] sm:$0xff] %v2867_v17 }
 0xe1e   :  { %3485 = vst [vmem:[#allocation2 + $0x398] sm:$0xff] %v3227_v18  ;;  %3412 = vst [vmem:[#allocation2 + $0x150] sm:$0xff] %v2862_v21  ;;  %v4983_v23 = vpop.f32.mrb[44].mxu0 }
 0xe1f   :  { %3484 = vst [vmem:[#allocation2 + $0x390] sm:$0xff] %v3222_v22  ;;  %v5091_v25 = vpop.f32.mrb[44].mxu1  ;;  %v2877_v26 = vadd.f32 %v4983_v23, %v6904_v24  ;;  %v2871_v28 = vpop.f32.mrb[45].mxu0 }
 0xe20   :  { %v3237_v27 = vadd.f32 %v5091_v25, %v6904_v24  ;;  %v3231_v34 = vpop.f32.mrb[45].mxu1  ;;  %v2872_v29 = vadd.f32 %v6904_v24, %v2871_v28 }
 0xe21   :  { %v3232_v30 = vadd.f32 %v6904_v24, %v3231_v34  ;;  %3415 = vst [vmem:[#allocation2 + $0x168] sm:$0xff] %v2877_v26 }
 0xe22   :  { %3487 = vst [vmem:[#allocation2 + $0x3a8] sm:$0xff] %v3237_v27  ;;  %3414 = vst [vmem:[#allocation2 + $0x160] sm:$0xff] %v2872_v29  ;;  %v4986_v31 = vpop.f32.mrb[46].mxu0 }
 0xe23   :  { %3486 = vst [vmem:[#allocation2 + $0x3a0] sm:$0xff] %v3232_v30  ;;  %v5094_v32 = vpop.f32.mrb[46].mxu1  ;;  %v2887_v33 = vadd.f32 %v4986_v31, %v6904_v24  ;;  %v2881_v37 = vpop.f32.mrb[47].mxu0 }
 0xe24   :  { %v3247_v36 = vadd.f32 %v5094_v32, %v6904_v24  ;;  %v3241_v38 = vpop.f32.mrb[47].mxu1  ;;  %v2882_v39 = vadd.f32 %v6904_v24, %v2881_v37 }
 0xe25   :  { %v3242_v40 = vadd.f32 %v6904_v24, %v3241_v38  ;;  %3417 = vst [vmem:[#allocation2 + $0x178] sm:$0xff] %v2887_v33 }
 0xe26   :  { %3489 = vst [vmem:[#allocation2 + $0x3b8] sm:$0xff] %v3247_v36  ;;  %3416 = vst [vmem:[#allocation2 + $0x170] sm:$0xff] %v2882_v39  ;;  %v4989_v41 = vpop.f32.mrb[48].mxu0 }
 0xe27   :  { %3488 = vst [vmem:[#allocation2 + $0x3b0] sm:$0xff] %v3242_v40  ;;  %v5097_v42 = vpop.f32.mrb[48].mxu1  ;;  %v2897_v43 = vadd.f32 %v4989_v41, %v6904_v24  ;;  %v2891_v45 = vpop.f32.mrb[49].mxu0 }
 0xe28   :  { %v3257_v44 = vadd.f32 %v5097_v42, %v6904_v24  ;;  %v3251_v46 = vpop.f32.mrb[49].mxu1  ;;  %v2892_v47 = vadd.f32 %v6904_v24, %v2891_v45 }
 0xe29   :  { %v3252_v48 = vadd.f32 %v6904_v24, %v3251_v46  ;;  %3419 = vst [vmem:[#allocation2 + $0x188] sm:$0xff] %v2897_v43 }
 0xe2a   :  { %3491 = vst [vmem:[#allocation2 + $0x3c8] sm:$0xff] %v3257_v44  ;;  %3418 = vst [vmem:[#allocation2 + $0x180] sm:$0xff] %v2892_v47  ;;  %v4992_v49 = vpop.f32.mrb[50].mxu0 }
 0xe2b   :  { %3490 = vst [vmem:[#allocation2 + $0x3c0] sm:$0xff] %v3252_v48  ;;  %v5100_v50 = vpop.f32.mrb[50].mxu1  ;;  %v2907_v35 = vadd.f32 %v4992_v49, %v6904_v24  ;;  %v2901_v52 = vpop.f32.mrb[51].mxu0 }
 0xe2c   :  { %v3267_v51 = vadd.f32 %v5100_v50, %v6904_v24  ;;  %v3261_v53 = vpop.f32.mrb[51].mxu1  ;;  %v2902_v54 = vadd.f32 %v6904_v24, %v2901_v52 }
 0xe2d   :  { %v3262_v55 = vadd.f32 %v6904_v24, %v3261_v53  ;;  %3421 = vst [vmem:[#allocation2 + $0x198] sm:$0xff] %v2907_v35 }
 0xe2e   :  { %3493 = vst [vmem:[#allocation2 + $0x3d8] sm:$0xff] %v3267_v51  ;;  %3420 = vst [vmem:[#allocation2 + $0x190] sm:$0xff] %v2902_v54  ;;  %v4995_v4 = vpop.f32.mrb[52].mxu0 }
 0xe2f   :  { %3492 = vst [vmem:[#allocation2 + $0x3d0] sm:$0xff] %v3262_v55  ;;  %v5103_v5 = vpop.f32.mrb[52].mxu1  ;;  %v2917_v58 = vadd.f32 %v4995_v4, %v6904_v24  ;;  %v2911_v60 = vpop.f32.mrb[53].mxu0 }
 0xe30   :  { %v3277_v59 = vadd.f32 %v5103_v5, %v6904_v24  ;;  %v3271_v61 = vpop.f32.mrb[53].mxu1  ;;  %v2912_v62 = vadd.f32 %v6904_v24, %v2911_v60 }
 0xe31   :  { %v3272_v63 = vadd.f32 %v6904_v24, %v3271_v61  ;;  %3423 = vst [vmem:[#allocation2 + $0x1a8] sm:$0xff] %v2917_v58 }
 0xe32   :  { %3495 = vst [vmem:[#allocation2 + $0x3e8] sm:$0xff] %v3277_v59  ;;  %3422 = vst [vmem:[#allocation2 + $0x1a0] sm:$0xff] %v2912_v62  ;;  %v4998_v0 = vpop.f32.mrb[54].mxu0 }
 0xe33   :  { %3494 = vst [vmem:[#allocation2 + $0x3e0] sm:$0xff] %v3272_v63  ;;  %v5106_v1 = vpop.f32.mrb[54].mxu1  ;;  %v2927_v6 = vadd.f32 %v4998_v0, %v6904_v24  ;;  %v2921_v8 = vpop.f32.mrb[55].mxu0 }
 0xe34   :  { %v3287_v7 = vadd.f32 %v5106_v1, %v6904_v24  ;;  %v3281_v9 = vpop.f32.mrb[55].mxu1  ;;  %v2922_v10 = vadd.f32 %v6904_v24, %v2921_v8 }
 0xe35   :  { %v3282_v11 = vadd.f32 %v6904_v24, %v3281_v9  ;;  %3425 = vst [vmem:[#allocation2 + $0x1b8] sm:$0xff] %v2927_v6 }
 0xe36   :  { %3497 = vst [vmem:[#allocation2 + $0x3f8] sm:$0xff] %v3287_v7  ;;  %3424 = vst [vmem:[#allocation2 + $0x1b0] sm:$0xff] %v2922_v10  ;;  %v5001_v12 = vpop.f32.mrb[56].mxu0 }
 0xe37   :  { %3496 = vst [vmem:[#allocation2 + $0x3f0] sm:$0xff] %v3282_v11  ;;  %v5109_v13 = vpop.f32.mrb[56].mxu1  ;;  %v2937_v14 = vadd.f32 %v5001_v12, %v6904_v24  ;;  %v2931_v16 = vpop.f32.mrb[57].mxu0 }
 0xe38   :  { %v3297_v15 = vadd.f32 %v5109_v13, %v6904_v24  ;;  %v3291_v17 = vpop.f32.mrb[57].mxu1  ;;  %v2932_v18 = vadd.f32 %v6904_v24, %v2931_v16 }
 0xe39   :  { %v3292_v19 = vadd.f32 %v6904_v24, %v3291_v17  ;;  %3427 = vst [vmem:[#allocation2 + $0x1c8] sm:$0xff] %v2937_v14  ;;  %v7050_v17 = vmov 0.0  }
 0xe3a   :  { %3499 = vst [vmem:[#allocation2 + $0x408] sm:$0xff] %v3297_v15  ;;  %3426 = vst [vmem:[#allocation2 + $0x1c0] sm:$0xff] %v2932_v18  ;;  %v5004_v20 = vpop.f32.mrb[58].mxu0  ;;  %v7052_v18 = vmov 0.0  }
 0xe3b   :  { %3498 = vst [vmem:[#allocation2 + $0x400] sm:$0xff] %v3292_v19  ;;  %v5112_v21 = vpop.f32.mrb[58].mxu1  ;;  %v2947_v22 = vadd.f32 %v5004_v20, %v6904_v24  ;;  %v2941_v25 = vpop.f32.mrb[59].mxu0 }
 0xe3c   :  { %v3307_v23 = vadd.f32 %v5112_v21, %v6904_v24  ;;  %v3301_v26 = vpop.f32.mrb[59].mxu1  ;;  %v2942_v27 = vadd.f32 %v6904_v24, %v2941_v25 }
 0xe3d   :  { %v3302_v28 = vadd.f32 %v6904_v24, %v3301_v26  ;;  %3429 = vst [vmem:[#allocation2 + $0x1d8] sm:$0xff] %v2947_v22 }
 0xe3e   :  { %3501 = vst [vmem:[#allocation2 + $0x418] sm:$0xff] %v3307_v23  ;;  %3428 = vst [vmem:[#allocation2 + $0x1d0] sm:$0xff] %v2942_v27  ;;  %v5007_v34 = vpop.f32.mrb[60].mxu0 }
 0xe3f   :  { %3500 = vst [vmem:[#allocation2 + $0x410] sm:$0xff] %v3302_v28  ;;  %v5115_v29 = vpop.f32.mrb[60].mxu1  ;;  %v2957_v30 = vadd.f32 %v5007_v34, %v6904_v24  ;;  %v2951_v32 = vpop.f32.mrb[61].mxu0 }
 0xe40   :  { %v3317_v31 = vadd.f32 %v5115_v29, %v6904_v24  ;;  %v3311_v33 = vpop.f32.mrb[61].mxu1  ;;  %v2952_v36 = vadd.f32 %v6904_v24, %v2951_v32 }
 0xe41   :  { %v3312_v37 = vadd.f32 %v6904_v24, %v3311_v33  ;;  %3431 = vst [vmem:[#allocation2 + $0x1e8] sm:$0xff] %v2957_v30 }
 0xe42   :  { %3503 = vst [vmem:[#allocation2 + $0x428] sm:$0xff] %v3317_v31  ;;  %3430 = vst [vmem:[#allocation2 + $0x1e0] sm:$0xff] %v2952_v36  ;;  %v5010_v38 = vpop.f32.mrb[62].mxu0 }
 0xe43   :  { %3502 = vst [vmem:[#allocation2 + $0x420] sm:$0xff] %v3312_v37  ;;  %v5118_v39 = vpop.f32.mrb[62].mxu1  ;;  %v2967_v40 = vadd.f32 %v5010_v38, %v6904_v24  ;;  %v2961_v42 = vpop.f32.mrb[63].mxu0 }
 0xe44   :  { %v3327_v41 = vadd.f32 %v5118_v39, %v6904_v24  ;;  %v3321_v43 = vpop.f32.mrb[63].mxu1  ;;  %v2962_v44 = vadd.f32 %v6904_v24, %v2961_v42 }
 0xe45   :  { %v3322_v45 = vadd.f32 %v6904_v24, %v3321_v43  ;;  %3433 = vst [vmem:[#allocation2 + $0x1f8] sm:$0xff] %v2967_v40 }
 0xe46   :  { %3505 = vst [vmem:[#allocation2 + $0x438] sm:$0xff] %v3327_v41  ;;  %3432 = vst [vmem:[#allocation2 + $0x1f0] sm:$0xff] %v2962_v44  ;;  %v5013_v46 = vpop.f32.mrb[64].mxu0 }
 0xe47   :  { %3504 = vst [vmem:[#allocation2 + $0x430] sm:$0xff] %v3322_v45  ;;  %v5121_v47 = vpop.f32.mrb[64].mxu1  ;;  %v2977_v48 = vadd.f32 %v5013_v46, %v6904_v24  ;;  %v2971_v50 = vpop.f32.mrb[65].mxu0 }
 0xe48   :  { %v3337_v49 = vadd.f32 %v5121_v47, %v6904_v24  ;;  %v3331_v35 = vpop.f32.mrb[65].mxu1  ;;  %v2972_v51 = vadd.f32 %v6904_v24, %v2971_v50 }
 0xe49   :  { %v3332_v52 = vadd.f32 %v6904_v24, %v3331_v35  ;;  %3435 = vst [vmem:[#allocation2 + $0x208] sm:$0xff] %v2977_v48 }
 0xe4a   :  { %3507 = vst [vmem:[#allocation2 + $0x448] sm:$0xff] %v3337_v49  ;;  %3434 = vst [vmem:[#allocation2 + $0x200] sm:$0xff] %v2972_v51  ;;  %v5016_v53 = vpop.f32.mrb[66].mxu0 }
 0xe4b   :  { %3506 = vst [vmem:[#allocation2 + $0x440] sm:$0xff] %v3332_v52  ;;  %v5124_v54 = vpop.f32.mrb[66].mxu1  ;;  %v2987_v55 = vadd.f32 %v5016_v53, %v6904_v24  ;;  %v2981_v5 = vpop.f32.mrb[67].mxu0 }
 0xe4c   :  { %v3347_v4 = vadd.f32 %v5124_v54, %v6904_v24  ;;  %v3341_v58 = vpop.f32.mrb[67].mxu1  ;;  %v2982_v59 = vadd.f32 %v6904_v24, %v2981_v5 }
 0xe4d   :  { %v3342_v60 = vadd.f32 %v6904_v24, %v3341_v58  ;;  %3437 = vst [vmem:[#allocation2 + $0x218] sm:$0xff] %v2987_v55 }
 0xe4e   :  { %3509 = vst [vmem:[#allocation2 + $0x458] sm:$0xff] %v3347_v4  ;;  %3436 = vst [vmem:[#allocation2 + $0x210] sm:$0xff] %v2982_v59  ;;  %v5019_v61 = vpop.f32.mrb[68].mxu0 }
 0xe4f   :  { %3508 = vst [vmem:[#allocation2 + $0x450] sm:$0xff] %v3342_v60  ;;  %v5127_v62 = vpop.f32.mrb[68].mxu1  ;;  %v2997_v63 = vadd.f32 %v5019_v61, %v6904_v24  ;;  %v2991_v1 = vpop.f32.mrb[69].mxu0 }
 0xe50   :  { %v3357_v0 = vadd.f32 %v5127_v62, %v6904_v24  ;;  %v3351_v6 = vpop.f32.mrb[69].mxu1  ;;  %v2992_v7 = vadd.f32 %v6904_v24, %v2991_v1 }
 0xe51   :  { %v3352_v8 = vadd.f32 %v6904_v24, %v3351_v6  ;;  %3439 = vst [vmem:[#allocation2 + $0x228] sm:$0xff] %v2997_v63 }
 0xe52   :  { %3511 = vst [vmem:[#allocation2 + $0x468] sm:$0xff] %v3357_v0  ;;  %3438 = vst [vmem:[#allocation2 + $0x220] sm:$0xff] %v2992_v7  ;;  %v5022_v9 = vpop.f32.mrb[70].mxu0 }
 0xe53   :  { %3510 = vst [vmem:[#allocation2 + $0x460] sm:$0xff] %v3352_v8  ;;  %v5130_v10 = vpop.f32.mrb[70].mxu1  ;;  %v3007_v11 = vadd.f32 %v5022_v9, %v6904_v24  ;;  %v3001_v13 = vpop.f32.mrb[71].mxu0 }
 0xe54   :  { %v3367_v12 = vadd.f32 %v5130_v10, %v6904_v24  ;;  %v3361_v14 = vpop.f32.mrb[71].mxu1  ;;  %v3002_v15 = vadd.f32 %v6904_v24, %v3001_v13 }
 0xe55   :  { %v3362_v16 = vadd.f32 %v6904_v24, %v3361_v14  ;;  %3441 = vst [vmem:[#allocation2 + $0x238] sm:$0xff] %v3007_v11 }
 0xe56   :  { %3513 = vst [vmem:[#allocation2 + $0x478] sm:$0xff] %v3367_v12  ;;  %3440 = vst [vmem:[#allocation2 + $0x230] sm:$0xff] %v3002_v15 }
 0xe57   :  { %3512 = vst [vmem:[#allocation2 + $0x470] sm:$0xff] %v3362_v16 }
 0xe58 LB: > { %v5216_v24 = vpack.c.bf16 %v6307_v57, %v6302_v56  ;;  %v5422_v19 = vmov 0.0|0.0   ;;  %v3526_v20 = vrot.slane %v5411_v18, 6  ;;  %v5219_v21 = vpack.c.bf16 %v6317_v3, %v6312_v2  ;;  %s5425_s27 = smov 32   ;;  %s4294_s28 = sshll.u32 %s5415_s6, 3  ;;  %s5415_s6 = sphi %s7054_s6, %s3519_s6   ;;  %v5411_v18 = vphi %v7052_v18, %v3948_v18   ;;  %v5407_v17 = vphi %v7050_v17, %v3942_v17  }
 0xe59   : > { %5215 = vmatprep.subr.bf16.mxu0 %v5422_v19  ;;  %5221 = vmatprep.subr.bf16.mxu1 %v5422_v19  ;;  %vm5423_vm5 = vmmov 0   ;;  %v5424_v22 = vmov 0.0   ;;  %s3523_s29 = scalar_lea.vmem [#allocation2], %s4294_s28  ;;  %s5426_s0 = smov 64   ;;  %v3610_v37 = vrot.slane %v5407_v17, 6 }
 0xe5a   : > { %5217 = vmatpush3.bf16.msra.mxu0 %v5216_v24  ;;  %5139 = vmatprep.mubr.msk.f32.mxu0 %vm5423_vm5, %v5424_v22  ;;  %s3959_s3 = scalar_lea.vmem %s7124_s7, %s4294_s28  ;;  %s3519_s6 = sadd.s32 1, %s5415_s6  }
 0xe5b   : > { %5218 = vmatprep.subr.bf16.mxu0 %v5422_v19  ;;  %5223 = vmatpush3.bf16.msra.mxu1 %v5216_v24  ;;  %p3516_p1 = scmp.ge.s32.totalorder %s3519_s6, 144  }
 0xe5c   : > { %3527 = vrot.lane.b32.xlu0 %v3526_v20, %s5425_s27  ;;  %5224 = vmatprep.subr.bf16.mxu1 %v5422_v19 }
 0xe5d   : > { %5150 = vmatprep.mubr.msk.f32.mxu1 %vm5423_vm5, %v5424_v22 }
 0xe5e   : > { %5220 = vmatpush3.bf16.msra.mxu0 %v5219_v21  ;;  %v7073_v25 = vld [vmem:[%s3523_s29] sm:$0xff] }
 0xe5f   : > { %5226 = vmatpush3.bf16.msra.mxu1 %v5219_v21  ;;  %5227 = vmatprep.subr.bf16.mxu0 %v5422_v19 }
 0xe60   : > { %5233 = vmatprep.subr.bf16.mxu1 %v5422_v19 }
 0xece   : > { %v3528_v23 = vpop.permute.xlu0 %3527 }
 0xecf   : > { %5140 = vmatmul.mubr.msk.f32.vlgmr.msra.gmra.mrb[0].mxu0 %vm185_vm0, %v3528_v23 }
 0xed0   : > { %5229 = vmatpush3.bf16.msra.mxu0 %v5216_v24  ;;  %5161 = vmatprep.mubr.msk.f32.mxu0 %vm5423_vm5, %v5424_v22 }
 0xed1   : > { %5230 = vmatprep.subr.bf16.mxu0 %v5422_v19 }
 0xed4   : > { %5232 = vmatpush3.bf16.msra.mxu0 %v5219_v21 }
 0xfa2   : > { %v3597_v26 = vpop.f32.mrb[0].mxu0 }
 0xfa3   : > { %v3601_v27 = vadd.f32 %v3597_v26, %v7073_v25  ;;  %v5141_v28 = vpop.f32.mrb[1].mxu0 }
 0xfa5   : > { %5337 = vtanh.f32 %v3601_v27  ;;  %v4296_v29 = vmul.f32 -1.442695, %v3601_v27 }
 0xfa7   : > { %5339 = vpow2.f32 %v4296_v29 }
 0xfaf   : > { %v5338_v34 = vpop.eup %5337 }
 0xfb0   : > { %3614 = vrot.lane.b32.xlu0 %v5338_v34, %s5426_s0 }
 0xfb1   : > { %v5340_v30 = vpop.eup %5339 }
 0xfb2   : > { %v3605_v31 = vadd.f32 1.0, %v5340_v30 }
 0xfb4   : > { %5341 = vrcp.f32 %v3605_v31 }
 0xfbe   : > { %v5342_v32 = vpop.eup %5341 }
 0xfbf   : > { %v3612_v38 = vmul.f32 %v5342_v32, %v3610_v37 }
0x1022   : > { %v3615_v33 = vpop.permute.xlu0 %3614 }
0x1023   : > { %v3617_v36 = vmul.f32 %v5342_v32, %v3615_v33 }
0x1025   : > { %3619 = vrot.lane.b32.xlu1 %v3617_v36, %s5425_s27 }
0x1097   : > { %v3620_v39 = vpop.permute.xlu1 %3619 }
0x1098   : > { %v3622_v40 = vadd.f32 %v3620_v39, %v3612_v38 }
0x109a   : > { %5343 = vtanh.f32 %v3622_v40  ;;  %v3716_v55 = vrot.slane %v3622_v40, 6 }
0x10a4   : > { %v5344_v41 = vpop.eup %5343 }
0x10a5   : > { %3625 = vrot.lane.b32.xlu1 %v5344_v41, %s5426_s0 }
0x1117   : > { %v3626_v42 = vpop.permute.xlu1 %3625 }
0x1118   : > { %v7079_v43 = vmul.f32 %v5342_v32, %v3626_v42 }
0x111a   : > { %3630 = vrot.lane.b32.xlu0 %v7079_v43, %s5425_s27 }
0x118c   : > { %v3631_v44 = vpop.permute.xlu0 %3630 }
0x118d   : > { %5151 = vmatmul.mubr.msk.f32.vlgmr.msra.gmra.mrb[0].mxu1 %vm185_vm0, %v3631_v44 }
0x118e   : > { %5235 = vmatpush3.bf16.msra.mxu1 %v5216_v24  ;;  %5172 = vmatprep.mubr.msk.f32.mxu1 %vm5423_vm5, %v5424_v22 }
0x118f   : > { %5236 = vmatprep.subr.bf16.mxu1 %v5422_v19 }
0x1192   : > { %5238 = vmatpush3.bf16.msra.mxu1 %v5219_v21 }
0x1260   : > { %v3700_v45 = vpop.f32.mrb[0].mxu1 }
0x1261   : > { %v3705_v46 = vrot.slane %v3700_v45, 6  ;;  %v5152_v47 = vpop.f32.mrb[1].mxu1 }
0x1263   : > { %v3707_v48 = vadd.f32 %v3705_v46, %v7073_v25 }
0x1265   : > { %5345 = vtanh.f32 %v3707_v48  ;;  %v4298_v50 = vmul.f32 -1.442695, %v3707_v48 }
0x1267   : > { %5347 = vpow2.f32 %v4298_v50 }
0x126f   : > { %v5346_v49 = vpop.eup %5345 }
0x1270   : > { %3720 = vrot.lane.b32.xlu1 %v5346_v49, %s5426_s0 }
0x1271   : > { %v5348_v35 = vpop.eup %5347 }
0x1272   : > { %v3711_v51 = vadd.f32 1.0, %v5348_v35 }
0x1274   : > { %5349 = vrcp.f32 %v3711_v51 }
0x127e   : > { %v5350_v52 = vpop.eup %5349 }
0x127f   : > { %v3718_v4 = vmul.f32 %v5350_v52, %v3716_v55 }
0x12e2   : > { %v3721_v53 = vpop.permute.xlu1 %3720 }
0x12e3   : > { %v3723_v54 = vmul.f32 %v5350_v52, %v3721_v53 }
0x12e5   : > { %3725 = vrot.lane.b32.xlu0 %v3723_v54, %s5425_s27 }
0x1357   : > { %v3726_v5 = vpop.permute.xlu0 %3725 }
0x1358   : > { %v3728_v58 = vadd.f32 %v3726_v5, %v3718_v4 }
0x135a   : > { %5351 = vtanh.f32 %v3728_v58  ;;  %v3823_v15 = vrot.slane %v3728_v58, 6 }
0x1364   : > { %v5352_v59 = vpop.eup %5351 }
0x1365   : > { %3731 = vrot.lane.b32.xlu1 %v5352_v59, %s5426_s0 }
0x13d7   : > { %v3732_v60 = vpop.permute.xlu1 %3731 }
0x13d8   : > { %v3734_v61 = vmul.f32 %v5350_v52, %v3732_v60 }
0x13da   : > { %v3736_v62 = vrot.slane %v3734_v61, 2  ;;  %v3950_v21 = vsel %vm1982_vm2, %v7079_v43, %v3734_v61 }
0x13dc   : > { %3737 = vrot.lane.b32.xlu0 %v3736_v62, %s5425_s27 }
0x144e   : > { %v3738_v63 = vpop.permute.xlu0 %3737 }
0x144f   : > { %5162 = vmatmul.mubr.msk.f32.vlgmr.msra.gmra.mrb[2].mxu0 %vm185_vm0, %v3738_v63 }
0x1522   : > { %v3807_v0 = vpop.f32.mrb[2].mxu0 }
0x1523   : > { %v3812_v1 = vrot.slane %v3807_v0, 4  ;;  %v5163_v6 = vpop.f32.mrb[3].mxu0 }
0x1525   : > { %v3814_v7 = vadd.f32 %v3812_v1, %v7073_v25 }
0x1527   : > { %5353 = vtanh.f32 %v3814_v7  ;;  %v4300_v9 = vmul.f32 -1.442695, %v3814_v7 }
0x1529   : > { %5355 = vpow2.f32 %v4300_v9 }
0x1531   : > { %v5354_v8 = vpop.eup %5353 }
0x1532   : > { %3827 = vrot.lane.b32.xlu1 %v5354_v8, %s5426_s0 }
0x1533   : > { %v5356_v10 = vpop.eup %5355 }
0x1534   : > { %v3818_v11 = vadd.f32 1.0, %v5356_v10 }
0x1536   : > { %5357 = vrcp.f32 %v3818_v11 }
0x1540   : > { %v5358_v12 = vpop.eup %5357 }
0x1541   : > { %v3825_v16 = vmul.f32 %v5358_v12, %v3823_v15 }
0x15a4   : > { %v3828_v13 = vpop.permute.xlu1 %3827 }
0x15a5   : > { %v3830_v14 = vmul.f32 %v5358_v12, %v3828_v13 }
0x15a7   : > { %3832 = vrot.lane.b32.xlu0 %v3830_v14, %s5425_s27 }
0x1619   : > { %v3833_v17 = vpop.permute.xlu0 %3832 }
0x161a   : > { %v3835_v18 = vadd.f32 %v3833_v17, %v3825_v16 }
0x161c   : > { %5359 = vtanh.f32 %v3835_v18  ;;  %v3930_v39 = vrot.slane %v3835_v18, 6 }
0x1626   : > { %v5360_v24 = vpop.eup %5359 }
0x1627   : > { %3838 = vrot.lane.b32.xlu1 %v5360_v24, %s5426_s0 }
0x1699   : > { %v3839_v19 = vpop.permute.xlu1 %3838 }
0x169a   : > { %v3841_v20 = vmul.f32 %v5358_v12, %v3839_v19 }
0x169c   : > { %v3843_v22 = vrot.slane %v3841_v20, 4  ;;  %v3952_v23 = vsel %vm1984_vm3, %v3950_v21, %v3841_v20 }
0x169e   : > { %3844 = vrot.lane.b32.xlu0 %v3843_v22, %s5425_s27 }
0x1710   : > { %v3845_v26 = vpop.permute.xlu0 %3844 }
0x1711   : > { %5173 = vmatmul.mubr.msk.f32.vlgmr.msra.gmra.mrb[2].mxu1 %vm185_vm0, %v3845_v26 }
0x17e4   : > { %v3914_v27 = vpop.f32.mrb[2].mxu1 }
0x17e5   : > { %v3919_v28 = vrot.slane %v3914_v27, 2  ;;  %v5174_v34 = vpop.f32.mrb[3].mxu1 }
0x17e7   : > { %v3921_v29 = vadd.f32 %v3919_v28, %v7073_v25 }
0x17e9   : > { %5361 = vtanh.f32 %v3921_v29  ;;  %v4302_v31 = vmul.f32 -1.442695, %v3921_v29 }
0x17eb   : > { %5363 = vpow2.f32 %v4302_v31 }
0x17f3   : > { %v5362_v30 = vpop.eup %5361 }
0x17f4   : > { %3934 = vrot.lane.b32.xlu1 %v5362_v30, %s5426_s0 }
0x17f5   : > { %v5364_v32 = vpop.eup %5363 }
0x17f6   : > { %v3925_v33 = vadd.f32 1.0, %v5364_v32 }
0x17f8   : > { %5365 = vrcp.f32 %v3925_v33 }
0x1802   : > { %v5366_v36 = vpop.eup %5365 }
0x1803   : > { %v3932_v40 = vmul.f32 %v5366_v36, %v3930_v39 }
0x1866   : > { %v3935_v37 = vpop.permute.xlu1 %3934 }
0x1867   : > { %v3937_v38 = vmul.f32 %v5366_v36, %v3935_v37 }
0x1869   : > { %3939 = vrot.lane.b32.xlu0 %v3937_v38, %s5425_s27 }
0x18db   : > { %v3940_v41 = vpop.permute.xlu0 %3939 }
0x18dc   : > { %v3942_v17 = vadd.f32 %v3940_v41, %v3932_v40  }
0x18de   : > { %5367 = vtanh.f32 %v3942_v17 }
0x18e8   : > { %v5368_v25 = vpop.eup %5367 }
0x18e9   : > { %3945 = vrot.lane.b32.xlu1 %v5368_v25, %s5426_s0 }
0x195b   : > { %v3946_v42 = vpop.permute.xlu1 %3945 }
0x195c   : > { %v3948_v18 = vmul.f32 %v5366_v36, %v3946_v42  }
0x195e   : > { %v3954_v43 = vsel %vm1986_vm4, %v3952_v23, %v3948_v18 }
0x195f   : > { %3956 = vrot.lane.b32.xlu0 %v3954_v43, %s5425_s27 }
0x19cc   :  { %3518 = sbr.rel (!%p3516_p1) target bundleno = 3672 (0xe58), region = 77 }
0x19d1   : > { %v3957_v44 = vpop.permute.xlu0 %3956 }
0x19d2   : > { %3960 = vst.msk [vmem:[%s3959_s3] sm:$0xff] %vm185_vm0, %v3957_v44 }

// kernel: squeeze.2
= control target key start
LH: loop header
LB: loop body
LE: loop exit
PB: predicated region body
PF: predicated region fallthrough
CT: control target
= control target key end

     0   :  { %s91_s8 = smov 104   ;;  %vm19_vm0 = vcmask 64512   ;;  %s92_s9 = smov 112   ;;  %s121_s0 = inlined_call_operand.vmem [shape: bf16[2,64], index: 0, kind: input, shape index: {}]   ;;  %s122_s1 = inlined_call_operand.vmem [shape: bf16[2,8,8,1], index: 1, kind: output, shape index: {}]  }
   0x1   :  { %v14_v0 = vld [vmem:[%s121_s0] sm:$0x1]  ;;  %s90_s0 = smov 120   ;;  %s93_s10 = smov 96  }
   0x2   :  { %v15_v1 = vunpack.c.l.bf16 %v14_v0  ;;  %s94_s11 = smov 88   ;;  %s95_s12 = smov 80  }
   0x3   :  { %s96_s13 = smov 72  }
   0x4   :  { %17 = vst [vmem:[#allocation1] sm:$0x3] %v15_v1 }
   0xb   :  { %v21_v2 = vld [vmem:[#allocation1] sm:$0x3]  }
   0xc   :  { %v33_v3 = vld [vmem:[#allocation1] sm:$0x3]   ;;  %22 = vrot.lane.b32.xlu0 %v21_v2, %s90_s0 }
   0xd   :  { %34 = vrot.lane.b32.xlu1 %v33_v3, %s91_s8  ;;  %v27_v4 = vld [vmem:[#allocation1] sm:$0x3]  }
   0xe   :  { %v39_v5 = vld [vmem:[#allocation1] sm:$0x3]  }
   0xf   :  { %v18_v6 = vld [vmem:[#allocation1] sm:$0x3]  }
  0x10   :  { %20 = vst.msk [vmem:[#allocation0] ss:$8 sm:$0x3] %vm19_vm0, %v18_v6   ;;  %28 = vrot.lane.b32.xlu0 %v27_v4, %s92_s9  ;;  %v45_v7 = vld [vmem:[#allocation1] sm:$0x3]  }
  0x11   :  { %40 = vrot.lane.b32.xlu1 %v39_v5, %s93_s10  ;;  %v51_v8 = vld [vmem:[#allocation1] sm:$0x3]  }
  0x12   :  { %v57_v9 = vld [vmem:[#allocation1] sm:$0x3]  }
  0x14   :  { %46 = vrot.lane.b32.xlu0 %v45_v7, %s94_s11 }
  0x15   :  { %52 = vrot.lane.b32.xlu1 %v51_v8, %s95_s12 }
  0x18   :  { %58 = vrot.lane.b32.xlu0 %v57_v9, %s96_s13 }
  0x7e   :  { %v23_v10 = vpop.permute.xlu0 %22  }
  0x7f   :  { %v35_v11 = vpop.permute.xlu1 %34   ;;  %26 = vst.msk [vmem:[#allocation0 + $0x1] ss:$8 sm:$0x3] %vm19_vm0, %v23_v10  }
  0x80   :  { %38 = vst.msk [vmem:[#allocation0 + $0x3] ss:$8 sm:$0x3] %vm19_vm0, %v35_v11  }
  0x82   :  { %v29_v12 = vpop.permute.xlu0 %28  }
  0x83   :  { %v41_v13 = vpop.permute.xlu1 %40   ;;  %32 = vst.msk [vmem:[#allocation0 + $0x2] ss:$8 sm:$0x3] %vm19_vm0, %v29_v12  }
  0x84   :  { %44 = vst.msk [vmem:[#allocation0 + $0x4] ss:$8 sm:$0x3] %vm19_vm0, %v41_v13  }
  0x86   :  { %v47_v14 = vpop.permute.xlu0 %46  }
  0x87   :  { %v53_v15 = vpop.permute.xlu1 %52   ;;  %50 = vst.msk [vmem:[#allocation0 + $0x5] ss:$8 sm:$0x3] %vm19_vm0, %v47_v14  }
  0x88   :  { %56 = vst.msk [vmem:[#allocation0 + $0x6] ss:$8 sm:$0x3] %vm19_vm0, %v53_v15  }
  0x8a   :  { %v59_v16 = vpop.permute.xlu0 %58  }
  0x8b   :  { %62 = vst.msk [vmem:[#allocation0 + $0x7] ss:$8 sm:$0x3] %vm19_vm0, %v59_v16  }
  0x92   :  { %v67_v17 = vld [vmem:[#allocation0] sm:$0xff]  ;;  %v72_v18 = vld [vmem:[#allocation0 + $0x8] sm:$0xff] }
  0x93   :  { %v81_v19 = vpack.c.bf16 %v72_v18, %v67_v17 }
  0x95   :  { %82 = vst [vmem:[%s122_s1] sm:$0xff] %v81_v19  }

// kernel: multimoding2017_forward.11
= control target key start
LH: loop header
LB: loop body
LE: loop exit
PB: predicated region body
PF: predicated region fallthrough
CT: control target
= control target key end

     0   :  { %vm86_vm0 = vcmask 130048   ;;  %s406_s1 = inlined_call_operand.vmem [shape: bf16[16,128], index: 1, kind: input, shape index: {}]   ;;  %s407_s0 = inlined_call_operand.vmem [shape: bf16[128,16], index: 0, kind: input, shape index: {}]   ;;  %s408_s2 = inlined_call_operand.vmem [shape: f32[1,128], index: 2, kind: input, shape index: {}]   ;;  %s409_s3 = inlined_call_operand.vmem [shape: f32[128,128], index: 3, kind: output, shape index: {}]  }
   0x1   :  { %v291_v0 = vld [vmem:[%s406_s1] sm:$0xff]   ;;  %v294_v3 = vld [vmem:[%s407_s0 + $0x8] sm:$0xff]   ;;  %v296_v5 = vld [vmem:[%s407_s0 + $0x10] sm:$0xff]  }
   0x2   :  { %v292_v1 = vld [vmem:[%s407_s0] sm:$0xff]   ;;  %271 = vmatprep.subr.bf16.mxu0 %v291_v0  ;;  %289 = vmatprep.subr.bf16.mxu1 %v291_v0  ;;  %v295_v4 = vld [vmem:[%s407_s0 + $0x28] sm:$0xff]   ;;  %v297_v6 = vld [vmem:[%s407_s0 + $0x30] sm:$0xff]  }
   0x3   :  { %v293_v2 = vld [vmem:[%s407_s0 + $0x20] sm:$0xff]   ;;  %272 = vmatpush3.bf16.msra.mxu0 %v291_v0  ;;  %290 = vmatpush3.bf16.msra.mxu1 %v291_v0  ;;  %v298_v7 = vld [vmem:[%s407_s0 + $0x18] sm:$0xff]  }
   0x4   :  { %273 = vmatprep.mubr.msk.bf16.mxu0 %vm86_vm0, %v292_v1  ;;  %281 = vmatprep.mubr.msk.bf16.mxu1 %vm86_vm0, %v293_v2  ;;  %v299_v8 = vld [vmem:[%s407_s0 + $0x38] sm:$0xff]   ;;  %v244_v9 = vld [vmem:[%s408_s2] ss:$0 sm:$0xff] }
   0x6   :  { %274 = vmatmul.mubr.msk.bf16.vlgmr.msra.gmra.mrb[0].mxu0 %vm86_vm0, %v294_v3  ;;  %282 = vmatmul.mubr.msk.bf16.vlgmr.msra.gmra.mrb[0].mxu1 %vm86_vm0, %v295_v4 }
   0x7   :  { %277 = vmatprep.mubr.msk.bf16.mxu0 %vm86_vm0, %v296_v5  ;;  %285 = vmatprep.mubr.msk.bf16.mxu1 %vm86_vm0, %v297_v6 }
   0xe   :  { %278 = vmatmul.mubr.msk.bf16.gmra.mrb[4].mxu0 %vm86_vm0, %v298_v7  ;;  %286 = vmatmul.mubr.msk.bf16.gmra.mrb[4].mxu1 %vm86_vm0, %v299_v8 }
  0xd9   :  { %v275_v10 = vpop.f32.mrb[0].mxu0  ;;  %v283_v11 = vpop.f32.mrb[0].mxu1 }
  0xda   :  { %v154_v12 = vadd.f32 %v275_v10, %v244_v9  ;;  %v186_v13 = vadd.f32 %v283_v11, %v244_v9  ;;  %v145_v14 = vpop.f32.mrb[1].mxu0  ;;  %v177_v15 = vpop.f32.mrb[1].mxu1 }
  0xdb   :  { %v146_v16 = vadd.f32 %v244_v9, %v145_v14  ;;  %v178_v17 = vadd.f32 %v244_v9, %v177_v15  ;;  %v276_v18 = vpop.f32.mrb[2].mxu0  ;;  %v284_v19 = vpop.f32.mrb[2].mxu1 }
  0xdc   :  { %v210_v20 = vmax.f32 %v154_v12, 0.0  ;;  %v218_v21 = vmax.f32 %v186_v13, 0.0  ;;  %v157_v22 = vadd.f32 %v276_v18, %v244_v9  ;;  %v189_v23 = vadd.f32 %v284_v19, %v244_v9  ;;  %v148_v24 = vpop.f32.mrb[3].mxu0  ;;  %v180_v25 = vpop.f32.mrb[3].mxu1 }
  0xdd   :  { %v208_v26 = vmax.f32 %v146_v16, 0.0  ;;  %v216_v27 = vmax.f32 %v178_v17, 0.0  ;;  %v149_v28 = vadd.f32 %v244_v9, %v148_v24  ;;  %v181_v29 = vadd.f32 %v244_v9, %v180_v25 }
  0xde   :  { %226 = vst [vmem:[%s409_s3 + $0x10] sm:$0xff] %v210_v20  ;;  %234 = vst [vmem:[%s409_s3 + $0x50] sm:$0xff] %v218_v21  ;;  %v211_v30 = vmax.f32 %v157_v22, 0.0  ;;  %v219_v31 = vmax.f32 %v189_v23, 0.0 }
  0xdf   :  { %224 = vst [vmem:[%s409_s3] sm:$0xff] %v208_v26  ;;  %232 = vst [vmem:[%s409_s3 + $0x40] sm:$0xff] %v216_v27  ;;  %v209_v32 = vmax.f32 %v149_v28, 0.0  ;;  %v217_v33 = vmax.f32 %v181_v29, 0.0 }
  0xe0   :  { %227 = vst [vmem:[%s409_s3 + $0x18] sm:$0xff] %v211_v30  ;;  %235 = vst [vmem:[%s409_s3 + $0x58] sm:$0xff] %v219_v31 }
  0xe1   :  { %225 = vst [vmem:[%s409_s3 + $0x8] sm:$0xff] %v209_v32  ;;  %233 = vst [vmem:[%s409_s3 + $0x48] sm:$0xff] %v217_v33  ;;  %v279_v34 = vpop.f32.mrb[4].mxu0  ;;  %v287_v35 = vpop.f32.mrb[4].mxu1 }
  0xe2   :  { %v170_v36 = vadd.f32 %v279_v34, %v244_v9  ;;  %v202_v37 = vadd.f32 %v287_v35, %v244_v9  ;;  %v161_v38 = vpop.f32.mrb[5].mxu0  ;;  %v193_v39 = vpop.f32.mrb[5].mxu1 }
  0xe3   :  { %v162_v40 = vadd.f32 %v244_v9, %v161_v38  ;;  %v194_v41 = vadd.f32 %v244_v9, %v193_v39  ;;  %v280_v42 = vpop.f32.mrb[6].mxu0  ;;  %v288_v43 = vpop.f32.mrb[6].mxu1 }
  0xe4   :  { %v214_v44 = vmax.f32 %v170_v36, 0.0  ;;  %v222_v45 = vmax.f32 %v202_v37, 0.0  ;;  %v173_v46 = vadd.f32 %v280_v42, %v244_v9  ;;  %v205_v47 = vadd.f32 %v288_v43, %v244_v9  ;;  %v164_v48 = vpop.f32.mrb[7].mxu0  ;;  %v196_v49 = vpop.f32.mrb[7].mxu1 }
  0xe5   :  { %v212_v50 = vmax.f32 %v162_v40, 0.0  ;;  %v220_v51 = vmax.f32 %v194_v41, 0.0  ;;  %v165_v52 = vadd.f32 %v244_v9, %v164_v48  ;;  %v197_v53 = vadd.f32 %v244_v9, %v196_v49 }
  0xe6   :  { %230 = vst [vmem:[%s409_s3 + $0x30] sm:$0xff] %v214_v44  ;;  %238 = vst [vmem:[%s409_s3 + $0x70] sm:$0xff] %v222_v45  ;;  %v215_v54 = vmax.f32 %v173_v46, 0.0  ;;  %v223_v55 = vmax.f32 %v205_v47, 0.0 }
  0xe7   :  { %228 = vst [vmem:[%s409_s3 + $0x20] sm:$0xff] %v212_v50  ;;  %236 = vst [vmem:[%s409_s3 + $0x60] sm:$0xff] %v220_v51  ;;  %v213_v56 = vmax.f32 %v165_v52, 0.0  ;;  %v221_v57 = vmax.f32 %v197_v53, 0.0 }
  0xe8   :  { %231 = vst [vmem:[%s409_s3 + $0x38] sm:$0xff] %v215_v54  ;;  %239 = vst [vmem:[%s409_s3 + $0x78] sm:$0xff] %v223_v55 }
  0xe9   :  { %229 = vst [vmem:[%s409_s3 + $0x28] sm:$0xff] %v213_v56  ;;  %237 = vst [vmem:[%s409_s3 + $0x68] sm:$0xff] %v221_v57 }

// kernel: multimoding2017_forward.12
= control target key start
LH: loop header
LB: loop body
LE: loop exit
PB: predicated region body
PF: predicated region fallthrough
CT: control target
= control target key end

     0   :  { %vm45_vm0 = vcmask 261120   ;;  %s143_s0 = inlined_call_operand.vmem [shape: f32[2,16,32], index: 0, kind: input, shape index: {}]   ;;  %s144_s1 = inlined_call_operand.vmem [shape: f32[2,16,32], index: 1, kind: input, shape index: {}]   ;;  %s145_s2 = inlined_call_operand.vmem [shape: f32[2,16,32], index: 2, kind: input, shape index: {}]   ;;  %s146_s3 = inlined_call_operand.vmem [shape: f32[2,16,32], index: 3, kind: input, shape index: {}]   ;;  %s147_s4 = inlined_call_operand.vmem [shape: f32[2,16,32], index: 4, kind: output, shape index: {}]  }
   0x1   :  { %v17_v0 = vld [vmem:[%s143_s0] sm:$0xff]  ;;  %v18_v5 = vld [vmem:[%s143_s0 + $0x8] sm:$0xff]  ;;  %v19_v11 = vld [vmem:[%s143_s0 + $0x10] sm:$0xff] }
   0x2   :  { %v21_v1 = vld [vmem:[%s144_s1] sm:$0xff]  ;;  %v22_v6 = vld [vmem:[%s144_s1 + $0x8] sm:$0xff]  ;;  %v23_v13 = vld [vmem:[%s144_s1 + $0x10] sm:$0xff] }
   0x3   :  { %v29_v2 = vld [vmem:[%s145_s2] sm:$0xff]  ;;  %v25_v3 = vmax.f32 %v17_v0, %v21_v1  ;;  %v26_v8 = vmax.f32 %v18_v5, %v22_v6  ;;  %v30_v9 = vld [vmem:[%s145_s2 + $0x8] sm:$0xff]  ;;  %v31_v14 = vld [vmem:[%s145_s2 + $0x10] sm:$0xff]  ;;  %v27_v17 = vmax.f32 %v19_v11, %v23_v13 }
   0x4   :  { %v33_v4 = vld [vmem:[%s146_s3] sm:$0xff]  ;;  %v34_v10 = vld [vmem:[%s146_s3 + $0x8] sm:$0xff]  ;;  %v35_v15 = vld [vmem:[%s146_s3 + $0x10] sm:$0xff] }
   0x5   :  { %v37_v7 = vmax.f32 %v29_v2, %v33_v4  ;;  %v38_v12 = vmax.f32 %v30_v9, %v34_v10  ;;  %v39_v18 = vmax.f32 %v31_v14, %v35_v15  ;;  %v20_v19 = vld [vmem:[%s143_s0 + $0x18] sm:$0xff] }
   0x6   :  { %v24_v20 = vld [vmem:[%s144_s1 + $0x18] sm:$0xff] }
   0x7   :  { %v41_v16 = vmax.f32 %v25_v3, %v37_v7  ;;  %v32_v21 = vld [vmem:[%s145_s2 + $0x18] sm:$0xff]  ;;  %v42_v22 = vmax.f32 %v26_v8, %v38_v12  ;;  %v28_v23 = vmax.f32 %v20_v19, %v24_v20  ;;  %v43_v25 = vmax.f32 %v27_v17, %v39_v18 }
   0x8   :  { %v36_v24 = vld [vmem:[%s146_s3 + $0x18] sm:$0xff] }
   0x9   :  { %46 = vst.msk [vmem:[%s147_s4] sm:$0xff] %vm45_vm0, %v41_v16  ;;  %v40_v26 = vmax.f32 %v32_v21, %v36_v24  ;;  %47 = vst.msk [vmem:[%s147_s4 + $0x8] sm:$0xff] %vm45_vm0, %v42_v22 }
   0xa   :  { %48 = vst.msk [vmem:[%s147_s4 + $0x10] sm:$0xff] %vm45_vm0, %v43_v25 }
   0xb   :  { %v44_v27 = vmax.f32 %v28_v23, %v40_v26 }
   0xd   :  { %49 = vst.msk [vmem:[%s147_s4 + $0x18] sm:$0xff] %vm45_vm0, %v44_v27 }

// kernel: multimoding2017_forward.20
= control target key start
LH: loop header
LB: loop body
LE: loop exit
PB: predicated region body
PF: predicated region fallthrough
CT: control target
= control target key end

     0   :  { %s8478_s1 = inlined_call_operand.vmem [shape: bf16[4608,256], index: 1, kind: input, shape index: {}]   ;;  %s8479_s0 = inlined_call_operand.vmem [shape: bf16[24,4608], index: 0, kind: input, shape index: {}]   ;;  %s8480_s2 = inlined_call_operand.vmem [shape: f32[1,256], index: 2, kind: input, shape index: {}]   ;;  %s8481_s3 = inlined_call_operand.vmem [shape: f32[1,256], index: 3, kind: input, shape index: {}]   ;;  %s8482_s4 = inlined_call_operand.vmem [shape: f32[24,256], index: 4, kind: output, shape index: {}]  }
   0x1   :  { %v5585_v0 = vld [vmem:[%s8478_s1 + $0x4] ss:$8 sps:$4 sm:$0xff]   ;;  %v5589_v2 = vld [vmem:[%s8478_s1] ss:$8 sps:$4 sm:$0xff]   ;;  %v5591_v4 = vld [vmem:[%s8478_s1 + $0x14] ss:$8 sps:$4 sm:$0xff]  }
   0x2   :  { %v5587_v1 = vld [vmem:[%s8478_s1 + $0x904] ss:$8 sps:$4 sm:$0xff]   ;;  %3833 = vmatprep.subr.bf16.mxu1 %v5585_v0  ;;  %v5590_v3 = vld [vmem:[%s8478_s1 + $0x900] ss:$8 sps:$4 sm:$0xff]   ;;  %v5593_v5 = vld [vmem:[%s8478_s1 + $0x914] ss:$8 sps:$4 sm:$0xff]  }
   0x3   :  { %4292 = vmatprep.subr.bf16.mxu0 %v5587_v1  ;;  %3834 = vmatpush1.bf16.msra.mxu1 %v5589_v2  ;;  %v5595_v6 = vld [vmem:[%s8478_s1 + $0x10] ss:$8 sps:$4 sm:$0xff]   ;;  %v5597_v8 = vld [vmem:[%s8478_s1 + $0x24] ss:$8 sps:$4 sm:$0xff]   ;;  %v5601_v10 = vld [vmem:[%s8478_s1 + $0x20] ss:$8 sps:$4 sm:$0xff]  }
   0x4   :  { %4293 = vmatpush1.bf16.msra.mxu0 %v5590_v3  ;;  %3835 = vmatprep.subr.bf16.mxu1 %v5591_v4  ;;  %v5596_v7 = vld [vmem:[%s8478_s1 + $0x910] ss:$8 sps:$4 sm:$0xff]   ;;  %v5599_v9 = vld [vmem:[%s8478_s1 + $0x924] ss:$8 sps:$4 sm:$0xff]   ;;  %v5602_v11 = vld [vmem:[%s8478_s1 + $0x920] ss:$8 sps:$4 sm:$0xff]  }
   0x5   :  { %4294 = vmatprep.subr.bf16.mxu0 %v5593_v5  ;;  %v5603_v12 = vld [vmem:[%s8478_s1 + $0x34] ss:$8 sps:$4 sm:$0xff]   ;;  %v5607_v14 = vld [vmem:[%s8478_s1 + $0x30] ss:$8 sps:$4 sm:$0xff]   ;;  %v5609_v16 = vld [vmem:[%s8478_s1 + $0x44] ss:$8 sps:$4 sm:$0xff]  }
   0x6   :  { %v5605_v13 = vld [vmem:[%s8478_s1 + $0x934] ss:$8 sps:$4 sm:$0xff]   ;;  %v5608_v15 = vld [vmem:[%s8478_s1 + $0x930] ss:$8 sps:$4 sm:$0xff]   ;;  %v5611_v17 = vld [vmem:[%s8478_s1 + $0x944] ss:$8 sps:$4 sm:$0xff]  }
   0x7   :  { %3836 = vmatpush1.bf16.msra.mxu1 %v5595_v6  ;;  %v5613_v18 = vld [vmem:[%s8478_s1 + $0x40] ss:$8 sps:$4 sm:$0xff]   ;;  %v5615_v20 = vld [vmem:[%s8478_s1 + $0x54] ss:$8 sps:$4 sm:$0xff]   ;;  %v5619_v22 = vld [vmem:[%s8478_s1 + $0x50] ss:$8 sps:$4 sm:$0xff]  }
   0x8   :  { %4295 = vmatpush1.bf16.msra.mxu0 %v5596_v7  ;;  %3837 = vmatprep.subr.bf16.mxu1 %v5597_v8  ;;  %v5614_v19 = vld [vmem:[%s8478_s1 + $0x940] ss:$8 sps:$4 sm:$0xff]   ;;  %v5617_v21 = vld [vmem:[%s8478_s1 + $0x954] ss:$8 sps:$4 sm:$0xff]   ;;  %v5620_v23 = vld [vmem:[%s8478_s1 + $0x950] ss:$8 sps:$4 sm:$0xff]  }
   0x9   :  { %4296 = vmatprep.subr.bf16.mxu0 %v5599_v9  ;;  %v5621_v24 = vld [vmem:[%s8478_s1 + $0x64] ss:$8 sps:$4 sm:$0xff]   ;;  %v5625_v26 = vld [vmem:[%s8478_s1 + $0x60] ss:$8 sps:$4 sm:$0xff]   ;;  %v5627_v28 = vld [vmem:[%s8478_s1 + $0x74] ss:$8 sps:$4 sm:$0xff]  }
   0xa   :  { %v5623_v25 = vld [vmem:[%s8478_s1 + $0x964] ss:$8 sps:$4 sm:$0xff]   ;;  %v5626_v27 = vld [vmem:[%s8478_s1 + $0x960] ss:$8 sps:$4 sm:$0xff]   ;;  %v5629_v29 = vld [vmem:[%s8478_s1 + $0x974] ss:$8 sps:$4 sm:$0xff]  }
   0xb   :  { %3838 = vmatpush1.bf16.msra.mxu1 %v5601_v10  ;;  %v5631_v30 = vld [vmem:[%s8478_s1 + $0x70] ss:$8 sps:$4 sm:$0xff]   ;;  %v5633_v32 = vld [vmem:[%s8478_s1 + $0x84] ss:$8 sps:$4 sm:$0xff]   ;;  %v5637_v34 = vld [vmem:[%s8478_s1 + $0x80] ss:$8 sps:$4 sm:$0xff]  }
   0xc   :  { %4297 = vmatpush1.bf16.msra.mxu0 %v5602_v11  ;;  %3839 = vmatprep.subr.bf16.mxu1 %v5603_v12  ;;  %v5632_v31 = vld [vmem:[%s8478_s1 + $0x970] ss:$8 sps:$4 sm:$0xff]   ;;  %v5635_v33 = vld [vmem:[%s8478_s1 + $0x984] ss:$8 sps:$4 sm:$0xff]   ;;  %v5638_v35 = vld [vmem:[%s8478_s1 + $0x980] ss:$8 sps:$4 sm:$0xff]  }
   0xd   :  { %4298 = vmatprep.subr.bf16.mxu0 %v5605_v13  ;;  %v5639_v36 = vld [vmem:[%s8478_s1 + $0x94] ss:$8 sps:$4 sm:$0xff]   ;;  %v5643_v38 = vld [vmem:[%s8478_s1 + $0x90] ss:$8 sps:$4 sm:$0xff]   ;;  %v5645_v40 = vld [vmem:[%s8478_s1 + $0xa4] ss:$8 sps:$4 sm:$0xff]  }
   0xe   :  { %v5641_v37 = vld [vmem:[%s8478_s1 + $0x994] ss:$8 sps:$4 sm:$0xff]   ;;  %v5644_v39 = vld [vmem:[%s8478_s1 + $0x990] ss:$8 sps:$4 sm:$0xff]   ;;  %v5647_v41 = vld [vmem:[%s8478_s1 + $0x9a4] ss:$8 sps:$4 sm:$0xff]  }
   0xf   :  { %3840 = vmatpush1.bf16.msra.mxu1 %v5607_v14  ;;  %v5649_v42 = vld [vmem:[%s8478_s1 + $0xa0] ss:$8 sps:$4 sm:$0xff]   ;;  %v5651_v44 = vld [vmem:[%s8478_s1 + $0xb4] ss:$8 sps:$4 sm:$0xff]   ;;  %v5655_v46 = vld [vmem:[%s8478_s1 + $0xb0] ss:$8 sps:$4 sm:$0xff]  }
  0x10   :  { %4299 = vmatpush1.bf16.msra.mxu0 %v5608_v15  ;;  %3841 = vmatprep.subr.bf16.mxu1 %v5609_v16  ;;  %v5650_v43 = vld [vmem:[%s8478_s1 + $0x9a0] ss:$8 sps:$4 sm:$0xff]   ;;  %v5653_v45 = vld [vmem:[%s8478_s1 + $0x9b4] ss:$8 sps:$4 sm:$0xff]   ;;  %v5656_v47 = vld [vmem:[%s8478_s1 + $0x9b0] ss:$8 sps:$4 sm:$0xff]  }
  0x11   :  { %4300 = vmatprep.subr.bf16.mxu0 %v5611_v17  ;;  %v5683_v48 = vld [vmem:[%s8479_s0 + $0x4] ss:$144 sps:$4 sm:$0xff]   ;;  %v5689_v51 = vld [vmem:[%s8479_s0 + $0x4c] ss:$144 sps:$4 sm:$0xff]   ;;  %v5661_v52 = vld [vmem:[%s8478_s1 + $0xc0] ss:$8 sps:$4 sm:$0xff]  }
  0x12   :  { %v5657_v49 = vld [vmem:[%s8478_s1 + $0xc4] ss:$8 sps:$4 sm:$0xff]   ;;  %3865 = vmatprep.mubr.bf16.mxu1 %v5683_v48  ;;  %v5662_v53 = vld [vmem:[%s8478_s1 + $0x9c0] ss:$8 sps:$4 sm:$0xff]   ;;  %v5663_v54 = vld [vmem:[%s8478_s1 + $0xd4] ss:$8 sps:$4 sm:$0xff]   ;;  %4324 = vmatprep.mubr.bf16.mxu0 %v5689_v51 }
  0x13   :  { %3842 = vmatpush1.bf16.msra.mxu1 %v5613_v18  ;;  %v5659_v50 = vld [vmem:[%s8478_s1 + $0x9c4] ss:$8 sps:$4 sm:$0xff]   ;;  %v5665_v55 = vld [vmem:[%s8478_s1 + $0x9d4] ss:$8 sps:$4 sm:$0xff]   ;;  %v5667_v56 = vld [vmem:[%s8478_s1 + $0xd0] ss:$8 sps:$4 sm:$0xff]  }
  0x14   :  { %4301 = vmatpush1.bf16.msra.mxu0 %v5614_v19  ;;  %3843 = vmatprep.subr.bf16.mxu1 %v5615_v20  ;;  %v5668_v57 = vld [vmem:[%s8478_s1 + $0x9d0] ss:$8 sps:$4 sm:$0xff]   ;;  %v5669_v58 = vld [vmem:[%s8478_s1 + $0xe4] ss:$8 sps:$4 sm:$0xff]   ;;  %v5673_v60 = vld [vmem:[%s8478_s1 + $0xe0] ss:$8 sps:$4 sm:$0xff]  }
  0x15   :  { %4302 = vmatprep.subr.bf16.mxu0 %v5617_v21  ;;  %v5671_v59 = vld [vmem:[%s8478_s1 + $0x9e4] ss:$8 sps:$4 sm:$0xff]   ;;  %v5674_v61 = vld [vmem:[%s8478_s1 + $0x9e0] ss:$8 sps:$4 sm:$0xff]   ;;  %v5675_v62 = vld [vmem:[%s8478_s1 + $0xf4] ss:$8 sps:$4 sm:$0xff]  }
  0x16   :  { %v5677_v63 = vld [vmem:[%s8478_s1 + $0x9f4] ss:$8 sps:$4 sm:$0xff]   ;;  %v5679_v0 = vld [vmem:[%s8478_s1 + $0xf0] ss:$8 sps:$4 sm:$0xff]   ;;  %v5686_v2 = vld [vmem:[%s8478_s1 + $0x104] ss:$8 sps:$4 sm:$0xff]  }
  0x17   :  { %3844 = vmatpush1.bf16.msra.mxu1 %v5619_v22  ;;  %v5680_v1 = vld [vmem:[%s8478_s1 + $0x9f0] ss:$8 sps:$4 sm:$0xff]   ;;  %v5692_v3 = vld [vmem:[%s8478_s1 + $0xa04] ss:$8 sps:$4 sm:$0xff]   ;;  %v5684_v5 = vld [vmem:[%s8478_s1 + $0x100] ss:$8 sps:$4 sm:$0xff]  }
  0x18   :  { %4303 = vmatpush1.bf16.msra.mxu0 %v5620_v23  ;;  %3845 = vmatprep.subr.bf16.mxu1 %v5621_v24  ;;  %v5681_v4 = vld [vmem:[%s8479_s0] ss:$144 sps:$4 sm:$0xff]   ;;  %v5687_v6 = vld [vmem:[%s8479_s0 + $0x48] ss:$144 sps:$4 sm:$0xff]   ;;  %v5695_v8 = vld [vmem:[%s8478_s1 + $0x114] ss:$8 sps:$4 sm:$0xff]  }
  0x19   :  { %4304 = vmatprep.subr.bf16.mxu0 %v5623_v25  ;;  %v5690_v7 = vld [vmem:[%s8478_s1 + $0xa00] ss:$8 sps:$4 sm:$0xff]   ;;  %v5698_v9 = vld [vmem:[%s8478_s1 + $0xa14] ss:$8 sps:$4 sm:$0xff]   ;;  %v5693_v10 = vld [vmem:[%s8478_s1 + $0x110] ss:$8 sps:$4 sm:$0xff]  }
  0x1a   :  { %v5696_v11 = vld [vmem:[%s8478_s1 + $0xa10] ss:$8 sps:$4 sm:$0xff]   ;;  %v5701_v12 = vld [vmem:[%s8478_s1 + $0x124] ss:$8 sps:$4 sm:$0xff]   ;;  %v5699_v14 = vld [vmem:[%s8478_s1 + $0x120] ss:$8 sps:$4 sm:$0xff]  }
  0x1b   :  { %3846 = vmatpush1.bf16.msra.mxu1 %v5625_v26  ;;  %v5704_v13 = vld [vmem:[%s8478_s1 + $0xa24] ss:$8 sps:$4 sm:$0xff]   ;;  %v5702_v15 = vld [vmem:[%s8478_s1 + $0xa20] ss:$8 sps:$4 sm:$0xff]   ;;  %v5707_v16 = vld [vmem:[%s8478_s1 + $0x134] ss:$8 sps:$4 sm:$0xff]  }
  0x1c   :  { %4305 = vmatpush1.bf16.msra.mxu0 %v5626_v27  ;;  %3847 = vmatprep.subr.bf16.mxu1 %v5627_v28  ;;  %v5710_v17 = vld [vmem:[%s8478_s1 + $0xa34] ss:$8 sps:$4 sm:$0xff]   ;;  %v5705_v18 = vld [vmem:[%s8478_s1 + $0x130] ss:$8 sps:$4 sm:$0xff]   ;;  %v5713_v20 = vld [vmem:[%s8478_s1 + $0x144] ss:$8 sps:$4 sm:$0xff]  }
  0x1d   :  { %4306 = vmatprep.subr.bf16.mxu0 %v5629_v29  ;;  %v5708_v19 = vld [vmem:[%s8478_s1 + $0xa30] ss:$8 sps:$4 sm:$0xff]   ;;  %v5716_v21 = vld [vmem:[%s8478_s1 + $0xa44] ss:$8 sps:$4 sm:$0xff]   ;;  %v5711_v22 = vld [vmem:[%s8478_s1 + $0x140] ss:$8 sps:$4 sm:$0xff]  }
  0x1e   :  { %v5714_v23 = vld [vmem:[%s8478_s1 + $0xa40] ss:$8 sps:$4 sm:$0xff]   ;;  %v5719_v24 = vld [vmem:[%s8478_s1 + $0x154] ss:$8 sps:$4 sm:$0xff]   ;;  %v5717_v27 = vld [vmem:[%s8478_s1 + $0x150] ss:$8 sps:$4 sm:$0xff]  }
  0x1f   :  { %3848 = vmatpush1.bf16.msra.mxu1 %v5631_v30  ;;  %v5722_v25 = vld [vmem:[%s8478_s1 + $0xa54] ss:$8 sps:$4 sm:$0xff]   ;;  %v53_v26 = vld [vmem:[%s8479_s0 + $0x120] sm:$0xff]  ;;  %v5720_v30 = vld [vmem:[%s8478_s1 + $0xa50] ss:$8 sps:$4 sm:$0xff]  }
  0x20   :  { %4307 = vmatpush1.bf16.msra.mxu0 %v5632_v31  ;;  %3849 = vmatprep.subr.bf16.mxu1 %v5633_v32  ;;  %v4840_v28 = vcombine.high %v53_v26, %v53_v26  ;;  %v4839_v29 = vcombine.low %v53_v26, %v53_v26  ;;  %v62_v31 = vld [vmem:[%s8479_s0 + $0x168] sm:$0xff]  ;;  %v5743_v48 = vld [vmem:[%s8478_s1 + $0x194] ss:$8 sps:$4 sm:$0xff]   ;;  %v5744_v51 = vld [vmem:[%s8478_s1 + $0xa90] ss:$8 sps:$4 sm:$0xff]  }
  0x21   :  { %4308 = vmatprep.subr.bf16.mxu0 %v5635_v33  ;;  %v5725_v32 = vld [vmem:[%s8478_s1 + $0x164] ss:$8 sps:$4 sm:$0xff]  }
  0x22   :  { %v5728_v33 = vld [vmem:[%s8478_s1 + $0xa64] ss:$8 sps:$4 sm:$0xff]  }
  0x23   :  { %3850 = vmatpush1.bf16.msra.mxu1 %v5637_v34  ;;  %v4858_v34 = vcombine.high %v62_v31, %v62_v31  ;;  %v5807_v26 = vld [vmem:[%s8478_s1 + $0x224] ss:$8 sps:$4 sm:$0xff]  }
  0x24   :  { %4309 = vmatpush1.bf16.msra.mxu0 %v5638_v35  ;;  %3851 = vmatprep.subr.bf16.mxu1 %v5639_v36  ;;  %v4857_v35 = vcombine.low %v62_v31, %v62_v31  ;;  %v5723_v36 = vld [vmem:[%s8478_s1 + $0x160] ss:$8 sps:$4 sm:$0xff]  }
  0x25   :  { %4310 = vmatprep.subr.bf16.mxu0 %v5641_v37  ;;  %v5726_v37 = vld [vmem:[%s8478_s1 + $0xa60] ss:$8 sps:$4 sm:$0xff]  }
  0x27   :  { %3852 = vmatpush1.bf16.msra.mxu1 %v5643_v38  ;;  %v5731_v38 = vld [vmem:[%s8478_s1 + $0x174] ss:$8 sps:$4 sm:$0xff]  }
  0x28   :  { %4311 = vmatpush1.bf16.msra.mxu0 %v5644_v39  ;;  %3853 = vmatprep.subr.bf16.mxu1 %v5645_v40  ;;  %v5734_v39 = vld [vmem:[%s8478_s1 + $0xa74] ss:$8 sps:$4 sm:$0xff]  }
  0x29   :  { %4312 = vmatprep.subr.bf16.mxu0 %v5647_v41  ;;  %v5789_v40 = vld [vmem:[%s8479_s0 + $0xc] ss:$144 sps:$4 sm:$0xff]   ;;  %v5729_v41 = vld [vmem:[%s8478_s1 + $0x170] ss:$8 sps:$4 sm:$0xff]  }
  0x2b   :  { %3854 = vmatpush1.bf16.msra.mxu1 %v5649_v42  ;;  %v5732_v42 = vld [vmem:[%s8478_s1 + $0xa70] ss:$8 sps:$4 sm:$0xff]  }
  0x2c   :  { %4313 = vmatpush1.bf16.msra.mxu0 %v5650_v43  ;;  %3855 = vmatprep.subr.bf16.mxu1 %v5651_v44  ;;  %v5795_v43 = vld [vmem:[%s8479_s0 + $0x54] ss:$144 sps:$4 sm:$0xff]  }
  0x2d   :  { %4314 = vmatprep.subr.bf16.mxu0 %v5653_v45  ;;  %v5737_v44 = vld [vmem:[%s8478_s1 + $0x184] ss:$8 sps:$4 sm:$0xff]  }
  0x2e   :  { %v5740_v45 = vld [vmem:[%s8478_s1 + $0xa84] ss:$8 sps:$4 sm:$0xff]  }
  0x2f   :  { %3856 = vmatpush1.bf16.msra.mxu1 %v5655_v46  ;;  %v5735_v46 = vld [vmem:[%s8478_s1 + $0x180] ss:$8 sps:$4 sm:$0xff]  }
  0x30   :  { %4315 = vmatpush1.bf16.msra.mxu0 %v5656_v47  ;;  %3857 = vmatprep.subr.bf16.mxu1 %v5657_v49  ;;  %v5738_v47 = vld [vmem:[%s8478_s1 + $0xa80] ss:$8 sps:$4 sm:$0xff]   ;;  %v5746_v49 = vld [vmem:[%s8478_s1 + $0xa94] ss:$8 sps:$4 sm:$0xff]  }
  0x31   :  { %4316 = vmatprep.subr.bf16.mxu0 %v5659_v50  ;;  %v5741_v50 = vld [vmem:[%s8478_s1 + $0x190] ss:$8 sps:$4 sm:$0xff]  }
  0x33   :  { %3858 = vmatpush1.bf16.msra.mxu1 %v5661_v52  ;;  %v5749_v52 = vld [vmem:[%s8478_s1 + $0x1a4] ss:$8 sps:$4 sm:$0xff]  }
  0x34   :  { %4317 = vmatpush1.bf16.msra.mxu0 %v5662_v53  ;;  %3859 = vmatprep.subr.bf16.mxu1 %v5663_v54  ;;  %v5752_v53 = vld [vmem:[%s8478_s1 + $0xaa4] ss:$8 sps:$4 sm:$0xff]   ;;  %v5747_v54 = vld [vmem:[%s8478_s1 + $0x1a0] ss:$8 sps:$4 sm:$0xff]  }
  0x35   :  { %4318 = vmatprep.subr.bf16.mxu0 %v5665_v55  ;;  %v5750_v55 = vld [vmem:[%s8478_s1 + $0xaa0] ss:$8 sps:$4 sm:$0xff]  }
  0x37   :  { %3860 = vmatpush1.bf16.msra.mxu1 %v5667_v56  ;;  %v5755_v56 = vld [vmem:[%s8478_s1 + $0x1b4] ss:$8 sps:$4 sm:$0xff]  }
  0x38   :  { %4319 = vmatpush1.bf16.msra.mxu0 %v5668_v57  ;;  %3861 = vmatprep.subr.bf16.mxu1 %v5669_v58  ;;  %v5758_v57 = vld [vmem:[%s8478_s1 + $0xab4] ss:$8 sps:$4 sm:$0xff]   ;;  %v5753_v58 = vld [vmem:[%s8478_s1 + $0x1b0] ss:$8 sps:$4 sm:$0xff]  }
  0x39   :  { %4320 = vmatprep.subr.bf16.mxu0 %v5671_v59  ;;  %v5756_v59 = vld [vmem:[%s8478_s1 + $0xab0] ss:$8 sps:$4 sm:$0xff]  }
  0x3b   :  { %3862 = vmatpush1.bf16.msra.mxu1 %v5673_v60  ;;  %v5761_v60 = vld [vmem:[%s8478_s1 + $0x1c4] ss:$8 sps:$4 sm:$0xff]  }
  0x3c   :  { %4321 = vmatpush1.bf16.msra.mxu0 %v5674_v61  ;;  %3863 = vmatprep.subr.bf16.mxu1 %v5675_v62  ;;  %v5764_v61 = vld [vmem:[%s8478_s1 + $0xac4] ss:$8 sps:$4 sm:$0xff]   ;;  %v5759_v62 = vld [vmem:[%s8478_s1 + $0x1c0] ss:$8 sps:$4 sm:$0xff]  }
  0x3d   :  { %4322 = vmatprep.subr.bf16.mxu0 %v5677_v63  ;;  %v5762_v63 = vld [vmem:[%s8478_s1 + $0xac0] ss:$8 sps:$4 sm:$0xff]  }
  0x3f   :  { %3864 = vmatpush1.bf16.msra.mxu1 %v5679_v0  ;;  %v5767_v0 = vld [vmem:[%s8478_s1 + $0x1d4] ss:$8 sps:$4 sm:$0xff]  }
  0x40   :  { %4323 = vmatpush1.bf16.msra.mxu0 %v5680_v1  ;;  %3884 = vmatprep.subr.bf16.mxu1 %v5686_v2  ;;  %v5770_v1 = vld [vmem:[%s8478_s1 + $0xad4] ss:$8 sps:$4 sm:$0xff]   ;;  %v5765_v2 = vld [vmem:[%s8478_s1 + $0x1d0] ss:$8 sps:$4 sm:$0xff]  }
  0x41   :  { %4343 = vmatprep.subr.bf16.mxu0 %v5692_v3  ;;  %v5768_v3 = vld [vmem:[%s8478_s1 + $0xad0] ss:$8 sps:$4 sm:$0xff]  }
  0x42   :  { %3866 = vmatmul.mubr.bf16.vlgmr.msra.gmra.mrb[0].mxu1 %v5681_v4  ;;  %v5774_v4 = vld [vmem:[%s8478_s1 + $0x1e4] ss:$8 sps:$4 sm:$0xff]  }
  0x43   :  { %4325 = vmatmul.mubr.bf16.vlgmr.msra.gmra.mrb[0].mxu0 %v5687_v6  ;;  %3885 = vmatpush1.bf16.msra.mxu1 %v5684_v5  ;;  %v5778_v5 = vld [vmem:[%s8478_s1 + $0xae4] ss:$8 sps:$4 sm:$0xff]   ;;  %v5772_v6 = vld [vmem:[%s8478_s1 + $0x1e0] ss:$8 sps:$4 sm:$0xff]  }
  0x44   :  { %4344 = vmatpush1.bf16.msra.mxu0 %v5690_v7  ;;  %3886 = vmatprep.subr.bf16.mxu1 %v5695_v8  ;;  %v5776_v7 = vld [vmem:[%s8478_s1 + $0xae0] ss:$8 sps:$4 sm:$0xff]   ;;  %v5783_v8 = vld [vmem:[%s8478_s1 + $0x1f4] ss:$8 sps:$4 sm:$0xff]  }
  0x45   :  { %4345 = vmatprep.subr.bf16.mxu0 %v5698_v9  ;;  %3875 = vmatprep.mubr.bf16.mxu1 %v4840_v28  ;;  %v5786_v9 = vld [vmem:[%s8478_s1 + $0xaf4] ss:$8 sps:$4 sm:$0xff]   ;;  %v5805_v28 = vld [vmem:[%s8478_s1 + $0x220] ss:$8 sps:$4 sm:$0xff]  }
  0x46   :  { %4334 = vmatprep.mubr.bf16.mxu0 %v4858_v34  ;;  %v5895_v34 = vld [vmem:[%s8479_s0 + $0x14] ss:$144 sps:$4 sm:$0xff]  }
  0x47   :  { %3887 = vmatpush1.bf16.msra.mxu1 %v5693_v10  ;;  %v5781_v10 = vld [vmem:[%s8478_s1 + $0x1f0] ss:$8 sps:$4 sm:$0xff]  }
  0x48   :  { %4346 = vmatpush1.bf16.msra.mxu0 %v5696_v11  ;;  %3888 = vmatprep.subr.bf16.mxu1 %v5701_v12  ;;  %v5784_v11 = vld [vmem:[%s8478_s1 + $0xaf0] ss:$8 sps:$4 sm:$0xff]  }
  0x49   :  { %4347 = vmatprep.subr.bf16.mxu0 %v5704_v13  ;;  %v5787_v12 = vld [vmem:[%s8479_s0 + $0x8] ss:$144 sps:$4 sm:$0xff]   ;;  %v5792_v13 = vld [vmem:[%s8478_s1 + $0x204] ss:$8 sps:$4 sm:$0xff]  }
  0x4a   :  { %3876 = vmatmul.mubr.bf16.gmra.mrb[4].mxu1 %v4839_v29  ;;  %v5808_v29 = vld [vmem:[%s8478_s1 + $0xb20] ss:$8 sps:$4 sm:$0xff]  }
  0x4b   :  { %3889 = vmatpush1.bf16.msra.mxu1 %v5699_v14  ;;  %4335 = vmatmul.mubr.bf16.gmra.mrb[4].mxu0 %v4857_v35  ;;  %v5798_v14 = vld [vmem:[%s8478_s1 + $0xb04] ss:$8 sps:$4 sm:$0xff]  }
  0x4c   :  { %4348 = vmatpush1.bf16.msra.mxu0 %v5702_v15  ;;  %3890 = vmatprep.subr.bf16.mxu1 %v5707_v16  ;;  %v5790_v15 = vld [vmem:[%s8478_s1 + $0x200] ss:$8 sps:$4 sm:$0xff]   ;;  %v5901_v35 = vld [vmem:[%s8479_s0 + $0x5c] ss:$144 sps:$4 sm:$0xff]  }
  0x4d   :  { %4349 = vmatprep.subr.bf16.mxu0 %v5710_v17  ;;  %3916 = vmatprep.mubr.bf16.mxu1 %v5789_v40  ;;  %v5793_v16 = vld [vmem:[%s8479_s0 + $0x50] ss:$144 sps:$4 sm:$0xff]  }
  0x4e   :  { %4375 = vmatprep.mubr.bf16.mxu0 %v5795_v43  ;;  %v5796_v17 = vld [vmem:[%s8478_s1 + $0xb00] ss:$8 sps:$4 sm:$0xff]   ;;  %v5828_v43 = vld [vmem:[%s8478_s1 + $0xb54] ss:$8 sps:$4 sm:$0xff]  }
  0x4f   :  { %3891 = vmatpush1.bf16.msra.mxu1 %v5705_v18  ;;  %v5801_v18 = vld [vmem:[%s8478_s1 + $0x214] ss:$8 sps:$4 sm:$0xff]   ;;  %v5817_v40 = vld [vmem:[%s8478_s1 + $0x240] ss:$8 sps:$4 sm:$0xff]  }
  0x50   :  { %4350 = vmatpush1.bf16.msra.mxu0 %v5708_v19  ;;  %3892 = vmatprep.subr.bf16.mxu1 %v5713_v20  ;;  %v54_v19 = vld [vmem:[%s8479_s0 + $0x128] sm:$0xff]  ;;  %v5804_v20 = vld [vmem:[%s8478_s1 + $0xb14] ss:$8 sps:$4 sm:$0xff]  }
  0x51   :  { %4351 = vmatprep.subr.bf16.mxu0 %v5716_v21  ;;  %v4842_v21 = vcombine.high %v54_v19, %v54_v19 }
  0x53   :  { %3893 = vmatpush1.bf16.msra.mxu1 %v5711_v22  ;;  %v63_v22 = vld [vmem:[%s8479_s0 + $0x170] sm:$0xff] }
  0x54   :  { %4352 = vmatpush1.bf16.msra.mxu0 %v5714_v23  ;;  %3894 = vmatprep.subr.bf16.mxu1 %v5719_v24  ;;  %v5799_v23 = vld [vmem:[%s8478_s1 + $0x210] ss:$8 sps:$4 sm:$0xff]   ;;  %v4859_v31 = vcombine.low %v63_v22, %v63_v22 }
  0x55   :  { %4353 = vmatprep.subr.bf16.mxu0 %v5722_v25  ;;  %v5802_v24 = vld [vmem:[%s8478_s1 + $0xb10] ss:$8 sps:$4 sm:$0xff]   ;;  %v4860_v25 = vcombine.high %v63_v22, %v63_v22  ;;  %v5898_v22 = vld [vmem:[%s8478_s1 + $0x304] ss:$8 sps:$4 sm:$0xff]  }
  0x57   :  { %3895 = vmatpush1.bf16.msra.mxu1 %v5717_v27  ;;  %v5810_v27 = vld [vmem:[%s8478_s1 + $0xb24] ss:$8 sps:$4 sm:$0xff]  }
  0x58   :  { %4354 = vmatpush1.bf16.msra.mxu0 %v5720_v30  ;;  %3896 = vmatprep.subr.bf16.mxu1 %v5725_v32  ;;  %v4841_v30 = vcombine.low %v54_v19, %v54_v19  ;;  %v5813_v32 = vld [vmem:[%s8478_s1 + $0x234] ss:$8 sps:$4 sm:$0xff]  }
  0x59   :  { %4355 = vmatprep.subr.bf16.mxu0 %v5728_v33  ;;  %v5816_v33 = vld [vmem:[%s8478_s1 + $0xb34] ss:$8 sps:$4 sm:$0xff]  }
  0x5a   :  { %v5892_v19 = vld [vmem:[%s8478_s1 + $0xbf4] ss:$8 sps:$4 sm:$0xff]  }
  0x5b   :  { %3897 = vmatpush1.bf16.msra.mxu1 %v5723_v36  ;;  %v5811_v36 = vld [vmem:[%s8478_s1 + $0x230] ss:$8 sps:$4 sm:$0xff]  }
  0x5c   :  { %4356 = vmatpush1.bf16.msra.mxu0 %v5726_v37  ;;  %3898 = vmatprep.subr.bf16.mxu1 %v5731_v38  ;;  %v5814_v37 = vld [vmem:[%s8478_s1 + $0xb30] ss:$8 sps:$4 sm:$0xff]   ;;  %v5819_v38 = vld [vmem:[%s8478_s1 + $0x244] ss:$8 sps:$4 sm:$0xff]  }
  0x5d   :  { %4357 = vmatprep.subr.bf16.mxu0 %v5734_v39  ;;  %v5822_v39 = vld [vmem:[%s8478_s1 + $0xb44] ss:$8 sps:$4 sm:$0xff]  }
  0x5f   :  { %3899 = vmatpush1.bf16.msra.mxu1 %v5729_v41  ;;  %v5820_v41 = vld [vmem:[%s8478_s1 + $0xb40] ss:$8 sps:$4 sm:$0xff]  }
  0x60   :  { %4358 = vmatpush1.bf16.msra.mxu0 %v5732_v42  ;;  %3900 = vmatprep.subr.bf16.mxu1 %v5737_v44  ;;  %v5825_v42 = vld [vmem:[%s8478_s1 + $0x254] ss:$8 sps:$4 sm:$0xff]   ;;  %v5823_v44 = vld [vmem:[%s8478_s1 + $0x250] ss:$8 sps:$4 sm:$0xff]  }
  0x61   :  { %4359 = vmatprep.subr.bf16.mxu0 %v5740_v45  ;;  %v5826_v45 = vld [vmem:[%s8478_s1 + $0xb50] ss:$8 sps:$4 sm:$0xff]  }
  0x63   :  { %3901 = vmatpush1.bf16.msra.mxu1 %v5735_v46  ;;  %v5831_v46 = vld [vmem:[%s8478_s1 + $0x264] ss:$8 sps:$4 sm:$0xff]  }
  0x64   :  { %4360 = vmatpush1.bf16.msra.mxu0 %v5738_v47  ;;  %3902 = vmatprep.subr.bf16.mxu1 %v5743_v48  ;;  %v5834_v47 = vld [vmem:[%s8478_s1 + $0xb64] ss:$8 sps:$4 sm:$0xff]   ;;  %v5829_v48 = vld [vmem:[%s8478_s1 + $0x260] ss:$8 sps:$4 sm:$0xff]  }
  0x65   :  { %4361 = vmatprep.subr.bf16.mxu0 %v5746_v49  ;;  %v5832_v49 = vld [vmem:[%s8478_s1 + $0xb60] ss:$8 sps:$4 sm:$0xff]  }
  0x67   :  { %3903 = vmatpush1.bf16.msra.mxu1 %v5741_v50  ;;  %v5837_v50 = vld [vmem:[%s8478_s1 + $0x274] ss:$8 sps:$4 sm:$0xff]  }
  0x68   :  { %4362 = vmatpush1.bf16.msra.mxu0 %v5744_v51  ;;  %3904 = vmatprep.subr.bf16.mxu1 %v5749_v52  ;;  %v5840_v51 = vld [vmem:[%s8478_s1 + $0xb74] ss:$8 sps:$4 sm:$0xff]   ;;  %v5835_v52 = vld [vmem:[%s8478_s1 + $0x270] ss:$8 sps:$4 sm:$0xff]  }
  0x69   :  { %4363 = vmatprep.subr.bf16.mxu0 %v5752_v53  ;;  %v5838_v53 = vld [vmem:[%s8478_s1 + $0xb70] ss:$8 sps:$4 sm:$0xff]  }
  0x6b   :  { %3905 = vmatpush1.bf16.msra.mxu1 %v5747_v54  ;;  %v5843_v54 = vld [vmem:[%s8478_s1 + $0x284] ss:$8 sps:$4 sm:$0xff]  }
  0x6c   :  { %4364 = vmatpush1.bf16.msra.mxu0 %v5750_v55  ;;  %3906 = vmatprep.subr.bf16.mxu1 %v5755_v56  ;;  %v5846_v55 = vld [vmem:[%s8478_s1 + $0xb84] ss:$8 sps:$4 sm:$0xff]   ;;  %v5841_v56 = vld [vmem:[%s8478_s1 + $0x280] ss:$8 sps:$4 sm:$0xff]  }
  0x6d   :  { %4365 = vmatprep.subr.bf16.mxu0 %v5758_v57  ;;  %v5844_v57 = vld [vmem:[%s8478_s1 + $0xb80] ss:$8 sps:$4 sm:$0xff]  }
  0x6f   :  { %3907 = vmatpush1.bf16.msra.mxu1 %v5753_v58  ;;  %v5849_v58 = vld [vmem:[%s8478_s1 + $0x294] ss:$8 sps:$4 sm:$0xff]  }
  0x70   :  { %4366 = vmatpush1.bf16.msra.mxu0 %v5756_v59  ;;  %3908 = vmatprep.subr.bf16.mxu1 %v5761_v60  ;;  %v5852_v59 = vld [vmem:[%s8478_s1 + $0xb94] ss:$8 sps:$4 sm:$0xff]   ;;  %v5847_v60 = vld [vmem:[%s8478_s1 + $0x290] ss:$8 sps:$4 sm:$0xff]  }
  0x71   :  { %4367 = vmatprep.subr.bf16.mxu0 %v5764_v61  ;;  %v5850_v61 = vld [vmem:[%s8478_s1 + $0xb90] ss:$8 sps:$4 sm:$0xff]  }
  0x73   :  { %3909 = vmatpush1.bf16.msra.mxu1 %v5759_v62  ;;  %v5855_v62 = vld [vmem:[%s8478_s1 + $0x2a4] ss:$8 sps:$4 sm:$0xff]  }
  0x74   :  { %4368 = vmatpush1.bf16.msra.mxu0 %v5762_v63  ;;  %3910 = vmatprep.subr.bf16.mxu1 %v5767_v0  ;;  %v5858_v63 = vld [vmem:[%s8478_s1 + $0xba4] ss:$8 sps:$4 sm:$0xff]   ;;  %v5853_v0 = vld [vmem:[%s8478_s1 + $0x2a0] ss:$8 sps:$4 sm:$0xff]  }
  0x75   :  { %4369 = vmatprep.subr.bf16.mxu0 %v5770_v1  ;;  %v5856_v1 = vld [vmem:[%s8478_s1 + $0xba0] ss:$8 sps:$4 sm:$0xff]  }
  0x77   :  { %3911 = vmatpush1.bf16.msra.mxu1 %v5765_v2  ;;  %v5861_v2 = vld [vmem:[%s8478_s1 + $0x2b4] ss:$8 sps:$4 sm:$0xff]  }
  0x78   :  { %4370 = vmatpush1.bf16.msra.mxu0 %v5768_v3  ;;  %3912 = vmatprep.subr.bf16.mxu1 %v5774_v4  ;;  %v5864_v3 = vld [vmem:[%s8478_s1 + $0xbb4] ss:$8 sps:$4 sm:$0xff]   ;;  %v5859_v4 = vld [vmem:[%s8478_s1 + $0x2b0] ss:$8 sps:$4 sm:$0xff]  }
  0x79   :  { %4371 = vmatprep.subr.bf16.mxu0 %v5778_v5  ;;  %v5862_v5 = vld [vmem:[%s8478_s1 + $0xbb0] ss:$8 sps:$4 sm:$0xff]  }
  0x7b   :  { %3913 = vmatpush1.bf16.msra.mxu1 %v5772_v6  ;;  %v5867_v6 = vld [vmem:[%s8478_s1 + $0x2c4] ss:$8 sps:$4 sm:$0xff]  }
  0x7c   :  { %4372 = vmatpush1.bf16.msra.mxu0 %v5776_v7  ;;  %3914 = vmatprep.subr.bf16.mxu1 %v5783_v8  ;;  %v5870_v7 = vld [vmem:[%s8478_s1 + $0xbc4] ss:$8 sps:$4 sm:$0xff]   ;;  %v5865_v8 = vld [vmem:[%s8478_s1 + $0x2c0] ss:$8 sps:$4 sm:$0xff]  }
  0x7d   :  { %4373 = vmatprep.subr.bf16.mxu0 %v5786_v9  ;;  %v5868_v9 = vld [vmem:[%s8478_s1 + $0xbc0] ss:$8 sps:$4 sm:$0xff]  }
  0x7f   :  { %3915 = vmatpush1.bf16.msra.mxu1 %v5781_v10  ;;  %v5873_v10 = vld [vmem:[%s8478_s1 + $0x2d4] ss:$8 sps:$4 sm:$0xff]  }
  0x80   :  { %4374 = vmatpush1.bf16.msra.mxu0 %v5784_v11  ;;  %3935 = vmatprep.subr.bf16.mxu1 %v5792_v13  ;;  %v5876_v11 = vld [vmem:[%s8478_s1 + $0xbd4] ss:$8 sps:$4 sm:$0xff]   ;;  %v5874_v13 = vld [vmem:[%s8478_s1 + $0xbd0] ss:$8 sps:$4 sm:$0xff]  }
  0x81   :  { %4394 = vmatprep.subr.bf16.mxu0 %v5798_v14  ;;  %v5880_v14 = vld [vmem:[%s8478_s1 + $0x2e4] ss:$8 sps:$4 sm:$0xff]  }
  0x82   :  { %3917 = vmatmul.mubr.bf16.vlgmr.msra.gmra.mrb[0].mxu1 %v5787_v12  ;;  %v5871_v12 = vld [vmem:[%s8478_s1 + $0x2d0] ss:$8 sps:$4 sm:$0xff]  }
  0x83   :  { %4376 = vmatmul.mubr.bf16.vlgmr.msra.gmra.mrb[0].mxu0 %v5793_v16  ;;  %3936 = vmatpush1.bf16.msra.mxu1 %v5790_v15  ;;  %v5884_v15 = vld [vmem:[%s8478_s1 + $0xbe4] ss:$8 sps:$4 sm:$0xff]   ;;  %v5878_v16 = vld [vmem:[%s8478_s1 + $0x2e0] ss:$8 sps:$4 sm:$0xff]  }
  0x84   :  { %4395 = vmatpush1.bf16.msra.mxu0 %v5796_v17  ;;  %3937 = vmatprep.subr.bf16.mxu1 %v5801_v18  ;;  %v5882_v17 = vld [vmem:[%s8478_s1 + $0xbe0] ss:$8 sps:$4 sm:$0xff]   ;;  %v5889_v18 = vld [vmem:[%s8478_s1 + $0x2f4] ss:$8 sps:$4 sm:$0xff]  }
  0x85   :  { %4396 = vmatprep.subr.bf16.mxu0 %v5804_v20  ;;  %3926 = vmatprep.mubr.bf16.mxu1 %v4842_v21  ;;  %v5887_v20 = vld [vmem:[%s8478_s1 + $0x2f0] ss:$8 sps:$4 sm:$0xff]  }
  0x86   :  { %4385 = vmatprep.mubr.bf16.mxu0 %v4860_v25  ;;  %v5890_v21 = vld [vmem:[%s8478_s1 + $0xbf0] ss:$8 sps:$4 sm:$0xff]   ;;  %v5904_v25 = vld [vmem:[%s8478_s1 + $0xc04] ss:$8 sps:$4 sm:$0xff]  }
  0x87   :  { %3938 = vmatpush1.bf16.msra.mxu1 %v5799_v23  ;;  %v5893_v23 = vld [vmem:[%s8479_s0 + $0x10] ss:$144 sps:$4 sm:$0xff]  }
  0x88   :  { %4397 = vmatpush1.bf16.msra.mxu0 %v5802_v24  ;;  %3939 = vmatprep.subr.bf16.mxu1 %v5807_v26  ;;  %v5899_v24 = vld [vmem:[%s8479_s0 + $0x58] ss:$144 sps:$4 sm:$0xff]   ;;  %v55_v26 = vld [vmem:[%s8479_s0 + $0x130] sm:$0xff] }
  0x89   :  { %4398 = vmatprep.subr.bf16.mxu0 %v5810_v27  ;;  %v64_v27 = vld [vmem:[%s8479_s0 + $0x178] sm:$0xff] }
  0x8a   :  { %3927 = vmatmul.mubr.bf16.gmra.mrb[4].mxu1 %v4841_v30  ;;  %v5907_v30 = vld [vmem:[%s8478_s1 + $0x314] ss:$8 sps:$4 sm:$0xff]  }
  0x8b   :  { %4386 = vmatmul.mubr.bf16.gmra.mrb[4].mxu0 %v4859_v31  ;;  %3940 = vmatpush1.bf16.msra.mxu1 %v5805_v28  ;;  %v5896_v28 = vld [vmem:[%s8478_s1 + $0x300] ss:$8 sps:$4 sm:$0xff]   ;;  %v5910_v31 = vld [vmem:[%s8478_s1 + $0xc14] ss:$8 sps:$4 sm:$0xff]  }
  0x8c   :  { %4399 = vmatpush1.bf16.msra.mxu0 %v5808_v29  ;;  %3941 = vmatprep.subr.bf16.mxu1 %v5813_v32  ;;  %v5902_v29 = vld [vmem:[%s8478_s1 + $0xc00] ss:$8 sps:$4 sm:$0xff]   ;;  %v4844_v32 = vcombine.high %v55_v26, %v55_v26 }
  0x8d   :  { %4400 = vmatprep.subr.bf16.mxu0 %v5816_v33  ;;  %3967 = vmatprep.mubr.bf16.mxu1 %v5895_v34  ;;  %v4862_v33 = vcombine.high %v64_v27, %v64_v27  ;;  %v5905_v34 = vld [vmem:[%s8478_s1 + $0x310] ss:$8 sps:$4 sm:$0xff]  }
  0x8e   :  { %4426 = vmatprep.mubr.bf16.mxu0 %v5901_v35  ;;  %v5908_v35 = vld [vmem:[%s8478_s1 + $0xc10] ss:$8 sps:$4 sm:$0xff]  }
  0x8f   :  { %3942 = vmatpush1.bf16.msra.mxu1 %v5811_v36  ;;  %v5913_v36 = vld [vmem:[%s8478_s1 + $0x324] ss:$8 sps:$4 sm:$0xff]  }
  0x90   :  { %4401 = vmatpush1.bf16.msra.mxu0 %v5814_v37  ;;  %3943 = vmatprep.subr.bf16.mxu1 %v5819_v38  ;;  %v5916_v37 = vld [vmem:[%s8478_s1 + $0xc24] ss:$8 sps:$4 sm:$0xff]   ;;  %v5911_v38 = vld [vmem:[%s8478_s1 + $0x320] ss:$8 sps:$4 sm:$0xff]  }
  0x91   :  { %4402 = vmatprep.subr.bf16.mxu0 %v5822_v39  ;;  %v4843_v39 = vcombine.low %v55_v26, %v55_v26  ;;  %v5984_v26 = vld [vmem:[%s8478_s1 + $0x3e0] ss:$8 sps:$4 sm:$0xff]  }
  0x93   :  { %3944 = vmatpush1.bf16.msra.mxu1 %v5817_v40  ;;  %v4861_v40 = vcombine.low %v64_v27, %v64_v27  ;;  %v5988_v27 = vld [vmem:[%s8478_s1 + $0xce0] ss:$8 sps:$4 sm:$0xff]  }
  0x94   :  { %4403 = vmatpush1.bf16.msra.mxu0 %v5820_v41  ;;  %3945 = vmatprep.subr.bf16.mxu1 %v5825_v42  ;;  %v5914_v41 = vld [vmem:[%s8478_s1 + $0xc20] ss:$8 sps:$4 sm:$0xff]   ;;  %v5919_v42 = vld [vmem:[%s8478_s1 + $0x334] ss:$8 sps:$4 sm:$0xff]  }
  0x95   :  { %4404 = vmatprep.subr.bf16.mxu0 %v5828_v43  ;;  %v5922_v43 = vld [vmem:[%s8478_s1 + $0xc34] ss:$8 sps:$4 sm:$0xff]  }
  0x97   :  { %3946 = vmatpush1.bf16.msra.mxu1 %v5823_v44  ;;  %v6001_v44 = vld [vmem:[%s8479_s0 + $0x1c] ss:$144 sps:$4 sm:$0xff]  }
  0x98   :  { %4405 = vmatpush1.bf16.msra.mxu0 %v5826_v45  ;;  %3947 = vmatprep.subr.bf16.mxu1 %v5831_v46  ;;  %v6007_v45 = vld [vmem:[%s8479_s0 + $0x64] ss:$144 sps:$4 sm:$0xff]   ;;  %v5917_v46 = vld [vmem:[%s8478_s1 + $0x330] ss:$8 sps:$4 sm:$0xff]  }
  0x99   :  { %4406 = vmatprep.subr.bf16.mxu0 %v5834_v47  ;;  %v5920_v47 = vld [vmem:[%s8478_s1 + $0xc30] ss:$8 sps:$4 sm:$0xff]  }
  0x9b   :  { %3948 = vmatpush1.bf16.msra.mxu1 %v5829_v48  ;;  %v5925_v48 = vld [vmem:[%s8478_s1 + $0x344] ss:$8 sps:$4 sm:$0xff]  }
  0x9c   :  { %4407 = vmatpush1.bf16.msra.mxu0 %v5832_v49  ;;  %3949 = vmatprep.subr.bf16.mxu1 %v5837_v50  ;;  %v5928_v49 = vld [vmem:[%s8478_s1 + $0xc44] ss:$8 sps:$4 sm:$0xff]   ;;  %v5923_v50 = vld [vmem:[%s8478_s1 + $0x340] ss:$8 sps:$4 sm:$0xff]  }
  0x9d   :  { %4408 = vmatprep.subr.bf16.mxu0 %v5840_v51  ;;  %v5926_v51 = vld [vmem:[%s8478_s1 + $0xc40] ss:$8 sps:$4 sm:$0xff]  }
  0x9f   :  { %3950 = vmatpush1.bf16.msra.mxu1 %v5835_v52  ;;  %v5931_v52 = vld [vmem:[%s8478_s1 + $0x354] ss:$8 sps:$4 sm:$0xff]  }
  0xa0   :  { %4409 = vmatpush1.bf16.msra.mxu0 %v5838_v53  ;;  %3951 = vmatprep.subr.bf16.mxu1 %v5843_v54  ;;  %v5934_v53 = vld [vmem:[%s8478_s1 + $0xc54] ss:$8 sps:$4 sm:$0xff]   ;;  %v5929_v54 = vld [vmem:[%s8478_s1 + $0x350] ss:$8 sps:$4 sm:$0xff]  }
  0xa1   :  { %4410 = vmatprep.subr.bf16.mxu0 %v5846_v55  ;;  %v5932_v55 = vld [vmem:[%s8478_s1 + $0xc50] ss:$8 sps:$4 sm:$0xff]  }
  0xa3   :  { %3952 = vmatpush1.bf16.msra.mxu1 %v5841_v56  ;;  %v5937_v56 = vld [vmem:[%s8478_s1 + $0x364] ss:$8 sps:$4 sm:$0xff]  }
  0xa4   :  { %4411 = vmatpush1.bf16.msra.mxu0 %v5844_v57  ;;  %3953 = vmatprep.subr.bf16.mxu1 %v5849_v58  ;;  %v5940_v57 = vld [vmem:[%s8478_s1 + $0xc64] ss:$8 sps:$4 sm:$0xff]   ;;  %v5935_v58 = vld [vmem:[%s8478_s1 + $0x360] ss:$8 sps:$4 sm:$0xff]  }
  0xa5   :  { %4412 = vmatprep.subr.bf16.mxu0 %v5852_v59  ;;  %v5938_v59 = vld [vmem:[%s8478_s1 + $0xc60] ss:$8 sps:$4 sm:$0xff]  }
  0xa7   :  { %3954 = vmatpush1.bf16.msra.mxu1 %v5847_v60  ;;  %v5943_v60 = vld [vmem:[%s8478_s1 + $0x374] ss:$8 sps:$4 sm:$0xff]  }
  0xa8   :  { %4413 = vmatpush1.bf16.msra.mxu0 %v5850_v61  ;;  %3955 = vmatprep.subr.bf16.mxu1 %v5855_v62  ;;  %v5946_v61 = vld [vmem:[%s8478_s1 + $0xc74] ss:$8 sps:$4 sm:$0xff]   ;;  %v5941_v62 = vld [vmem:[%s8478_s1 + $0x370] ss:$8 sps:$4 sm:$0xff]  }
  0xa9   :  { %4414 = vmatprep.subr.bf16.mxu0 %v5858_v63  ;;  %v5944_v63 = vld [vmem:[%s8478_s1 + $0xc70] ss:$8 sps:$4 sm:$0xff]  }
  0xab   :  { %3956 = vmatpush1.bf16.msra.mxu1 %v5853_v0  ;;  %v5949_v0 = vld [vmem:[%s8478_s1 + $0x384] ss:$8 sps:$4 sm:$0xff]  }
  0xac   :  { %4415 = vmatpush1.bf16.msra.mxu0 %v5856_v1  ;;  %3957 = vmatprep.subr.bf16.mxu1 %v5861_v2  ;;  %v5952_v1 = vld [vmem:[%s8478_s1 + $0xc84] ss:$8 sps:$4 sm:$0xff]   ;;  %v5947_v2 = vld [vmem:[%s8478_s1 + $0x380] ss:$8 sps:$4 sm:$0xff]  }
  0xad   :  { %4416 = vmatprep.subr.bf16.mxu0 %v5864_v3  ;;  %v5950_v3 = vld [vmem:[%s8478_s1 + $0xc80] ss:$8 sps:$4 sm:$0xff]  }
  0xaf   :  { %3958 = vmatpush1.bf16.msra.mxu1 %v5859_v4  ;;  %v5955_v4 = vld [vmem:[%s8478_s1 + $0x394] ss:$8 sps:$4 sm:$0xff]  }
  0xb0   :  { %4417 = vmatpush1.bf16.msra.mxu0 %v5862_v5  ;;  %3959 = vmatprep.subr.bf16.mxu1 %v5867_v6  ;;  %v5958_v5 = vld [vmem:[%s8478_s1 + $0xc94] ss:$8 sps:$4 sm:$0xff]   ;;  %v5953_v6 = vld [vmem:[%s8478_s1 + $0x390] ss:$8 sps:$4 sm:$0xff]  }
  0xb1   :  { %4418 = vmatprep.subr.bf16.mxu0 %v5870_v7  ;;  %v5956_v7 = vld [vmem:[%s8478_s1 + $0xc90] ss:$8 sps:$4 sm:$0xff]  }
  0xb3   :  { %3960 = vmatpush1.bf16.msra.mxu1 %v5865_v8  ;;  %v5961_v8 = vld [vmem:[%s8478_s1 + $0x3a4] ss:$8 sps:$4 sm:$0xff]  }
  0xb4   :  { %4419 = vmatpush1.bf16.msra.mxu0 %v5868_v9  ;;  %3961 = vmatprep.subr.bf16.mxu1 %v5873_v10  ;;  %v5964_v9 = vld [vmem:[%s8478_s1 + $0xca4] ss:$8 sps:$4 sm:$0xff]   ;;  %v5959_v10 = vld [vmem:[%s8478_s1 + $0x3a0] ss:$8 sps:$4 sm:$0xff]  }
  0xb5   :  { %4420 = vmatprep.subr.bf16.mxu0 %v5876_v11  ;;  %v5962_v11 = vld [vmem:[%s8478_s1 + $0xca0] ss:$8 sps:$4 sm:$0xff]  }
  0xb7   :  { %3962 = vmatpush1.bf16.msra.mxu1 %v5871_v12  ;;  %v5967_v12 = vld [vmem:[%s8478_s1 + $0x3b4] ss:$8 sps:$4 sm:$0xff]  }
  0xb8   :  { %4421 = vmatpush1.bf16.msra.mxu0 %v5874_v13  ;;  %3963 = vmatprep.subr.bf16.mxu1 %v5880_v14  ;;  %v5970_v13 = vld [vmem:[%s8478_s1 + $0xcb4] ss:$8 sps:$4 sm:$0xff]   ;;  %v5965_v14 = vld [vmem:[%s8478_s1 + $0x3b0] ss:$8 sps:$4 sm:$0xff]  }
  0xb9   :  { %4422 = vmatprep.subr.bf16.mxu0 %v5884_v15  ;;  %v5968_v15 = vld [vmem:[%s8478_s1 + $0xcb0] ss:$8 sps:$4 sm:$0xff]  }
  0xbb   :  { %3964 = vmatpush1.bf16.msra.mxu1 %v5878_v16  ;;  %v5973_v16 = vld [vmem:[%s8478_s1 + $0x3c4] ss:$8 sps:$4 sm:$0xff]  }
  0xbc   :  { %4423 = vmatpush1.bf16.msra.mxu0 %v5882_v17  ;;  %3965 = vmatprep.subr.bf16.mxu1 %v5889_v18  ;;  %v5976_v17 = vld [vmem:[%s8478_s1 + $0xcc4] ss:$8 sps:$4 sm:$0xff]   ;;  %v5971_v18 = vld [vmem:[%s8478_s1 + $0x3c0] ss:$8 sps:$4 sm:$0xff]  }
  0xbd   :  { %4424 = vmatprep.subr.bf16.mxu0 %v5892_v19  ;;  %v5974_v19 = vld [vmem:[%s8478_s1 + $0xcc0] ss:$8 sps:$4 sm:$0xff]  }
  0xbf   :  { %3966 = vmatpush1.bf16.msra.mxu1 %v5887_v20  ;;  %v5979_v20 = vld [vmem:[%s8478_s1 + $0x3d4] ss:$8 sps:$4 sm:$0xff]  }
  0xc0   :  { %4425 = vmatpush1.bf16.msra.mxu0 %v5890_v21  ;;  %3986 = vmatprep.subr.bf16.mxu1 %v5898_v22  ;;  %v5982_v21 = vld [vmem:[%s8478_s1 + $0xcd4] ss:$8 sps:$4 sm:$0xff]   ;;  %v5977_v22 = vld [vmem:[%s8478_s1 + $0x3d0] ss:$8 sps:$4 sm:$0xff]  }
  0xc1   :  { %4445 = vmatprep.subr.bf16.mxu0 %v5904_v25  ;;  %v5990_v25 = vld [vmem:[%s8478_s1 + $0xce4] ss:$8 sps:$4 sm:$0xff]  }
  0xc2   :  { %3968 = vmatmul.mubr.bf16.vlgmr.msra.gmra.mrb[0].mxu1 %v5893_v23  ;;  %v5980_v23 = vld [vmem:[%s8478_s1 + $0xcd0] ss:$8 sps:$4 sm:$0xff]  }
  0xc3   :  { %4427 = vmatmul.mubr.bf16.vlgmr.msra.gmra.mrb[0].mxu0 %v5899_v24  ;;  %3987 = vmatpush1.bf16.msra.mxu1 %v5896_v28  ;;  %v5986_v24 = vld [vmem:[%s8478_s1 + $0x3e4] ss:$8 sps:$4 sm:$0xff]   ;;  %v5995_v28 = vld [vmem:[%s8478_s1 + $0x3f4] ss:$8 sps:$4 sm:$0xff]  }
  0xc4   :  { %4446 = vmatpush1.bf16.msra.mxu0 %v5902_v29  ;;  %3988 = vmatprep.subr.bf16.mxu1 %v5907_v30  ;;  %v5998_v29 = vld [vmem:[%s8478_s1 + $0xcf4] ss:$8 sps:$4 sm:$0xff]   ;;  %v5993_v30 = vld [vmem:[%s8478_s1 + $0x3f0] ss:$8 sps:$4 sm:$0xff]  }
  0xc5   :  { %4447 = vmatprep.subr.bf16.mxu0 %v5910_v31  ;;  %3977 = vmatprep.mubr.bf16.mxu1 %v4844_v32  ;;  %v5996_v31 = vld [vmem:[%s8478_s1 + $0xcf0] ss:$8 sps:$4 sm:$0xff]   ;;  %v6004_v32 = vld [vmem:[%s8478_s1 + $0x404] ss:$8 sps:$4 sm:$0xff]  }
  0xc6   :  { %4436 = vmatprep.mubr.bf16.mxu0 %v4862_v33  ;;  %v5999_v33 = vld [vmem:[%s8479_s0 + $0x18] ss:$144 sps:$4 sm:$0xff]  }
  0xc7   :  { %3989 = vmatpush1.bf16.msra.mxu1 %v5905_v34  ;;  %v6010_v34 = vld [vmem:[%s8478_s1 + $0xd04] ss:$8 sps:$4 sm:$0xff]  }
  0xc8   :  { %4448 = vmatpush1.bf16.msra.mxu0 %v5908_v35  ;;  %3990 = vmatprep.subr.bf16.mxu1 %v5913_v36  ;;  %v6002_v35 = vld [vmem:[%s8478_s1 + $0x400] ss:$8 sps:$4 sm:$0xff]  }
  0xc9   :  { %4449 = vmatprep.subr.bf16.mxu0 %v5916_v37  ;;  %v6005_v36 = vld [vmem:[%s8479_s0 + $0x60] ss:$144 sps:$4 sm:$0xff]  }
  0xca   :  { %3978 = vmatmul.mubr.bf16.gmra.mrb[4].mxu1 %v4843_v39  ;;  %v6008_v37 = vld [vmem:[%s8478_s1 + $0xd00] ss:$8 sps:$4 sm:$0xff]  }
  0xcb   :  { %4437 = vmatmul.mubr.bf16.gmra.mrb[4].mxu0 %v4861_v40  ;;  %3991 = vmatpush1.bf16.msra.mxu1 %v5911_v38  ;;  %v56_v38 = vld [vmem:[%s8479_s0 + $0x138] sm:$0xff]  ;;  %v65_v39 = vld [vmem:[%s8479_s0 + $0x180] sm:$0xff] }
  0xcc   :  { %4450 = vmatpush1.bf16.msra.mxu0 %v5914_v41  ;;  %3992 = vmatprep.subr.bf16.mxu1 %v5919_v42  ;;  %v6013_v40 = vld [vmem:[%s8478_s1 + $0x414] ss:$8 sps:$4 sm:$0xff]   ;;  %v4846_v42 = vcombine.high %v56_v38, %v56_v38 }
  0xcd   :  { %4451 = vmatprep.subr.bf16.mxu0 %v5922_v43  ;;  %4018 = vmatprep.mubr.bf16.mxu1 %v6001_v44  ;;  %v6016_v41 = vld [vmem:[%s8478_s1 + $0xd14] ss:$8 sps:$4 sm:$0xff]   ;;  %v4864_v43 = vcombine.high %v65_v39, %v65_v39  ;;  %v6011_v44 = vld [vmem:[%s8478_s1 + $0x410] ss:$8 sps:$4 sm:$0xff]  }
  0xce   :  { %4477 = vmatprep.mubr.bf16.mxu0 %v6007_v45  ;;  %v6014_v45 = vld [vmem:[%s8478_s1 + $0xd10] ss:$8 sps:$4 sm:$0xff]  }
  0xcf   :  { %3993 = vmatpush1.bf16.msra.mxu1 %v5917_v46  ;;  %v6019_v46 = vld [vmem:[%s8478_s1 + $0x424] ss:$8 sps:$4 sm:$0xff]  }
  0xd0   :  { %4452 = vmatpush1.bf16.msra.mxu0 %v5920_v47  ;;  %3994 = vmatprep.subr.bf16.mxu1 %v5925_v48  ;;  %v6022_v47 = vld [vmem:[%s8478_s1 + $0xd24] ss:$8 sps:$4 sm:$0xff]   ;;  %v6017_v48 = vld [vmem:[%s8478_s1 + $0x420] ss:$8 sps:$4 sm:$0xff]  }
  0xd1   :  { %4453 = vmatprep.subr.bf16.mxu0 %v5928_v49  ;;  %v6020_v49 = vld [vmem:[%s8478_s1 + $0xd20] ss:$8 sps:$4 sm:$0xff]  }
  0xd3   :  { %3995 = vmatpush1.bf16.msra.mxu1 %v5923_v50  ;;  %v4845_v50 = vcombine.low %v56_v38, %v56_v38  ;;  %v6101_v38 = vld [vmem:[%s8478_s1 + $0x4f4] ss:$8 sps:$4 sm:$0xff]  }
  0xd4   :  { %4454 = vmatpush1.bf16.msra.mxu0 %v5926_v51  ;;  %3996 = vmatprep.subr.bf16.mxu1 %v5931_v52  ;;  %v4863_v51 = vcombine.low %v65_v39, %v65_v39  ;;  %v6025_v52 = vld [vmem:[%s8478_s1 + $0x434] ss:$8 sps:$4 sm:$0xff]  }
  0xd5   :  { %4455 = vmatprep.subr.bf16.mxu0 %v5934_v53  ;;  %v6028_v53 = vld [vmem:[%s8478_s1 + $0xd34] ss:$8 sps:$4 sm:$0xff]  }
  0xd6   :  { %v6104_v39 = vld [vmem:[%s8478_s1 + $0xdf4] ss:$8 sps:$4 sm:$0xff]  }
  0xd7   :  { %3997 = vmatpush1.bf16.msra.mxu1 %v5929_v54  ;;  %v6107_v54 = vld [vmem:[%s8479_s0 + $0x24] ss:$144 sps:$4 sm:$0xff]  }
  0xd8   :  { %4456 = vmatpush1.bf16.msra.mxu0 %v5932_v55  ;;  %3998 = vmatprep.subr.bf16.mxu1 %v5937_v56  ;;  %v6113_v55 = vld [vmem:[%s8479_s0 + $0x6c] ss:$144 sps:$4 sm:$0xff]   ;;  %v6023_v56 = vld [vmem:[%s8478_s1 + $0x430] ss:$8 sps:$4 sm:$0xff]  }
  0xd9   :  { %4457 = vmatprep.subr.bf16.mxu0 %v5940_v57  ;;  %v6026_v57 = vld [vmem:[%s8478_s1 + $0xd30] ss:$8 sps:$4 sm:$0xff]  }
  0xdb   :  { %3999 = vmatpush1.bf16.msra.mxu1 %v5935_v58  ;;  %v6031_v58 = vld [vmem:[%s8478_s1 + $0x444] ss:$8 sps:$4 sm:$0xff]  }
  0xdc   :  { %4458 = vmatpush1.bf16.msra.mxu0 %v5938_v59  ;;  %4000 = vmatprep.subr.bf16.mxu1 %v5943_v60  ;;  %v6034_v59 = vld [vmem:[%s8478_s1 + $0xd44] ss:$8 sps:$4 sm:$0xff]   ;;  %v6029_v60 = vld [vmem:[%s8478_s1 + $0x440] ss:$8 sps:$4 sm:$0xff]  }
  0xdd   :  { %4459 = vmatprep.subr.bf16.mxu0 %v5946_v61  ;;  %v6032_v61 = vld [vmem:[%s8478_s1 + $0xd40] ss:$8 sps:$4 sm:$0xff]  }
  0xdf   :  { %4001 = vmatpush1.bf16.msra.mxu1 %v5941_v62  ;;  %v6037_v62 = vld [vmem:[%s8478_s1 + $0x454] ss:$8 sps:$4 sm:$0xff]  }
  0xe0   :  { %4460 = vmatpush1.bf16.msra.mxu0 %v5944_v63  ;;  %4002 = vmatprep.subr.bf16.mxu1 %v5949_v0  ;;  %v6040_v63 = vld [vmem:[%s8478_s1 + $0xd54] ss:$8 sps:$4 sm:$0xff]   ;;  %v6035_v0 = vld [vmem:[%s8478_s1 + $0x450] ss:$8 sps:$4 sm:$0xff]  }
  0xe1   :  { %4461 = vmatprep.subr.bf16.mxu0 %v5952_v1  ;;  %v6038_v1 = vld [vmem:[%s8478_s1 + $0xd50] ss:$8 sps:$4 sm:$0xff]  }
  0xe3   :  { %4003 = vmatpush1.bf16.msra.mxu1 %v5947_v2  ;;  %v6043_v2 = vld [vmem:[%s8478_s1 + $0x464] ss:$8 sps:$4 sm:$0xff]  }
  0xe4   :  { %4462 = vmatpush1.bf16.msra.mxu0 %v5950_v3  ;;  %4004 = vmatprep.subr.bf16.mxu1 %v5955_v4  ;;  %v6046_v3 = vld [vmem:[%s8478_s1 + $0xd64] ss:$8 sps:$4 sm:$0xff]   ;;  %v6041_v4 = vld [vmem:[%s8478_s1 + $0x460] ss:$8 sps:$4 sm:$0xff]  }
  0xe5   :  { %4463 = vmatprep.subr.bf16.mxu0 %v5958_v5  ;;  %v6044_v5 = vld [vmem:[%s8478_s1 + $0xd60] ss:$8 sps:$4 sm:$0xff]  }
  0xe7   :  { %4005 = vmatpush1.bf16.msra.mxu1 %v5953_v6  ;;  %v6049_v6 = vld [vmem:[%s8478_s1 + $0x474] ss:$8 sps:$4 sm:$0xff]  }
  0xe8   :  { %4464 = vmatpush1.bf16.msra.mxu0 %v5956_v7  ;;  %4006 = vmatprep.subr.bf16.mxu1 %v5961_v8  ;;  %v6052_v7 = vld [vmem:[%s8478_s1 + $0xd74] ss:$8 sps:$4 sm:$0xff]   ;;  %v6047_v8 = vld [vmem:[%s8478_s1 + $0x470] ss:$8 sps:$4 sm:$0xff]  }
  0xe9   :  { %4465 = vmatprep.subr.bf16.mxu0 %v5964_v9  ;;  %v6050_v9 = vld [vmem:[%s8478_s1 + $0xd70] ss:$8 sps:$4 sm:$0xff]  }
  0xeb   :  { %4007 = vmatpush1.bf16.msra.mxu1 %v5959_v10  ;;  %v6055_v10 = vld [vmem:[%s8478_s1 + $0x484] ss:$8 sps:$4 sm:$0xff]  }
  0xec   :  { %4466 = vmatpush1.bf16.msra.mxu0 %v5962_v11  ;;  %4008 = vmatprep.subr.bf16.mxu1 %v5967_v12  ;;  %v6058_v11 = vld [vmem:[%s8478_s1 + $0xd84] ss:$8 sps:$4 sm:$0xff]   ;;  %v6053_v12 = vld [vmem:[%s8478_s1 + $0x480] ss:$8 sps:$4 sm:$0xff]  }
  0xed   :  { %4467 = vmatprep.subr.bf16.mxu0 %v5970_v13  ;;  %v6056_v13 = vld [vmem:[%s8478_s1 + $0xd80] ss:$8 sps:$4 sm:$0xff]  }
  0xef   :  { %4009 = vmatpush1.bf16.msra.mxu1 %v5965_v14  ;;  %v6061_v14 = vld [vmem:[%s8478_s1 + $0x494] ss:$8 sps:$4 sm:$0xff]  }
  0xf0   :  { %4468 = vmatpush1.bf16.msra.mxu0 %v5968_v15  ;;  %4010 = vmatprep.subr.bf16.mxu1 %v5973_v16  ;;  %v6064_v15 = vld [vmem:[%s8478_s1 + $0xd94] ss:$8 sps:$4 sm:$0xff]   ;;  %v6059_v16 = vld [vmem:[%s8478_s1 + $0x490] ss:$8 sps:$4 sm:$0xff]  }
  0xf1   :  { %4469 = vmatprep.subr.bf16.mxu0 %v5976_v17  ;;  %v6062_v17 = vld [vmem:[%s8478_s1 + $0xd90] ss:$8 sps:$4 sm:$0xff]  }
  0xf3   :  { %4011 = vmatpush1.bf16.msra.mxu1 %v5971_v18  ;;  %v6067_v18 = vld [vmem:[%s8478_s1 + $0x4a4] ss:$8 sps:$4 sm:$0xff]  }
  0xf4   :  { %4470 = vmatpush1.bf16.msra.mxu0 %v5974_v19  ;;  %4012 = vmatprep.subr.bf16.mxu1 %v5979_v20  ;;  %v6070_v19 = vld [vmem:[%s8478_s1 + $0xda4] ss:$8 sps:$4 sm:$0xff]   ;;  %v6065_v20 = vld [vmem:[%s8478_s1 + $0x4a0] ss:$8 sps:$4 sm:$0xff]  }
  0xf5   :  { %4471 = vmatprep.subr.bf16.mxu0 %v5982_v21  ;;  %v6068_v21 = vld [vmem:[%s8478_s1 + $0xda0] ss:$8 sps:$4 sm:$0xff]  }
  0xf7   :  { %4013 = vmatpush1.bf16.msra.mxu1 %v5977_v22  ;;  %v6073_v22 = vld [vmem:[%s8478_s1 + $0x4b4] ss:$8 sps:$4 sm:$0xff]  }
  0xf8   :  { %4472 = vmatpush1.bf16.msra.mxu0 %v5980_v23  ;;  %4014 = vmatprep.subr.bf16.mxu1 %v5986_v24  ;;  %v6076_v23 = vld [vmem:[%s8478_s1 + $0xdb4] ss:$8 sps:$4 sm:$0xff]   ;;  %v6071_v24 = vld [vmem:[%s8478_s1 + $0x4b0] ss:$8 sps:$4 sm:$0xff]  }
  0xf9   :  { %4473 = vmatprep.subr.bf16.mxu0 %v5990_v25  ;;  %v6074_v25 = vld [vmem:[%s8478_s1 + $0xdb0] ss:$8 sps:$4 sm:$0xff]  }
  0xfb   :  { %4015 = vmatpush1.bf16.msra.mxu1 %v5984_v26  ;;  %v6079_v26 = vld [vmem:[%s8478_s1 + $0x4c4] ss:$8 sps:$4 sm:$0xff]  }
  0xfc   :  { %4474 = vmatpush1.bf16.msra.mxu0 %v5988_v27  ;;  %4016 = vmatprep.subr.bf16.mxu1 %v5995_v28  ;;  %v6082_v27 = vld [vmem:[%s8478_s1 + $0xdc4] ss:$8 sps:$4 sm:$0xff]   ;;  %v6077_v28 = vld [vmem:[%s8478_s1 + $0x4c0] ss:$8 sps:$4 sm:$0xff]  }
  0xfd   :  { %4475 = vmatprep.subr.bf16.mxu0 %v5998_v29  ;;  %v6080_v29 = vld [vmem:[%s8478_s1 + $0xdc0] ss:$8 sps:$4 sm:$0xff]  }
  0xff   :  { %4017 = vmatpush1.bf16.msra.mxu1 %v5993_v30  ;;  %v6085_v30 = vld [vmem:[%s8478_s1 + $0x4d4] ss:$8 sps:$4 sm:$0xff]  }
 0x100   :  { %4476 = vmatpush1.bf16.msra.mxu0 %v5996_v31  ;;  %4037 = vmatprep.subr.bf16.mxu1 %v6004_v32  ;;  %v6088_v31 = vld [vmem:[%s8478_s1 + $0xdd4] ss:$8 sps:$4 sm:$0xff]   ;;  %v6083_v32 = vld [vmem:[%s8478_s1 + $0x4d0] ss:$8 sps:$4 sm:$0xff]  }
 0x101   :  { %4496 = vmatprep.subr.bf16.mxu0 %v6010_v34  ;;  %v6092_v34 = vld [vmem:[%s8478_s1 + $0x4e4] ss:$8 sps:$4 sm:$0xff]  }
 0x102   :  { %4019 = vmatmul.mubr.bf16.vlgmr.msra.gmra.mrb[0].mxu1 %v5999_v33  ;;  %v6086_v33 = vld [vmem:[%s8478_s1 + $0xdd0] ss:$8 sps:$4 sm:$0xff]  }
 0x103   :  { %4478 = vmatmul.mubr.bf16.vlgmr.msra.gmra.mrb[0].mxu0 %v6005_v36  ;;  %4038 = vmatpush1.bf16.msra.mxu1 %v6002_v35  ;;  %v6096_v35 = vld [vmem:[%s8478_s1 + $0xde4] ss:$8 sps:$4 sm:$0xff]   ;;  %v6090_v36 = vld [vmem:[%s8478_s1 + $0x4e0] ss:$8 sps:$4 sm:$0xff]  }
 0x104   :  { %4497 = vmatpush1.bf16.msra.mxu0 %v6008_v37  ;;  %4039 = vmatprep.subr.bf16.mxu1 %v6013_v40  ;;  %v6094_v37 = vld [vmem:[%s8478_s1 + $0xde0] ss:$8 sps:$4 sm:$0xff]   ;;  %v6099_v40 = vld [vmem:[%s8478_s1 + $0x4f0] ss:$8 sps:$4 sm:$0xff]  }
 0x105   :  { %4498 = vmatprep.subr.bf16.mxu0 %v6016_v41  ;;  %4028 = vmatprep.mubr.bf16.mxu1 %v4846_v42  ;;  %v6102_v41 = vld [vmem:[%s8478_s1 + $0xdf0] ss:$8 sps:$4 sm:$0xff]   ;;  %v6110_v42 = vld [vmem:[%s8478_s1 + $0x504] ss:$8 sps:$4 sm:$0xff]  }
 0x106   :  { %4487 = vmatprep.mubr.bf16.mxu0 %v4864_v43  ;;  %v6105_v43 = vld [vmem:[%s8479_s0 + $0x20] ss:$144 sps:$4 sm:$0xff]  }
 0x107   :  { %4040 = vmatpush1.bf16.msra.mxu1 %v6011_v44  ;;  %v6111_v44 = vld [vmem:[%s8479_s0 + $0x68] ss:$144 sps:$4 sm:$0xff]  }
 0x108   :  { %4499 = vmatpush1.bf16.msra.mxu0 %v6014_v45  ;;  %4041 = vmatprep.subr.bf16.mxu1 %v6019_v46  ;;  %v6116_v45 = vld [vmem:[%s8478_s1 + $0xe04] ss:$8 sps:$4 sm:$0xff]  }
 0x109   :  { %4500 = vmatprep.subr.bf16.mxu0 %v6022_v47  ;;  %v57_v46 = vld [vmem:[%s8479_s0 + $0x140] sm:$0xff]  ;;  %v66_v47 = vld [vmem:[%s8479_s0 + $0x188] sm:$0xff] }
 0x10a   :  { %4029 = vmatmul.mubr.bf16.gmra.mrb[4].mxu1 %v4845_v50  ;;  %v6119_v50 = vld [vmem:[%s8478_s1 + $0x514] ss:$8 sps:$4 sm:$0xff]  }
 0x10b   :  { %4488 = vmatmul.mubr.bf16.gmra.mrb[4].mxu0 %v4863_v51  ;;  %4042 = vmatpush1.bf16.msra.mxu1 %v6017_v48  ;;  %v6108_v48 = vld [vmem:[%s8478_s1 + $0x500] ss:$8 sps:$4 sm:$0xff]   ;;  %v6122_v51 = vld [vmem:[%s8478_s1 + $0xe14] ss:$8 sps:$4 sm:$0xff]  }
 0x10c   :  { %4501 = vmatpush1.bf16.msra.mxu0 %v6020_v49  ;;  %4043 = vmatprep.subr.bf16.mxu1 %v6025_v52  ;;  %v6114_v49 = vld [vmem:[%s8478_s1 + $0xe00] ss:$8 sps:$4 sm:$0xff]   ;;  %v4848_v52 = vcombine.high %v57_v46, %v57_v46 }
 0x10d   :  { %4502 = vmatprep.subr.bf16.mxu0 %v6028_v53  ;;  %4069 = vmatprep.mubr.bf16.mxu1 %v6107_v54  ;;  %v4866_v53 = vcombine.high %v66_v47, %v66_v47  ;;  %v6117_v54 = vld [vmem:[%s8478_s1 + $0x510] ss:$8 sps:$4 sm:$0xff]  }
 0x10e   :  { %4528 = vmatprep.mubr.bf16.mxu0 %v6113_v55  ;;  %v6120_v55 = vld [vmem:[%s8478_s1 + $0xe10] ss:$8 sps:$4 sm:$0xff]  }
 0x10f   :  { %4044 = vmatpush1.bf16.msra.mxu1 %v6023_v56  ;;  %v6125_v56 = vld [vmem:[%s8478_s1 + $0x524] ss:$8 sps:$4 sm:$0xff]  }
 0x110   :  { %4503 = vmatpush1.bf16.msra.mxu0 %v6026_v57  ;;  %4045 = vmatprep.subr.bf16.mxu1 %v6031_v58  ;;  %v6128_v57 = vld [vmem:[%s8478_s1 + $0xe24] ss:$8 sps:$4 sm:$0xff]   ;;  %v6123_v58 = vld [vmem:[%s8478_s1 + $0x520] ss:$8 sps:$4 sm:$0xff]  }
 0x111   :  { %4504 = vmatprep.subr.bf16.mxu0 %v6034_v59  ;;  %v6126_v59 = vld [vmem:[%s8478_s1 + $0xe20] ss:$8 sps:$4 sm:$0xff]  }
 0x113   :  { %4046 = vmatpush1.bf16.msra.mxu1 %v6029_v60  ;;  %v4847_v60 = vcombine.low %v57_v46, %v57_v46  ;;  %v6196_v46 = vld [vmem:[%s8478_s1 + $0x5e0] ss:$8 sps:$4 sm:$0xff]  }
 0x114   :  { %4505 = vmatpush1.bf16.msra.mxu0 %v6032_v61  ;;  %4047 = vmatprep.subr.bf16.mxu1 %v6037_v62  ;;  %v4865_v61 = vcombine.low %v66_v47, %v66_v47  ;;  %v6131_v62 = vld [vmem:[%s8478_s1 + $0x534] ss:$8 sps:$4 sm:$0xff]   ;;  %v6200_v47 = vld [vmem:[%s8478_s1 + $0xee0] ss:$8 sps:$4 sm:$0xff]  }
 0x115   :  { %4506 = vmatprep.subr.bf16.mxu0 %v6040_v63  ;;  %v6134_v63 = vld [vmem:[%s8478_s1 + $0xe34] ss:$8 sps:$4 sm:$0xff]  }
 0x117   :  { %4048 = vmatpush1.bf16.msra.mxu1 %v6035_v0  ;;  %v6213_v0 = vld [vmem:[%s8479_s0 + $0x2c] ss:$144 sps:$4 sm:$0xff]  }
 0x118   :  { %4507 = vmatpush1.bf16.msra.mxu0 %v6038_v1  ;;  %4049 = vmatprep.subr.bf16.mxu1 %v6043_v2  ;;  %v6219_v1 = vld [vmem:[%s8479_s0 + $0x74] ss:$144 sps:$4 sm:$0xff]   ;;  %v6129_v2 = vld [vmem:[%s8478_s1 + $0x530] ss:$8 sps:$4 sm:$0xff]  }
 0x119   :  { %4508 = vmatprep.subr.bf16.mxu0 %v6046_v3  ;;  %v6132_v3 = vld [vmem:[%s8478_s1 + $0xe30] ss:$8 sps:$4 sm:$0xff]  }
 0x11b   :  { %4050 = vmatpush1.bf16.msra.mxu1 %v6041_v4  ;;  %v6137_v4 = vld [vmem:[%s8478_s1 + $0x544] ss:$8 sps:$4 sm:$0xff]  }
 0x11c   :  { %4509 = vmatpush1.bf16.msra.mxu0 %v6044_v5  ;;  %4051 = vmatprep.subr.bf16.mxu1 %v6049_v6  ;;  %v6140_v5 = vld [vmem:[%s8478_s1 + $0xe44] ss:$8 sps:$4 sm:$0xff]   ;;  %v6135_v6 = vld [vmem:[%s8478_s1 + $0x540] ss:$8 sps:$4 sm:$0xff]  }
 0x11d   :  { %4510 = vmatprep.subr.bf16.mxu0 %v6052_v7  ;;  %v6138_v7 = vld [vmem:[%s8478_s1 + $0xe40] ss:$8 sps:$4 sm:$0xff]  }
 0x11f   :  { %4052 = vmatpush1.bf16.msra.mxu1 %v6047_v8  ;;  %v6143_v8 = vld [vmem:[%s8478_s1 + $0x554] ss:$8 sps:$4 sm:$0xff]  }
 0x120   :  { %4511 = vmatpush1.bf16.msra.mxu0 %v6050_v9  ;;  %4053 = vmatprep.subr.bf16.mxu1 %v6055_v10  ;;  %v6146_v9 = vld [vmem:[%s8478_s1 + $0xe54] ss:$8 sps:$4 sm:$0xff]   ;;  %v6141_v10 = vld [vmem:[%s8478_s1 + $0x550] ss:$8 sps:$4 sm:$0xff]  }
 0x121   :  { %4512 = vmatprep.subr.bf16.mxu0 %v6058_v11  ;;  %v6144_v11 = vld [vmem:[%s8478_s1 + $0xe50] ss:$8 sps:$4 sm:$0xff]  }
 0x123   :  { %4054 = vmatpush1.bf16.msra.mxu1 %v6053_v12  ;;  %v6149_v12 = vld [vmem:[%s8478_s1 + $0x564] ss:$8 sps:$4 sm:$0xff]  }
 0x124   :  { %4513 = vmatpush1.bf16.msra.mxu0 %v6056_v13  ;;  %4055 = vmatprep.subr.bf16.mxu1 %v6061_v14  ;;  %v6152_v13 = vld [vmem:[%s8478_s1 + $0xe64] ss:$8 sps:$4 sm:$0xff]   ;;  %v6147_v14 = vld [vmem:[%s8478_s1 + $0x560] ss:$8 sps:$4 sm:$0xff]  }
 0x125   :  { %4514 = vmatprep.subr.bf16.mxu0 %v6064_v15  ;;  %v6150_v15 = vld [vmem:[%s8478_s1 + $0xe60] ss:$8 sps:$4 sm:$0xff]  }
 0x127   :  { %4056 = vmatpush1.bf16.msra.mxu1 %v6059_v16  ;;  %v6155_v16 = vld [vmem:[%s8478_s1 + $0x574] ss:$8 sps:$4 sm:$0xff]  }
 0x128   :  { %4515 = vmatpush1.bf16.msra.mxu0 %v6062_v17  ;;  %4057 = vmatprep.subr.bf16.mxu1 %v6067_v18  ;;  %v6158_v17 = vld [vmem:[%s8478_s1 + $0xe74] ss:$8 sps:$4 sm:$0xff]   ;;  %v6153_v18 = vld [vmem:[%s8478_s1 + $0x570] ss:$8 sps:$4 sm:$0xff]  }
 0x129   :  { %4516 = vmatprep.subr.bf16.mxu0 %v6070_v19  ;;  %v6156_v19 = vld [vmem:[%s8478_s1 + $0xe70] ss:$8 sps:$4 sm:$0xff]  }
 0x12b   :  { %4058 = vmatpush1.bf16.msra.mxu1 %v6065_v20  ;;  %v6161_v20 = vld [vmem:[%s8478_s1 + $0x584] ss:$8 sps:$4 sm:$0xff]  }
 0x12c   :  { %4517 = vmatpush1.bf16.msra.mxu0 %v6068_v21  ;;  %4059 = vmatprep.subr.bf16.mxu1 %v6073_v22  ;;  %v6164_v21 = vld [vmem:[%s8478_s1 + $0xe84] ss:$8 sps:$4 sm:$0xff]   ;;  %v6159_v22 = vld [vmem:[%s8478_s1 + $0x580] ss:$8 sps:$4 sm:$0xff]  }
 0x12d   :  { %4518 = vmatprep.subr.bf16.mxu0 %v6076_v23  ;;  %v6162_v23 = vld [vmem:[%s8478_s1 + $0xe80] ss:$8 sps:$4 sm:$0xff]  }
 0x12f   :  { %4060 = vmatpush1.bf16.msra.mxu1 %v6071_v24  ;;  %v6167_v24 = vld [vmem:[%s8478_s1 + $0x594] ss:$8 sps:$4 sm:$0xff]  }
 0x130   :  { %4519 = vmatpush1.bf16.msra.mxu0 %v6074_v25  ;;  %4061 = vmatprep.subr.bf16.mxu1 %v6079_v26  ;;  %v6170_v25 = vld [vmem:[%s8478_s1 + $0xe94] ss:$8 sps:$4 sm:$0xff]   ;;  %v6165_v26 = vld [vmem:[%s8478_s1 + $0x590] ss:$8 sps:$4 sm:$0xff]  }
 0x131   :  { %4520 = vmatprep.subr.bf16.mxu0 %v6082_v27  ;;  %v6168_v27 = vld [vmem:[%s8478_s1 + $0xe90] ss:$8 sps:$4 sm:$0xff]  }
 0x133   :  { %4062 = vmatpush1.bf16.msra.mxu1 %v6077_v28  ;;  %v6173_v28 = vld [vmem:[%s8478_s1 + $0x5a4] ss:$8 sps:$4 sm:$0xff]  }
 0x134   :  { %4521 = vmatpush1.bf16.msra.mxu0 %v6080_v29  ;;  %4063 = vmatprep.subr.bf16.mxu1 %v6085_v30  ;;  %v6176_v29 = vld [vmem:[%s8478_s1 + $0xea4] ss:$8 sps:$4 sm:$0xff]   ;;  %v6171_v30 = vld [vmem:[%s8478_s1 + $0x5a0] ss:$8 sps:$4 sm:$0xff]  }
 0x135   :  { %4522 = vmatprep.subr.bf16.mxu0 %v6088_v31  ;;  %v6174_v31 = vld [vmem:[%s8478_s1 + $0xea0] ss:$8 sps:$4 sm:$0xff]  }
 0x137   :  { %4064 = vmatpush1.bf16.msra.mxu1 %v6083_v32  ;;  %v6179_v32 = vld [vmem:[%s8478_s1 + $0x5b4] ss:$8 sps:$4 sm:$0xff]  }
 0x138   :  { %4523 = vmatpush1.bf16.msra.mxu0 %v6086_v33  ;;  %4065 = vmatprep.subr.bf16.mxu1 %v6092_v34  ;;  %v6182_v33 = vld [vmem:[%s8478_s1 + $0xeb4] ss:$8 sps:$4 sm:$0xff]   ;;  %v6177_v34 = vld [vmem:[%s8478_s1 + $0x5b0] ss:$8 sps:$4 sm:$0xff]  }
 0x139   :  { %4524 = vmatprep.subr.bf16.mxu0 %v6096_v35  ;;  %v6180_v35 = vld [vmem:[%s8478_s1 + $0xeb0] ss:$8 sps:$4 sm:$0xff]  }
 0x13b   :  { %4066 = vmatpush1.bf16.msra.mxu1 %v6090_v36  ;;  %v6185_v36 = vld [vmem:[%s8478_s1 + $0x5c4] ss:$8 sps:$4 sm:$0xff]  }
 0x13c   :  { %4525 = vmatpush1.bf16.msra.mxu0 %v6094_v37  ;;  %4067 = vmatprep.subr.bf16.mxu1 %v6101_v38  ;;  %v6188_v37 = vld [vmem:[%s8478_s1 + $0xec4] ss:$8 sps:$4 sm:$0xff]   ;;  %v6183_v38 = vld [vmem:[%s8478_s1 + $0x5c0] ss:$8 sps:$4 sm:$0xff]  }
 0x13d   :  { %4526 = vmatprep.subr.bf16.mxu0 %v6104_v39  ;;  %v6186_v39 = vld [vmem:[%s8478_s1 + $0xec0] ss:$8 sps:$4 sm:$0xff]  }
 0x13f   :  { %4068 = vmatpush1.bf16.msra.mxu1 %v6099_v40  ;;  %v6191_v40 = vld [vmem:[%s8478_s1 + $0x5d4] ss:$8 sps:$4 sm:$0xff]  }
 0x140   :  { %4527 = vmatpush1.bf16.msra.mxu0 %v6102_v41  ;;  %4088 = vmatprep.subr.bf16.mxu1 %v6110_v42  ;;  %v6194_v41 = vld [vmem:[%s8478_s1 + $0xed4] ss:$8 sps:$4 sm:$0xff]   ;;  %v6189_v42 = vld [vmem:[%s8478_s1 + $0x5d0] ss:$8 sps:$4 sm:$0xff]  }
 0x141   :  { %4547 = vmatprep.subr.bf16.mxu0 %v6116_v45  ;;  %v6202_v45 = vld [vmem:[%s8478_s1 + $0xee4] ss:$8 sps:$4 sm:$0xff]  }
 0x142   :  { %4070 = vmatmul.mubr.bf16.vlgmr.msra.gmra.mrb[0].mxu1 %v6105_v43  ;;  %v6192_v43 = vld [vmem:[%s8478_s1 + $0xed0] ss:$8 sps:$4 sm:$0xff]  }
 0x143   :  { %4529 = vmatmul.mubr.bf16.vlgmr.msra.gmra.mrb[0].mxu0 %v6111_v44  ;;  %4089 = vmatpush1.bf16.msra.mxu1 %v6108_v48  ;;  %v6198_v44 = vld [vmem:[%s8478_s1 + $0x5e4] ss:$8 sps:$4 sm:$0xff]   ;;  %v6207_v48 = vld [vmem:[%s8478_s1 + $0x5f4] ss:$8 sps:$4 sm:$0xff]  }
 0x144   :  { %4548 = vmatpush1.bf16.msra.mxu0 %v6114_v49  ;;  %4090 = vmatprep.subr.bf16.mxu1 %v6119_v50  ;;  %v6210_v49 = vld [vmem:[%s8478_s1 + $0xef4] ss:$8 sps:$4 sm:$0xff]   ;;  %v6205_v50 = vld [vmem:[%s8478_s1 + $0x5f0] ss:$8 sps:$4 sm:$0xff]  }
 0x145   :  { %4549 = vmatprep.subr.bf16.mxu0 %v6122_v51  ;;  %4079 = vmatprep.mubr.bf16.mxu1 %v4848_v52  ;;  %v6208_v51 = vld [vmem:[%s8478_s1 + $0xef0] ss:$8 sps:$4 sm:$0xff]   ;;  %v6216_v52 = vld [vmem:[%s8478_s1 + $0x604] ss:$8 sps:$4 sm:$0xff]  }
 0x146   :  { %4538 = vmatprep.mubr.bf16.mxu0 %v4866_v53  ;;  %v6222_v53 = vld [vmem:[%s8478_s1 + $0xf04] ss:$8 sps:$4 sm:$0xff]  }
 0x147   :  { %4091 = vmatpush1.bf16.msra.mxu1 %v6117_v54  ;;  %v6211_v54 = vld [vmem:[%s8479_s0 + $0x28] ss:$144 sps:$4 sm:$0xff]  }
 0x148   :  { %4550 = vmatpush1.bf16.msra.mxu0 %v6120_v55  ;;  %4092 = vmatprep.subr.bf16.mxu1 %v6125_v56  ;;  %v6217_v55 = vld [vmem:[%s8479_s0 + $0x70] ss:$144 sps:$4 sm:$0xff]   ;;  %v58_v56 = vld [vmem:[%s8479_s0 + $0x148] sm:$0xff] }
 0x149   :  { %4551 = vmatprep.subr.bf16.mxu0 %v6128_v57  ;;  %v67_v57 = vld [vmem:[%s8479_s0 + $0x190] sm:$0xff] }
 0x14a   :  { %4080 = vmatmul.mubr.bf16.gmra.mrb[4].mxu1 %v4847_v60  ;;  %v6225_v60 = vld [vmem:[%s8478_s1 + $0x614] ss:$8 sps:$4 sm:$0xff]  }
 0x14b   :  { %4539 = vmatmul.mubr.bf16.gmra.mrb[4].mxu0 %v4865_v61  ;;  %4093 = vmatpush1.bf16.msra.mxu1 %v6123_v58  ;;  %v6214_v58 = vld [vmem:[%s8478_s1 + $0x600] ss:$8 sps:$4 sm:$0xff]   ;;  %v6228_v61 = vld [vmem:[%s8478_s1 + $0xf14] ss:$8 sps:$4 sm:$0xff]  }
 0x14c   :  { %4552 = vmatpush1.bf16.msra.mxu0 %v6126_v59  ;;  %4094 = vmatprep.subr.bf16.mxu1 %v6131_v62  ;;  %v6220_v59 = vld [vmem:[%s8478_s1 + $0xf00] ss:$8 sps:$4 sm:$0xff]   ;;  %v4850_v62 = vcombine.high %v58_v56, %v58_v56 }
 0x14d   :  { %4553 = vmatprep.subr.bf16.mxu0 %v6134_v63  ;;  %4120 = vmatprep.mubr.bf16.mxu1 %v6213_v0  ;;  %v4868_v63 = vcombine.high %v67_v57, %v67_v57  ;;  %v6223_v0 = vld [vmem:[%s8478_s1 + $0x610] ss:$8 sps:$4 sm:$0xff]  }
 0x14e   :  { %4579 = vmatprep.mubr.bf16.mxu0 %v6219_v1  ;;  %v6226_v1 = vld [vmem:[%s8478_s1 + $0xf10] ss:$8 sps:$4 sm:$0xff]  }
 0x14f   :  { %4095 = vmatpush1.bf16.msra.mxu1 %v6129_v2  ;;  %v6231_v2 = vld [vmem:[%s8478_s1 + $0x624] ss:$8 sps:$4 sm:$0xff]  }
 0x150   :  { %4554 = vmatpush1.bf16.msra.mxu0 %v6132_v3  ;;  %4096 = vmatprep.subr.bf16.mxu1 %v6137_v4  ;;  %v6234_v3 = vld [vmem:[%s8478_s1 + $0xf24] ss:$8 sps:$4 sm:$0xff]   ;;  %v4849_v4 = vcombine.low %v58_v56, %v58_v56  ;;  %v6302_v56 = vld [vmem:[%s8478_s1 + $0x6e0] ss:$8 sps:$4 sm:$0xff]  }
 0x151   :  { %4555 = vmatprep.subr.bf16.mxu0 %v6140_v5  ;;  %v4867_v5 = vcombine.low %v67_v57, %v67_v57  ;;  %v6306_v57 = vld [vmem:[%s8478_s1 + $0xfe0] ss:$8 sps:$4 sm:$0xff]  }
 0x153   :  { %4097 = vmatpush1.bf16.msra.mxu1 %v6135_v6  ;;  %v6229_v6 = vld [vmem:[%s8478_s1 + $0x620] ss:$8 sps:$4 sm:$0xff]  }
 0x154   :  { %4556 = vmatpush1.bf16.msra.mxu0 %v6138_v7  ;;  %4098 = vmatprep.subr.bf16.mxu1 %v6143_v8  ;;  %v6232_v7 = vld [vmem:[%s8478_s1 + $0xf20] ss:$8 sps:$4 sm:$0xff]   ;;  %v6237_v8 = vld [vmem:[%s8478_s1 + $0x634] ss:$8 sps:$4 sm:$0xff]  }
 0x155   :  { %4557 = vmatprep.subr.bf16.mxu0 %v6146_v9  ;;  %v6240_v9 = vld [vmem:[%s8478_s1 + $0xf34] ss:$8 sps:$4 sm:$0xff]  }
 0x157   :  { %4099 = vmatpush1.bf16.msra.mxu1 %v6141_v10  ;;  %v6319_v10 = vld [vmem:[%s8479_s0 + $0x34] ss:$144 sps:$4 sm:$0xff]  }
 0x158   :  { %4558 = vmatpush1.bf16.msra.mxu0 %v6144_v11  ;;  %4100 = vmatprep.subr.bf16.mxu1 %v6149_v12  ;;  %v6325_v11 = vld [vmem:[%s8479_s0 + $0x7c] ss:$144 sps:$4 sm:$0xff]   ;;  %v6235_v12 = vld [vmem:[%s8478_s1 + $0x630] ss:$8 sps:$4 sm:$0xff]  }
 0x159   :  { %4559 = vmatprep.subr.bf16.mxu0 %v6152_v13  ;;  %v6238_v13 = vld [vmem:[%s8478_s1 + $0xf30] ss:$8 sps:$4 sm:$0xff]  }
 0x15b   :  { %4101 = vmatpush1.bf16.msra.mxu1 %v6147_v14  ;;  %v6243_v14 = vld [vmem:[%s8478_s1 + $0x644] ss:$8 sps:$4 sm:$0xff]  }
 0x15c   :  { %4560 = vmatpush1.bf16.msra.mxu0 %v6150_v15  ;;  %4102 = vmatprep.subr.bf16.mxu1 %v6155_v16  ;;  %v6246_v15 = vld [vmem:[%s8478_s1 + $0xf44] ss:$8 sps:$4 sm:$0xff]   ;;  %v6241_v16 = vld [vmem:[%s8478_s1 + $0x640] ss:$8 sps:$4 sm:$0xff]  }
 0x15d   :  { %4561 = vmatprep.subr.bf16.mxu0 %v6158_v17  ;;  %v6244_v17 = vld [vmem:[%s8478_s1 + $0xf40] ss:$8 sps:$4 sm:$0xff]  }
 0x15f   :  { %4103 = vmatpush1.bf16.msra.mxu1 %v6153_v18  ;;  %v6249_v18 = vld [vmem:[%s8478_s1 + $0x654] ss:$8 sps:$4 sm:$0xff]  }
 0x160   :  { %4562 = vmatpush1.bf16.msra.mxu0 %v6156_v19  ;;  %4104 = vmatprep.subr.bf16.mxu1 %v6161_v20  ;;  %v6252_v19 = vld [vmem:[%s8478_s1 + $0xf54] ss:$8 sps:$4 sm:$0xff]   ;;  %v6247_v20 = vld [vmem:[%s8478_s1 + $0x650] ss:$8 sps:$4 sm:$0xff]  }
 0x161   :  { %4563 = vmatprep.subr.bf16.mxu0 %v6164_v21  ;;  %v6250_v21 = vld [vmem:[%s8478_s1 + $0xf50] ss:$8 sps:$4 sm:$0xff]  }
 0x163   :  { %4105 = vmatpush1.bf16.msra.mxu1 %v6159_v22  ;;  %v6255_v22 = vld [vmem:[%s8478_s1 + $0x664] ss:$8 sps:$4 sm:$0xff]  }
 0x164   :  { %4564 = vmatpush1.bf16.msra.mxu0 %v6162_v23  ;;  %4106 = vmatprep.subr.bf16.mxu1 %v6167_v24  ;;  %v6258_v23 = vld [vmem:[%s8478_s1 + $0xf64] ss:$8 sps:$4 sm:$0xff]   ;;  %v6253_v24 = vld [vmem:[%s8478_s1 + $0x660] ss:$8 sps:$4 sm:$0xff]  }
 0x165   :  { %4565 = vmatprep.subr.bf16.mxu0 %v6170_v25  ;;  %v6256_v25 = vld [vmem:[%s8478_s1 + $0xf60] ss:$8 sps:$4 sm:$0xff]  }
 0x167   :  { %4107 = vmatpush1.bf16.msra.mxu1 %v6165_v26  ;;  %v6261_v26 = vld [vmem:[%s8478_s1 + $0x674] ss:$8 sps:$4 sm:$0xff]  }
 0x168   :  { %4566 = vmatpush1.bf16.msra.mxu0 %v6168_v27  ;;  %4108 = vmatprep.subr.bf16.mxu1 %v6173_v28  ;;  %v6264_v27 = vld [vmem:[%s8478_s1 + $0xf74] ss:$8 sps:$4 sm:$0xff]   ;;  %v6259_v28 = vld [vmem:[%s8478_s1 + $0x670] ss:$8 sps:$4 sm:$0xff]  }
 0x169   :  { %4567 = vmatprep.subr.bf16.mxu0 %v6176_v29  ;;  %v6262_v29 = vld [vmem:[%s8478_s1 + $0xf70] ss:$8 sps:$4 sm:$0xff]  }
 0x16b   :  { %4109 = vmatpush1.bf16.msra.mxu1 %v6171_v30  ;;  %v6267_v30 = vld [vmem:[%s8478_s1 + $0x684] ss:$8 sps:$4 sm:$0xff]  }
 0x16c   :  { %4568 = vmatpush1.bf16.msra.mxu0 %v6174_v31  ;;  %4110 = vmatprep.subr.bf16.mxu1 %v6179_v32  ;;  %v6270_v31 = vld [vmem:[%s8478_s1 + $0xf84] ss:$8 sps:$4 sm:$0xff]   ;;  %v6265_v32 = vld [vmem:[%s8478_s1 + $0x680] ss:$8 sps:$4 sm:$0xff]  }
 0x16d   :  { %4569 = vmatprep.subr.bf16.mxu0 %v6182_v33  ;;  %v6268_v33 = vld [vmem:[%s8478_s1 + $0xf80] ss:$8 sps:$4 sm:$0xff]  }
 0x16f   :  { %4111 = vmatpush1.bf16.msra.mxu1 %v6177_v34  ;;  %v6273_v34 = vld [vmem:[%s8478_s1 + $0x694] ss:$8 sps:$4 sm:$0xff]  }
 0x170   :  { %4570 = vmatpush1.bf16.msra.mxu0 %v6180_v35  ;;  %4112 = vmatprep.subr.bf16.mxu1 %v6185_v36  ;;  %v6276_v35 = vld [vmem:[%s8478_s1 + $0xf94] ss:$8 sps:$4 sm:$0xff]   ;;  %v6271_v36 = vld [vmem:[%s8478_s1 + $0x690] ss:$8 sps:$4 sm:$0xff]  }
 0x171   :  { %4571 = vmatprep.subr.bf16.mxu0 %v6188_v37  ;;  %v6274_v37 = vld [vmem:[%s8478_s1 + $0xf90] ss:$8 sps:$4 sm:$0xff]  }
 0x173   :  { %4113 = vmatpush1.bf16.msra.mxu1 %v6183_v38  ;;  %v6279_v38 = vld [vmem:[%s8478_s1 + $0x6a4] ss:$8 sps:$4 sm:$0xff]  }
 0x174   :  { %4572 = vmatpush1.bf16.msra.mxu0 %v6186_v39  ;;  %4114 = vmatprep.subr.bf16.mxu1 %v6191_v40  ;;  %v6282_v39 = vld [vmem:[%s8478_s1 + $0xfa4] ss:$8 sps:$4 sm:$0xff]   ;;  %v6277_v40 = vld [vmem:[%s8478_s1 + $0x6a0] ss:$8 sps:$4 sm:$0xff]  }
 0x175   :  { %4573 = vmatprep.subr.bf16.mxu0 %v6194_v41  ;;  %v6280_v41 = vld [vmem:[%s8478_s1 + $0xfa0] ss:$8 sps:$4 sm:$0xff]  }
 0x177   :  { %4115 = vmatpush1.bf16.msra.mxu1 %v6189_v42  ;;  %v6285_v42 = vld [vmem:[%s8478_s1 + $0x6b4] ss:$8 sps:$4 sm:$0xff]  }
 0x178   :  { %4574 = vmatpush1.bf16.msra.mxu0 %v6192_v43  ;;  %4116 = vmatprep.subr.bf16.mxu1 %v6198_v44  ;;  %v6288_v43 = vld [vmem:[%s8478_s1 + $0xfb4] ss:$8 sps:$4 sm:$0xff]   ;;  %v6283_v44 = vld [vmem:[%s8478_s1 + $0x6b0] ss:$8 sps:$4 sm:$0xff]  }
 0x179   :  { %4575 = vmatprep.subr.bf16.mxu0 %v6202_v45  ;;  %v6286_v45 = vld [vmem:[%s8478_s1 + $0xfb0] ss:$8 sps:$4 sm:$0xff]  }
 0x17b   :  { %4117 = vmatpush1.bf16.msra.mxu1 %v6196_v46  ;;  %v6291_v46 = vld [vmem:[%s8478_s1 + $0x6c4] ss:$8 sps:$4 sm:$0xff]  }
 0x17c   :  { %4576 = vmatpush1.bf16.msra.mxu0 %v6200_v47  ;;  %4118 = vmatprep.subr.bf16.mxu1 %v6207_v48  ;;  %v6294_v47 = vld [vmem:[%s8478_s1 + $0xfc4] ss:$8 sps:$4 sm:$0xff]   ;;  %v6289_v48 = vld [vmem:[%s8478_s1 + $0x6c0] ss:$8 sps:$4 sm:$0xff]  }
 0x17d   :  { %4577 = vmatprep.subr.bf16.mxu0 %v6210_v49  ;;  %v6292_v49 = vld [vmem:[%s8478_s1 + $0xfc0] ss:$8 sps:$4 sm:$0xff]  }
 0x17f   :  { %4119 = vmatpush1.bf16.msra.mxu1 %v6205_v50  ;;  %v6297_v50 = vld [vmem:[%s8478_s1 + $0x6d4] ss:$8 sps:$4 sm:$0xff]  }
 0x180   :  { %4578 = vmatpush1.bf16.msra.mxu0 %v6208_v51  ;;  %4139 = vmatprep.subr.bf16.mxu1 %v6216_v52  ;;  %v6300_v51 = vld [vmem:[%s8478_s1 + $0xfd4] ss:$8 sps:$4 sm:$0xff]   ;;  %v6295_v52 = vld [vmem:[%s8478_s1 + $0x6d0] ss:$8 sps:$4 sm:$0xff]  }
 0x181   :  { %4598 = vmatprep.subr.bf16.mxu0 %v6222_v53  ;;  %v6298_v53 = vld [vmem:[%s8478_s1 + $0xfd0] ss:$8 sps:$4 sm:$0xff]  }
 0x182   :  { %4121 = vmatmul.mubr.bf16.vlgmr.msra.gmra.mrb[0].mxu1 %v6211_v54  ;;  %v6304_v54 = vld [vmem:[%s8478_s1 + $0x6e4] ss:$8 sps:$4 sm:$0xff]  }
 0x183   :  { %4580 = vmatmul.mubr.bf16.vlgmr.msra.gmra.mrb[0].mxu0 %v6217_v55  ;;  %4140 = vmatpush1.bf16.msra.mxu1 %v6214_v58  ;;  %v6308_v55 = vld [vmem:[%s8478_s1 + $0xfe4] ss:$8 sps:$4 sm:$0xff]   ;;  %v6313_v58 = vld [vmem:[%s8478_s1 + $0x6f4] ss:$8 sps:$4 sm:$0xff]  }
 0x184   :  { %4599 = vmatpush1.bf16.msra.mxu0 %v6220_v59  ;;  %4141 = vmatprep.subr.bf16.mxu1 %v6225_v60  ;;  %v6316_v59 = vld [vmem:[%s8478_s1 + $0xff4] ss:$8 sps:$4 sm:$0xff]   ;;  %v6311_v60 = vld [vmem:[%s8478_s1 + $0x6f0] ss:$8 sps:$4 sm:$0xff]  }
 0x185   :  { %4600 = vmatprep.subr.bf16.mxu0 %v6228_v61  ;;  %4130 = vmatprep.mubr.bf16.mxu1 %v4850_v62  ;;  %v6314_v61 = vld [vmem:[%s8478_s1 + $0xff0] ss:$8 sps:$4 sm:$0xff]   ;;  %v6322_v62 = vld [vmem:[%s8478_s1 + $0x704] ss:$8 sps:$4 sm:$0xff]  }
 0x186   :  { %4589 = vmatprep.mubr.bf16.mxu0 %v4868_v63  ;;  %v6328_v63 = vld [vmem:[%s8478_s1 + $0x1004] ss:$8 sps:$4 sm:$0xff]  }
 0x187   :  { %4142 = vmatpush1.bf16.msra.mxu1 %v6223_v0  ;;  %v6317_v0 = vld [vmem:[%s8479_s0 + $0x30] ss:$144 sps:$4 sm:$0xff]  }
 0x188   :  { %4601 = vmatpush1.bf16.msra.mxu0 %v6226_v1  ;;  %4143 = vmatprep.subr.bf16.mxu1 %v6231_v2  ;;  %v6323_v1 = vld [vmem:[%s8479_s0 + $0x78] ss:$144 sps:$4 sm:$0xff]   ;;  %v59_v2 = vld [vmem:[%s8479_s0 + $0x150] sm:$0xff] }
 0x189   :  { %4602 = vmatprep.subr.bf16.mxu0 %v6234_v3  ;;  %v68_v3 = vld [vmem:[%s8479_s0 + $0x198] sm:$0xff] }
 0x18a   :  { %4131 = vmatmul.mubr.bf16.gmra.mrb[4].mxu1 %v4849_v4  ;;  %v6320_v4 = vld [vmem:[%s8478_s1 + $0x700] ss:$8 sps:$4 sm:$0xff]  }
 0x18b   :  { %4590 = vmatmul.mubr.bf16.gmra.mrb[4].mxu0 %v4867_v5  ;;  %4144 = vmatpush1.bf16.msra.mxu1 %v6229_v6  ;;  %v6326_v5 = vld [vmem:[%s8478_s1 + $0x1000] ss:$8 sps:$4 sm:$0xff]   ;;  %v6331_v6 = vld [vmem:[%s8478_s1 + $0x714] ss:$8 sps:$4 sm:$0xff]  }
 0x18c   :  { %4603 = vmatpush1.bf16.msra.mxu0 %v6232_v7  ;;  %4145 = vmatprep.subr.bf16.mxu1 %v6237_v8  ;;  %v6334_v7 = vld [vmem:[%s8478_s1 + $0x1014] ss:$8 sps:$4 sm:$0xff]   ;;  %v4852_v8 = vcombine.high %v59_v2, %v59_v2 }
 0x18d   :  { %4604 = vmatprep.subr.bf16.mxu0 %v6240_v9  ;;  %4171 = vmatprep.mubr.bf16.mxu1 %v6319_v10  ;;  %v4870_v9 = vcombine.high %v68_v3, %v68_v3  ;;  %v6329_v10 = vld [vmem:[%s8478_s1 + $0x710] ss:$8 sps:$4 sm:$0xff]  }
 0x18e   :  { %4630 = vmatprep.mubr.bf16.mxu0 %v6325_v11  ;;  %v6332_v11 = vld [vmem:[%s8478_s1 + $0x1010] ss:$8 sps:$4 sm:$0xff]  }
 0x18f   :  { %4146 = vmatpush1.bf16.msra.mxu1 %v6235_v12  ;;  %v6337_v12 = vld [vmem:[%s8478_s1 + $0x724] ss:$8 sps:$4 sm:$0xff]  }
 0x190   :  { %4605 = vmatpush1.bf16.msra.mxu0 %v6238_v13  ;;  %4147 = vmatprep.subr.bf16.mxu1 %v6243_v14  ;;  %v6340_v13 = vld [vmem:[%s8478_s1 + $0x1024] ss:$8 sps:$4 sm:$0xff]   ;;  %v4851_v14 = vcombine.low %v59_v2, %v59_v2  ;;  %v6408_v2 = vld [vmem:[%s8478_s1 + $0x7e0] ss:$8 sps:$4 sm:$0xff]  }
 0x191   :  { %4606 = vmatprep.subr.bf16.mxu0 %v6246_v15  ;;  %v4869_v15 = vcombine.low %v68_v3, %v68_v3  ;;  %v6412_v3 = vld [vmem:[%s8478_s1 + $0x10e0] ss:$8 sps:$4 sm:$0xff]  }
 0x193   :  { %4148 = vmatpush1.bf16.msra.mxu1 %v6241_v16  ;;  %v6335_v16 = vld [vmem:[%s8478_s1 + $0x720] ss:$8 sps:$4 sm:$0xff]  }
 0x194   :  { %4607 = vmatpush1.bf16.msra.mxu0 %v6244_v17  ;;  %4149 = vmatprep.subr.bf16.mxu1 %v6249_v18  ;;  %v6338_v17 = vld [vmem:[%s8478_s1 + $0x1020] ss:$8 sps:$4 sm:$0xff]   ;;  %v6343_v18 = vld [vmem:[%s8478_s1 + $0x734] ss:$8 sps:$4 sm:$0xff]  }
 0x195   :  { %4608 = vmatprep.subr.bf16.mxu0 %v6252_v19  ;;  %v6346_v19 = vld [vmem:[%s8478_s1 + $0x1034] ss:$8 sps:$4 sm:$0xff]  }
 0x197   :  { %4150 = vmatpush1.bf16.msra.mxu1 %v6247_v20  ;;  %v6425_v20 = vld [vmem:[%s8479_s0 + $0x3c] ss:$144 sps:$4 sm:$0xff]  }
 0x198   :  { %4609 = vmatpush1.bf16.msra.mxu0 %v6250_v21  ;;  %4151 = vmatprep.subr.bf16.mxu1 %v6255_v22  ;;  %v6431_v21 = vld [vmem:[%s8479_s0 + $0x84] ss:$144 sps:$4 sm:$0xff]   ;;  %v6341_v22 = vld [vmem:[%s8478_s1 + $0x730] ss:$8 sps:$4 sm:$0xff]  }
 0x199   :  { %4610 = vmatprep.subr.bf16.mxu0 %v6258_v23  ;;  %v6344_v23 = vld [vmem:[%s8478_s1 + $0x1030] ss:$8 sps:$4 sm:$0xff]  }
 0x19b   :  { %4152 = vmatpush1.bf16.msra.mxu1 %v6253_v24  ;;  %v6349_v24 = vld [vmem:[%s8478_s1 + $0x744] ss:$8 sps:$4 sm:$0xff]  }
 0x19c   :  { %4611 = vmatpush1.bf16.msra.mxu0 %v6256_v25  ;;  %4153 = vmatprep.subr.bf16.mxu1 %v6261_v26  ;;  %v6352_v25 = vld [vmem:[%s8478_s1 + $0x1044] ss:$8 sps:$4 sm:$0xff]   ;;  %v6347_v26 = vld [vmem:[%s8478_s1 + $0x740] ss:$8 sps:$4 sm:$0xff]  }
 0x19d   :  { %4612 = vmatprep.subr.bf16.mxu0 %v6264_v27  ;;  %v6350_v27 = vld [vmem:[%s8478_s1 + $0x1040] ss:$8 sps:$4 sm:$0xff]  }
 0x19f   :  { %4154 = vmatpush1.bf16.msra.mxu1 %v6259_v28  ;;  %v6355_v28 = vld [vmem:[%s8478_s1 + $0x754] ss:$8 sps:$4 sm:$0xff]  }
 0x1a0   :  { %4613 = vmatpush1.bf16.msra.mxu0 %v6262_v29  ;;  %4155 = vmatprep.subr.bf16.mxu1 %v6267_v30  ;;  %v6358_v29 = vld [vmem:[%s8478_s1 + $0x1054] ss:$8 sps:$4 sm:$0xff]   ;;  %v6353_v30 = vld [vmem:[%s8478_s1 + $0x750] ss:$8 sps:$4 sm:$0xff]  }
 0x1a1   :  { %4614 = vmatprep.subr.bf16.mxu0 %v6270_v31  ;;  %v6356_v31 = vld [vmem:[%s8478_s1 + $0x1050] ss:$8 sps:$4 sm:$0xff]  }
 0x1a3   :  { %4156 = vmatpush1.bf16.msra.mxu1 %v6265_v32  ;;  %v6361_v32 = vld [vmem:[%s8478_s1 + $0x764] ss:$8 sps:$4 sm:$0xff]  }
 0x1a4   :  { %4615 = vmatpush1.bf16.msra.mxu0 %v6268_v33  ;;  %4157 = vmatprep.subr.bf16.mxu1 %v6273_v34  ;;  %v6364_v33 = vld [vmem:[%s8478_s1 + $0x1064] ss:$8 sps:$4 sm:$0xff]   ;;  %v6359_v34 = vld [vmem:[%s8478_s1 + $0x760] ss:$8 sps:$4 sm:$0xff]  }
 0x1a5   :  { %4616 = vmatprep.subr.bf16.mxu0 %v6276_v35  ;;  %v6362_v35 = vld [vmem:[%s8478_s1 + $0x1060] ss:$8 sps:$4 sm:$0xff]  }
 0x1a7   :  { %4158 = vmatpush1.bf16.msra.mxu1 %v6271_v36  ;;  %v6367_v36 = vld [vmem:[%s8478_s1 + $0x774] ss:$8 sps:$4 sm:$0xff]  }
 0x1a8   :  { %4617 = vmatpush1.bf16.msra.mxu0 %v6274_v37  ;;  %4159 = vmatprep.subr.bf16.mxu1 %v6279_v38  ;;  %v6370_v37 = vld [vmem:[%s8478_s1 + $0x1074] ss:$8 sps:$4 sm:$0xff]   ;;  %v6365_v38 = vld [vmem:[%s8478_s1 + $0x770] ss:$8 sps:$4 sm:$0xff]  }
 0x1a9   :  { %4618 = vmatprep.subr.bf16.mxu0 %v6282_v39  ;;  %v6368_v39 = vld [vmem:[%s8478_s1 + $0x1070] ss:$8 sps:$4 sm:$0xff]  }
 0x1ab   :  { %4160 = vmatpush1.bf16.msra.mxu1 %v6277_v40  ;;  %v6373_v40 = vld [vmem:[%s8478_s1 + $0x784] ss:$8 sps:$4 sm:$0xff]  }
 0x1ac   :  { %4619 = vmatpush1.bf16.msra.mxu0 %v6280_v41  ;;  %4161 = vmatprep.subr.bf16.mxu1 %v6285_v42  ;;  %v6376_v41 = vld [vmem:[%s8478_s1 + $0x1084] ss:$8 sps:$4 sm:$0xff]   ;;  %v6371_v42 = vld [vmem:[%s8478_s1 + $0x780] ss:$8 sps:$4 sm:$0xff]  }
 0x1ad   :  { %4620 = vmatprep.subr.bf16.mxu0 %v6288_v43  ;;  %v6374_v43 = vld [vmem:[%s8478_s1 + $0x1080] ss:$8 sps:$4 sm:$0xff]  }
 0x1af   :  { %4162 = vmatpush1.bf16.msra.mxu1 %v6283_v44  ;;  %v6379_v44 = vld [vmem:[%s8478_s1 + $0x794] ss:$8 sps:$4 sm:$0xff]  }
 0x1b0   :  { %4621 = vmatpush1.bf16.msra.mxu0 %v6286_v45  ;;  %4163 = vmatprep.subr.bf16.mxu1 %v6291_v46  ;;  %v6382_v45 = vld [vmem:[%s8478_s1 + $0x1094] ss:$8 sps:$4 sm:$0xff]   ;;  %v6377_v46 = vld [vmem:[%s8478_s1 + $0x790] ss:$8 sps:$4 sm:$0xff]  }
 0x1b1   :  { %4622 = vmatprep.subr.bf16.mxu0 %v6294_v47  ;;  %v6380_v47 = vld [vmem:[%s8478_s1 + $0x1090] ss:$8 sps:$4 sm:$0xff]  }
 0x1b3   :  { %4164 = vmatpush1.bf16.msra.mxu1 %v6289_v48  ;;  %v6385_v48 = vld [vmem:[%s8478_s1 + $0x7a4] ss:$8 sps:$4 sm:$0xff]  }
 0x1b4   :  { %4623 = vmatpush1.bf16.msra.mxu0 %v6292_v49  ;;  %4165 = vmatprep.subr.bf16.mxu1 %v6297_v50  ;;  %v6388_v49 = vld [vmem:[%s8478_s1 + $0x10a4] ss:$8 sps:$4 sm:$0xff]   ;;  %v6383_v50 = vld [vmem:[%s8478_s1 + $0x7a0] ss:$8 sps:$4 sm:$0xff]  }
 0x1b5   :  { %4624 = vmatprep.subr.bf16.mxu0 %v6300_v51  ;;  %v6386_v51 = vld [vmem:[%s8478_s1 + $0x10a0] ss:$8 sps:$4 sm:$0xff]  }
 0x1b7   :  { %4166 = vmatpush1.bf16.msra.mxu1 %v6295_v52  ;;  %v6391_v52 = vld [vmem:[%s8478_s1 + $0x7b4] ss:$8 sps:$4 sm:$0xff]  }
 0x1b8   :  { %4625 = vmatpush1.bf16.msra.mxu0 %v6298_v53  ;;  %4167 = vmatprep.subr.bf16.mxu1 %v6304_v54  ;;  %v6394_v53 = vld [vmem:[%s8478_s1 + $0x10b4] ss:$8 sps:$4 sm:$0xff]   ;;  %v6389_v54 = vld [vmem:[%s8478_s1 + $0x7b0] ss:$8 sps:$4 sm:$0xff]  }
 0x1b9   :  { %4626 = vmatprep.subr.bf16.mxu0 %v6308_v55  ;;  %v6392_v55 = vld [vmem:[%s8478_s1 + $0x10b0] ss:$8 sps:$4 sm:$0xff]  }
 0x1bb   :  { %4168 = vmatpush1.bf16.msra.mxu1 %v6302_v56  ;;  %v6397_v56 = vld [vmem:[%s8478_s1 + $0x7c4] ss:$8 sps:$4 sm:$0xff]  }
 0x1bc   :  { %4627 = vmatpush1.bf16.msra.mxu0 %v6306_v57  ;;  %4169 = vmatprep.subr.bf16.mxu1 %v6313_v58  ;;  %v6400_v57 = vld [vmem:[%s8478_s1 + $0x10c4] ss:$8 sps:$4 sm:$0xff]   ;;  %v6395_v58 = vld [vmem:[%s8478_s1 + $0x7c0] ss:$8 sps:$4 sm:$0xff]  }
 0x1bd   :  { %4628 = vmatprep.subr.bf16.mxu0 %v6316_v59  ;;  %v6398_v59 = vld [vmem:[%s8478_s1 + $0x10c0] ss:$8 sps:$4 sm:$0xff]  }
 0x1bf   :  { %4170 = vmatpush1.bf16.msra.mxu1 %v6311_v60  ;;  %v6403_v60 = vld [vmem:[%s8478_s1 + $0x7d4] ss:$8 sps:$4 sm:$0xff]  }
 0x1c0   :  { %4629 = vmatpush1.bf16.msra.mxu0 %v6314_v61  ;;  %4190 = vmatprep.subr.bf16.mxu1 %v6322_v62  ;;  %v6406_v61 = vld [vmem:[%s8478_s1 + $0x10d4] ss:$8 sps:$4 sm:$0xff]   ;;  %v6401_v62 = vld [vmem:[%s8478_s1 + $0x7d0] ss:$8 sps:$4 sm:$0xff]  }
 0x1c1   :  { %4649 = vmatprep.subr.bf16.mxu0 %v6328_v63  ;;  %v6404_v63 = vld [vmem:[%s8478_s1 + $0x10d0] ss:$8 sps:$4 sm:$0xff]  }
 0x1c2   :  { %4172 = vmatmul.mubr.bf16.vlgmr.msra.gmra.mrb[0].mxu1 %v6317_v0  ;;  %v6410_v0 = vld [vmem:[%s8478_s1 + $0x7e4] ss:$8 sps:$4 sm:$0xff]  }
 0x1c3   :  { %4631 = vmatmul.mubr.bf16.vlgmr.msra.gmra.mrb[0].mxu0 %v6323_v1  ;;  %4191 = vmatpush1.bf16.msra.mxu1 %v6320_v4  ;;  %v6414_v1 = vld [vmem:[%s8478_s1 + $0x10e4] ss:$8 sps:$4 sm:$0xff]   ;;  %v6419_v4 = vld [vmem:[%s8478_s1 + $0x7f4] ss:$8 sps:$4 sm:$0xff]  }
 0x1c4   :  { %4650 = vmatpush1.bf16.msra.mxu0 %v6326_v5  ;;  %4192 = vmatprep.subr.bf16.mxu1 %v6331_v6  ;;  %v6422_v5 = vld [vmem:[%s8478_s1 + $0x10f4] ss:$8 sps:$4 sm:$0xff]   ;;  %v6417_v6 = vld [vmem:[%s8478_s1 + $0x7f0] ss:$8 sps:$4 sm:$0xff]  }
 0x1c5   :  { %4651 = vmatprep.subr.bf16.mxu0 %v6334_v7  ;;  %4181 = vmatprep.mubr.bf16.mxu1 %v4852_v8  ;;  %v6420_v7 = vld [vmem:[%s8478_s1 + $0x10f0] ss:$8 sps:$4 sm:$0xff]   ;;  %v6428_v8 = vld [vmem:[%s8478_s1 + $0x804] ss:$8 sps:$4 sm:$0xff]  }
 0x1c6   :  { %4640 = vmatprep.mubr.bf16.mxu0 %v4870_v9  ;;  %v6434_v9 = vld [vmem:[%s8478_s1 + $0x1104] ss:$8 sps:$4 sm:$0xff]  }
 0x1c7   :  { %4193 = vmatpush1.bf16.msra.mxu1 %v6329_v10  ;;  %v6423_v10 = vld [vmem:[%s8479_s0 + $0x38] ss:$144 sps:$4 sm:$0xff]  }
 0x1c8   :  { %4652 = vmatpush1.bf16.msra.mxu0 %v6332_v11  ;;  %4194 = vmatprep.subr.bf16.mxu1 %v6337_v12  ;;  %v6429_v11 = vld [vmem:[%s8479_s0 + $0x80] ss:$144 sps:$4 sm:$0xff]   ;;  %v60_v12 = vld [vmem:[%s8479_s0 + $0x158] sm:$0xff] }
 0x1c9   :  { %4653 = vmatprep.subr.bf16.mxu0 %v6340_v13  ;;  %v69_v13 = vld [vmem:[%s8479_s0 + $0x1a0] sm:$0xff] }
 0x1ca   :  { %4182 = vmatmul.mubr.bf16.gmra.mrb[4].mxu1 %v4851_v14  ;;  %v6426_v14 = vld [vmem:[%s8478_s1 + $0x800] ss:$8 sps:$4 sm:$0xff]  }
 0x1cb   :  { %4641 = vmatmul.mubr.bf16.gmra.mrb[4].mxu0 %v4869_v15  ;;  %4195 = vmatpush1.bf16.msra.mxu1 %v6335_v16  ;;  %v6432_v15 = vld [vmem:[%s8478_s1 + $0x1100] ss:$8 sps:$4 sm:$0xff]   ;;  %v6437_v16 = vld [vmem:[%s8478_s1 + $0x814] ss:$8 sps:$4 sm:$0xff]  }
 0x1cc   :  { %4654 = vmatpush1.bf16.msra.mxu0 %v6338_v17  ;;  %4196 = vmatprep.subr.bf16.mxu1 %v6343_v18  ;;  %v6440_v17 = vld [vmem:[%s8478_s1 + $0x1114] ss:$8 sps:$4 sm:$0xff]   ;;  %v4854_v18 = vcombine.high %v60_v12, %v60_v12 }
 0x1cd   :  { %4655 = vmatprep.subr.bf16.mxu0 %v6346_v19  ;;  %4222 = vmatprep.mubr.bf16.mxu1 %v6425_v20  ;;  %v4872_v19 = vcombine.high %v69_v13, %v69_v13  ;;  %v6435_v20 = vld [vmem:[%s8478_s1 + $0x810] ss:$8 sps:$4 sm:$0xff]  }
 0x1ce   :  { %4681 = vmatprep.mubr.bf16.mxu0 %v6431_v21  ;;  %v6438_v21 = vld [vmem:[%s8478_s1 + $0x1110] ss:$8 sps:$4 sm:$0xff]  }
 0x1cf   :  { %4197 = vmatpush1.bf16.msra.mxu1 %v6341_v22  ;;  %v6443_v22 = vld [vmem:[%s8478_s1 + $0x824] ss:$8 sps:$4 sm:$0xff]  }
 0x1d0   :  { %4656 = vmatpush1.bf16.msra.mxu0 %v6344_v23  ;;  %4198 = vmatprep.subr.bf16.mxu1 %v6349_v24  ;;  %v6446_v23 = vld [vmem:[%s8478_s1 + $0x1124] ss:$8 sps:$4 sm:$0xff]   ;;  %v4853_v24 = vcombine.low %v60_v12, %v60_v12  ;;  %v6516_v12 = vld [vmem:[%s8478_s1 + $0x8e0] ss:$8 sps:$4 sm:$0xff]  }
 0x1d1   :  { %4657 = vmatprep.subr.bf16.mxu0 %v6352_v25  ;;  %v4871_v25 = vcombine.low %v69_v13, %v69_v13  ;;  %v6520_v13 = vld [vmem:[%s8478_s1 + $0x11e0] ss:$8 sps:$4 sm:$0xff]  }
 0x1d3   :  { %4199 = vmatpush1.bf16.msra.mxu1 %v6347_v26  ;;  %v6441_v26 = vld [vmem:[%s8478_s1 + $0x820] ss:$8 sps:$4 sm:$0xff]  }
 0x1d4   :  { %4658 = vmatpush1.bf16.msra.mxu0 %v6350_v27  ;;  %4200 = vmatprep.subr.bf16.mxu1 %v6355_v28  ;;  %v6444_v27 = vld [vmem:[%s8478_s1 + $0x1120] ss:$8 sps:$4 sm:$0xff]   ;;  %v6449_v28 = vld [vmem:[%s8478_s1 + $0x834] ss:$8 sps:$4 sm:$0xff]  }
 0x1d5   :  { %4659 = vmatprep.subr.bf16.mxu0 %v6358_v29  ;;  %v6452_v29 = vld [vmem:[%s8478_s1 + $0x1134] ss:$8 sps:$4 sm:$0xff]  }
 0x1d7   :  { %4201 = vmatpush1.bf16.msra.mxu1 %v6353_v30  ;;  %v6531_v30 = vld [vmem:[%s8479_s0 + $0x44] ss:$144 sps:$4 sm:$0xff]  }
 0x1d8   :  { %4660 = vmatpush1.bf16.msra.mxu0 %v6356_v31  ;;  %4202 = vmatprep.subr.bf16.mxu1 %v6361_v32  ;;  %v6534_v31 = vld [vmem:[%s8479_s0 + $0x8c] ss:$144 sps:$4 sm:$0xff]   ;;  %v6447_v32 = vld [vmem:[%s8478_s1 + $0x830] ss:$8 sps:$4 sm:$0xff]  }
 0x1d9   :  { %4661 = vmatprep.subr.bf16.mxu0 %v6364_v33  ;;  %v6450_v33 = vld [vmem:[%s8478_s1 + $0x1130] ss:$8 sps:$4 sm:$0xff]  }
 0x1db   :  { %4203 = vmatpush1.bf16.msra.mxu1 %v6359_v34  ;;  %v6455_v34 = vld [vmem:[%s8478_s1 + $0x844] ss:$8 sps:$4 sm:$0xff]  }
 0x1dc   :  { %4662 = vmatpush1.bf16.msra.mxu0 %v6362_v35  ;;  %4204 = vmatprep.subr.bf16.mxu1 %v6367_v36  ;;  %v6458_v35 = vld [vmem:[%s8478_s1 + $0x1144] ss:$8 sps:$4 sm:$0xff]   ;;  %v6453_v36 = vld [vmem:[%s8478_s1 + $0x840] ss:$8 sps:$4 sm:$0xff]  }
 0x1dd   :  { %4663 = vmatprep.subr.bf16.mxu0 %v6370_v37  ;;  %v6456_v37 = vld [vmem:[%s8478_s1 + $0x1140] ss:$8 sps:$4 sm:$0xff]  }
 0x1df   :  { %4205 = vmatpush1.bf16.msra.mxu1 %v6365_v38  ;;  %v6461_v38 = vld [vmem:[%s8478_s1 + $0x854] ss:$8 sps:$4 sm:$0xff]  }
 0x1e0   :  { %4664 = vmatpush1.bf16.msra.mxu0 %v6368_v39  ;;  %4206 = vmatprep.subr.bf16.mxu1 %v6373_v40  ;;  %v6464_v39 = vld [vmem:[%s8478_s1 + $0x1154] ss:$8 sps:$4 sm:$0xff]   ;;  %v6459_v40 = vld [vmem:[%s8478_s1 + $0x850] ss:$8 sps:$4 sm:$0xff]  }
 0x1e1   :  { %4665 = vmatprep.subr.bf16.mxu0 %v6376_v41  ;;  %v6462_v41 = vld [vmem:[%s8478_s1 + $0x1150] ss:$8 sps:$4 sm:$0xff]  }
 0x1e3   :  { %4207 = vmatpush1.bf16.msra.mxu1 %v6371_v42  ;;  %v6467_v42 = vld [vmem:[%s8478_s1 + $0x864] ss:$8 sps:$4 sm:$0xff]  }
 0x1e4   :  { %4666 = vmatpush1.bf16.msra.mxu0 %v6374_v43  ;;  %4208 = vmatprep.subr.bf16.mxu1 %v6379_v44  ;;  %v6470_v43 = vld [vmem:[%s8478_s1 + $0x1164] ss:$8 sps:$4 sm:$0xff]   ;;  %v6465_v44 = vld [vmem:[%s8478_s1 + $0x860] ss:$8 sps:$4 sm:$0xff]  }
 0x1e5   :  { %4667 = vmatprep.subr.bf16.mxu0 %v6382_v45  ;;  %v6468_v45 = vld [vmem:[%s8478_s1 + $0x1160] ss:$8 sps:$4 sm:$0xff]  }
 0x1e7   :  { %4209 = vmatpush1.bf16.msra.mxu1 %v6377_v46  ;;  %v6473_v46 = vld [vmem:[%s8478_s1 + $0x874] ss:$8 sps:$4 sm:$0xff]  }
 0x1e8   :  { %4668 = vmatpush1.bf16.msra.mxu0 %v6380_v47  ;;  %4210 = vmatprep.subr.bf16.mxu1 %v6385_v48  ;;  %v6476_v47 = vld [vmem:[%s8478_s1 + $0x1174] ss:$8 sps:$4 sm:$0xff]   ;;  %v6471_v48 = vld [vmem:[%s8478_s1 + $0x870] ss:$8 sps:$4 sm:$0xff]  }
 0x1e9   :  { %4669 = vmatprep.subr.bf16.mxu0 %v6388_v49  ;;  %v6474_v49 = vld [vmem:[%s8478_s1 + $0x1170] ss:$8 sps:$4 sm:$0xff]  }
 0x1eb   :  { %4211 = vmatpush1.bf16.msra.mxu1 %v6383_v50  ;;  %v6479_v50 = vld [vmem:[%s8478_s1 + $0x884] ss:$8 sps:$4 sm:$0xff]  }
 0x1ec   :  { %4670 = vmatpush1.bf16.msra.mxu0 %v6386_v51  ;;  %4212 = vmatprep.subr.bf16.mxu1 %v6391_v52  ;;  %v6482_v51 = vld [vmem:[%s8478_s1 + $0x1184] ss:$8 sps:$4 sm:$0xff]   ;;  %v6477_v52 = vld [vmem:[%s8478_s1 + $0x880] ss:$8 sps:$4 sm:$0xff]  }
 0x1ed   :  { %4671 = vmatprep.subr.bf16.mxu0 %v6394_v53  ;;  %v6480_v53 = vld [vmem:[%s8478_s1 + $0x1180] ss:$8 sps:$4 sm:$0xff]  }
 0x1ef   :  { %4213 = vmatpush1.bf16.msra.mxu1 %v6389_v54  ;;  %v6485_v54 = vld [vmem:[%s8478_s1 + $0x894] ss:$8 sps:$4 sm:$0xff]  }
 0x1f0   :  { %4672 = vmatpush1.bf16.msra.mxu0 %v6392_v55  ;;  %4214 = vmatprep.subr.bf16.mxu1 %v6397_v56  ;;  %v6488_v55 = vld [vmem:[%s8478_s1 + $0x1194] ss:$8 sps:$4 sm:$0xff]   ;;  %v6483_v56 = vld [vmem:[%s8478_s1 + $0x890] ss:$8 sps:$4 sm:$0xff]  }
 0x1f1   :  { %4673 = vmatprep.subr.bf16.mxu0 %v6400_v57  ;;  %v6486_v57 = vld [vmem:[%s8478_s1 + $0x1190] ss:$8 sps:$4 sm:$0xff]  }
 0x1f3   :  { %4215 = vmatpush1.bf16.msra.mxu1 %v6395_v58  ;;  %v6491_v58 = vld [vmem:[%s8478_s1 + $0x8a4] ss:$8 sps:$4 sm:$0xff]  }
 0x1f4   :  { %4674 = vmatpush1.bf16.msra.mxu0 %v6398_v59  ;;  %4216 = vmatprep.subr.bf16.mxu1 %v6403_v60  ;;  %v6494_v59 = vld [vmem:[%s8478_s1 + $0x11a4] ss:$8 sps:$4 sm:$0xff]   ;;  %v6489_v60 = vld [vmem:[%s8478_s1 + $0x8a0] ss:$8 sps:$4 sm:$0xff]  }
 0x1f5   :  { %4675 = vmatprep.subr.bf16.mxu0 %v6406_v61  ;;  %v6492_v61 = vld [vmem:[%s8478_s1 + $0x11a0] ss:$8 sps:$4 sm:$0xff]  }
 0x1f7   :  { %4217 = vmatpush1.bf16.msra.mxu1 %v6401_v62  ;;  %v6497_v62 = vld [vmem:[%s8478_s1 + $0x8b4] ss:$8 sps:$4 sm:$0xff]  }
 0x1f8   :  { %4676 = vmatpush1.bf16.msra.mxu0 %v6404_v63  ;;  %4218 = vmatprep.subr.bf16.mxu1 %v6410_v0  ;;  %v6500_v63 = vld [vmem:[%s8478_s1 + $0x11b4] ss:$8 sps:$4 sm:$0xff]   ;;  %v6495_v0 = vld [vmem:[%s8478_s1 + $0x8b0] ss:$8 sps:$4 sm:$0xff]  }
 0x1f9   :  { %4677 = vmatprep.subr.bf16.mxu0 %v6414_v1  ;;  %v6498_v1 = vld [vmem:[%s8478_s1 + $0x11b0] ss:$8 sps:$4 sm:$0xff]  }
 0x1fb   :  { %4219 = vmatpush1.bf16.msra.mxu1 %v6408_v2  ;;  %v6503_v2 = vld [vmem:[%s8478_s1 + $0x8c4] ss:$8 sps:$4 sm:$0xff]  }
 0x1fc   :  { %4678 = vmatpush1.bf16.msra.mxu0 %v6412_v3  ;;  %4220 = vmatprep.subr.bf16.mxu1 %v6419_v4  ;;  %v6506_v3 = vld [vmem:[%s8478_s1 + $0x11c4] ss:$8 sps:$4 sm:$0xff]   ;;  %v6501_v4 = vld [vmem:[%s8478_s1 + $0x8c0] ss:$8 sps:$4 sm:$0xff]  }
 0x1fd   :  { %4679 = vmatprep.subr.bf16.mxu0 %v6422_v5  ;;  %v6504_v5 = vld [vmem:[%s8478_s1 + $0x11c0] ss:$8 sps:$4 sm:$0xff]  }
 0x1ff   :  { %4221 = vmatpush1.bf16.msra.mxu1 %v6417_v6  ;;  %v6509_v6 = vld [vmem:[%s8478_s1 + $0x8d4] ss:$8 sps:$4 sm:$0xff]  }
 0x200   :  { %4680 = vmatpush1.bf16.msra.mxu0 %v6420_v7  ;;  %4241 = vmatprep.subr.bf16.mxu1 %v6428_v8  ;;  %v6512_v7 = vld [vmem:[%s8478_s1 + $0x11d4] ss:$8 sps:$4 sm:$0xff]   ;;  %v6507_v8 = vld [vmem:[%s8478_s1 + $0x8d0] ss:$8 sps:$4 sm:$0xff]  }
 0x201   :  { %4700 = vmatprep.subr.bf16.mxu0 %v6434_v9  ;;  %v6510_v9 = vld [vmem:[%s8478_s1 + $0x11d0] ss:$8 sps:$4 sm:$0xff]  }
 0x202   :  { %4223 = vmatmul.mubr.bf16.vlgmr.msra.gmra.mrb[0].mxu1 %v6423_v10  ;;  %v6518_v10 = vld [vmem:[%s8478_s1 + $0x8e4] ss:$8 sps:$4 sm:$0xff]  }
 0x203   :  { %4682 = vmatmul.mubr.bf16.vlgmr.msra.gmra.mrb[0].mxu0 %v6429_v11  ;;  %4242 = vmatpush1.bf16.msra.mxu1 %v6426_v14  ;;  %v6522_v11 = vld [vmem:[%s8478_s1 + $0x11e4] ss:$8 sps:$4 sm:$0xff]   ;;  %v6525_v14 = vld [vmem:[%s8478_s1 + $0x8f4] ss:$8 sps:$4 sm:$0xff]  }
 0x204   :  { %4701 = vmatpush1.bf16.msra.mxu0 %v6432_v15  ;;  %4243 = vmatprep.subr.bf16.mxu1 %v6437_v16  ;;  %v6528_v15 = vld [vmem:[%s8478_s1 + $0x11f4] ss:$8 sps:$4 sm:$0xff]   ;;  %v6523_v16 = vld [vmem:[%s8478_s1 + $0x8f0] ss:$8 sps:$4 sm:$0xff]  }
 0x205   :  { %4702 = vmatprep.subr.bf16.mxu0 %v6440_v17  ;;  %4232 = vmatprep.mubr.bf16.mxu1 %v4854_v18  ;;  %v6526_v17 = vld [vmem:[%s8478_s1 + $0x11f0] ss:$8 sps:$4 sm:$0xff]   ;;  %v61_v18 = vld [vmem:[%s8479_s0 + $0x160] sm:$0xff] }
 0x206   :  { %4691 = vmatprep.mubr.bf16.mxu0 %v4872_v19  ;;  %v70_v19 = vld [vmem:[%s8479_s0 + $0x1a8] sm:$0xff] }
 0x207   :  { %4244 = vmatpush1.bf16.msra.mxu1 %v6435_v20  ;;  %v6529_v20 = vld [vmem:[%s8479_s0 + $0x40] ss:$144 sps:$4 sm:$0xff]  }
 0x208   :  { %4703 = vmatpush1.bf16.msra.mxu0 %v6438_v21  ;;  %4245 = vmatprep.subr.bf16.mxu1 %v6443_v22  ;;  %v6532_v21 = vld [vmem:[%s8479_s0 + $0x88] ss:$144 sps:$4 sm:$0xff]   ;;  %v4856_v22 = vcombine.high %v61_v18, %v61_v18 }
 0x209   :  { %4704 = vmatprep.subr.bf16.mxu0 %v6446_v23  ;;  %v4874_v23 = vcombine.high %v70_v19, %v70_v19 }
 0x20a   :  { %4233 = vmatmul.mubr.bf16.gmra.mrb[4].mxu1 %v4853_v24  ;;  %v4855_v24 = vcombine.low %v61_v18, %v61_v18 }
 0x20b   :  { %4692 = vmatmul.mubr.bf16.gmra.mrb[4].mxu0 %v4871_v25  ;;  %4246 = vmatpush1.bf16.msra.mxu1 %v6441_v26  ;;  %v4873_v25 = vcombine.low %v70_v19, %v70_v19  ;;  %v4753_v26 = vlaneseq }
 0x20c   :  { %4705 = vmatpush1.bf16.msra.mxu0 %v6444_v27  ;;  %4247 = vmatprep.subr.bf16.mxu1 %v6449_v28 }
 0x20d   :  { %4706 = vmatprep.subr.bf16.mxu0 %v6452_v29  ;;  %4273 = vmatprep.mubr.bf16.mxu1 %v6531_v30  ;;  %v4754_v27 = vshrl.u32 %v4753_v26, 7  ;;  %v4751_v29 = vld [vmem:[%s8480_s2] sm:$0x3] }
 0x20e   :  { %4732 = vmatprep.mubr.bf16.mxu0 %v6534_v31  ;;  %v4769_v31 = vld [vmem:[%s8481_s3] sm:$0x3] }
 0x20f   :  { %4248 = vmatpush1.bf16.msra.mxu1 %v6447_v32  ;;  %v4755_v28 = vsub.s32 0, %v4754_v27  ;;  %v4759_v30 = vsub.s32 1, %v4754_v27 }
 0x210   :  { %4707 = vmatpush1.bf16.msra.mxu0 %v6450_v33  ;;  %4249 = vmatprep.subr.bf16.mxu1 %v6455_v34 }
 0x211   :  { %4708 = vmatprep.subr.bf16.mxu0 %v6458_v35  ;;  %v4756_v32 = vrot.slane %v4751_v29, %v4755_v28  ;;  %v4760_v35 = vrot.slane %v4751_v29, %v4759_v30 }
 0x213   :  { %4250 = vmatpush1.bf16.msra.mxu1 %v6453_v36 }
 0x214   :  { %4709 = vmatpush1.bf16.msra.mxu0 %v6456_v37  ;;  %4251 = vmatprep.subr.bf16.mxu1 %v6461_v38  ;;  %v4774_v37 = vrot.slane %v4769_v31, %v4755_v28 }
 0x215   :  { %4710 = vmatprep.subr.bf16.mxu0 %v6464_v39 }
 0x217   :  { %4252 = vmatpush1.bf16.msra.mxu1 %v6459_v40 }
 0x218   :  { %4711 = vmatpush1.bf16.msra.mxu0 %v6462_v41  ;;  %4253 = vmatprep.subr.bf16.mxu1 %v6467_v42  ;;  %v4778_v41 = vrot.slane %v4769_v31, %v4759_v30 }
 0x219   :  { %4712 = vmatprep.subr.bf16.mxu0 %v6470_v43 }
 0x21b   :  { %4254 = vmatpush1.bf16.msra.mxu1 %v6465_v44 }
 0x21c   :  { %4713 = vmatpush1.bf16.msra.mxu0 %v6468_v45  ;;  %4255 = vmatprep.subr.bf16.mxu1 %v6473_v46 }
 0x21d   :  { %4714 = vmatprep.subr.bf16.mxu0 %v6476_v47 }
 0x21f   :  { %4256 = vmatpush1.bf16.msra.mxu1 %v6471_v48 }
 0x220   :  { %4715 = vmatpush1.bf16.msra.mxu0 %v6474_v49  ;;  %4257 = vmatprep.subr.bf16.mxu1 %v6479_v50 }
 0x221   :  { %4716 = vmatprep.subr.bf16.mxu0 %v6482_v51 }
 0x223   :  { %4258 = vmatpush1.bf16.msra.mxu1 %v6477_v52 }
 0x224   :  { %4717 = vmatpush1.bf16.msra.mxu0 %v6480_v53  ;;  %4259 = vmatprep.subr.bf16.mxu1 %v6485_v54 }
 0x225   :  { %4718 = vmatprep.subr.bf16.mxu0 %v6488_v55 }
 0x227   :  { %4260 = vmatpush1.bf16.msra.mxu1 %v6483_v56 }
 0x228   :  { %4719 = vmatpush1.bf16.msra.mxu0 %v6486_v57  ;;  %4261 = vmatprep.subr.bf16.mxu1 %v6491_v58 }
 0x229   :  { %4720 = vmatprep.subr.bf16.mxu0 %v6494_v59 }
 0x22b   :  { %4262 = vmatpush1.bf16.msra.mxu1 %v6489_v60 }
 0x22c   :  { %4721 = vmatpush1.bf16.msra.mxu0 %v6492_v61  ;;  %4263 = vmatprep.subr.bf16.mxu1 %v6497_v62 }
 0x22d   :  { %4722 = vmatprep.subr.bf16.mxu0 %v6500_v63 }
 0x22f   :  { %4264 = vmatpush1.bf16.msra.mxu1 %v6495_v0 }
 0x230   :  { %4723 = vmatpush1.bf16.msra.mxu0 %v6498_v1  ;;  %4265 = vmatprep.subr.bf16.mxu1 %v6503_v2 }
 0x231   :  { %4724 = vmatprep.subr.bf16.mxu0 %v6506_v3 }
 0x233   :  { %4266 = vmatpush1.bf16.msra.mxu1 %v6501_v4 }
 0x234   :  { %4725 = vmatpush1.bf16.msra.mxu0 %v6504_v5  ;;  %4267 = vmatprep.subr.bf16.mxu1 %v6509_v6 }
 0x235   :  { %4726 = vmatprep.subr.bf16.mxu0 %v6512_v7 }
 0x237   :  { %4268 = vmatpush1.bf16.msra.mxu1 %v6507_v8 }
 0x238   :  { %4727 = vmatpush1.bf16.msra.mxu0 %v6510_v9  ;;  %4269 = vmatprep.subr.bf16.mxu1 %v6518_v10 }
 0x239   :  { %4728 = vmatprep.subr.bf16.mxu0 %v6522_v11 }
 0x23b   :  { %4270 = vmatpush1.bf16.msra.mxu1 %v6516_v12 }
 0x23c   :  { %4729 = vmatpush1.bf16.msra.mxu0 %v6520_v13  ;;  %4271 = vmatprep.subr.bf16.mxu1 %v6525_v14 }
 0x23d   :  { %4730 = vmatprep.subr.bf16.mxu0 %v6528_v15 }
 0x23f   :  { %4272 = vmatpush1.bf16.msra.mxu1 %v6523_v16 }
 0x240   :  { %4731 = vmatpush1.bf16.msra.mxu0 %v6526_v17 }
 0x242   :  { %4274 = vmatmul.mubr.bf16.vlgmr.msra.gmra.mrb[0].mxu1 %v6529_v20 }
 0x243   :  { %4733 = vmatmul.mubr.bf16.vlgmr.msra.gmra.mrb[0].mxu0 %v6532_v21  ;;  %4283 = vmatprep.mubr.bf16.mxu1 %v4856_v22 }
 0x244   :  { %4742 = vmatprep.mubr.bf16.mxu0 %v4874_v23 }
 0x24a   :  { %4284 = vmatmul.mubr.bf16.gmra.mrb[4].mxu1 %v4855_v24 }
 0x24b   :  { %4743 = vmatmul.mubr.bf16.gmra.mrb[4].mxu0 %v4873_v25 }
 0x315   :  { %v4275_v33 = vpop.f32.mrb[0].mxu1 }
 0x316   :  { %v4734_v34 = vpop.f32.mrb[0].mxu0  ;;  %v4277_v38 = vpop.f32.mrb[1].mxu1 }
 0x317   :  { %v5451_v36 = vadd.f32 %v4734_v34, %v4275_v33  ;;  %v4736_v39 = vpop.f32.mrb[1].mxu0  ;;  %v4279_v42 = vpop.f32.mrb[2].mxu1 }
 0x318   :  { %v5452_v40 = vadd.f32 %v4736_v39, %v4277_v38  ;;  %v4738_v43 = vpop.f32.mrb[2].mxu0  ;;  %v4281_v46 = vpop.f32.mrb[3].mxu1 }
 0x319   :  { %v4763_v44 = vmul.f32 %v5451_v36, %v4756_v32  ;;  %v5453_v45 = vadd.f32 %v4738_v43, %v4279_v42  ;;  %v4740_v47 = vpop.f32.mrb[3].mxu0 }
 0x31a   :  { %v4764_v48 = vmul.f32 %v5452_v40, %v4760_v35  ;;  %v5454_v49 = vadd.f32 %v4740_v47, %v4281_v46 }
 0x31b   :  { %v4781_v50 = vadd.f32 %v4774_v37, %v4763_v44  ;;  %v4765_v51 = vmul.f32 %v5453_v45, %v4756_v32 }
 0x31c   :  { %v4782_v52 = vadd.f32 %v4778_v41, %v4764_v48  ;;  %v4766_v53 = vmul.f32 %v5454_v49, %v4760_v35 }
 0x31d   :  { %v4787_v54 = vmax.f32 %v4781_v50, 0.0  ;;  %v4783_v55 = vadd.f32 %v4774_v37, %v4765_v51  ;;  %v4285_v58 = vpop.f32.mrb[4].mxu1 }
 0x31e   :  { %v4788_v56 = vmax.f32 %v4782_v52, 0.0  ;;  %v4784_v57 = vadd.f32 %v4778_v41, %v4766_v53  ;;  %v4744_v59 = vpop.f32.mrb[4].mxu0  ;;  %v4287_v62 = vpop.f32.mrb[5].mxu1 }
 0x31f   :  { %4793 = vst [vmem:[%s8482_s4] sm:$0xff] %v4787_v54  ;;  %v4789_v60 = vmax.f32 %v4783_v55, 0.0  ;;  %v5455_v61 = vadd.f32 %v4744_v59, %v4285_v58  ;;  %v4746_v63 = vpop.f32.mrb[5].mxu0  ;;  %v4289_v2 = vpop.f32.mrb[6].mxu1 }
 0x320   :  { %4794 = vst [vmem:[%s8482_s4 + $0x8] sm:$0xff] %v4788_v56  ;;  %v4790_v0 = vmax.f32 %v4784_v57, 0.0  ;;  %v5456_v1 = vadd.f32 %v4746_v63, %v4287_v62  ;;  %v4748_v3 = vpop.f32.mrb[6].mxu0  ;;  %v4290_v5 = vpop.f32.mrb[7].mxu1 }
 0x321   :  { %4795 = vst [vmem:[%s8482_s4 + $0x10] sm:$0xff] %v4789_v60  ;;  %v4767_v4 = vmul.f32 %v5455_v61, %v4756_v32  ;;  %v4749_v6 = vpop.f32.mrb[7].mxu0 }
 0x322   :  { %4796 = vst [vmem:[%s8482_s4 + $0x18] sm:$0xff] %v4790_v0  ;;  %v4768_v7 = vmul.f32 %v5456_v1, %v4760_v35 }
 0x323   :  { %v4785_v8 = vadd.f32 %v4774_v37, %v4767_v4 }
 0x324   :  { %v4786_v9 = vadd.f32 %v4778_v41, %v4768_v7 }
 0x325   :  { %v4791_v10 = vmax.f32 %v4785_v8, 0.0 }
 0x326   :  { %v4792_v11 = vmax.f32 %v4786_v9, 0.0 }
 0x327   :  { %4797 = vst [vmem:[%s8482_s4 + $0x20] sm:$0xff] %v4791_v10 }
 0x328   :  { %4798 = vst [vmem:[%s8482_s4 + $0x28] sm:$0xff] %v4792_v11 }

// kernel: multimoding2017_forward.13
= control target key start
LH: loop header
LB: loop body
LE: loop exit
PB: predicated region body
PF: predicated region fallthrough
CT: control target
= control target key end

     0   :  { %vm204_vm0 = vcmask 261120   ;;  %s521_s1 = inlined_call_operand.vmem [shape: bf16[288,128], index: 1, kind: input, shape index: {}]   ;;  %s522_s0 = inlined_call_operand.vmem [shape: bf16[32,288], index: 0, kind: input, shape index: {}]   ;;  %s523_s2 = inlined_call_operand.vmem [shape: f32[1,128], index: 2, kind: input, shape index: {}]   ;;  %s524_s3 = inlined_call_operand.vmem [shape: f32[32,128], index: 3, kind: output, shape index: {}]  }
   0x1   :  { %v388_v0 = vld [vmem:[%s521_s1 + $0x40] sm:$0xff]   ;;  %v390_v2 = vld [vmem:[%s521_s1 + $0x48] sm:$0xff]   ;;  %v392_v4 = vld [vmem:[%s521_s1 + $0x50] sm:$0xff]  }
   0x2   :  { %v389_v1 = vld [vmem:[%s521_s1] sm:$0xff]   ;;  %348 = vmatprep.subr.bf16.mxu0 %v388_v0  ;;  %v391_v3 = vld [vmem:[%s521_s1 + $0x8] sm:$0xff]   ;;  %v393_v5 = vld [vmem:[%s521_s1 + $0x10] sm:$0xff]  }
   0x3   :  { %349 = vmatpush3.bf16.msra.mxu0 %v389_v1  ;;  %v394_v6 = vld [vmem:[%s521_s1 + $0x58] sm:$0xff]   ;;  %v396_v8 = vld [vmem:[%s521_s1 + $0x60] sm:$0xff]   ;;  %v398_v11 = vld [vmem:[%s521_s1 + $0x68] sm:$0xff]  }
   0x4   :  { %350 = vmatprep.subr.bf16.mxu0 %v390_v2  ;;  %v395_v7 = vld [vmem:[%s521_s1 + $0x18] sm:$0xff]   ;;  %v397_v9 = vld [vmem:[%s521_s1 + $0x20] sm:$0xff]   ;;  %v399_v12 = vld [vmem:[%s521_s1 + $0x28] sm:$0xff]  }
   0x5   :  { %v403_v10 = vld [vmem:[%s521_s1 + $0x80] sm:$0xff]   ;;  %v400_v13 = vld [vmem:[%s521_s1 + $0x70] sm:$0xff]   ;;  %v408_v15 = vld [vmem:[%s521_s1 + $0x88] sm:$0xff]  }
   0x6   :  { %380 = vmatprep.subr.bf16.mxu1 %v403_v10  ;;  %v407_v14 = vld [vmem:[%s522_s0 + $0x4] ss:$12 sps:$4 sm:$0xff]   ;;  %v409_v16 = vld [vmem:[%s522_s0 + $0x8] ss:$12 sps:$4 sm:$0xff]   ;;  %v410_v17 = vld [vmem:[%s522_s0 + $0x20] ss:$12 sps:$4 sm:$0xff]  }
   0x7   :  { %351 = vmatpush3.bf16.msra.mxu0 %v391_v3  ;;  %381 = vmatpush3.bf16.msra.mxu1 %v403_v10  ;;  %v401_v18 = vld [vmem:[%s521_s1 + $0x30] sm:$0xff]   ;;  %v402_v19 = vld [vmem:[%s521_s1 + $0x78] sm:$0xff]   ;;  %v405_v21 = vld [vmem:[%s522_s0] ss:$12 sps:$4 sm:$0xff]  }
   0x8   :  { %352 = vmatprep.subr.bf16.mxu0 %v392_v4  ;;  %243 = vmatprep.mubr.bf16.mxu0 %v407_v14  ;;  %v404_v20 = vld [vmem:[%s521_s1 + $0x38] sm:$0xff]   ;;  %v321_v30 = vld [vmem:[%s523_s2] ss:$0 sm:$0xff] }
   0x9   :  { %382 = vmatprep.subr.bf16.mxu1 %v408_v15  ;;  %384 = vmatprep.mubr.msk.bf16.mxu1 %vm204_vm0, %v409_v16  ;;  %v411_v22 = vld [vmem:[%s522_s0 + $0x1c] ss:$12 sps:$4 sm:$0xff]   ;;  %v413_v23 = vld [vmem:[%s522_s0 + $0x18] ss:$12 sps:$4 sm:$0xff]  }
   0xb   :  { %353 = vmatpush3.bf16.msra.mxu0 %v393_v5  ;;  %383 = vmatpush3.bf16.msra.mxu1 %v408_v15 }
   0xc   :  { %354 = vmatprep.subr.bf16.mxu0 %v394_v6 }
   0xe   :  { %385 = vmatmul.mubr.msk.bf16.vlgmr.msra.gmra.mrb[0].mxu1 %vm204_vm0, %v410_v17 }
   0xf   :  { %355 = vmatpush3.bf16.msra.mxu0 %v395_v7 }
  0x10   :  { %356 = vmatprep.subr.bf16.mxu0 %v396_v8 }
  0x13   :  { %357 = vmatpush3.bf16.msra.mxu0 %v397_v9 }
  0x14   :  { %358 = vmatprep.subr.bf16.mxu0 %v398_v11 }
  0x17   :  { %359 = vmatpush3.bf16.msra.mxu0 %v399_v12 }
  0x18   :  { %360 = vmatprep.subr.bf16.mxu0 %v400_v13 }
  0x1b   :  { %361 = vmatpush3.bf16.msra.mxu0 %v401_v18 }
  0x1c   :  { %362 = vmatprep.subr.bf16.mxu0 %v402_v19 }
  0x1f   :  { %363 = vmatpush3.bf16.msra.mxu0 %v404_v20 }
  0x22   :  { %244 = vmatmul.mubr.bf16.vlgmr.msra.gmra.mrb[0].mxu0 %v405_v21 }
  0x23   :  { %251 = vmatprep.mubr.bf16.mxu0 %v411_v22 }
  0x2a   :  { %252 = vmatmul.mubr.bf16.gmra.mrb[4].mxu0 %v413_v23 }
  0xe1   :  { %v386_v24 = vpop.f32.mrb[0].mxu1 }
  0xe2   :  { %v294_v25 = vpop.f32.mrb[1].mxu1 }
  0xe3   :  { %v387_v26 = vpop.f32.mrb[2].mxu1 }
  0xe4   :  { %v297_v27 = vpop.f32.mrb[3].mxu1 }
  0xf5   :  { %v364_v28 = vpop.f32.mrb[0].mxu0 }
  0xf6   :  { %v365_v29 = vpop.f32.mrb[1].mxu0 }
  0xf7   :  { %v366_v31 = vadd.f32 %v365_v29, %v364_v28  ;;  %v367_v32 = vpop.f32.mrb[2].mxu0 }
  0xf8   :  { %v368_v33 = vpop.f32.mrb[3].mxu0 }
  0xf9   :  { %v369_v34 = vadd.f32 %v368_v33, %v367_v32  ;;  %v246_v35 = vadd.f32 %v366_v31, %v321_v30 }
  0xfb   :  { %v295_v36 = vadd.f32 %v294_v25, %v246_v35  ;;  %v249_v37 = vadd.f32 %v369_v34, %v321_v30 }
  0xfd   :  { %v309_v38 = vmax.f32 %v295_v36, 0.0  ;;  %v298_v39 = vadd.f32 %v297_v27, %v249_v37  ;;  %v370_v40 = vpop.f32.mrb[4].mxu0 }
  0xfe   :  { %v371_v41 = vpop.f32.mrb[5].mxu0 }
  0xff   :  { %313 = vst [vmem:[%s524_s3] sm:$0xff] %v309_v38  ;;  %v310_v42 = vmax.f32 %v298_v39, 0.0  ;;  %v372_v43 = vadd.f32 %v371_v41, %v370_v40  ;;  %v373_v44 = vpop.f32.mrb[6].mxu0 }
 0x100   :  { %v374_v45 = vpop.f32.mrb[7].mxu0 }
 0x101   :  { %314 = vst [vmem:[%s524_s3 + $0x8] sm:$0xff] %v310_v42  ;;  %v254_v46 = vadd.f32 %v372_v43, %v321_v30  ;;  %v375_v47 = vadd.f32 %v374_v45, %v373_v44 }
 0x103   :  { %v303_v48 = vadd.f32 %v386_v24, %v254_v46  ;;  %v257_v49 = vadd.f32 %v375_v47, %v321_v30 }
 0x105   :  { %v311_v50 = vmax.f32 %v303_v48, 0.0  ;;  %v306_v51 = vadd.f32 %v387_v26, %v257_v49 }
 0x107   :  { %315 = vst [vmem:[%s524_s3 + $0x10] sm:$0xff] %v311_v50  ;;  %v312_v52 = vmax.f32 %v306_v51, 0.0 }
 0x109   :  { %316 = vst [vmem:[%s524_s3 + $0x18] sm:$0xff] %v312_v52 }

// kernel: multimoding2017_forward.21
= control target key start
LH: loop header
LB: loop body
LE: loop exit
PB: predicated region body
PF: predicated region fallthrough
CT: control target
= control target key end

     0   :  { %v504_v5 = vmov 0.0|0.0   ;;  %vm505_vm0 = vmmov 0   ;;  %v506_v13 = vmov 0.0   ;;  %vm38_vm1 = vcmask 1040384   ;;  %s804_s0 = inlined_call_operand.vmem [shape: f32[2,9,256], index: 0, kind: input, shape index: {}]   ;;  %s805_s1 = inlined_call_operand.vmem [shape: f32[2,4,128], index: 1, kind: input, shape index: {}]   ;;  %s806_s2 = inlined_call_operand.vmem [shape: f32[2,4,128], index: 2, kind: input, shape index: {}]   ;;  %s807_s3 = inlined_call_operand.vmem [shape: f32[2,4,128], index: 3, kind: input, shape index: {}]   ;;  %s808_s4 = inlined_call_operand.vmem [shape: f32[2,4,128], index: 4, kind: input, shape index: {}]   ;;  %s809_s5 = inlined_call_operand.vmem [shape: f32[256,128], index: 5, kind: input, shape index: {}]   ;;  %s810_s6 = inlined_call_operand.vmem [shape: f32[128,128], index: 6, kind: input, shape index: {}]   ;;  %s811_s7 = inlined_call_operand.vmem [shape: f32[1,128], index: 7, kind: input, shape index: {}]   ;;  %s812_s8 = inlined_call_operand.hbm [shape: f32[2,128], index: 8, kind: output, shape index: {}]  }
   0x1   :  { %v124_v0 = vld [vmem:[%s809_s5 + $0x80] sm:$0xff]  ;;  %v125_v1 = vld [vmem:[%s809_s5 + $0x88] sm:$0xff]  ;;  %420 = vmatprep.subr.bf16.mxu0 %v504_v5  ;;  %v126_v10 = vld [vmem:[%s809_s5 + $0x90] sm:$0xff]  ;;  %417 = vmatprep.mubr.msk.f32.mxu0 %vm505_vm0, %v506_v13  ;;  %vm90_vm2 = vcmask 1043456  }
   0x2   :  { %v108_v2 = vld [vmem:[%s809_s5] sm:$0xff]  ;;  %v444_v3 = vpack.c.bf16 %v125_v1, %v124_v0  ;;  %v109_v4 = vld [vmem:[%s809_s5 + $0x8] sm:$0xff]  ;;  %v127_v11 = vld [vmem:[%s809_s5 + $0x98] sm:$0xff] }
   0x3   :  { %v140_v6 = vld [vmem:[%s810_s6] sm:$0xff]  ;;  %v141_v7 = vld [vmem:[%s810_s6 + $0x8] sm:$0xff]  ;;  %v446_v8 = vpack.c.bf16 %v109_v4, %v108_v2  ;;  %v110_v12 = vld [vmem:[%s809_s5 + $0x10] sm:$0xff]  ;;  %v448_v14 = vpack.c.bf16 %v127_v11, %v126_v10 }
   0x4   :  { %v421_v9 = vpack.c.bf16 %v141_v7, %v140_v6  ;;  %445 = vmatprep.subr.bf16.mxu1 %v444_v3  ;;  %v111_v15 = vld [vmem:[%s809_s5 + $0x18] sm:$0xff]  ;;  %v142_v16 = vld [vmem:[%s810_s6 + $0x10] sm:$0xff]  ;;  %v128_v20 = vld [vmem:[%s809_s5 + $0xa0] sm:$0xff] }
   0x5   :  { %v143_v17 = vld [vmem:[%s810_s6 + $0x18] sm:$0xff]  ;;  %447 = vmatpush3.bf16.msra.mxu1 %v446_v8  ;;  %v450_v18 = vpack.c.bf16 %v111_v15, %v110_v12  ;;  %v129_v21 = vld [vmem:[%s809_s5 + $0xa8] sm:$0xff]  ;;  %v112_v22 = vld [vmem:[%s809_s5 + $0x20] sm:$0xff] }
   0x6   :  { %422 = vmatpush3.bf16.msra.mxu0 %v421_v9  ;;  %v424_v19 = vpack.c.bf16 %v143_v17, %v142_v16  ;;  %449 = vmatprep.subr.bf16.mxu1 %v448_v14  ;;  %v452_v23 = vpack.c.bf16 %v129_v21, %v128_v20  ;;  %v113_v24 = vld [vmem:[%s809_s5 + $0x28] sm:$0xff]  ;;  %v144_v25 = vld [vmem:[%s810_s6 + $0x20] sm:$0xff]  ;;  %v130_v27 = vld [vmem:[%s809_s5 + $0xb0] sm:$0xff] }
   0x7   :  { %423 = vmatprep.subr.bf16.mxu0 %v504_v5  ;;  %v145_v26 = vld [vmem:[%s810_s6 + $0x28] sm:$0xff]  ;;  %v131_v28 = vld [vmem:[%s809_s5 + $0xb8] sm:$0xff]  ;;  %v454_v29 = vpack.c.bf16 %v113_v24, %v112_v22  ;;  %v114_v31 = vld [vmem:[%s809_s5 + $0x30] sm:$0xff] }
   0x8   :  { %v427_v30 = vpack.c.bf16 %v145_v26, %v144_v25  ;;  %v456_v32 = vpack.c.bf16 %v131_v28, %v130_v27  ;;  %v115_v33 = vld [vmem:[%s809_s5 + $0x38] sm:$0xff]  ;;  %v146_v34 = vld [vmem:[%s810_s6 + $0x30] sm:$0xff]  ;;  %v132_v36 = vld [vmem:[%s809_s5 + $0xc0] sm:$0xff] }
   0x9   :  { %451 = vmatpush3.bf16.msra.mxu1 %v450_v18  ;;  %v147_v35 = vld [vmem:[%s810_s6 + $0x38] sm:$0xff]  ;;  %v133_v37 = vld [vmem:[%s809_s5 + $0xc8] sm:$0xff]  ;;  %v458_v38 = vpack.c.bf16 %v115_v33, %v114_v31  ;;  %v116_v40 = vld [vmem:[%s809_s5 + $0x40] sm:$0xff] }
   0xa   :  { %425 = vmatpush3.bf16.msra.mxu0 %v424_v19  ;;  %453 = vmatprep.subr.bf16.mxu1 %v452_v23  ;;  %v430_v39 = vpack.c.bf16 %v147_v35, %v146_v34  ;;  %v117_v41 = vld [vmem:[%s809_s5 + $0x48] sm:$0xff]  ;;  %v460_v42 = vpack.c.bf16 %v133_v37, %v132_v36  ;;  %v148_v43 = vld [vmem:[%s810_s6 + $0x40] sm:$0xff]  ;;  %v134_v45 = vld [vmem:[%s809_s5 + $0xd0] sm:$0xff] }
   0xb   :  { %426 = vmatprep.subr.bf16.mxu0 %v504_v5  ;;  %v149_v44 = vld [vmem:[%s810_s6 + $0x48] sm:$0xff]  ;;  %v135_v46 = vld [vmem:[%s809_s5 + $0xd8] sm:$0xff]  ;;  %v656_v47 = vld [vmem:[%s809_s5 + $0x50] sm:$0xff]  ;;  %v462_v53 = vpack.c.bf16 %v117_v41, %v116_v40 }
   0xc   :  { %v661_v48 = vld [vmem:[%s809_s5 + $0x58] sm:$0xff]  ;;  %v666_v49 = vld [vmem:[%s810_s6 + $0x50] sm:$0xff]  ;;  %v676_v51 = vld [vmem:[%s809_s5 + $0xe0] sm:$0xff]  ;;  %v433_v54 = vpack.c.bf16 %v149_v44, %v148_v43  ;;  %v464_v58 = vpack.c.bf16 %v135_v46, %v134_v45 }
   0xd   :  { %455 = vmatpush3.bf16.msra.mxu1 %v454_v29  ;;  %v671_v50 = vld [vmem:[%s810_s6 + $0x58] sm:$0xff]  ;;  %v681_v52 = vld [vmem:[%s809_s5 + $0xe8] sm:$0xff]  ;;  %v696_v59 = vld [vmem:[%s809_s5 + $0x60] sm:$0xff]  ;;  %v466_v7 = vpack.c.bf16 %v661_v48, %v656_v47 }
   0xe   :  { %428 = vmatpush3.bf16.msra.mxu0 %v427_v30  ;;  %457 = vmatprep.subr.bf16.mxu1 %v456_v32  ;;  %v31_v55 = vld [vmem:[%s804_s0 + $0x8] sm:$0xff]  ;;  %v33_v56 = vld [vmem:[%s804_s0 + $0x18] sm:$0x1]  ;;  %v30_v62 = vld [vmem:[%s804_s0] sm:$0xff]  ;;  %v436_v16 = vpack.c.bf16 %v671_v50, %v666_v49  ;;  %v468_v17 = vpack.c.bf16 %v681_v52, %v676_v51 }
   0xf   :  { %429 = vmatprep.subr.bf16.mxu0 %v504_v5  ;;  %v35_v57 = vld [vmem:[%s804_s0 + $0x28] sm:$0xff]  ;;  %v37_v60 = vld [vmem:[%s804_s0 + $0x38] sm:$0x1]  ;;  %v47_v61 = vsel %vm38_vm1, %v33_v56, 0.0  ;;  %v32_v63 = vld [vmem:[%s804_s0 + $0x10] sm:$0x1] }
  0x10   :  { %v711_v0 = vld [vmem:[%s809_s5 + $0x68] sm:$0xff]  ;;  %v48_v1 = vadd.f32 %v47_v61, %v31_v55  ;;  %v63_v2 = vsel %vm38_vm1, %v37_v60, 0.0  ;;  %v34_v3 = vld [vmem:[%s804_s0 + $0x20] sm:$0xff]  ;;  %v36_v4 = vld [vmem:[%s804_s0 + $0x30] sm:$0x1]  ;;  %v39_v6 = vsel %vm38_vm1, %v32_v63, 0.0 }
  0x11   :  { %459 = vmatpush3.bf16.msra.mxu1 %v458_v38  ;;  %v152_v8 = vld [vmem:[%s810_s6 + $0x60] sm:$0xff]  ;;  %v153_v9 = vld [vmem:[%s810_s6 + $0x68] sm:$0xff]  ;;  %v732_v10 = vld [vmem:[%s809_s5 + $0xf0] sm:$0xff]  ;;  %v64_v11 = vadd.f32 %v63_v2, %v35_v57  ;;  %v40_v12 = vadd.f32 %v39_v6, %v30_v62  ;;  %v55_v13 = vsel %vm38_vm1, %v36_v4, 0.0  ;;  %v470_v30 = vpack.c.bf16 %v711_v0, %v696_v59 }
  0x12   :  { %431 = vmatpush3.bf16.msra.mxu0 %v430_v39  ;;  %461 = vmatprep.subr.bf16.mxu1 %v460_v42  ;;  %v76_v14 = vld [vmem:[%s805_s1] sm:$0xf]  ;;  %v77_v15 = vld [vmem:[%s805_s1 + $0x4] sm:$0xf]  ;;  %v139_v18 = vld [vmem:[%s809_s5 + $0xf8] sm:$0xff]  ;;  %v49_v19 = vrot.slane %v48_v1, 4  ;;  %v56_v20 = vadd.f32 %v55_v13, %v34_v3 }
  0x13   :  { %432 = vmatprep.subr.bf16.mxu0 %v504_v5  ;;  %v78_v21 = vld [vmem:[%s806_s2] sm:$0xf]  ;;  %v79_v22 = vld [vmem:[%s806_s2 + $0x4] sm:$0xf]  ;;  %v122_v23 = vld [vmem:[%s809_s5 + $0x70] sm:$0xff]  ;;  %v65_v24 = vrot.slane %v64_v11, 4 }
  0x14   :  { %v41_v25 = vrot.slane %v40_v12, 4  ;;  %v80_v26 = vmax.f32 %v76_v14, %v78_v21  ;;  %v81_v27 = vmax.f32 %v77_v15, %v79_v22  ;;  %v82_v28 = vld [vmem:[%s807_s3] sm:$0xf]  ;;  %v83_v29 = vld [vmem:[%s807_s3 + $0x4] sm:$0xf]  ;;  %v123_v31 = vld [vmem:[%s809_s5 + $0x78] sm:$0xff]  ;;  %v50_v32 = vadd.f32 %v49_v19, %v48_v1 }
  0x15   :  { %463 = vmatpush3.bf16.msra.mxu1 %v462_v53  ;;  %v57_v33 = vrot.slane %v56_v20, 4  ;;  %v84_v34 = vld [vmem:[%s808_s4] sm:$0xf]  ;;  %v85_v35 = vld [vmem:[%s808_s4 + $0x4] sm:$0xf]  ;;  %v154_v36 = vld [vmem:[%s810_s6 + $0x70] sm:$0xff]  ;;  %v66_v38 = vadd.f32 %v65_v24, %v64_v11 }
  0x16   :  { %434 = vmatpush3.bf16.msra.mxu0 %v433_v54  ;;  %465 = vmatprep.subr.bf16.mxu1 %v464_v58  ;;  %v155_v37 = vld [vmem:[%s810_s6 + $0x78] sm:$0xff]  ;;  %v42_v39 = vadd.f32 %v41_v25, %v40_v12  ;;  %v86_v40 = vmax.f32 %v82_v28, %v84_v34  ;;  %v87_v41 = vmax.f32 %v83_v29, %v85_v35 }
  0x17   :  { %435 = vmatprep.subr.bf16.mxu0 %v504_v5 }
  0x18   :  { %13 = vsyncpa [#allocation3], 0  ;;  %v439_v42 = vpack.c.bf16 %v153_v9, %v152_v8  ;;  %v472_v43 = vpack.c.bf16 %v139_v18, %v732_v10  ;;  %v51_v44 = vrot.slane %v50_v32, 2  ;;  %v58_v45 = vadd.f32 %v57_v33, %v56_v20  ;;  %v332_v28 = vld [vmem:[%s811_s7] ss:$0 sm:$0xff]  ;;  %s507_s6 = smov [#allocation2]  }
  0x19   :  { %467 = vmatpush3.bf16.msra.mxu1 %v466_v7  ;;  %v67_v46 = vrot.slane %v66_v38, 2  ;;  %v43_v47 = vrot.slane %v42_v39, 2  ;;  %v88_v48 = vmax.f32 %v80_v26, %v86_v40  ;;  %v89_v49 = vmax.f32 %v81_v27, %v87_v41  ;;  %s324_s0 = sshll.u32 %s507_s6, 4  ;;  %s325_s0 = int_to_ptr.vmem [resolvable:$true] %s324_s0 }
  0x1a   :  { %437 = vmatpush3.bf16.msra.mxu0 %v436_v16  ;;  %469 = vmatprep.subr.bf16.mxu1 %v468_v17  ;;  %v474_v50 = vpack.c.bf16 %v123_v31, %v122_v23  ;;  %v442_v51 = vpack.c.bf16 %v155_v37, %v154_v36  ;;  %v52_v52 = vadd.f32 %v51_v44, %v50_v32  ;;  %v59_v53 = vrot.slane %v58_v45, 2  ;;  %s480_s19 = scalar_lea.vmem %s325_s0, 32  ;;  %p485_p1 = scmp.lt.s32.totalorder %s325_s0, %s325_s0 }
  0x1b   :  { %438 = vmatprep.subr.bf16.mxu0 %v504_v5  ;;  %v68_v54 = vadd.f32 %v67_v46, %v66_v38  ;;  %v44_v55 = vadd.f32 %v43_v47, %v42_v39  ;;  %v91_v56 = vsel %vm90_vm2, %v88_v48, 0.0  ;;  %v98_v57 = vsel %vm90_vm2, %v89_v49, 0.0  ;;  %p481_p0 = scmp.ne.s32.totalorder %s325_s0, %s480_s19  ;;  %p486_p2 = scmp.lt.s32.totalorder %s480_s19, %s480_s19 }
  0x1c   :  { %v53_v58 = vrot.slane %v52_v52, 1  ;;  %v60_v59 = vadd.f32 %v59_v53, %v58_v45  ;;  %v92_v60 = vrot.slane %v91_v56, 4  ;;  %v99_v61 = vrot.slane %v98_v57, 4 }
  0x1d   :  { %471 = vmatpush3.bf16.msra.mxu1 %v470_v30  ;;  %v69_v62 = vrot.slane %v68_v54, 1  ;;  %v45_v63 = vrot.slane %v44_v55, 1  ;;  %vm158_vm3 = vcmask 1041409   ;;  %p487_p3 = por %p486_p2, %p485_p1 }
  0x1e   :  { %440 = vmatpush3.bf16.msra.mxu0 %v439_v42  ;;  %473 = vmatprep.subr.bf16.mxu1 %v472_v43  ;;  %v54_v0 = vadd.f32 %v53_v58, %v52_v52  ;;  %v61_v1 = vrot.slane %v60_v59, 1  ;;  %v93_v2 = vadd.f32 %v92_v60, %v91_v56  ;;  %v100_v3 = vadd.f32 %v99_v61, %v98_v57 }
  0x1f   :  { %441 = vmatprep.subr.bf16.mxu0 %v504_v5  ;;  %v70_v4 = vadd.f32 %v69_v62, %v68_v54  ;;  %v46_v6 = vadd.f32 %v45_v63, %v44_v55  ;;  %p488_p4 = pnand %p487_p3, %p481_p0 }
  0x20   :  { %v73_v7 = vmul.f32 0.11111111, %v54_v0  ;;  %v62_v8 = vadd.f32 %v61_v1, %v60_v59  ;;  %v94_v9 = vrot.slane %v93_v2, 2  ;;  %v101_v10 = vrot.slane %v100_v3, 2 }
  0x21   :  { %475 = vmatpush3.bf16.msra.mxu1 %v474_v50  ;;  %v75_v11 = vmul.f32 0.11111111, %v70_v4  ;;  %v72_v12 = vmul.f32 0.11111111, %v46_v6 }
  0x22   :  { %443 = vmatpush3.bf16.msra.mxu0 %v442_v51  ;;  %v74_v13 = vmul.f32 0.11111111, %v62_v8  ;;  %v95_v14 = vadd.f32 %v94_v9, %v93_v2  ;;  %v102_v5 = vadd.f32 %v101_v10, %v100_v3 }
  0x23   :  { %v236_v15 = vsel %vm158_vm3, %v75_v11, %v73_v7 }
  0x24   :  { %303 = vmatprep.mubr.f32.mxu1 %v236_v15  ;;  %v235_v16 = vsel %vm158_vm3, %v74_v13, %v72_v12  ;;  %v96_v17 = vrot.slane %v95_v14, 1  ;;  %v103_v18 = vrot.slane %v102_v5, 1 }
  0x25   :  { %304 = vmatmul.mubr.f32.vlgmr.msra.gmra.mrb[0].mxu1 %v235_v16 }
  0x26   :  { %v97_v19 = vadd.f32 %v96_v17, %v95_v14  ;;  %v104_v20 = vadd.f32 %v103_v18, %v102_v5 }
  0x28   :  { %v106_v21 = vmul.f32 0.25, %v97_v19  ;;  %v107_v22 = vmul.f32 0.25, %v104_v20 }
  0x2a   :  { %v159_v23 = vsel %vm158_vm3, %v107_v22, %v106_v21 }
  0x2b   :  { %418 = vmatmul.mubr.f32.vlgmr.msra.gmra.mrb[0].mxu0 %v159_v23 }
  0xf8   :  { %v382_v24 = vpop.f32.mrb[0].mxu1 }
  0xf9   :  { %v383_v25 = vpop.f32.mrb[1].mxu1 }
  0xfa   :  { %v384_v26 = vadd.f32 %v383_v25, %v382_v24 }
  0xfe   :  { %v227_v27 = vpop.f32.mrb[0].mxu0 }
  0xff   :  { %v306_v29 = vadd.f32 %v384_v26, %v227_v27  ;;  %v419_v30 = vpop.f32.mrb[1].mxu0 }
 0x101   :  { %v316_v31 = vadd.f32 %v332_v28, %v306_v29 }
 0x103   :  { %317 = vst [vmem:[#allocation2] sm:$0x3] %v316_v31 }
 0x104   :  { %491 = shalt.err (!%p488_p4)
}
 0x105   :  { %s492_s22 = scalar_lea.hbm %s812_s8, 32 }
 0x106   :  { %p493_p5 = scmp.ne.s32.totalorder %s812_s8, %s492_s22  ;;  %p496_p6 = scmp.lt.u32.totalorder %s492_s22, %s812_s8 }
 0x108   :  { %p498_p7 = pnand %p496_p6, %p493_p5 }
 0x10a   :  { %501 = shalt.err (!%p498_p7)
}
 0x10b   :  { %327 = dma.vmem_to_hbm [thread:$0]  %s325_s0, 32, %s812_s8, [#allocation3]  }
 0x10c   :  { %502 = dma.done.wait [#allocation3], 32  }
 0x10d   :  { %503 = vsyncadd [#allocation3], 4294967264 }
 0x10e   :  { %331 = vsyncpa [#allocation3], 1 }

</bundles_post_ra>
